<compile_context>
chip_gen: v7x
topology: tpu7x:2x2x1
jax: 0.10.0
libtpu: 0.0.40
codegen_flags: <defaults>
</compile_context>

<pallas_src>
import math

import jax
import jax.numpy as jnp
from jax.experimental import pallas as pl
from jax.experimental.pallas import tpu as pltpu

_BN_EPS = 1e-5
_LANE = 128
_SUBLANE = 8
_TILE_M = 512  # M tile for large layers (multiple of 128, VMEM friendly)


def _round_up(x, m):
    return (x + m - 1) // m * m


def _choose_tile_m(m):
    if m >= _TILE_M:
        return _TILE_M
    return _round_up(m, _SUBLANE)


# --------------------------------------------------------------------------- #
# Pallas kernels
# --------------------------------------------------------------------------- #
def conv_stats_kernel(p_ref, w_ref, y_ref, stats_ref):
    """Folded-K 3x3 conv matmul + per-tile BN partial sums.

    grid = (M tiles,), all tiles independent ("parallel").
      p_ref    : (tile_m, K)    bf16  im2col patches, K = 9*Cin (zero padded)
      w_ref    : (K, Cout)      bf16  folded conv weights
      y_ref    : (tile_m, Cout) bf16  raw conv output (pre-BN)
      stats_ref: (1, 2, Cout)   f32   [sum(y), sum(y*y)] for this tile
    """
    acc = jnp.dot(p_ref[...], w_ref[...], preferred_element_type=jnp.float32)
    y_ref[...] = acc.astype(y_ref.dtype)
    s = jnp.sum(acc, axis=0, keepdims=True)
    ss = jnp.sum(acc * acc, axis=0, keepdims=True)
    stats_ref[...] = jnp.concatenate([s, ss], axis=0)[None]


def bn_relu_kernel(y_ref, scale_ref, shift_ref, o_ref):
    """y * scale + shift, ReLU.  y (tile_m, C) bf16; scale/shift (1, C) f32."""
    z = y_ref[...].astype(jnp.float32) * scale_ref[...] + shift_ref[...]
    o_ref[...] = jnp.maximum(z, 0.0).astype(o_ref.dtype)


def bn_relu_pool_kernel(y4_ref, scale_ref, shift_ref, o_ref):
    """Fused BN + ReLU + 2x2 max pool over 4 pre-gathered window offsets.

    y4_ref (4, tile_m2, C) bf16 ; scale/shift (1, C) f32 ; o_ref (tile_m2, C).
    (ReLU commutes with max; the affine is applied per-offset since gamma may
     be negative.)
    """
    z = y4_ref[...].astype(jnp.float32) * scale_ref[...][None] + shift_ref[...][None]
    z = jnp.maximum(z, 0.0)
    o_ref[...] = jnp.max(z, axis=0).astype(o_ref.dtype)


# --------------------------------------------------------------------------- #
# JAX wrappers (layout glue: padding, im2col fold, BN scale/shift reduction)
# --------------------------------------------------------------------------- #
def _im2col_folded(x_nhwc, pad):
    """(N,H,W,C) -> (N*Ho*Wo, 9*C): taps folded into K (tap-major, ch-minor)."""
    n, _, _, c = x_nhwc.shape
    if pad:
        x_nhwc = jnp.pad(x_nhwc, ((0, 0), (pad, pad), (pad, pad), (0, 0)))
    hp, wp = x_nhwc.shape[1], x_nhwc.shape[2]
    ho, wo = hp - 2, wp - 2
    taps = [x_nhwc[:, dy:dy + ho, dx:dx + wo, :] for dy in range(3) for dx in range(3)]
    patches = jnp.concatenate(taps, axis=-1).reshape(n * ho * wo, 9 * c)
    return patches, ho, wo


def conv_bn_relu_block(x_nhwc, w, conv_b, gamma, beta, *, pad, pool,
                       out_dtype=jnp.bfloat16):
    """Conv2d(3x3, stride 1) + BatchNorm2d(train) + ReLU [+ MaxPool2d(2)]."""
    # conv bias is a no-op under training-mode BN (absorbed into the batch
    # mean and cancels exactly) -> not used.
    del conv_b

    n = x_nhwc.shape[0]
    cin_arr = x_nhwc.shape[-1]          # may exceed w's Cin (lane padding)
    cout, cin = w.shape[0], w.shape[1]
    cout_pad = _round_up(cout, _LANE)   # lane-dense output (conv1: 64 -> 128)

    # ---- im2col with taps folded into K, bf16, padded to tile boundaries ----
    patches, ho, wo = _im2col_folded(x_nhwc, pad)        # (M, 9*cin_arr)
    m = n * ho * wo
    k = 9 * cin_arr
    k_pad = _round_up(k, _LANE)
    tile_m = _choose_tile_m(m)
    m_pad = _round_up(m, tile_m)
    grid_m = m_pad // tile_m

    patches = jnp.pad(patches, ((0, m_pad - m), (0, k_pad - k))).astype(jnp.bfloat16)

    # PyTorch weight (Cout, Cin, 3, 3) -> folded (k_pad, cout_pad), bf16.
    # Extra input channels (cin_arr > cin) and extra output channels get zeros.
    w_p = jnp.pad(w, ((0, cout_pad - cout), (0, cin_arr - cin), (0, 0), (0, 0)))
    wt = jnp.transpose(w_p, (2, 3, 1, 0)).reshape(k, cout_pad)
    wt = jnp.pad(wt, ((0, k_pad - k), (0, 0))).astype(jnp.bfloat16)

    # ---- pass 1: conv matmul (bf16 -> f32 acc) + per-tile BN partial sums ----
    y, stats = pl.pallas_call(
        conv_stats_kernel,
        out_shape=(
            jax.ShapeDtypeStruct((m_pad, cout_pad), jnp.bfloat16),
            jax.ShapeDtypeStruct((grid_m, 2, cout_pad), jnp.float32),
        ),
        grid_spec=pltpu.PrefetchScalarGridSpec(
            num_scalar_prefetch=0,
            grid=(grid_m,),
            in_specs=[
                pl.BlockSpec((tile_m, k_pad), lambda i: (i, 0)),
                pl.BlockSpec((k_pad, cout_pad), lambda i: (0, 0)),
            ],
            out_specs=[
                pl.BlockSpec((tile_m, cout_pad), lambda i: (i, 0)),
                pl.BlockSpec((1, 2, cout_pad), lambda i: (i, 0, 0)),
            ],
        ),
        compiler_params=pltpu.CompilerParams(dimension_semantics=("parallel",)),
    )(patches, wt)

    # ---- training-mode BN statistics over the FULL N*Ho*Wo extent ----
    # (padded rows are all-zero patches -> contribute 0 to both sums; divide
    #  by the real M; biased variance; eps = 1e-5)
    s = jnp.sum(stats, axis=0)                         # (2, cout_pad)
    mean = s[0] / m
    var = jnp.maximum(s[1] / m - mean * mean, 0.0)
    inv = jax.lax.rsqrt(var + _BN_EPS)
    gamma_p = jnp.pad(gamma, (0, cout_pad - cout))
    beta_p = jnp.pad(beta, (0, cout_pad - cout))
    scale = (gamma_p * inv).reshape(1, cout_pad).astype(jnp.float32)
    shift = (beta_p - mean * gamma_p * inv).reshape(1, cout_pad).astype(jnp.float32)

    if not pool:
        out = pl.pallas_call(
            bn_relu_kernel,
            out_shape=jax.ShapeDtypeStruct((m_pad, cout_pad), out_dtype),
            grid_spec=pltpu.PrefetchScalarGridSpec(
                num_scalar_prefetch=0,
                grid=(grid_m,),
                in_specs=[
                    pl.BlockSpec((tile_m, cout_pad), lambda i: (i, 0)),
                    pl.BlockSpec((1, cout_pad), lambda i: (0, 0)),
                    pl.BlockSpec((1, cout_pad), lambda i: (0, 0)),
                ],
                out_specs=pl.BlockSpec((tile_m, cout_pad), lambda i: (i, 0)),
            ),
            compiler_params=pltpu.CompilerParams(dimension_semantics=("parallel",)),
        )(y, scale, shift)
        return out[:m].reshape(n, ho, wo, cout_pad)

    # ---- pool path: fused BN + ReLU + 2x2 max pool ----
    h2, w2 = ho // 2, wo // 2
    m2 = n * h2 * w2
    yv = y[:m].reshape(n, ho, wo, cout_pad)
    offs = jnp.stack(
        [yv[:, dy:2 * h2:2, dx:2 * w2:2, :].reshape(m2, cout_pad)
         for dy in range(2) for dx in range(2)],
        axis=0,
    )                                                  # (4, m2, cout_pad) bf16
    tile_m2 = _choose_tile_m(m2)
    m2_pad = _round_up(m2, tile_m2)
    grid2 = m2_pad // tile_m2
    offs = jnp.pad(offs, ((0, 0), (0, m2_pad - m2), (0, 0)))

    out = pl.pallas_call(
        bn_relu_pool_kernel,
        out_shape=jax.ShapeDtypeStruct((m2_pad, cout_pad), out_dtype),
        grid_spec=pltpu.PrefetchScalarGridSpec(
            num_scalar_prefetch=0,
            grid=(grid2,),
            in_specs=[
                pl.BlockSpec((4, tile_m2, cout_pad), lambda i: (0, i, 0)),
                pl.BlockSpec((1, cout_pad), lambda i: (0, 0)),
                pl.BlockSpec((1, cout_pad), lambda i: (0, 0)),
            ],
            out_specs=pl.BlockSpec((tile_m2, cout_pad), lambda i: (i, 0)),
        ),
        compiler_params=pltpu.CompilerParams(dimension_semantics=("parallel",)),
    )(offs, scale, shift)
    return out[:m2].reshape(n, h2, w2, cout_pad)


def usps_feature_extractor(x_nchw, params):
    """Forward pass of USPS_FeatureExtractor. Input NCHW (like PyTorch)."""
    x = jnp.transpose(x_nchw, (0, 2, 3, 1)).astype(jnp.float32)  # -> NHWC

    x = conv_bn_relu_block(x, *params["conv1"], pad=1, pool=True)
    x = conv_bn_relu_block(x, *params["conv2"], pad=1, pool=True)
    x = conv_bn_relu_block(x, *params["conv3"], pad=0, pool=False)
    x = conv_bn_relu_block(x, *params["conv4"], pad=0, pool=False)
    x = conv_bn_relu_block(x, *params["conv5"], pad=0, pool=False,
                           out_dtype=jnp.float32)

    # x5 is (N, 1, 1, 512) (512 is already lane-dense, no channel padding);
    # flatten -> (N, 512), identical values to PyTorch's NCHW flatten(1).
    n = x.shape[0]
    return x.reshape(n, -1)


def init_params(key):
    """Deterministic synthetic parameters (shapes from the module's __init__)."""
    dims = [(1, 64), (64, 128), (128, 256), (256, 256), (256, 512)]
    params = {}
    for i, (cin, cout) in enumerate(dims, start=1):
        key, k1, k2, k3, k4 = jax.random.split(key, 5)
        fan_in = cin * 9
        w = jax.random.normal(k1, (cout, cin, 3, 3), jnp.float32) / math.sqrt(fan_in)
        b = 0.01 * jax.random.normal(k2, (cout,), jnp.float32)
        gamma = 1.0 + 0.1 * jax.random.normal(k3, (cout,), jnp.float32)
        beta = 0.1 * jax.random.normal(k4, (cout,), jnp.float32)
        params[f"conv{i}"] = (w, b, gamma, beta)
    return params


if __name__ == "__main__":
    key = jax.random.PRNGKey(0)
    pkey, xkey = jax.random.split(key)
    params = init_params(pkey)

    # USPS images resized to 28x28 in the homework; anything smaller than 28
    # would make conv4/conv5 (3x3, pad=0) produce an empty spatial output.
    x = jax.random.normal(xkey, (2, 1, 28, 28), jnp.float32)

    feats = jax.jit(usps_feature_extractor)(x, params)
    feats = jax.block_until_ready(feats)
    assert feats.shape == (2, 512), feats.shape
    assert bool(jnp.all(jnp.isfinite(feats)))
    print("KERNEL_OK")
</pallas_src>

<mosaic_0001>
module attributes {stable_mosaic.version = 11 : i64} {
  func.func @conv_stats_kernel(%arg0: i32, %arg1: memref<512x128xbf16, #tpu.memory_space<vmem>>, %arg2: memref<128x128xbf16, #tpu.memory_space<vmem>>, %arg3: memref<512x128xbf16, #tpu.memory_space<vmem>>, %arg4: memref<1x2x128xf32, #tpu.memory_space<vmem>>) attributes {dimension_semantics = [#tpu.dimension_semantics<parallel>], iteration_bounds = array<i64: 4>, scalar_prefetch = 0 : i64, scratch_operands = 0 : i64, tpu.core_type = #tpu.core_type<tc>, window_params = [{transform_indices = @transform_0, window_bounds = array<i64: 512, 128>}, {pipeline_mode = #tpu.pipeline_mode<synchronous>, transform_indices = @transform_1, window_bounds = array<i64: 128, 128>}, {transform_indices = @transform_2, window_bounds = array<i64: 512, 128>}, {transform_indices = @transform_3, window_bounds = array<i64: 1, 2, 128>}]} {
    %c0 = arith.constant 0 : index
    %c0_0 = arith.constant 0 : index
    %0 = vector.load %arg1[%c0, %c0_0] : memref<512x128xbf16, #tpu.memory_space<vmem>>, vector<512x128xbf16>
    %c0_1 = arith.constant 0 : index
    %c0_2 = arith.constant 0 : index
    %1 = vector.load %arg2[%c0_1, %c0_2] : memref<128x128xbf16, #tpu.memory_space<vmem>>, vector<128x128xbf16>
    %cst = arith.constant dense<0.000000e+00> : vector<512x128xf32>
    %2 = tpu.matmul %0, %1, %cst {dimension_numbers = #tpu.dot_dimension_numbers<[1], [0], [0], [1], [0, 0, 1, 1], [], []>} : vector<512x128xbf16>, vector<128x128xbf16>, vector<512x128xf32> -> vector<512x128xf32>
    %3 = arith.truncf %2 : vector<512x128xf32> to vector<512x128xbf16>
    %c0_3 = arith.constant 0 : index
    %c0_4 = arith.constant 0 : index
    %4 = vector.load %arg3[%c0_3, %c0_4] : memref<512x128xbf16, #tpu.memory_space<vmem>>, vector<512x128xbf16>
    tpu.vector_store %arg3[%c0_3, %c0_4], %3 {strides = array<i32>} : memref<512x128xbf16, #tpu.memory_space<vmem>>, vector<512x128xbf16>,
    %cst_5 = arith.constant dense<0.000000e+00> : vector<128xf32>
    %5 = vector.multi_reduction <add>, %2, %cst_5 [0] : vector<512x128xf32> to vector<128xf32>
    %6 = vector.shape_cast %5 : vector<128xf32> to vector<1x128xf32>
    %7 = arith.mulf %2, %2 : vector<512x128xf32>
    %cst_6 = arith.constant dense<0.000000e+00> : vector<128xf32>
    %8 = vector.multi_reduction <add>, %7, %cst_6 [0] : vector<512x128xf32> to vector<128xf32>
    %9 = vector.shape_cast %8 : vector<128xf32> to vector<1x128xf32>
    %10 = tpu.concatenate %6, %9 in 0 : vector<1x128xf32>, vector<1x128xf32> -> vector<2x128xf32>
    %11 = vector.shape_cast %10 : vector<2x128xf32> to vector<1x2x128xf32>
    %c0_7 = arith.constant 0 : index
    %c0_8 = arith.constant 0 : index
    %c0_9 = arith.constant 0 : index
    %12 = vector.load %arg4[%c0_7, %c0_8, %c0_9] : memref<1x2x128xf32, #tpu.memory_space<vmem>>, vector<1x2x128xf32>
    tpu.vector_store %arg4[%c0_7, %c0_8, %c0_9], %11 {strides = array<i32>} : memref<1x2x128xf32, #tpu.memory_space<vmem>>, vector<1x2x128xf32>,
    return
  }
  func.func @transform_0(%arg0: i32) -> (i32, i32) {
    %c0_i32 = arith.constant 0 : i32
    %c0_i32_0 = arith.constant 0 : i32
    return %arg0, %c0_i32 : i32, i32
  }
  func.func @transform_1(%arg0: i32) -> (i32, i32) {
    %c0_i32 = arith.constant 0 : i32
    %c0_i32_0 = arith.constant 0 : i32
    %c0_i32_1 = arith.constant 0 : i32
    return %c0_i32, %c0_i32_0 : i32, i32
  }
  func.func @transform_2(%arg0: i32) -> (i32, i32) {
    %c0_i32 = arith.constant 0 : i32
    %c0_i32_0 = arith.constant 0 : i32
    return %arg0, %c0_i32 : i32, i32
  }
  func.func @transform_3(%arg0: i32) -> (i32, i32, i32) {
    %c0_i32 = arith.constant 0 : i32
    %c0_i32_0 = arith.constant 0 : i32
    %c0_i32_1 = arith.constant 0 : i32
    return %arg0, %c0_i32, %c0_i32_0 : i32, i32, i32
  }
}

module attributes {stable_mosaic.version = 11 : i64} {
  func.func @bn_relu_pool_kernel(%arg0: i32, %arg1: memref<4x392x128xbf16, #tpu.memory_space<vmem>>, %arg2: memref<1x128xf32, #tpu.memory_space<vmem>>, %arg3: memref<1x128xf32, #tpu.memory_space<vmem>>, %arg4: memref<392x128xbf16, #tpu.memory_space<vmem>>) attributes {dimension_semantics = [#tpu.dimension_semantics<parallel>], iteration_bounds = array<i64: 1>, scalar_prefetch = 0 : i64, scratch_operands = 0 : i64, tpu.core_type = #tpu.core_type<tc>, window_params = [{transform_indices = @transform_0, window_bounds = array<i64: 4, 392, 128>}, {pipeline_mode = #tpu.pipeline_mode<synchronous>, transform_indices = @transform_1, window_bounds = array<i64: 1, 128>}, {pipeline_mode = #tpu.pipeline_mode<synchronous>, transform_indices = @transform_2, window_bounds = array<i64: 1, 128>}, {transform_indices = @transform_3, window_bounds = array<i64: 392, 128>}]} {
    %c0 = arith.constant 0 : index
    %c0_0 = arith.constant 0 : index
    %c0_1 = arith.constant 0 : index
    %0 = vector.load %arg1[%c0, %c0_0, %c0_1] : memref<4x392x128xbf16, #tpu.memory_space<vmem>>, vector<4x392x128xbf16>
    %1 = arith.extf %0 : vector<4x392x128xbf16> to vector<4x392x128xf32>
    %c0_2 = arith.constant 0 : index
    %c0_3 = arith.constant 0 : index
    %2 = vector.load %arg2[%c0_2, %c0_3] : memref<1x128xf32, #tpu.memory_space<vmem>>, vector<1x128xf32>
    %3 = vector.shape_cast %2 : vector<1x128xf32> to vector<1x1x128xf32>
    %4 = vector.broadcast %3 : vector<1x1x128xf32> to vector<4x392x128xf32>
    %5 = arith.mulf %1, %4 : vector<4x392x128xf32>
    %c0_4 = arith.constant 0 : index
    %c0_5 = arith.constant 0 : index
    %6 = vector.load %arg3[%c0_4, %c0_5] : memref<1x128xf32, #tpu.memory_space<vmem>>, vector<1x128xf32>
    %7 = vector.shape_cast %6 : vector<1x128xf32> to vector<1x1x128xf32>
    %8 = vector.broadcast %7 : vector<1x1x128xf32> to vector<4x392x128xf32>
    %9 = arith.addf %5, %8 : vector<4x392x128xf32>
    %cst = arith.constant 0.000000e+00 : f32
    %10 = vector.broadcast %cst : f32 to vector<4x392x128xf32>
    %11 = arith.maximumf %9, %10 : vector<4x392x128xf32>
    %cst_6 = arith.constant dense<0xFF800000> : vector<392x128xf32>
    %12 = vector.multi_reduction <maximumf>, %11, %cst_6 [0] : vector<4x392x128xf32> to vector<392x128xf32>
    %13 = arith.truncf %12 : vector<392x128xf32> to vector<392x128xbf16>
    %c0_7 = arith.constant 0 : index
    %c0_8 = arith.constant 0 : index
    %14 = vector.load %arg4[%c0_7, %c0_8] : memref<392x128xbf16, #tpu.memory_space<vmem>>, vector<392x128xbf16>
    tpu.vector_store %arg4[%c0_7, %c0_8], %13 {strides = array<i32>} : memref<392x128xbf16, #tpu.memory_space<vmem>>, vector<392x128xbf16>,
    return
  }
  func.func @transform_0(%arg0: i32) -> (i32, i32, i32) {
    %c0_i32 = arith.constant 0 : i32
    %c0_i32_0 = arith.constant 0 : i32
    %c0_i32_1 = arith.constant 0 : i32
    return %c0_i32, %arg0, %c0_i32_0 : i32, i32, i32
  }
  func.func @transform_1(%arg0: i32) -> (i32, i32) {
    %c0_i32 = arith.constant 0 : i32
    %c0_i32_0 = arith.constant 0 : i32
    %c0_i32_1 = arith.constant 0 : i32
    return %c0_i32, %c0_i32_0 : i32, i32
  }
  func.func @transform_2(%arg0: i32) -> (i32, i32) {
    %c0_i32 = arith.constant 0 : i32
    %c0_i32_0 = arith.constant 0 : i32
    %c0_i32_1 = arith.constant 0 : i32
    return %c0_i32, %c0_i32_0 : i32, i32
  }
  func.func @transform_3(%arg0: i32) -> (i32, i32) {
    %c0_i32 = arith.constant 0 : i32
    %c0_i32_0 = arith.constant 0 : i32
    return %arg0, %c0_i32 : i32, i32
  }
}

module attributes {stable_mosaic.version = 11 : i64} {
  func.func @conv_stats_kernel(%arg0: i32, %arg1: memref<392x1152xbf16, #tpu.memory_space<vmem>>, %arg2: memref<1152x128xbf16, #tpu.memory_space<vmem>>, %arg3: memref<392x128xbf16, #tpu.memory_space<vmem>>, %arg4: memref<1x2x128xf32, #tpu.memory_space<vmem>>) attributes {dimension_semantics = [#tpu.dimension_semantics<parallel>], iteration_bounds = array<i64: 1>, scalar_prefetch = 0 : i64, scratch_operands = 0 : i64, tpu.core_type = #tpu.core_type<tc>, window_params = [{transform_indices = @transform_0, window_bounds = array<i64: 392, 1152>}, {pipeline_mode = #tpu.pipeline_mode<synchronous>, transform_indices = @transform_1, window_bounds = array<i64: 1152, 128>}, {transform_indices = @transform_2, window_bounds = array<i64: 392, 128>}, {transform_indices = @transform_3, window_bounds = array<i64: 1, 2, 128>}]} {
    %c0 = arith.constant 0 : index
    %c0_0 = arith.constant 0 : index
    %0 = vector.load %arg1[%c0, %c0_0] : memref<392x1152xbf16, #tpu.memory_space<vmem>>, vector<392x1152xbf16>
    %c0_1 = arith.constant 0 : index
    %c0_2 = arith.constant 0 : index
    %1 = vector.load %arg2[%c0_1, %c0_2] : memref<1152x128xbf16, #tpu.memory_space<vmem>>, vector<1152x128xbf16>
    %cst = arith.constant dense<0.000000e+00> : vector<392x128xf32>
    %2 = tpu.matmul %0, %1, %cst {dimension_numbers = #tpu.dot_dimension_numbers<[1], [0], [0], [1], [0, 0, 1, 1], [], []>} : vector<392x1152xbf16>, vector<1152x128xbf16>, vector<392x128xf32> -> vector<392x128xf32>
    %3 = arith.truncf %2 : vector<392x128xf32> to vector<392x128xbf16>
    %c0_3 = arith.constant 0 : index
    %c0_4 = arith.constant 0 : index
    %4 = vector.load %arg3[%c0_3, %c0_4] : memref<392x128xbf16, #tpu.memory_space<vmem>>, vector<392x128xbf16>
    tpu.vector_store %arg3[%c0_3, %c0_4], %3 {strides = array<i32>} : memref<392x128xbf16, #tpu.memory_space<vmem>>, vector<392x128xbf16>,
    %cst_5 = arith.constant dense<0.000000e+00> : vector<128xf32>
    %5 = vector.multi_reduction <add>, %2, %cst_5 [0] : vector<392x128xf32> to vector<128xf32>
    %6 = vector.shape_cast %5 : vector<128xf32> to vector<1x128xf32>
    %7 = arith.mulf %2, %2 : vector<392x128xf32>
    %cst_6 = arith.constant dense<0.000000e+00> : vector<128xf32>
    %8 = vector.multi_reduction <add>, %7, %cst_6 [0] : vector<392x128xf32> to vector<128xf32>
    %9 = vector.shape_cast %8 : vector<128xf32> to vector<1x128xf32>
    %10 = tpu.concatenate %6, %9 in 0 : vector<1x128xf32>, vector<1x128xf32> -> vector<2x128xf32>
    %11 = vector.shape_cast %10 : vector<2x128xf32> to vector<1x2x128xf32>
    %c0_7 = arith.constant 0 : index
    %c0_8 = arith.constant 0 : index
    %c0_9 = arith.constant 0 : index
    %12 = vector.load %arg4[%c0_7, %c0_8, %c0_9] : memref<1x2x128xf32, #tpu.memory_space<vmem>>, vector<1x2x128xf32>
    tpu.vector_store %arg4[%c0_7, %c0_8, %c0_9], %11 {strides = array<i32>} : memref<1x2x128xf32, #tpu.memory_space<vmem>>, vector<1x2x128xf32>,
    return
  }
  func.func @transform_0(%arg0: i32) -> (i32, i32) {
    %c0_i32 = arith.constant 0 : i32
    %c0_i32_0 = arith.constant 0 : i32
    return %arg0, %c0_i32 : i32, i32
  }
  func.func @transform_1(%arg0: i32) -> (i32, i32) {
    %c0_i32 = arith.constant 0 : i32
    %c0_i32_0 = arith.constant 0 : i32
    %c0_i32_1 = arith.constant 0 : i32
    return %c0_i32, %c0_i32_0 : i32, i32
  }
  func.func @transform_2(%arg0: i32) -> (i32, i32) {
    %c0_i32 = arith.constant 0 : i32
    %c0_i32_0 = arith.constant 0 : i32
    return %arg0, %c0_i32 : i32, i32
  }
  func.func @transform_3(%arg0: i32) -> (i32, i32, i32) {
    %c0_i32 = arith.constant 0 : i32
    %c0_i32_0 = arith.constant 0 : i32
    %c0_i32_1 = arith.constant 0 : i32
    return %arg0, %c0_i32, %c0_i32_0 : i32, i32, i32
  }
}

module attributes {stable_mosaic.version = 11 : i64} {
  func.func @bn_relu_pool_kernel(%arg0: i32, %arg1: memref<4x104x128xbf16, #tpu.memory_space<vmem>>, %arg2: memref<1x128xf32, #tpu.memory_space<vmem>>, %arg3: memref<1x128xf32, #tpu.memory_space<vmem>>, %arg4: memref<104x128xbf16, #tpu.memory_space<vmem>>) attributes {dimension_semantics = [#tpu.dimension_semantics<parallel>], iteration_bounds = array<i64: 1>, scalar_prefetch = 0 : i64, scratch_operands = 0 : i64, tpu.core_type = #tpu.core_type<tc>, window_params = [{transform_indices = @transform_0, window_bounds = array<i64: 4, 104, 128>}, {pipeline_mode = #tpu.pipeline_mode<synchronous>, transform_indices = @transform_1, window_bounds = array<i64: 1, 128>}, {pipeline_mode = #tpu.pipeline_mode<synchronous>, transform_indices = @transform_2, window_bounds = array<i64: 1, 128>}, {transform_indices = @transform_3, window_bounds = array<i64: 104, 128>}]} {
    %c0 = arith.constant 0 : index
    %c0_0 = arith.constant 0 : index
    %c0_1 = arith.constant 0 : index
    %0 = vector.load %arg1[%c0, %c0_0, %c0_1] : memref<4x104x128xbf16, #tpu.memory_space<vmem>>, vector<4x104x128xbf16>
    %1 = arith.extf %0 : vector<4x104x128xbf16> to vector<4x104x128xf32>
    %c0_2 = arith.constant 0 : index
    %c0_3 = arith.constant 0 : index
    %2 = vector.load %arg2[%c0_2, %c0_3] : memref<1x128xf32, #tpu.memory_space<vmem>>, vector<1x128xf32>
    %3 = vector.shape_cast %2 : vector<1x128xf32> to vector<1x1x128xf32>
    %4 = vector.broadcast %3 : vector<1x1x128xf32> to vector<4x104x128xf32>
    %5 = arith.mulf %1, %4 : vector<4x104x128xf32>
    %c0_4 = arith.constant 0 : index
    %c0_5 = arith.constant 0 : index
    %6 = vector.load %arg3[%c0_4, %c0_5] : memref<1x128xf32, #tpu.memory_space<vmem>>, vector<1x128xf32>
    %7 = vector.shape_cast %6 : vector<1x128xf32> to vector<1x1x128xf32>
    %8 = vector.broadcast %7 : vector<1x1x128xf32> to vector<4x104x128xf32>
    %9 = arith.addf %5, %8 : vector<4x104x128xf32>
    %cst = arith.constant 0.000000e+00 : f32
    %10 = vector.broadcast %cst : f32 to vector<4x104x128xf32>
    %11 = arith.maximumf %9, %10 : vector<4x104x128xf32>
    %cst_6 = arith.constant dense<0xFF800000> : vector<104x128xf32>
    %12 = vector.multi_reduction <maximumf>, %11, %cst_6 [0] : vector<4x104x128xf32> to vector<104x128xf32>
    %13 = arith.truncf %12 : vector<104x128xf32> to vector<104x128xbf16>
    %c0_7 = arith.constant 0 : index
    %c0_8 = arith.constant 0 : index
    %14 = vector.load %arg4[%c0_7, %c0_8] : memref<104x128xbf16, #tpu.memory_space<vmem>>, vector<104x128xbf16>
    tpu.vector_store %arg4[%c0_7, %c0_8], %13 {strides = array<i32>} : memref<104x128xbf16, #tpu.memory_space<vmem>>, vector<104x128xbf16>,
    return
  }
  func.func @transform_0(%arg0: i32) -> (i32, i32, i32) {
    %c0_i32 = arith.constant 0 : i32
    %c0_i32_0 = arith.constant 0 : i32
    %c0_i32_1 = arith.constant 0 : i32
    return %c0_i32, %arg0, %c0_i32_0 : i32, i32, i32
  }
  func.func @transform_1(%arg0: i32) -> (i32, i32) {
    %c0_i32 = arith.constant 0 : i32
    %c0_i32_0 = arith.constant 0 : i32
    %c0_i32_1 = arith.constant 0 : i32
    return %c0_i32, %c0_i32_0 : i32, i32
  }
  func.func @transform_2(%arg0: i32) -> (i32, i32) {
    %c0_i32 = arith.constant 0 : i32
    %c0_i32_0 = arith.constant 0 : i32
    %c0_i32_1 = arith.constant 0 : i32
    return %c0_i32, %c0_i32_0 : i32, i32
  }
  func.func @transform_3(%arg0: i32) -> (i32, i32) {
    %c0_i32 = arith.constant 0 : i32
    %c0_i32_0 = arith.constant 0 : i32
    return %arg0, %c0_i32 : i32, i32
  }
}

module attributes {stable_mosaic.version = 11 : i64} {
  func.func @bn_relu_kernel(%arg0: i32, %arg1: memref<56x256xbf16, #tpu.memory_space<vmem>>, %arg2: memref<1x256xf32, #tpu.memory_space<vmem>>, %arg3: memref<1x256xf32, #tpu.memory_space<vmem>>, %arg4: memref<56x256xbf16, #tpu.memory_space<vmem>>) attributes {dimension_semantics = [#tpu.dimension_semantics<parallel>], iteration_bounds = array<i64: 1>, scalar_prefetch = 0 : i64, scratch_operands = 0 : i64, tpu.core_type = #tpu.core_type<tc>, window_params = [{transform_indices = @transform_0, window_bounds = array<i64: 56, 256>}, {pipeline_mode = #tpu.pipeline_mode<synchronous>, transform_indices = @transform_1, window_bounds = array<i64: 1, 256>}, {pipeline_mode = #tpu.pipeline_mode<synchronous>, transform_indices = @transform_2, window_bounds = array<i64: 1, 256>}, {transform_indices = @transform_3, window_bounds = array<i64: 56, 256>}]} {
    %c0 = arith.constant 0 : index
    %c0_0 = arith.constant 0 : index
    %0 = vector.load %arg1[%c0, %c0_0] : memref<56x256xbf16, #tpu.memory_space<vmem>>, vector<56x256xbf16>
    %1 = arith.extf %0 : vector<56x256xbf16> to vector<56x256xf32>
    %c0_1 = arith.constant 0 : index
    %c0_2 = arith.constant 0 : index
    %2 = vector.load %arg2[%c0_1, %c0_2] : memref<1x256xf32, #tpu.memory_space<vmem>>, vector<1x256xf32>
    %3 = vector.broadcast %2 : vector<1x256xf32> to vector<56x256xf32>
    %4 = arith.mulf %1, %3 : vector<56x256xf32>
    %c0_3 = arith.constant 0 : index
    %c0_4 = arith.constant 0 : index
    %5 = vector.load %arg3[%c0_3, %c0_4] : memref<1x256xf32, #tpu.memory_space<vmem>>, vector<1x256xf32>
    %6 = vector.broadcast %5 : vector<1x256xf32> to vector<56x256xf32>
    %7 = arith.addf %4, %6 : vector<56x256xf32>
    %cst = arith.constant 0.000000e+00 : f32
    %8 = vector.broadcast %cst : f32 to vector<56x256xf32>
    %9 = arith.maximumf %7, %8 : vector<56x256xf32>
    %10 = arith.truncf %9 : vector<56x256xf32> to vector<56x256xbf16>
    %c0_5 = arith.constant 0 : index
    %c0_6 = arith.constant 0 : index
    %11 = vector.load %arg4[%c0_5, %c0_6] : memref<56x256xbf16, #tpu.memory_space<vmem>>, vector<56x256xbf16>
    tpu.vector_store %arg4[%c0_5, %c0_6], %10 {strides = array<i32>} : memref<56x256xbf16, #tpu.memory_space<vmem>>, vector<56x256xbf16>,
    return
  }
  func.func @transform_0(%arg0: i32) -> (i32, i32) {
    %c0_i32 = arith.constant 0 : i32
    %c0_i32_0 = arith.constant 0 : i32
    return %arg0, %c0_i32 : i32, i32
  }
  func.func @transform_1(%arg0: i32) -> (i32, i32) {
    %c0_i32 = arith.constant 0 : i32
    %c0_i32_0 = arith.constant 0 : i32
    %c0_i32_1 = arith.constant 0 : i32
    return %c0_i32, %c0_i32_0 : i32, i32
  }
  func.func @transform_2(%arg0: i32) -> (i32, i32) {
    %c0_i32 = arith.constant 0 : i32
    %c0_i32_0 = arith.constant 0 : i32
    %c0_i32_1 = arith.constant 0 : i32
    return %c0_i32, %c0_i32_0 : i32, i32
  }
  func.func @transform_3(%arg0: i32) -> (i32, i32) {
    %c0_i32 = arith.constant 0 : i32
    %c0_i32_0 = arith.constant 0 : i32
    return %arg0, %c0_i32 : i32, i32
  }
}

module attributes {stable_mosaic.version = 11 : i64} {
  func.func @conv_stats_kernel(%arg0: i32, %arg1: memref<56x1152xbf16, #tpu.memory_space<vmem>>, %arg2: memref<1152x256xbf16, #tpu.memory_space<vmem>>, %arg3: memref<56x256xbf16, #tpu.memory_space<vmem>>, %arg4: memref<1x2x256xf32, #tpu.memory_space<vmem>>) attributes {dimension_semantics = [#tpu.dimension_semantics<parallel>], iteration_bounds = array<i64: 1>, scalar_prefetch = 0 : i64, scratch_operands = 0 : i64, tpu.core_type = #tpu.core_type<tc>, window_params = [{transform_indices = @transform_0, window_bounds = array<i64: 56, 1152>}, {pipeline_mode = #tpu.pipeline_mode<synchronous>, transform_indices = @transform_1, window_bounds = array<i64: 1152, 256>}, {transform_indices = @transform_2, window_bounds = array<i64: 56, 256>}, {transform_indices = @transform_3, window_bounds = array<i64: 1, 2, 256>}]} {
    %c0 = arith.constant 0 : index
    %c0_0 = arith.constant 0 : index
    %0 = vector.load %arg1[%c0, %c0_0] : memref<56x1152xbf16, #tpu.memory_space<vmem>>, vector<56x1152xbf16>
    %c0_1 = arith.constant 0 : index
    %c0_2 = arith.constant 0 : index
    %1 = vector.load %arg2[%c0_1, %c0_2] : memref<1152x256xbf16, #tpu.memory_space<vmem>>, vector<1152x256xbf16>
    %cst = arith.constant dense<0.000000e+00> : vector<56x256xf32>
    %2 = tpu.matmul %0, %1, %cst {dimension_numbers = #tpu.dot_dimension_numbers<[1], [0], [0], [1], [0, 0, 1, 1], [], []>} : vector<56x1152xbf16>, vector<1152x256xbf16>, vector<56x256xf32> -> vector<56x256xf32>
    %3 = arith.truncf %2 : vector<56x256xf32> to vector<56x256xbf16>
    %c0_3 = arith.constant 0 : index
    %c0_4 = arith.constant 0 : index
    %4 = vector.load %arg3[%c0_3, %c0_4] : memref<56x256xbf16, #tpu.memory_space<vmem>>, vector<56x256xbf16>
    tpu.vector_store %arg3[%c0_3, %c0_4], %3 {strides = array<i32>} : memref<56x256xbf16, #tpu.memory_space<vmem>>, vector<56x256xbf16>,
    %cst_5 = arith.constant dense<0.000000e+00> : vector<256xf32>
    %5 = vector.multi_reduction <add>, %2, %cst_5 [0] : vector<56x256xf32> to vector<256xf32>
    %6 = vector.shape_cast %5 : vector<256xf32> to vector<1x256xf32>
    %7 = arith.mulf %2, %2 : vector<56x256xf32>
    %cst_6 = arith.constant dense<0.000000e+00> : vector<256xf32>
    %8 = vector.multi_reduction <add>, %7, %cst_6 [0] : vector<56x256xf32> to vector<256xf32>
    %9 = vector.shape_cast %8 : vector<256xf32> to vector<1x256xf32>
    %10 = tpu.concatenate %6, %9 in 0 : vector<1x256xf32>, vector<1x256xf32> -> vector<2x256xf32>
    %11 = vector.shape_cast %10 : vector<2x256xf32> to vector<1x2x256xf32>
    %c0_7 = arith.constant 0 : index
    %c0_8 = arith.constant 0 : index
    %c0_9 = arith.constant 0 : index
    %12 = vector.load %arg4[%c0_7, %c0_8, %c0_9] : memref<1x2x256xf32, #tpu.memory_space<vmem>>, vector<1x2x256xf32>
    tpu.vector_store %arg4[%c0_7, %c0_8, %c0_9], %11 {strides = array<i32>} : memref<1x2x256xf32, #tpu.memory_space<vmem>>, vector<1x2x256xf32>,
    return
  }
  func.func @transform_0(%arg0: i32) -> (i32, i32) {
    %c0_i32 = arith.constant 0 : i32
    %c0_i32_0 = arith.constant 0 : i32
    return %arg0, %c0_i32 : i32, i32
  }
  func.func @transform_1(%arg0: i32) -> (i32, i32) {
    %c0_i32 = arith.constant 0 : i32
    %c0_i32_0 = arith.constant 0 : i32
    %c0_i32_1 = arith.constant 0 : i32
    return %c0_i32, %c0_i32_0 : i32, i32
  }
  func.func @transform_2(%arg0: i32) -> (i32, i32) {
    %c0_i32 = arith.constant 0 : i32
    %c0_i32_0 = arith.constant 0 : i32
    return %arg0, %c0_i32 : i32, i32
  }
  func.func @transform_3(%arg0: i32) -> (i32, i32, i32) {
    %c0_i32 = arith.constant 0 : i32
    %c0_i32_0 = arith.constant 0 : i32
    %c0_i32_1 = arith.constant 0 : i32
    return %arg0, %c0_i32, %c0_i32_0 : i32, i32, i32
  }
}

module attributes {stable_mosaic.version = 11 : i64} {
  func.func @conv_stats_kernel(%arg0: i32, %arg1: memref<24x2304xbf16, #tpu.memory_space<vmem>>, %arg2: memref<2304x256xbf16, #tpu.memory_space<vmem>>, %arg3: memref<24x256xbf16, #tpu.memory_space<vmem>>, %arg4: memref<1x2x256xf32, #tpu.memory_space<vmem>>) attributes {dimension_semantics = [#tpu.dimension_semantics<parallel>], iteration_bounds = array<i64: 1>, scalar_prefetch = 0 : i64, scratch_operands = 0 : i64, tpu.core_type = #tpu.core_type<tc>, window_params = [{transform_indices = @transform_0, window_bounds = array<i64: 24, 2304>}, {pipeline_mode = #tpu.pipeline_mode<synchronous>, transform_indices = @transform_1, window_bounds = array<i64: 2304, 256>}, {transform_indices = @transform_2, window_bounds = array<i64: 24, 256>}, {transform_indices = @transform_3, window_bounds = array<i64: 1, 2, 256>}]} {
    %c0 = arith.constant 0 : index
    %c0_0 = arith.constant 0 : index
    %0 = vector.load %arg1[%c0, %c0_0] : memref<24x2304xbf16, #tpu.memory_space<vmem>>, vector<24x2304xbf16>
    %c0_1 = arith.constant 0 : index
    %c0_2 = arith.constant 0 : index
    %1 = vector.load %arg2[%c0_1, %c0_2] : memref<2304x256xbf16, #tpu.memory_space<vmem>>, vector<2304x256xbf16>
    %cst = arith.constant dense<0.000000e+00> : vector<24x256xf32>
    %2 = tpu.matmul %0, %1, %cst {dimension_numbers = #tpu.dot_dimension_numbers<[1], [0], [0], [1], [0, 0, 1, 1], [], []>} : vector<24x2304xbf16>, vector<2304x256xbf16>, vector<24x256xf32> -> vector<24x256xf32>
    %3 = arith.truncf %2 : vector<24x256xf32> to vector<24x256xbf16>
    %c0_3 = arith.constant 0 : index
    %c0_4 = arith.constant 0 : index
    %4 = vector.load %arg3[%c0_3, %c0_4] : memref<24x256xbf16, #tpu.memory_space<vmem>>, vector<24x256xbf16>
    tpu.vector_store %arg3[%c0_3, %c0_4], %3 {strides = array<i32>} : memref<24x256xbf16, #tpu.memory_space<vmem>>, vector<24x256xbf16>,
    %cst_5 = arith.constant dense<0.000000e+00> : vector<256xf32>
    %5 = vector.multi_reduction <add>, %2, %cst_5 [0] : vector<24x256xf32> to vector<256xf32>
    %6 = vector.shape_cast %5 : vector<256xf32> to vector<1x256xf32>
    %7 = arith.mulf %2, %2 : vector<24x256xf32>
    %cst_6 = arith.constant dense<0.000000e+00> : vector<256xf32>
    %8 = vector.multi_reduction <add>, %7, %cst_6 [0] : vector<24x256xf32> to vector<256xf32>
    %9 = vector.shape_cast %8 : vector<256xf32> to vector<1x256xf32>
    %10 = tpu.concatenate %6, %9 in 0 : vector<1x256xf32>, vector<1x256xf32> -> vector<2x256xf32>
    %11 = vector.shape_cast %10 : vector<2x256xf32> to vector<1x2x256xf32>
    %c0_7 = arith.constant 0 : index
    %c0_8 = arith.constant 0 : index
    %c0_9 = arith.constant 0 : index
    %12 = vector.load %arg4[%c0_7, %c0_8, %c0_9] : memref<1x2x256xf32, #tpu.memory_space<vmem>>, vector<1x2x256xf32>
    tpu.vector_store %arg4[%c0_7, %c0_8, %c0_9], %11 {strides = array<i32>} : memref<1x2x256xf32, #tpu.memory_space<vmem>>, vector<1x2x256xf32>,
    return
  }
  func.func @transform_0(%arg0: i32) -> (i32, i32) {
    %c0_i32 = arith.constant 0 : i32
    %c0_i32_0 = arith.constant 0 : i32
    return %arg0, %c0_i32 : i32, i32
  }
  func.func @transform_1(%arg0: i32) -> (i32, i32) {
    %c0_i32 = arith.constant 0 : i32
    %c0_i32_0 = arith.constant 0 : i32
    %c0_i32_1 = arith.constant 0 : i32
    return %c0_i32, %c0_i32_0 : i32, i32
  }
  func.func @transform_2(%arg0: i32) -> (i32, i32) {
    %c0_i32 = arith.constant 0 : i32
    %c0_i32_0 = arith.constant 0 : i32
    return %arg0, %c0_i32 : i32, i32
  }
  func.func @transform_3(%arg0: i32) -> (i32, i32, i32) {
    %c0_i32 = arith.constant 0 : i32
    %c0_i32_0 = arith.constant 0 : i32
    %c0_i32_1 = arith.constant 0 : i32
    return %arg0, %c0_i32, %c0_i32_0 : i32, i32, i32
  }
}

module attributes {stable_mosaic.version = 11 : i64} {
  func.func @bn_relu_kernel(%arg0: i32, %arg1: memref<24x256xbf16, #tpu.memory_space<vmem>>, %arg2: memref<1x256xf32, #tpu.memory_space<vmem>>, %arg3: memref<1x256xf32, #tpu.memory_space<vmem>>, %arg4: memref<24x256xbf16, #tpu.memory_space<vmem>>) attributes {dimension_semantics = [#tpu.dimension_semantics<parallel>], iteration_bounds = array<i64: 1>, scalar_prefetch = 0 : i64, scratch_operands = 0 : i64, tpu.core_type = #tpu.core_type<tc>, window_params = [{transform_indices = @transform_0, window_bounds = array<i64: 24, 256>}, {pipeline_mode = #tpu.pipeline_mode<synchronous>, transform_indices = @transform_1, window_bounds = array<i64: 1, 256>}, {pipeline_mode = #tpu.pipeline_mode<synchronous>, transform_indices = @transform_2, window_bounds = array<i64: 1, 256>}, {transform_indices = @transform_3, window_bounds = array<i64: 24, 256>}]} {
    %c0 = arith.constant 0 : index
    %c0_0 = arith.constant 0 : index
    %0 = vector.load %arg1[%c0, %c0_0] : memref<24x256xbf16, #tpu.memory_space<vmem>>, vector<24x256xbf16>
    %1 = arith.extf %0 : vector<24x256xbf16> to vector<24x256xf32>
    %c0_1 = arith.constant 0 : index
    %c0_2 = arith.constant 0 : index
    %2 = vector.load %arg2[%c0_1, %c0_2] : memref<1x256xf32, #tpu.memory_space<vmem>>, vector<1x256xf32>
    %3 = vector.broadcast %2 : vector<1x256xf32> to vector<24x256xf32>
    %4 = arith.mulf %1, %3 : vector<24x256xf32>
    %c0_3 = arith.constant 0 : index
    %c0_4 = arith.constant 0 : index
    %5 = vector.load %arg3[%c0_3, %c0_4] : memref<1x256xf32, #tpu.memory_space<vmem>>, vector<1x256xf32>
    %6 = vector.broadcast %5 : vector<1x256xf32> to vector<24x256xf32>
    %7 = arith.addf %4, %6 : vector<24x256xf32>
    %cst = arith.constant 0.000000e+00 : f32
    %8 = vector.broadcast %cst : f32 to vector<24x256xf32>
    %9 = arith.maximumf %7, %8 : vector<24x256xf32>
    %10 = arith.truncf %9 : vector<24x256xf32> to vector<24x256xbf16>
    %c0_5 = arith.constant 0 : index
    %c0_6 = arith.constant 0 : index
    %11 = vector.load %arg4[%c0_5, %c0_6] : memref<24x256xbf16, #tpu.memory_space<vmem>>, vector<24x256xbf16>
    tpu.vector_store %arg4[%c0_5, %c0_6], %10 {strides = array<i32>} : memref<24x256xbf16, #tpu.memory_space<vmem>>, vector<24x256xbf16>,
    return
  }
  func.func @transform_0(%arg0: i32) -> (i32, i32) {
    %c0_i32 = arith.constant 0 : i32
    %c0_i32_0 = arith.constant 0 : i32
    return %arg0, %c0_i32 : i32, i32
  }
  func.func @transform_1(%arg0: i32) -> (i32, i32) {
    %c0_i32 = arith.constant 0 : i32
    %c0_i32_0 = arith.constant 0 : i32
    %c0_i32_1 = arith.constant 0 : i32
    return %c0_i32, %c0_i32_0 : i32, i32
  }
  func.func @transform_2(%arg0: i32) -> (i32, i32) {
    %c0_i32 = arith.constant 0 : i32
    %c0_i32_0 = arith.constant 0 : i32
    %c0_i32_1 = arith.constant 0 : i32
    return %c0_i32, %c0_i32_0 : i32, i32
  }
  func.func @transform_3(%arg0: i32) -> (i32, i32) {
    %c0_i32 = arith.constant 0 : i32
    %c0_i32_0 = arith.constant 0 : i32
    return %arg0, %c0_i32 : i32, i32
  }
}

module attributes {stable_mosaic.version = 11 : i64} {
  func.func @conv_stats_kernel(%arg0: i32, %arg1: memref<8x2304xbf16, #tpu.memory_space<vmem>>, %arg2: memref<2304x512xbf16, #tpu.memory_space<vmem>>, %arg3: memref<8x512xbf16, #tpu.memory_space<vmem>>, %arg4: memref<1x2x512xf32, #tpu.memory_space<vmem>>) attributes {dimension_semantics = [#tpu.dimension_semantics<parallel>], iteration_bounds = array<i64: 1>, scalar_prefetch = 0 : i64, scratch_operands = 0 : i64, tpu.core_type = #tpu.core_type<tc>, window_params = [{transform_indices = @transform_0, window_bounds = array<i64: 8, 2304>}, {pipeline_mode = #tpu.pipeline_mode<synchronous>, transform_indices = @transform_1, window_bounds = array<i64: 2304, 512>}, {transform_indices = @transform_2, window_bounds = array<i64: 8, 512>}, {transform_indices = @transform_3, window_bounds = array<i64: 1, 2, 512>}]} {
    %c0 = arith.constant 0 : index
    %c0_0 = arith.constant 0 : index
    %0 = vector.load %arg1[%c0, %c0_0] : memref<8x2304xbf16, #tpu.memory_space<vmem>>, vector<8x2304xbf16>
    %c0_1 = arith.constant 0 : index
    %c0_2 = arith.constant 0 : index
    %1 = vector.load %arg2[%c0_1, %c0_2] : memref<2304x512xbf16, #tpu.memory_space<vmem>>, vector<2304x512xbf16>
    %cst = arith.constant dense<0.000000e+00> : vector<8x512xf32>
    %2 = tpu.matmul %0, %1, %cst {dimension_numbers = #tpu.dot_dimension_numbers<[1], [0], [0], [1], [0, 0, 1, 1], [], []>} : vector<8x2304xbf16>, vector<2304x512xbf16>, vector<8x512xf32> -> vector<8x512xf32>
    %3 = arith.truncf %2 : vector<8x512xf32> to vector<8x512xbf16>
    %c0_3 = arith.constant 0 : index
    %c0_4 = arith.constant 0 : index
    %4 = vector.load %arg3[%c0_3, %c0_4] : memref<8x512xbf16, #tpu.memory_space<vmem>>, vector<8x512xbf16>
    tpu.vector_store %arg3[%c0_3, %c0_4], %3 {strides = array<i32>} : memref<8x512xbf16, #tpu.memory_space<vmem>>, vector<8x512xbf16>,
    %cst_5 = arith.constant dense<0.000000e+00> : vector<512xf32>
    %5 = vector.multi_reduction <add>, %2, %cst_5 [0] : vector<8x512xf32> to vector<512xf32>
    %6 = vector.shape_cast %5 : vector<512xf32> to vector<1x512xf32>
    %7 = arith.mulf %2, %2 : vector<8x512xf32>
    %cst_6 = arith.constant dense<0.000000e+00> : vector<512xf32>
    %8 = vector.multi_reduction <add>, %7, %cst_6 [0] : vector<8x512xf32> to vector<512xf32>
    %9 = vector.shape_cast %8 : vector<512xf32> to vector<1x512xf32>
    %10 = tpu.concatenate %6, %9 in 0 : vector<1x512xf32>, vector<1x512xf32> -> vector<2x512xf32>
    %11 = vector.shape_cast %10 : vector<2x512xf32> to vector<1x2x512xf32>
    %c0_7 = arith.constant 0 : index
    %c0_8 = arith.constant 0 : index
    %c0_9 = arith.constant 0 : index
    %12 = vector.load %arg4[%c0_7, %c0_8, %c0_9] : memref<1x2x512xf32, #tpu.memory_space<vmem>>, vector<1x2x512xf32>
    tpu.vector_store %arg4[%c0_7, %c0_8, %c0_9], %11 {strides = array<i32>} : memref<1x2x512xf32, #tpu.memory_space<vmem>>, vector<1x2x512xf32>,
    return
  }
  func.func @transform_0(%arg0: i32) -> (i32, i32) {
    %c0_i32 = arith.constant 0 : i32
    %c0_i32_0 = arith.constant 0 : i32
    return %arg0, %c0_i32 : i32, i32
  }
  func.func @transform_1(%arg0: i32) -> (i32, i32) {
    %c0_i32 = arith.constant 0 : i32
    %c0_i32_0 = arith.constant 0 : i32
    %c0_i32_1 = arith.constant 0 : i32
    return %c0_i32, %c0_i32_0 : i32, i32
  }
  func.func @transform_2(%arg0: i32) -> (i32, i32) {
    %c0_i32 = arith.constant 0 : i32
    %c0_i32_0 = arith.constant 0 : i32
    return %arg0, %c0_i32 : i32, i32
  }
  func.func @transform_3(%arg0: i32) -> (i32, i32, i32) {
    %c0_i32 = arith.constant 0 : i32
    %c0_i32_0 = arith.constant 0 : i32
    %c0_i32_1 = arith.constant 0 : i32
    return %arg0, %c0_i32, %c0_i32_0 : i32, i32, i32
  }
}

module attributes {stable_mosaic.version = 11 : i64} {
  func.func @bn_relu_kernel(%arg0: i32, %arg1: memref<8x512xbf16, #tpu.memory_space<vmem>>, %arg2: memref<1x512xf32, #tpu.memory_space<vmem>>, %arg3: memref<1x512xf32, #tpu.memory_space<vmem>>, %arg4: memref<8x512xf32, #tpu.memory_space<vmem>>) attributes {dimension_semantics = [#tpu.dimension_semantics<parallel>], iteration_bounds = array<i64: 1>, scalar_prefetch = 0 : i64, scratch_operands = 0 : i64, tpu.core_type = #tpu.core_type<tc>, window_params = [{transform_indices = @transform_0, window_bounds = array<i64: 8, 512>}, {pipeline_mode = #tpu.pipeline_mode<synchronous>, transform_indices = @transform_1, window_bounds = array<i64: 1, 512>}, {pipeline_mode = #tpu.pipeline_mode<synchronous>, transform_indices = @transform_2, window_bounds = array<i64: 1, 512>}, {transform_indices = @transform_3, window_bounds = array<i64: 8, 512>}]} {
    %c0 = arith.constant 0 : index
    %c0_0 = arith.constant 0 : index
    %0 = vector.load %arg1[%c0, %c0_0] : memref<8x512xbf16, #tpu.memory_space<vmem>>, vector<8x512xbf16>
    %1 = arith.extf %0 : vector<8x512xbf16> to vector<8x512xf32>
    %c0_1 = arith.constant 0 : index
    %c0_2 = arith.constant 0 : index
    %2 = vector.load %arg2[%c0_1, %c0_2] : memref<1x512xf32, #tpu.memory_space<vmem>>, vector<1x512xf32>
    %3 = vector.broadcast %2 : vector<1x512xf32> to vector<8x512xf32>
    %4 = arith.mulf %1, %3 : vector<8x512xf32>
    %c0_3 = arith.constant 0 : index
    %c0_4 = arith.constant 0 : index
    %5 = vector.load %arg3[%c0_3, %c0_4] : memref<1x512xf32, #tpu.memory_space<vmem>>, vector<1x512xf32>
    %6 = vector.broadcast %5 : vector<1x512xf32> to vector<8x512xf32>
    %7 = arith.addf %4, %6 : vector<8x512xf32>
    %cst = arith.constant 0.000000e+00 : f32
    %8 = vector.broadcast %cst : f32 to vector<8x512xf32>
    %9 = arith.maximumf %7, %8 : vector<8x512xf32>
    %c0_5 = arith.constant 0 : index
    %c0_6 = arith.constant 0 : index
    %10 = vector.load %arg4[%c0_5, %c0_6] : memref<8x512xf32, #tpu.memory_space<vmem>>, vector<8x512xf32>
    tpu.vector_store %arg4[%c0_5, %c0_6], %9 {strides = array<i32>} : memref<8x512xf32, #tpu.memory_space<vmem>>, vector<8x512xf32>,
    return
  }
  func.func @transform_0(%arg0: i32) -> (i32, i32) {
    %c0_i32 = arith.constant 0 : i32
    %c0_i32_0 = arith.constant 0 : i32
    return %arg0, %c0_i32 : i32, i32
  }
  func.func @transform_1(%arg0: i32) -> (i32, i32) {
    %c0_i32 = arith.constant 0 : i32
    %c0_i32_0 = arith.constant 0 : i32
    %c0_i32_1 = arith.constant 0 : i32
    return %c0_i32, %c0_i32_0 : i32, i32
  }
  func.func @transform_2(%arg0: i32) -> (i32, i32) {
    %c0_i32 = arith.constant 0 : i32
    %c0_i32_0 = arith.constant 0 : i32
    %c0_i32_1 = arith.constant 0 : i32
    return %c0_i32, %c0_i32_0 : i32, i32
  }
  func.func @transform_3(%arg0: i32) -> (i32, i32) {
    %c0_i32 = arith.constant 0 : i32
    %c0_i32_0 = arith.constant 0 : i32
    return %arg0, %c0_i32 : i32, i32
  }
}

</mosaic_0001>

<bundles_post_ra>
// kernel: usps_feature_extractor.10
= control target key start
LH: loop header
LB: loop body
LE: loop exit
PB: predicated region body
PF: predicated region fallthrough
CT: control target
= control target key end

     0   :  { %s1990_s12 = smov 0   ;;  %s2306_s0 = inlined_call_operand.vmem [shape: bf16[2048,128], index: 0, kind: input, shape index: {}]   ;;  %s2307_s1 = inlined_call_operand.vmem [shape: bf16[128,128], index: 1, kind: input, shape index: {}]   ;;  %s2308_s2 = inlined_call_operand.vmem [shape: bf16[2048,128], index: 2, kind: output, shape index: {0}]   ;;  %s2309_s3 = inlined_call_operand.vmem [shape: f32[4,2,128], index: 3, kind: output, shape index: {1}]  }
   0x1 LB: > { %s1996_s13 = sadd.s32 4294967295, %s1968_s12   ;;  %p1411_p0 = scmp.ge.s32.totalorder %s1968_s12, 1  ;;  %s1968_s12 = sphi %s1990_s12, %s14_s12  }
   0x2   : > { %p141_p1 = scmp.lt.s32.totalorder %s1968_s12, 5 }
   0x4   : > { %p142_p2 = pnand %p1411_p0, %p141_p1 }
   0x5   : > { %v1922_v0 = vld [vmem:[%s2307_s1] sm:$0xff] (!%p142_p2)   ;;  %s1412_s16 = sshll.u32 (!%p142_p2), %s1996_s13, 6  ;;  %v1923_v1 = vld [vmem:[%s2307_s1 + $0x8] sm:$0xff] (!%p142_p2)   ;;  %v1924_v2 = vld [vmem:[%s2307_s1 + $0x10] sm:$0xff] (!%p142_p2)   ;;  %p181_p4 = scmp.lt.s32.totalorder (!%p142_p2), %s1996_s13, 3  ;;  %vm1317_vm0 = vcmask (!%p142_p2), 1040384  }
   0x6   : > { %145 = sbr.rel (%p142_p2) target bundleno = 395 (0x18b), region = 28  ;;  %p170_p3 = scmp.lt.s32.totalorder (!%p142_p2), %s1412_s16, 255  ;;  %1818 = vmatprep.subr.bf16.mxu0 (!%p142_p2), %v1922_v0  ;;  %1898 = vmatprep.subr.bf16.mxu1 (!%p142_p2), %v1922_v0  ;;  %v1925_v3 = vld [vmem:[%s2307_s1 + $0x18] sm:$0xff] (!%p142_p2)   ;;  %v1926_v5 = vld [vmem:[%s2307_s1 + $0x20] sm:$0xff] (!%p142_p2)   ;;  %v1927_v6 = vld [vmem:[%s2307_s1 + $0x28] sm:$0xff] (!%p142_p2)  }
   0x7   : > { %1819 = vmatpush3.bf16.msra.mxu0 (!%p142_p2), %v1922_v0  ;;  %1906 = vmatpush3.bf16.msra.mxu1 (!%p142_p2), %v1922_v0  ;;  %v1928_v7 = vld [vmem:[%s2307_s1 + $0x30] sm:$0xff] (!%p142_p2)   ;;  %v1929_v8 = vld [vmem:[%s2307_s1 + $0x38] sm:$0xff] (!%p142_p2)  }
   0x8   : > { %1820 = vmatprep.subr.bf16.mxu0 (!%p142_p2), %v1923_v1  ;;  %1899 = vmatprep.subr.bf16.mxu1 (!%p142_p2), %v1923_v1 }
   0xb   : > { %1821 = vmatpush3.bf16.msra.mxu0 (!%p142_p2), %v1923_v1  ;;  %1907 = vmatpush3.bf16.msra.mxu1 (!%p142_p2), %v1923_v1 }
   0xc   : > { %1822 = vmatprep.subr.bf16.mxu0 (!%p142_p2), %v1924_v2  ;;  %1900 = vmatprep.subr.bf16.mxu1 (!%p142_p2), %v1924_v2 }
   0xd   : > { %s2311_s16 = smov (!%p170_p3, %s1412_s16), 255  ;;  %s2313_s13 = smov (!%p181_p4, %s1996_s13), 3 }
   0xe   : > { %s1413_s21 = sshll.u32 %s2311_s16, 2  ;;  %s1416_s11 = sshll.u32 %s2313_s13, 1 }
   0xf   : > { %s2018_s24 = scalar_lea.vmem %s2306_s0, %s1413_s21  ;;  %1823 = vmatpush3.bf16.msra.mxu0 %v1924_v2  ;;  %1908 = vmatpush3.bf16.msra.mxu1 %v1924_v2  ;;  %s2076_s10 = scalar_lea.vmem %s2308_s2, %s1413_s21 }
  0x10   : > { %v1930_v4 = vld [vmem:[%s2018_s24] sm:$0xff]   ;;  %1824 = vmatprep.subr.bf16.mxu0 %v1925_v3  ;;  %1901 = vmatprep.subr.bf16.mxu1 %v1925_v3  ;;  %v1931_v10 = vld [vmem:[%s2018_s24 + $0x8] sm:$0xff]   ;;  %v1932_v11 = vld [vmem:[%s2018_s24 + $0x10] sm:$0xff]   ;;  %s184_s16 = scalar_lea.vmem %s2309_s3, %s1416_s11 }
  0x11   : > { %1834 = vmatprep.mubr.bf16.mxu0 %v1930_v4  ;;  %v1946_v9 = vld [vmem:[%s2018_s24 + $0x80] sm:$0xff]   ;;  %v1947_v12 = vld [vmem:[%s2018_s24 + $0x88] sm:$0xff]   ;;  %v1948_v13 = vld [vmem:[%s2018_s24 + $0x90] sm:$0xff]  }
  0x12   : > { %1866 = vmatprep.mubr.bf16.mxu1 %v1946_v9  ;;  %v1933_v14 = vld [vmem:[%s2018_s24 + $0x18] sm:$0xff]   ;;  %v1934_v15 = vld [vmem:[%s2018_s24 + $0x20] sm:$0xff]   ;;  %v1935_v18 = vld [vmem:[%s2018_s24 + $0x28] sm:$0xff]  }
  0x13   : > { %1825 = vmatpush3.bf16.msra.mxu0 %v1925_v3  ;;  %1909 = vmatpush3.bf16.msra.mxu1 %v1925_v3  ;;  %v1949_v16 = vld [vmem:[%s2018_s24 + $0x98] sm:$0xff]   ;;  %v1950_v17 = vld [vmem:[%s2018_s24 + $0xa0] sm:$0xff]   ;;  %v1951_v19 = vld [vmem:[%s2018_s24 + $0xa8] sm:$0xff]  }
  0x14   : > { %1826 = vmatprep.subr.bf16.mxu0 %v1926_v5  ;;  %1902 = vmatprep.subr.bf16.mxu1 %v1926_v5  ;;  %v1936_v20 = vld [vmem:[%s2018_s24 + $0x30] sm:$0xff]   ;;  %v1937_v22 = vld [vmem:[%s2018_s24 + $0x38] sm:$0xff]   ;;  %v1938_v24 = vld [vmem:[%s2018_s24 + $0x40] sm:$0xff]  }
  0x15   : > { %v1952_v21 = vld [vmem:[%s2018_s24 + $0xb0] sm:$0xff]   ;;  %v1953_v23 = vld [vmem:[%s2018_s24 + $0xb8] sm:$0xff]   ;;  %v1954_v25 = vld [vmem:[%s2018_s24 + $0xc0] sm:$0xff]  }
  0x16   : > { %v1939_v26 = vld [vmem:[%s2018_s24 + $0x48] sm:$0xff]   ;;  %v1940_v28 = vld [vmem:[%s2018_s24 + $0x50] sm:$0xff]   ;;  %v1941_v30 = vld [vmem:[%s2018_s24 + $0x58] sm:$0xff]  }
  0x17   : > { %1827 = vmatpush3.bf16.msra.mxu0 %v1926_v5  ;;  %1910 = vmatpush3.bf16.msra.mxu1 %v1926_v5  ;;  %v1955_v27 = vld [vmem:[%s2018_s24 + $0xc8] sm:$0xff]   ;;  %v1956_v29 = vld [vmem:[%s2018_s24 + $0xd0] sm:$0xff]   ;;  %v1957_v31 = vld [vmem:[%s2018_s24 + $0xd8] sm:$0xff]  }
  0x18   : > { %1828 = vmatprep.subr.bf16.mxu0 %v1927_v6  ;;  %1903 = vmatprep.subr.bf16.mxu1 %v1927_v6  ;;  %v1942_v32 = vld [vmem:[%s2018_s24 + $0x60] sm:$0xff]   ;;  %v1943_v34 = vld [vmem:[%s2018_s24 + $0x68] sm:$0xff]   ;;  %v1944_v36 = vld [vmem:[%s2018_s24 + $0x70] sm:$0xff]  }
  0x19   : > { %v1958_v33 = vld [vmem:[%s2018_s24 + $0xe0] sm:$0xff]   ;;  %v1959_v35 = vld [vmem:[%s2018_s24 + $0xe8] sm:$0xff]   ;;  %v1960_v37 = vld [vmem:[%s2018_s24 + $0xf0] sm:$0xff]  }
  0x1a   : > { %v1945_v38 = vld [vmem:[%s2018_s24 + $0x78] sm:$0xff]  }
  0x1b   : > { %1829 = vmatpush3.bf16.msra.mxu0 %v1927_v6  ;;  %1911 = vmatpush3.bf16.msra.mxu1 %v1927_v6  ;;  %v1961_v39 = vld [vmem:[%s2018_s24 + $0xf8] sm:$0xff]  }
  0x1c   : > { %1830 = vmatprep.subr.bf16.mxu0 %v1928_v7  ;;  %1904 = vmatprep.subr.bf16.mxu1 %v1928_v7 }
  0x1f   : > { %1831 = vmatpush3.bf16.msra.mxu0 %v1928_v7  ;;  %1912 = vmatpush3.bf16.msra.mxu1 %v1928_v7 }
  0x20   : > { %1832 = vmatprep.subr.bf16.mxu0 %v1929_v8  ;;  %1905 = vmatprep.subr.bf16.mxu1 %v1929_v8 }
  0x23   : > { %1833 = vmatpush3.bf16.msra.mxu0 %v1929_v8  ;;  %1913 = vmatpush3.bf16.msra.mxu1 %v1929_v8 }
  0x26   : > { %1835 = vmatmul.mubr.bf16.vlgmr.msra.gmra.mrb[0].mxu0 %v1931_v10  ;;  %1867 = vmatmul.mubr.bf16.vlgmr.msra.gmra.mrb[0].mxu1 %v1947_v12 }
  0x27   : > { %1838 = vmatprep.mubr.bf16.mxu0 %v1932_v11  ;;  %1870 = vmatprep.mubr.bf16.mxu1 %v1948_v13 }
  0x2e   : > { %1839 = vmatmul.mubr.bf16.gmra.mrb[4].mxu0 %v1933_v14  ;;  %1871 = vmatmul.mubr.bf16.gmra.mrb[4].mxu1 %v1949_v16 }
  0x2f   : > { %1842 = vmatprep.mubr.bf16.mxu0 %v1934_v15  ;;  %1874 = vmatprep.mubr.bf16.mxu1 %v1950_v17 }
  0x36   : > { %1843 = vmatmul.mubr.bf16.gmra.mrb[8].mxu0 %v1935_v18  ;;  %1875 = vmatmul.mubr.bf16.gmra.mrb[8].mxu1 %v1951_v19 }
  0x37   : > { %1846 = vmatprep.mubr.bf16.mxu0 %v1936_v20  ;;  %1878 = vmatprep.mubr.bf16.mxu1 %v1952_v21 }
  0x3e   : > { %1847 = vmatmul.mubr.bf16.gmra.mrb[12].mxu0 %v1937_v22  ;;  %1879 = vmatmul.mubr.bf16.gmra.mrb[12].mxu1 %v1953_v23 }
  0x3f   : > { %1850 = vmatprep.mubr.bf16.mxu0 %v1938_v24  ;;  %1882 = vmatprep.mubr.bf16.mxu1 %v1954_v25 }
  0x46   : > { %1851 = vmatmul.mubr.bf16.gmra.mrb[16].mxu0 %v1939_v26  ;;  %1883 = vmatmul.mubr.bf16.gmra.mrb[16].mxu1 %v1955_v27 }
  0x47   : > { %1854 = vmatprep.mubr.bf16.mxu0 %v1940_v28  ;;  %1886 = vmatprep.mubr.bf16.mxu1 %v1956_v29 }
  0x4e   : > { %1855 = vmatmul.mubr.bf16.gmra.mrb[20].mxu0 %v1941_v30  ;;  %1887 = vmatmul.mubr.bf16.gmra.mrb[20].mxu1 %v1957_v31 }
  0x4f   : > { %1858 = vmatprep.mubr.bf16.mxu0 %v1942_v32  ;;  %1890 = vmatprep.mubr.bf16.mxu1 %v1958_v33 }
  0x56   : > { %1859 = vmatmul.mubr.bf16.gmra.mrb[24].mxu0 %v1943_v34  ;;  %1891 = vmatmul.mubr.bf16.gmra.mrb[24].mxu1 %v1959_v35 }
  0x57   : > { %1862 = vmatprep.mubr.bf16.mxu0 %v1944_v36  ;;  %1894 = vmatprep.mubr.bf16.mxu1 %v1960_v37 }
  0x5e   : > { %1863 = vmatmul.mubr.bf16.gmra.mrb[28].mxu0 %v1945_v38  ;;  %1895 = vmatmul.mubr.bf16.gmra.mrb[28].mxu1 %v1961_v39 }
  0xf9   : > { %v1836_v40 = vpop.f32.mrb[0].mxu0  ;;  %v2067_v41 = vpop.f32.mrb[0].mxu1 }
  0xfa   : > { %v540_v42 = vpop.f32.mrb[1].mxu0  ;;  %v2069_v43 = vpop.f32.mrb[1].mxu1  ;;  %v1186_v55 = vmul.f32 %v1836_v40, %v1836_v40 }
  0xfb   : > { %v1837_v44 = vpop.f32.mrb[2].mxu0  ;;  %v2078_v45 = vpop.f32.mrb[2].mxu1  ;;  %v1184_v46 = vmul.f32 %v540_v42, %v540_v42 }
  0xfc   : > { %v1595_v47 = vpack.c.bf16 %v1837_v44, %v1836_v40  ;;  %v543_v48 = vpop.f32.mrb[3].mxu0  ;;  %v1675_v49 = vpack.c.bf16 %v2078_v45, %v2067_v41  ;;  %v2082_v50 = vpop.f32.mrb[3].mxu1  ;;  %v1187_v58 = vmul.f32 %v1837_v44, %v1837_v44 }
  0xfd   : > { %v1590_v51 = vpack.c.bf16 %v543_v48, %v540_v42  ;;  %v1115_v52 = vadd.f32 %v543_v48, %v540_v42  ;;  %v1185_v53 = vmul.f32 %v543_v48, %v543_v48  ;;  %v1670_v54 = vpack.c.bf16 %v2082_v50, %v2069_v43 }
  0xfe   : > { %1747 = vst [vmem:[%s2076_s10 + $0x8] sm:$0xff] %v1595_v47   ;;  %1763 = vst [vmem:[%s2076_s10 + $0x88] sm:$0xff] %v1675_v49  }
  0xff   : > { %1591 = vst [vmem:[%s2076_s10] sm:$0xff] %v1590_v51   ;;  %v1116_v56 = vadd.f32 %v1836_v40, %v1115_v52  ;;  %v1248_v57 = vadd.f32 %v1185_v53, %v1184_v46  ;;  %1762 = vst [vmem:[%s2076_s10 + $0x80] sm:$0xff] %v1670_v54  }
 0x101   : > { %v1249_v59 = vadd.f32 %v1248_v57, %v1186_v55  ;;  %v1840_v60 = vpop.f32.mrb[4].mxu0  ;;  %v1117_v61 = vadd.f32 %v1837_v44, %v1116_v56  ;;  %v2090_v62 = vpop.f32.mrb[4].mxu1 }
 0x102   : > { %v556_v63 = vpop.f32.mrb[5].mxu0  ;;  %v2092_v0 = vpop.f32.mrb[5].mxu1  ;;  %v1190_v15 = vmul.f32 %v1840_v60, %v1840_v60 }
 0x103   : > { %v1118_v1 = vadd.f32 %v1117_v61, %v556_v63  ;;  %v1188_v2 = vmul.f32 %v556_v63, %v556_v63  ;;  %v1250_v3 = vadd.f32 %v1249_v59, %v1187_v58  ;;  %v1841_v4 = vpop.f32.mrb[6].mxu0  ;;  %v2094_v5 = vpop.f32.mrb[6].mxu1 }
 0x104   : > { %v1605_v6 = vpack.c.bf16 %v1841_v4, %v1840_v60  ;;  %v559_v7 = vpop.f32.mrb[7].mxu0  ;;  %v1685_v8 = vpack.c.bf16 %v2094_v5, %v2090_v62  ;;  %v2098_v9 = vpop.f32.mrb[7].mxu1  ;;  %v1191_v18 = vmul.f32 %v1841_v4, %v1841_v4 }
 0x105   : > { %v1251_v10 = vadd.f32 %v1250_v3, %v1188_v2  ;;  %v1600_v11 = vpack.c.bf16 %v559_v7, %v556_v63  ;;  %v1119_v12 = vadd.f32 %v1118_v1, %v559_v7  ;;  %v1189_v13 = vmul.f32 %v559_v7, %v559_v7 }
 0x106   : > { %1749 = vst [vmem:[%s2076_s10 + $0x18] sm:$0xff] %v1605_v6   ;;  %1765 = vst [vmem:[%s2076_s10 + $0x98] sm:$0xff] %v1685_v8   ;;  %v1680_v14 = vpack.c.bf16 %v2098_v9, %v2092_v0 }
 0x107   : > { %1748 = vst [vmem:[%s2076_s10 + $0x10] sm:$0xff] %v1600_v11   ;;  %v1120_v16 = vadd.f32 %v1840_v60, %v1119_v12  ;;  %v1252_v17 = vadd.f32 %v1251_v10, %v1189_v13 }
 0x108   : > { %1764 = vst [vmem:[%s2076_s10 + $0x90] sm:$0xff] %v1680_v14  }
 0x109   : > { %v1253_v19 = vadd.f32 %v1252_v17, %v1190_v15  ;;  %v1844_v20 = vpop.f32.mrb[8].mxu0  ;;  %v1121_v21 = vadd.f32 %v1841_v4, %v1120_v16  ;;  %v2106_v22 = vpop.f32.mrb[8].mxu1 }
 0x10a   : > { %v572_v23 = vpop.f32.mrb[9].mxu0  ;;  %v2108_v24 = vpop.f32.mrb[9].mxu1  ;;  %v1194_v39 = vmul.f32 %v1844_v20, %v1844_v20 }
 0x10b   : > { %v1122_v25 = vadd.f32 %v1121_v21, %v572_v23  ;;  %v1192_v26 = vmul.f32 %v572_v23, %v572_v23  ;;  %v1254_v27 = vadd.f32 %v1253_v19, %v1191_v18  ;;  %v1845_v28 = vpop.f32.mrb[10].mxu0  ;;  %v2110_v29 = vpop.f32.mrb[10].mxu1 }
 0x10c   : > { %v1615_v30 = vpack.c.bf16 %v1845_v28, %v1844_v20  ;;  %v575_v31 = vpop.f32.mrb[11].mxu0  ;;  %v1695_v32 = vpack.c.bf16 %v2110_v29, %v2106_v22  ;;  %v2114_v33 = vpop.f32.mrb[11].mxu1  ;;  %v1195_v44 = vmul.f32 %v1845_v28, %v1845_v28 }
 0x10d   : > { %v1255_v34 = vadd.f32 %v1254_v27, %v1192_v26  ;;  %v1610_v35 = vpack.c.bf16 %v575_v31, %v572_v23  ;;  %v1123_v36 = vadd.f32 %v1122_v25, %v575_v31  ;;  %v1193_v37 = vmul.f32 %v575_v31, %v575_v31 }
 0x10e   : > { %1751 = vst [vmem:[%s2076_s10 + $0x28] sm:$0xff] %v1615_v30   ;;  %1767 = vst [vmem:[%s2076_s10 + $0xa8] sm:$0xff] %v1695_v32   ;;  %v1690_v38 = vpack.c.bf16 %v2114_v33, %v2108_v24 }
 0x10f   : > { %1750 = vst [vmem:[%s2076_s10 + $0x20] sm:$0xff] %v1610_v35   ;;  %v1124_v40 = vadd.f32 %v1844_v20, %v1123_v36  ;;  %v1256_v42 = vadd.f32 %v1255_v34, %v1193_v37 }
 0x110   : > { %1766 = vst [vmem:[%s2076_s10 + $0xa0] sm:$0xff] %v1690_v38  }
 0x111   : > { %v1257_v46 = vadd.f32 %v1256_v42, %v1194_v39  ;;  %v1848_v47 = vpop.f32.mrb[12].mxu0  ;;  %v1125_v48 = vadd.f32 %v1845_v28, %v1124_v40  ;;  %v2122_v49 = vpop.f32.mrb[12].mxu1 }
 0x112   : > { %v588_v51 = vpop.f32.mrb[13].mxu0  ;;  %v2124_v52 = vpop.f32.mrb[13].mxu1  ;;  %v1198_v6 = vmul.f32 %v1848_v47, %v1848_v47 }
 0x113   : > { %v1126_v53 = vadd.f32 %v1125_v48, %v588_v51  ;;  %v1196_v54 = vmul.f32 %v588_v51, %v588_v51  ;;  %v1258_v55 = vadd.f32 %v1257_v46, %v1195_v44  ;;  %v1849_v56 = vpop.f32.mrb[14].mxu0  ;;  %v2126_v57 = vpop.f32.mrb[14].mxu1 }
 0x114   : > { %v1625_v58 = vpack.c.bf16 %v1849_v56, %v1848_v47  ;;  %v591_v59 = vpop.f32.mrb[15].mxu0  ;;  %v1705_v60 = vpack.c.bf16 %v2126_v57, %v2122_v49  ;;  %v2130_v61 = vpop.f32.mrb[15].mxu1  ;;  %v1199_v10 = vmul.f32 %v1849_v56, %v1849_v56 }
 0x115   : > { %v1259_v63 = vadd.f32 %v1258_v55, %v1196_v54  ;;  %v1620_v1 = vpack.c.bf16 %v591_v59, %v588_v51  ;;  %v1127_v2 = vadd.f32 %v1126_v53, %v591_v59  ;;  %v1197_v3 = vmul.f32 %v591_v59, %v591_v59 }
 0x116   : > { %1753 = vst [vmem:[%s2076_s10 + $0x38] sm:$0xff] %v1625_v58   ;;  %1769 = vst [vmem:[%s2076_s10 + $0xb8] sm:$0xff] %v1705_v60   ;;  %v1700_v4 = vpack.c.bf16 %v2130_v61, %v2124_v52 }
 0x117   : > { %1752 = vst [vmem:[%s2076_s10 + $0x30] sm:$0xff] %v1620_v1   ;;  %v1128_v7 = vadd.f32 %v1848_v47, %v1127_v2  ;;  %v1260_v8 = vadd.f32 %v1259_v63, %v1197_v3 }
 0x118   : > { %1768 = vst [vmem:[%s2076_s10 + $0xb0] sm:$0xff] %v1700_v4  }
 0x119   : > { %v1261_v11 = vadd.f32 %v1260_v8, %v1198_v6  ;;  %v1852_v12 = vpop.f32.mrb[16].mxu0  ;;  %v1129_v13 = vadd.f32 %v1849_v56, %v1128_v7  ;;  %v2138_v14 = vpop.f32.mrb[16].mxu1 }
 0x11a   : > { %v604_v15 = vpop.f32.mrb[17].mxu0  ;;  %v2140_v16 = vpop.f32.mrb[17].mxu1  ;;  %v1202_v35 = vmul.f32 %v1852_v12, %v1852_v12 }
 0x11b   : > { %v1130_v17 = vadd.f32 %v1129_v13, %v604_v15  ;;  %v1200_v18 = vmul.f32 %v604_v15, %v604_v15  ;;  %v1262_v19 = vadd.f32 %v1261_v11, %v1199_v10  ;;  %v1853_v20 = vpop.f32.mrb[18].mxu0  ;;  %v2142_v21 = vpop.f32.mrb[18].mxu1 }
 0x11c   : > { %v1635_v23 = vpack.c.bf16 %v1853_v20, %v1852_v12  ;;  %v607_v25 = vpop.f32.mrb[19].mxu0  ;;  %v1715_v26 = vpack.c.bf16 %v2142_v21, %v2138_v14  ;;  %v2146_v27 = vpop.f32.mrb[19].mxu1  ;;  %v1203_v38 = vmul.f32 %v1853_v20, %v1853_v20 }
 0x11d   : > { %v1263_v28 = vadd.f32 %v1262_v19, %v1200_v18  ;;  %v1630_v30 = vpack.c.bf16 %v607_v25, %v604_v15  ;;  %v1131_v31 = vadd.f32 %v1130_v17, %v607_v25  ;;  %v1201_v32 = vmul.f32 %v607_v25, %v607_v25 }
 0x11e   : > { %1755 = vst [vmem:[%s2076_s10 + $0x48] sm:$0xff] %v1635_v23   ;;  %1771 = vst [vmem:[%s2076_s10 + $0xc8] sm:$0xff] %v1715_v26   ;;  %v1710_v34 = vpack.c.bf16 %v2146_v27, %v2140_v16 }
 0x11f   : > { %1754 = vst [vmem:[%s2076_s10 + $0x40] sm:$0xff] %v1630_v30   ;;  %v1132_v36 = vadd.f32 %v1852_v12, %v1131_v31  ;;  %v1264_v37 = vadd.f32 %v1263_v28, %v1201_v32 }
 0x120   : > { %1770 = vst [vmem:[%s2076_s10 + $0xc0] sm:$0xff] %v1710_v34  }
 0x121   : > { %v1265_v39 = vadd.f32 %v1264_v37, %v1202_v35  ;;  %v1856_v40 = vpop.f32.mrb[20].mxu0  ;;  %v1133_v42 = vadd.f32 %v1853_v20, %v1132_v36  ;;  %v2154_v44 = vpop.f32.mrb[20].mxu1 }
 0x122   : > { %v620_v46 = vpop.f32.mrb[21].mxu0  ;;  %v2156_v47 = vpop.f32.mrb[21].mxu1  ;;  %v1206_v6 = vmul.f32 %v1856_v40, %v1856_v40 }
 0x123   : > { %v1134_v48 = vadd.f32 %v1133_v42, %v620_v46  ;;  %v1204_v51 = vmul.f32 %v620_v46, %v620_v46  ;;  %v1266_v53 = vadd.f32 %v1265_v39, %v1203_v38  ;;  %v1857_v54 = vpop.f32.mrb[22].mxu0  ;;  %v2158_v55 = vpop.f32.mrb[22].mxu1 }
 0x124   : > { %v1645_v56 = vpack.c.bf16 %v1857_v54, %v1856_v40  ;;  %v623_v58 = vpop.f32.mrb[23].mxu0  ;;  %v1725_v59 = vpack.c.bf16 %v2158_v55, %v2154_v44  ;;  %v2162_v60 = vpop.f32.mrb[23].mxu1  ;;  %v1207_v10 = vmul.f32 %v1857_v54, %v1857_v54 }
 0x125   : > { %v1267_v63 = vadd.f32 %v1266_v53, %v1204_v51  ;;  %v1640_v1 = vpack.c.bf16 %v623_v58, %v620_v46  ;;  %v1135_v2 = vadd.f32 %v1134_v48, %v623_v58  ;;  %v1205_v3 = vmul.f32 %v623_v58, %v623_v58 }
 0x126   : > { %1757 = vst [vmem:[%s2076_s10 + $0x58] sm:$0xff] %v1645_v56   ;;  %1773 = vst [vmem:[%s2076_s10 + $0xd8] sm:$0xff] %v1725_v59   ;;  %v1720_v4 = vpack.c.bf16 %v2162_v60, %v2156_v47 }
 0x127   : > { %1756 = vst [vmem:[%s2076_s10 + $0x50] sm:$0xff] %v1640_v1   ;;  %v1136_v7 = vadd.f32 %v1856_v40, %v1135_v2  ;;  %v1268_v8 = vadd.f32 %v1267_v63, %v1205_v3 }
 0x128   : > { %1772 = vst [vmem:[%s2076_s10 + $0xd0] sm:$0xff] %v1720_v4  }
 0x129   : > { %v1269_v11 = vadd.f32 %v1268_v8, %v1206_v6  ;;  %v1860_v12 = vpop.f32.mrb[24].mxu0  ;;  %v1137_v13 = vadd.f32 %v1857_v54, %v1136_v7  ;;  %v2170_v15 = vpop.f32.mrb[24].mxu1 }
 0x12a   : > { %v636_v17 = vpop.f32.mrb[25].mxu0  ;;  %v2172_v18 = vpop.f32.mrb[25].mxu1  ;;  %v1210_v39 = vmul.f32 %v1860_v12, %v1860_v12 }
 0x12b   : > { %v1138_v19 = vadd.f32 %v1137_v13, %v636_v17  ;;  %v1208_v20 = vmul.f32 %v636_v17, %v636_v17  ;;  %v1270_v23 = vadd.f32 %v1269_v11, %v1207_v10  ;;  %v1861_v25 = vpop.f32.mrb[26].mxu0  ;;  %v2174_v26 = vpop.f32.mrb[26].mxu1 }
 0x12c   : > { %v1655_v28 = vpack.c.bf16 %v1861_v25, %v1860_v12  ;;  %v639_v30 = vpop.f32.mrb[27].mxu0  ;;  %v1735_v31 = vpack.c.bf16 %v2174_v26, %v2170_v15  ;;  %v2178_v32 = vpop.f32.mrb[27].mxu1  ;;  %v1211_v46 = vmul.f32 %v1861_v25, %v1861_v25 }
 0x12d   : > { %v1271_v34 = vadd.f32 %v1270_v23, %v1208_v20  ;;  %v1650_v35 = vpack.c.bf16 %v639_v30, %v636_v17  ;;  %v1139_v36 = vadd.f32 %v1138_v19, %v639_v30  ;;  %v1209_v37 = vmul.f32 %v639_v30, %v639_v30 }
 0x12e   : > { %1759 = vst [vmem:[%s2076_s10 + $0x68] sm:$0xff] %v1655_v28   ;;  %1775 = vst [vmem:[%s2076_s10 + $0xe8] sm:$0xff] %v1735_v31   ;;  %v1730_v38 = vpack.c.bf16 %v2178_v32, %v2172_v18  ;;  %v1216_v31 = vmul.f32 %v2069_v43, %v2069_v43 }
 0x12f   : > { %1758 = vst [vmem:[%s2076_s10 + $0x60] sm:$0xff] %v1650_v35   ;;  %v1140_v40 = vadd.f32 %v1860_v12, %v1139_v36  ;;  %v1272_v42 = vadd.f32 %v1271_v34, %v1209_v37 }
 0x130   : > { %1774 = vst [vmem:[%s2076_s10 + $0xe0] sm:$0xff] %v1730_v38   ;;  %v1217_v38 = vmul.f32 %v2082_v50, %v2082_v50 }
 0x131   : > { %v1273_v48 = vadd.f32 %v1272_v42, %v1210_v39  ;;  %v1864_v51 = vpop.f32.mrb[28].mxu0  ;;  %v1141_v53 = vadd.f32 %v1861_v25, %v1140_v40  ;;  %v2186_v54 = vpop.f32.mrb[28].mxu1  ;;  %v1218_v39 = vmul.f32 %v2067_v41, %v2067_v41 }
 0x132   : > { %v652_v56 = vpop.f32.mrb[29].mxu0  ;;  %v2188_v58 = vpop.f32.mrb[29].mxu1  ;;  %v1214_v19 = vmul.f32 %v1864_v51, %v1864_v51 }
 0x133   : > { %v1142_v59 = vadd.f32 %v1141_v53, %v652_v56  ;;  %v1212_v63 = vmul.f32 %v652_v56, %v652_v56  ;;  %v1274_v1 = vadd.f32 %v1273_v48, %v1211_v46  ;;  %v1865_v2 = vpop.f32.mrb[30].mxu0  ;;  %v2190_v3 = vpop.f32.mrb[30].mxu1  ;;  %v1219_v46 = vmul.f32 %v2078_v45, %v2078_v45 }
 0x134   : > { %v1665_v4 = vpack.c.bf16 %v1865_v2, %v1864_v51  ;;  %v655_v6 = vpop.f32.mrb[31].mxu0  ;;  %v1745_v7 = vpack.c.bf16 %v2190_v3, %v2186_v54  ;;  %v2194_v8 = vpop.f32.mrb[31].mxu1  ;;  %v1215_v25 = vmul.f32 %v1865_v2, %v1865_v2 }
 0x135   : > { %v1275_v10 = vadd.f32 %v1274_v1, %v1212_v63  ;;  %v1660_v11 = vpack.c.bf16 %v655_v6, %v652_v56  ;;  %v1143_v12 = vadd.f32 %v1142_v59, %v655_v6  ;;  %v1213_v13 = vmul.f32 %v655_v6, %v655_v6 }
 0x136   : > { %1761 = vst [vmem:[%s2076_s10 + $0x78] sm:$0xff] %v1665_v4   ;;  %1777 = vst [vmem:[%s2076_s10 + $0xf8] sm:$0xff] %v1745_v7   ;;  %v1740_v17 = vpack.c.bf16 %v2194_v8, %v2188_v58  ;;  %v1221_v63 = vmul.f32 %v2098_v9, %v2098_v9 }
 0x137   : > { %1760 = vst [vmem:[%s2076_s10 + $0x70] sm:$0xff] %v1660_v11   ;;  %v1144_v20 = vadd.f32 %v1864_v51, %v1143_v12  ;;  %v1276_v23 = vadd.f32 %v1275_v10, %v1213_v13  ;;  %v1225_v12 = vmul.f32 %v2114_v33, %v2114_v33 }
 0x138   : > { %1776 = vst [vmem:[%s2076_s10 + $0xf0] sm:$0xff] %v1740_v17  }
 0x139   : > { %v1277_v28 = vadd.f32 %v1276_v23, %v1214_v19  ;;  %v1145_v30 = vadd.f32 %v1865_v2, %v1144_v20 }
 0x13b   : > { %v1146_v34 = vadd.f32 %v1145_v30, %v2069_v43  ;;  %v1278_v35 = vadd.f32 %v1277_v28, %v1215_v25  ;;  %v1220_v43 = vmul.f32 %v2092_v0, %v2092_v0  ;;  %v1229_v30 = vmul.f32 %v2130_v61, %v2130_v61 }
 0x13d   : > { %v1279_v36 = vadd.f32 %v1278_v35, %v1216_v31  ;;  %v1147_v37 = vadd.f32 %v1146_v34, %v2082_v50 }
 0x13f   : > { %v1148_v40 = vadd.f32 %v2067_v41, %v1147_v37  ;;  %v1280_v42 = vadd.f32 %v1279_v36, %v1217_v38  ;;  %v1222_v41 = vmul.f32 %v2090_v62, %v2090_v62 }
 0x141   : > { %v1281_v48 = vadd.f32 %v1280_v42, %v1218_v39  ;;  %v1149_v51 = vadd.f32 %v2078_v45, %v1148_v40  ;;  %v1223_v45 = vmul.f32 %v2094_v5, %v2094_v5  ;;  %v1233_v40 = vmul.f32 %v2146_v27, %v2146_v27 }
 0x143   : > { %v1150_v53 = vadd.f32 %v1149_v51, %v2092_v0  ;;  %v1282_v56 = vadd.f32 %v1281_v48, %v1219_v46  ;;  %v1224_v0 = vmul.f32 %v2108_v24, %v2108_v24 }
 0x145   : > { %v1283_v59 = vadd.f32 %v1282_v56, %v1220_v43  ;;  %v1151_v50 = vadd.f32 %v1150_v53, %v2098_v9 }
 0x147   : > { %v1152_v1 = vadd.f32 %v2090_v62, %v1151_v50  ;;  %v1284_v2 = vadd.f32 %v1283_v59, %v1221_v63  ;;  %v1226_v62 = vmul.f32 %v2106_v22, %v2106_v22  ;;  %v1237_v59 = vmul.f32 %v2162_v60, %v2162_v60 }
 0x149   : > { %v1285_v4 = vadd.f32 %v1284_v2, %v1222_v41  ;;  %v1153_v6 = vadd.f32 %v2094_v5, %v1152_v1  ;;  %v1227_v5 = vmul.f32 %v2110_v29, %v2110_v29 }
 0x14b   : > { %v1154_v7 = vadd.f32 %v1153_v6, %v2108_v24  ;;  %v1286_v10 = vadd.f32 %v1285_v4, %v1223_v45  ;;  %v1228_v24 = vmul.f32 %v2124_v52, %v2124_v52  ;;  %v1241_v6 = vmul.f32 %v2178_v32, %v2178_v32 }
 0x14d   : > { %v1287_v11 = vadd.f32 %v1286_v10, %v1224_v0  ;;  %v1155_v9 = vadd.f32 %v1154_v7, %v2114_v33 }
 0x14f   : > { %v1156_v13 = vadd.f32 %v2106_v22, %v1155_v9  ;;  %v1288_v17 = vadd.f32 %v1287_v11, %v1225_v12  ;;  %v1230_v22 = vmul.f32 %v2122_v49, %v2122_v49  ;;  %v1244_v11 = vmul.f32 %v2188_v58, %v2188_v58 }
 0x151   : > { %v1289_v19 = vadd.f32 %v1288_v17, %v1226_v62  ;;  %v1157_v20 = vadd.f32 %v2110_v29, %v1156_v13  ;;  %v1231_v29 = vmul.f32 %v2126_v57, %v2126_v57  ;;  %v1246_v13 = vmul.f32 %v2186_v54, %v2186_v54 }
 0x153   : > { %v1158_v23 = vadd.f32 %v1157_v20, %v2124_v52  ;;  %v1290_v25 = vadd.f32 %v1289_v19, %v1227_v5  ;;  %v1232_v52 = vmul.f32 %v2140_v16, %v2140_v16 }
 0x155   : > { %v1291_v28 = vadd.f32 %v1290_v25, %v1228_v24  ;;  %v1159_v33 = vadd.f32 %v1158_v23, %v2130_v61 }
 0x157   : > { %v1160_v31 = vadd.f32 %v2122_v49, %v1159_v33  ;;  %v1292_v34 = vadd.f32 %v1291_v28, %v1229_v30  ;;  %v1234_v49 = vmul.f32 %v2138_v14, %v2138_v14 }
 0x159   : > { %v1293_v35 = vadd.f32 %v1292_v34, %v1230_v22  ;;  %v1161_v36 = vadd.f32 %v2126_v57, %v1160_v31  ;;  %v1235_v57 = vmul.f32 %v2142_v21, %v2142_v21 }
 0x15b   : > { %v1162_v37 = vadd.f32 %v1161_v36, %v2140_v16  ;;  %v1294_v38 = vadd.f32 %v1293_v35, %v1231_v29  ;;  %v1236_v16 = vmul.f32 %v2156_v47, %v2156_v47 }
 0x15d   : > { %v1295_v39 = vadd.f32 %v1294_v38, %v1232_v52  ;;  %v1163_v61 = vadd.f32 %v1162_v37, %v2146_v27 }
 0x15f   : > { %v1164_v42 = vadd.f32 %v2138_v14, %v1163_v61  ;;  %v1296_v46 = vadd.f32 %v1295_v39, %v1233_v40  ;;  %v1238_v14 = vmul.f32 %v2154_v44, %v2154_v44 }
 0x161   : > { %v1297_v48 = vadd.f32 %v1296_v46, %v1234_v49  ;;  %v1165_v51 = vadd.f32 %v2142_v21, %v1164_v42  ;;  %v1239_v21 = vmul.f32 %v2158_v55, %v2158_v55 }
 0x163   : > { %v1166_v43 = vadd.f32 %v1165_v51, %v2156_v47  ;;  %v1298_v53 = vadd.f32 %v1297_v48, %v1235_v57  ;;  %v1240_v47 = vmul.f32 %v2172_v18, %v2172_v18 }
 0x165   : > { %v1299_v56 = vadd.f32 %v1298_v53, %v1236_v16  ;;  %v1167_v27 = vadd.f32 %v1166_v43, %v2162_v60 }
 0x167   : > { %v1168_v50 = vadd.f32 %v2154_v44, %v1167_v27  ;;  %v1300_v63 = vadd.f32 %v1299_v56, %v1237_v59  ;;  %v1242_v44 = vmul.f32 %v2170_v15, %v2170_v15 }
 0x169   : > { %v1301_v41 = vadd.f32 %v1300_v63, %v1238_v14  ;;  %v1169_v1 = vadd.f32 %v2158_v55, %v1168_v50  ;;  %v1243_v55 = vmul.f32 %v2174_v26, %v2174_v26 }
 0x16b   : > { %v1170_v2 = vadd.f32 %v1169_v1, %v2172_v18  ;;  %v1302_v45 = vadd.f32 %v1301_v41, %v1239_v21 }
 0x16d   : > { %v1303_v4 = vadd.f32 %v1302_v45, %v1240_v47  ;;  %v1171_v60 = vadd.f32 %v1170_v2, %v2178_v32 }
 0x16f   : > { %v1172_v0 = vadd.f32 %v2170_v15, %v1171_v60  ;;  %v1304_v7 = vadd.f32 %v1303_v4, %v1241_v6  ;;  %v1245_v15 = vmul.f32 %v2194_v8, %v2194_v8 }
 0x171   : > { %v1305_v10 = vadd.f32 %v1304_v7, %v1242_v44  ;;  %v1173_v18 = vadd.f32 %v2174_v26, %v1172_v0  ;;  %v1247_v26 = vmul.f32 %v2190_v3, %v2190_v3 }
 0x173   : > { %v1174_v9 = vadd.f32 %v1173_v18, %v2188_v58  ;;  %v1306_v12 = vadd.f32 %v1305_v10, %v1243_v55 }
 0x175   : > { %v1307_v32 = vadd.f32 %v1306_v12, %v1244_v11  ;;  %v1175_v62 = vadd.f32 %v1174_v9, %v2194_v8 }
 0x177   : > { %v1176_v17 = vadd.f32 %v2186_v54, %v1175_v62  ;;  %v1308_v5 = vadd.f32 %v1307_v32, %v1245_v15 }
 0x179   : > { %v1177_v19 = vadd.f32 %v2190_v3, %v1176_v17  ;;  %v1309_v58 = vadd.f32 %v1308_v5, %v1246_v13 }
 0x17b   : > { %v1178_v20 = vrot.slane %v1177_v19, 4  ;;  %v1310_v24 = vadd.f32 %v1309_v58, %v1247_v26 }
 0x17d   : > { %v1179_v23 = vadd.f32 %v1178_v20, %v1177_v19  ;;  %v1311_v25 = vrot.slane %v1310_v24, 4 }
 0x17f   : > { %v1180_v28 = vrot.slane %v1179_v23, 2  ;;  %v1312_v33 = vadd.f32 %v1311_v25, %v1310_v24 }
 0x181   : > { %v1181_v8 = vadd.f32 %v1180_v28, %v1179_v23  ;;  %v1313_v30 = vrot.slane %v1312_v33, 2 }
 0x183   : > { %v1182_v22 = vrot.slane %v1181_v8, 1  ;;  %v1314_v31 = vadd.f32 %v1313_v30, %v1312_v33 }
 0x185   : > { %v1315_v54 = vrot.slane %v1314_v31, 1  ;;  %v1183_v3 = vadd.f32 %v1182_v22, %v1181_v8 }
 0x187   : > { %v1316_v34 = vadd.f32 %v1315_v54, %v1314_v31 }
 0x189   : > { %v1318_v29 = vsel %vm1317_vm0, %v1183_v3, %v1316_v34 }
 0x18a   : > { %1319 = vst [vmem:[%s184_s16] sm:$0x3] %v1318_v29 }
 0x18b PF: > { %s14_s12 = sadd.s32 1, %s1968_s12  }
 0x18c   : > { %p11_p5 = scmp.ge.s32.totalorder %s14_s12, 6  }
 0x18e   :  { %13 = sbr.rel (!%p11_p5) target bundleno = 1 (0x1), region = 70 }

// kernel: usps_feature_extractor.11
= control target key start
LH: loop header
LB: loop body
LE: loop exit
PB: predicated region body
PF: predicated region fallthrough
CT: control target
= control target key end

     0   :  { %s3124_s0 = inlined_call_operand.vmem [shape: bf16[4,392,128], index: 0, kind: input, shape index: {}]   ;;  %s3125_s1 = inlined_call_operand.vmem [shape: f32[1,128], index: 1, kind: input, shape index: {}]   ;;  %s3126_s2 = inlined_call_operand.vmem [shape: f32[1,128], index: 2, kind: input, shape index: {}]   ;;  %s3127_s3 = inlined_call_operand.vmem [shape: bf16[392,128], index: 3, kind: output, shape index: {}]  }
   0x1   :  { %v1506_v0 = vld [vmem:[%s3124_s0] sm:$0xff]   ;;  %v2041_v2 = vld [vmem:[%s3124_s0 + $0xc8] sm:$0xff]   ;;  %v2090_v9 = vld [vmem:[%s3124_s0 + $0x250] sm:$0xff]  }
   0x2   :  { %v2040_v1 = vld [vmem:[%s3124_s0 + $0xc0] sm:$0xff]   ;;  %v1507_v3 = vunpack.c.l.bf16 %v1506_v0  ;;  %v1508_v4 = vunpack.c.h.bf16 %v1506_v0  ;;  %v1607_v6 = vunpack.c.l.bf16 %v2041_v2  ;;  %v2065_v7 = vld [vmem:[%s3124_s0 + $0x188] sm:$0xff]   ;;  %v1803_v13 = vunpack.c.l.bf16 %v2090_v9  ;;  %v2213_v37 = vld [vmem:[%s3124_s0 + $0xd0] sm:$0xff]  }
   0x3   :  { %v1604_v5 = vunpack.c.h.bf16 %v2040_v1  ;;  %v2089_v8 = vld [vmem:[%s3124_s0 + $0x248] sm:$0xff]   ;;  %v1703_v10 = vunpack.c.l.bf16 %v2065_v7  ;;  %v1704_v11 = vunpack.c.h.bf16 %v2065_v7  ;;  %v2184_v14 = vld [vmem:[%s3125_s1] ss:$0 sm:$0xff]  ;;  %v2066_v38 = vld [vmem:[%s3124_s0 + $0x190] sm:$0xff]   ;;  %v1608_v48 = vunpack.c.h.bf16 %v2041_v2 }
   0x4   :  { %v1800_v12 = vunpack.c.h.bf16 %v2089_v8  ;;  %v2189_v15 = vld [vmem:[%s3126_s2] ss:$0 sm:$0xff]  ;;  %v413_v16 = vmul.f32 %v1507_v3, %v2184_v14  ;;  %v414_v17 = vmul.f32 %v1508_v4, %v2184_v14  ;;  %v463_v19 = vmul.f32 %v1607_v6, %v2184_v14  ;;  %v2017_v32 = vld [vmem:[%s3124_s0 + $0x8] sm:$0xff]   ;;  %v2221_v43 = vld [vmem:[%s3124_s0 + $0x258] sm:$0xff]  }
   0x5   :  { %v462_v18 = vmul.f32 %v1604_v5, %v2184_v14  ;;  %v511_v20 = vmul.f32 %v1703_v10, %v2184_v14  ;;  %v512_v21 = vmul.f32 %v1704_v11, %v2184_v14  ;;  %v561_v23 = vmul.f32 %v1803_v13, %v2184_v14  ;;  %v2018_v8 = vld [vmem:[%s3124_s0 + $0x10] sm:$0xff]  }
   0x6   :  { %v560_v22 = vmul.f32 %v1800_v12, %v2184_v14  ;;  %v616_v24 = vadd.f32 %v2189_v15, %v413_v16  ;;  %v617_v25 = vadd.f32 %v2189_v15, %v414_v17  ;;  %v666_v27 = vadd.f32 %v2189_v15, %v463_v19  ;;  %v2250_v19 = vld [vmem:[%s3124_s0 + $0xd8] sm:$0xff]  }
   0x7   :  { %v665_v26 = vadd.f32 %v2189_v15, %v462_v18  ;;  %v714_v28 = vadd.f32 %v2189_v15, %v511_v20  ;;  %v715_v29 = vadd.f32 %v2189_v15, %v512_v21  ;;  %v764_v31 = vadd.f32 %v2189_v15, %v561_v23  ;;  %v2067_v20 = vld [vmem:[%s3124_s0 + $0x198] sm:$0xff]  }
   0x8   :  { %v763_v30 = vadd.f32 %v2189_v15, %v560_v22  ;;  %v812_v33 = vmax.f32 %v616_v24, 0.0  ;;  %v813_v34 = vmax.f32 %v617_v25, 0.0  ;;  %v862_v36 = vmax.f32 %v666_v27, 0.0  ;;  %v2258_v25 = vld [vmem:[%s3124_s0 + $0x260] sm:$0xff]  }
   0x9   :  { %v861_v35 = vmax.f32 %v665_v26, 0.0  ;;  %v910_v39 = vmax.f32 %v714_v28, 0.0  ;;  %v911_v40 = vmax.f32 %v715_v29, 0.0  ;;  %v960_v42 = vmax.f32 %v764_v31, 0.0 }
   0xa   :  { %v959_v41 = vmax.f32 %v763_v30, 0.0  ;;  %v1011_v45 = vmax.f32 %v813_v34, %v862_v36  ;;  %v1511_v46 = vunpack.c.l.bf16 %v2017_v32  ;;  %v1512_v47 = vunpack.c.h.bf16 %v2017_v32 }
   0xb   :  { %v1008_v44 = vmax.f32 %v812_v33, %v861_v35  ;;  %v1611_v49 = vunpack.c.l.bf16 %v2213_v37  ;;  %v1707_v50 = vunpack.c.l.bf16 %v2066_v38  ;;  %v1708_v51 = vunpack.c.h.bf16 %v2066_v38 }
   0xc   :  { %v1012_v53 = vmax.f32 %v1011_v45, %v911_v40  ;;  %v1804_v54 = vunpack.c.h.bf16 %v2090_v9  ;;  %v1807_v55 = vunpack.c.l.bf16 %v2221_v43  ;;  %v415_v56 = vmul.f32 %v1511_v46, %v2184_v14 }
   0xd   :  { %v1009_v52 = vmax.f32 %v1008_v44, %v910_v39  ;;  %v416_v57 = vmul.f32 %v1512_v47, %v2184_v14  ;;  %v464_v58 = vmul.f32 %v1608_v48, %v2184_v14  ;;  %v465_v59 = vmul.f32 %v1611_v49, %v2184_v14 }
   0xe   :  { %v1013_v61 = vmax.f32 %v1012_v53, %v960_v42  ;;  %v513_v62 = vmul.f32 %v1707_v50, %v2184_v14  ;;  %v514_v63 = vmul.f32 %v1708_v51, %v2184_v14  ;;  %v562_v0 = vmul.f32 %v1804_v54, %v2184_v14  ;;  %v2019_v54 = vld [vmem:[%s3124_s0 + $0x18] sm:$0xff]  }
   0xf   :  { %v1010_v60 = vmax.f32 %v1009_v52, %v959_v41  ;;  %v563_v1 = vmul.f32 %v1807_v55, %v2184_v14  ;;  %v618_v2 = vadd.f32 %v2189_v15, %v415_v56  ;;  %v619_v3 = vadd.f32 %v2189_v15, %v416_v57 }
  0x10   :  { %v667_v5 = vadd.f32 %v2189_v15, %v464_v58  ;;  %v668_v6 = vadd.f32 %v2189_v15, %v465_v59  ;;  %v716_v7 = vadd.f32 %v2189_v15, %v513_v62  ;;  %v717_v9 = vadd.f32 %v2189_v15, %v514_v63  ;;  %v2286_v59 = vld [vmem:[%s3124_s0 + $0xe0] sm:$0xff]  }
  0x11   :  { %v1900_v4 = vpack.c.bf16 %v1013_v61, %v1010_v60  ;;  %v765_v10 = vadd.f32 %v2189_v15, %v562_v0  ;;  %v766_v11 = vadd.f32 %v2189_v15, %v563_v1  ;;  %v814_v12 = vmax.f32 %v618_v2, 0.0  ;;  %v2068_v0 = vld [vmem:[%s3124_s0 + $0x1a0] sm:$0xff]   ;;  %v2297_v1 = vld [vmem:[%s3124_s0 + $0x268] sm:$0xff]  }
  0x12   :  { %v815_v13 = vmax.f32 %v619_v3, 0.0  ;;  %v863_v16 = vmax.f32 %v667_v5, 0.0  ;;  %v864_v17 = vmax.f32 %v668_v6, 0.0  ;;  %v912_v18 = vmax.f32 %v716_v7, 0.0 }
  0x13   :  { %1901 = vst [vmem:[%s3127_s3] sm:$0xff] %v1900_v4   ;;  %v913_v21 = vmax.f32 %v717_v9, 0.0  ;;  %v961_v22 = vmax.f32 %v765_v10, 0.0  ;;  %v962_v23 = vmax.f32 %v766_v11, 0.0  ;;  %v1515_v24 = vunpack.c.l.bf16 %v2018_v8 }
  0x14   :  { %v1014_v26 = vmax.f32 %v814_v12, %v863_v16  ;;  %v1017_v27 = vmax.f32 %v815_v13, %v864_v17  ;;  %v1516_v28 = vunpack.c.h.bf16 %v2018_v8  ;;  %v1612_v29 = vunpack.c.h.bf16 %v2213_v37 }
  0x15   :  { %v1615_v30 = vunpack.c.l.bf16 %v2250_v19  ;;  %v1711_v31 = vunpack.c.l.bf16 %v2067_v20  ;;  %v1712_v32 = vunpack.c.h.bf16 %v2067_v20  ;;  %v1808_v33 = vunpack.c.h.bf16 %v2221_v43 }
  0x16   :  { %v1015_v34 = vmax.f32 %v1014_v26, %v912_v18  ;;  %v1018_v35 = vmax.f32 %v1017_v27, %v913_v21  ;;  %v1811_v36 = vunpack.c.l.bf16 %v2258_v25  ;;  %v417_v38 = vmul.f32 %v1515_v24, %v2184_v14 }
  0x17   :  { %v418_v39 = vmul.f32 %v1516_v28, %v2184_v14  ;;  %v466_v40 = vmul.f32 %v1612_v29, %v2184_v14  ;;  %v467_v41 = vmul.f32 %v1615_v30, %v2184_v14  ;;  %v515_v37 = vmul.f32 %v1711_v31, %v2184_v14 }
  0x18   :  { %v1016_v42 = vmax.f32 %v1015_v34, %v961_v22  ;;  %v1019_v44 = vmax.f32 %v1018_v35, %v962_v23  ;;  %v516_v45 = vmul.f32 %v1712_v32, %v2184_v14  ;;  %v564_v43 = vmul.f32 %v1808_v33, %v2184_v14 }
  0x19   :  { %v565_v46 = vmul.f32 %v1811_v36, %v2184_v14  ;;  %v620_v47 = vadd.f32 %v2189_v15, %v417_v38  ;;  %v621_v48 = vadd.f32 %v2189_v15, %v418_v39  ;;  %v669_v49 = vadd.f32 %v2189_v15, %v466_v40  ;;  %v2020_v36 = vld [vmem:[%s3124_s0 + $0x20] sm:$0xff]  }
  0x1a   :  { %v1905_v50 = vpack.c.bf16 %v1019_v44, %v1016_v42  ;;  %v670_v51 = vadd.f32 %v2189_v15, %v467_v41  ;;  %v718_v52 = vadd.f32 %v2189_v15, %v515_v37  ;;  %v719_v53 = vadd.f32 %v2189_v15, %v516_v45  ;;  %v2325_v37 = vld [vmem:[%s3124_s0 + $0xe8] sm:$0xff]  }
  0x1b   :  { %v767_v55 = vadd.f32 %v2189_v15, %v564_v43  ;;  %v768_v56 = vadd.f32 %v2189_v15, %v565_v46  ;;  %v816_v57 = vmax.f32 %v620_v47, 0.0  ;;  %v817_v58 = vmax.f32 %v621_v48, 0.0  ;;  %v2069_v42 = vld [vmem:[%s3124_s0 + $0x1a8] sm:$0xff]   ;;  %v2336_v47 = vld [vmem:[%s3124_s0 + $0x270] sm:$0xff]  }
  0x1c   :  { %2114 = vst [vmem:[%s3127_s3 + $0x8] sm:$0xff] %v1905_v50   ;;  %v865_v60 = vmax.f32 %v669_v49, 0.0  ;;  %v866_v61 = vmax.f32 %v670_v51, 0.0  ;;  %v914_v62 = vmax.f32 %v718_v52, 0.0  ;;  %v915_v63 = vmax.f32 %v719_v53, 0.0 }
  0x1d   :  { %v963_v2 = vmax.f32 %v767_v55, 0.0  ;;  %v964_v3 = vmax.f32 %v768_v56, 0.0  ;;  %v1519_v4 = vunpack.c.l.bf16 %v2019_v54  ;;  %v1520_v5 = vunpack.c.h.bf16 %v2019_v54 }
  0x1e   :  { %v1020_v6 = vmax.f32 %v816_v57, %v865_v60  ;;  %v1023_v7 = vmax.f32 %v817_v58, %v866_v61  ;;  %v1616_v8 = vunpack.c.h.bf16 %v2250_v19  ;;  %v1619_v9 = vunpack.c.l.bf16 %v2286_v59 }
  0x1f   :  { %v1715_v10 = vunpack.c.l.bf16 %v2068_v0  ;;  %v1716_v11 = vunpack.c.h.bf16 %v2068_v0  ;;  %v1812_v12 = vunpack.c.h.bf16 %v2258_v25  ;;  %v1815_v13 = vunpack.c.l.bf16 %v2297_v1 }
  0x20   :  { %v1021_v16 = vmax.f32 %v1020_v6, %v914_v62  ;;  %v1024_v17 = vmax.f32 %v1023_v7, %v915_v63  ;;  %v419_v18 = vmul.f32 %v1519_v4, %v2184_v14  ;;  %v420_v20 = vmul.f32 %v1520_v5, %v2184_v14 }
  0x21   :  { %v468_v21 = vmul.f32 %v1616_v8, %v2184_v14  ;;  %v469_v22 = vmul.f32 %v1619_v9, %v2184_v14  ;;  %v517_v19 = vmul.f32 %v1715_v10, %v2184_v14  ;;  %v518_v23 = vmul.f32 %v1716_v11, %v2184_v14 }
  0x22   :  { %v1022_v24 = vmax.f32 %v1021_v16, %v963_v2  ;;  %v1025_v26 = vmax.f32 %v1024_v17, %v964_v3  ;;  %v566_v25 = vmul.f32 %v1812_v12, %v2184_v14  ;;  %v567_v27 = vmul.f32 %v1815_v13, %v2184_v14 }
  0x23   :  { %v622_v28 = vadd.f32 %v2189_v15, %v419_v18  ;;  %v623_v29 = vadd.f32 %v2189_v15, %v420_v20  ;;  %v671_v30 = vadd.f32 %v2189_v15, %v468_v21  ;;  %v672_v31 = vadd.f32 %v2189_v15, %v469_v22  ;;  %v2021_v18 = vld [vmem:[%s3124_s0 + $0x28] sm:$0xff]  }
  0x24   :  { %v1910_v32 = vpack.c.bf16 %v1025_v26, %v1022_v24  ;;  %v720_v33 = vadd.f32 %v2189_v15, %v517_v19  ;;  %v721_v34 = vadd.f32 %v2189_v15, %v518_v23  ;;  %v769_v35 = vadd.f32 %v2189_v15, %v566_v25  ;;  %v2364_v23 = vld [vmem:[%s3124_s0 + $0xf0] sm:$0xff]  }
  0x25   :  { %v770_v38 = vadd.f32 %v2189_v15, %v567_v27  ;;  %v818_v39 = vmax.f32 %v622_v28, 0.0  ;;  %v819_v40 = vmax.f32 %v623_v29, 0.0  ;;  %v867_v41 = vmax.f32 %v671_v30, 0.0  ;;  %v2070_v24 = vld [vmem:[%s3124_s0 + $0x1b0] sm:$0xff]   ;;  %v2375_v29 = vld [vmem:[%s3124_s0 + $0x278] sm:$0xff]  }
  0x26   :  { %2115 = vst [vmem:[%s3127_s3 + $0x10] sm:$0xff] %v1910_v32   ;;  %v868_v44 = vmax.f32 %v672_v31, 0.0  ;;  %v916_v45 = vmax.f32 %v720_v33, 0.0  ;;  %v917_v43 = vmax.f32 %v721_v34, 0.0  ;;  %v965_v46 = vmax.f32 %v769_v35, 0.0 }
  0x27   :  { %v966_v48 = vmax.f32 %v770_v38, 0.0  ;;  %v1026_v49 = vmax.f32 %v818_v39, %v867_v41  ;;  %v1523_v50 = vunpack.c.l.bf16 %v2020_v36  ;;  %v1524_v51 = vunpack.c.h.bf16 %v2020_v36 }
  0x28   :  { %v1029_v52 = vmax.f32 %v819_v40, %v868_v44  ;;  %v1620_v53 = vunpack.c.h.bf16 %v2286_v59  ;;  %v1623_v54 = vunpack.c.l.bf16 %v2325_v37  ;;  %v1719_v55 = vunpack.c.l.bf16 %v2069_v42 }
  0x29   :  { %v1027_v56 = vmax.f32 %v1026_v49, %v916_v45  ;;  %v1720_v57 = vunpack.c.h.bf16 %v2069_v42  ;;  %v1816_v58 = vunpack.c.h.bf16 %v2297_v1  ;;  %v1819_v60 = vunpack.c.l.bf16 %v2336_v47 }
  0x2a   :  { %v1030_v61 = vmax.f32 %v1029_v52, %v917_v43  ;;  %v421_v62 = vmul.f32 %v1523_v50, %v2184_v14  ;;  %v422_v63 = vmul.f32 %v1524_v51, %v2184_v14  ;;  %v470_v0 = vmul.f32 %v1620_v53, %v2184_v14 }
  0x2b   :  { %v1028_v2 = vmax.f32 %v1027_v56, %v965_v46  ;;  %v471_v3 = vmul.f32 %v1623_v54, %v2184_v14  ;;  %v519_v59 = vmul.f32 %v1719_v55, %v2184_v14  ;;  %v520_v4 = vmul.f32 %v1720_v57, %v2184_v14 }
  0x2c   :  { %v1031_v5 = vmax.f32 %v1030_v61, %v966_v48  ;;  %v568_v6 = vmul.f32 %v1816_v58, %v2184_v14  ;;  %v569_v1 = vmul.f32 %v1819_v60, %v2184_v14  ;;  %v624_v7 = vadd.f32 %v2189_v15, %v421_v62  ;;  %v2022_v58 = vld [vmem:[%s3124_s0 + $0x30] sm:$0xff]  }
  0x2d   :  { %v625_v8 = vadd.f32 %v2189_v15, %v422_v63  ;;  %v673_v9 = vadd.f32 %v2189_v15, %v470_v0  ;;  %v674_v10 = vadd.f32 %v2189_v15, %v471_v3  ;;  %v722_v11 = vadd.f32 %v2189_v15, %v519_v59 }
  0x2e   :  { %v1915_v12 = vpack.c.bf16 %v1031_v5, %v1028_v2  ;;  %v723_v13 = vadd.f32 %v2189_v15, %v520_v4  ;;  %v771_v16 = vadd.f32 %v2189_v15, %v568_v6  ;;  %v772_v17 = vadd.f32 %v2189_v15, %v569_v1  ;;  %v2406_v4 = vld [vmem:[%s3124_s0 + $0xf8] sm:$0xff]  }
  0x2f   :  { %v820_v20 = vmax.f32 %v624_v7, 0.0  ;;  %v821_v21 = vmax.f32 %v625_v8, 0.0  ;;  %v869_v22 = vmax.f32 %v673_v9, 0.0  ;;  %v870_v19 = vmax.f32 %v674_v10, 0.0  ;;  %v2071_v5 = vld [vmem:[%s3124_s0 + $0x1b8] sm:$0xff]   ;;  %v2414_v9 = vld [vmem:[%s3124_s0 + $0x280] sm:$0xff]  }
  0x30   :  { %2116 = vst [vmem:[%s3127_s3 + $0x18] sm:$0xff] %v1915_v12   ;;  %v918_v26 = vmax.f32 %v722_v11, 0.0  ;;  %v919_v25 = vmax.f32 %v723_v13, 0.0  ;;  %v967_v27 = vmax.f32 %v771_v16, 0.0  ;;  %v968_v28 = vmax.f32 %v772_v17, 0.0 }
  0x31   :  { %v1032_v30 = vmax.f32 %v820_v20, %v869_v22  ;;  %v1035_v31 = vmax.f32 %v821_v21, %v870_v19  ;;  %v1527_v32 = vunpack.c.l.bf16 %v2021_v18  ;;  %v1528_v33 = vunpack.c.h.bf16 %v2021_v18 }
  0x32   :  { %v1624_v34 = vunpack.c.h.bf16 %v2325_v37  ;;  %v1627_v35 = vunpack.c.l.bf16 %v2364_v23  ;;  %v1723_v36 = vunpack.c.l.bf16 %v2070_v24  ;;  %v1724_v38 = vunpack.c.h.bf16 %v2070_v24 }
  0x33   :  { %v1033_v39 = vmax.f32 %v1032_v30, %v918_v26  ;;  %v1036_v40 = vmax.f32 %v1035_v31, %v919_v25  ;;  %v1820_v41 = vunpack.c.h.bf16 %v2336_v47  ;;  %v1823_v42 = vunpack.c.l.bf16 %v2375_v29 }
  0x34   :  { %v423_v44 = vmul.f32 %v1527_v32, %v2184_v14  ;;  %v424_v45 = vmul.f32 %v1528_v33, %v2184_v14  ;;  %v472_v43 = vmul.f32 %v1624_v34, %v2184_v14  ;;  %v473_v46 = vmul.f32 %v1627_v35, %v2184_v14 }
  0x35   :  { %v1034_v48 = vmax.f32 %v1033_v39, %v967_v27  ;;  %v1037_v37 = vmax.f32 %v1036_v40, %v968_v28  ;;  %v521_v49 = vmul.f32 %v1723_v36, %v2184_v14  ;;  %v522_v50 = vmul.f32 %v1724_v38, %v2184_v14 }
  0x36   :  { %v570_v51 = vmul.f32 %v1820_v41, %v2184_v14  ;;  %v571_v47 = vmul.f32 %v1823_v42, %v2184_v14  ;;  %v626_v52 = vadd.f32 %v2189_v15, %v423_v44  ;;  %v627_v53 = vadd.f32 %v2189_v15, %v424_v45  ;;  %v2023_v41 = vld [vmem:[%s3124_s0 + $0x38] sm:$0xff]  }
  0x37   :  { %v1920_v54 = vpack.c.bf16 %v1037_v37, %v1034_v48  ;;  %v675_v55 = vadd.f32 %v2189_v15, %v472_v43  ;;  %v676_v56 = vadd.f32 %v2189_v15, %v473_v46  ;;  %v724_v57 = vadd.f32 %v2189_v15, %v521_v49  ;;  %v2442_v46 = vld [vmem:[%s3124_s0 + $0x100] sm:$0xff]  }
  0x38   :  { %v725_v60 = vadd.f32 %v2189_v15, %v522_v50  ;;  %v773_v61 = vadd.f32 %v2189_v15, %v570_v51  ;;  %v774_v62 = vadd.f32 %v2189_v15, %v571_v47  ;;  %v822_v63 = vmax.f32 %v626_v52, 0.0  ;;  %v2072_v51 = vld [vmem:[%s3124_s0 + $0x1c0] sm:$0xff]   ;;  %v2453_v47 = vld [vmem:[%s3124_s0 + $0x288] sm:$0xff]  }
  0x39   :  { %2117 = vst [vmem:[%s3127_s3 + $0x20] sm:$0xff] %v1920_v54   ;;  %v823_v0 = vmax.f32 %v627_v53, 0.0  ;;  %v871_v2 = vmax.f32 %v675_v55, 0.0  ;;  %v872_v3 = vmax.f32 %v676_v56, 0.0  ;;  %v920_v59 = vmax.f32 %v724_v57, 0.0 }
  0x3a   :  { %v921_v6 = vmax.f32 %v725_v60, 0.0  ;;  %v969_v1 = vmax.f32 %v773_v61, 0.0  ;;  %v970_v7 = vmax.f32 %v774_v62, 0.0  ;;  %v1531_v8 = vunpack.c.l.bf16 %v2022_v58 }
  0x3b   :  { %v1038_v10 = vmax.f32 %v822_v63, %v871_v2  ;;  %v1041_v11 = vmax.f32 %v823_v0, %v872_v3  ;;  %v1532_v12 = vunpack.c.h.bf16 %v2022_v58  ;;  %v1628_v13 = vunpack.c.h.bf16 %v2364_v23 }
  0x3c   :  { %v1631_v16 = vunpack.c.l.bf16 %v2406_v4  ;;  %v1727_v17 = vunpack.c.l.bf16 %v2071_v5  ;;  %v1728_v18 = vunpack.c.h.bf16 %v2071_v5  ;;  %v1824_v20 = vunpack.c.h.bf16 %v2375_v29 }
  0x3d   :  { %v1039_v21 = vmax.f32 %v1038_v10, %v920_v59  ;;  %v1042_v22 = vmax.f32 %v1041_v11, %v921_v6  ;;  %v1827_v19 = vunpack.c.l.bf16 %v2414_v9  ;;  %v425_v24 = vmul.f32 %v1531_v8, %v2184_v14 }
  0x3e   :  { %v426_v26 = vmul.f32 %v1532_v12, %v2184_v14  ;;  %v474_v25 = vmul.f32 %v1628_v13, %v2184_v14  ;;  %v475_v27 = vmul.f32 %v1631_v16, %v2184_v14  ;;  %v523_v23 = vmul.f32 %v1727_v17, %v2184_v14 }
  0x3f   :  { %v1040_v28 = vmax.f32 %v1039_v21, %v969_v1  ;;  %v1043_v30 = vmax.f32 %v1042_v22, %v970_v7  ;;  %v524_v31 = vmul.f32 %v1728_v18, %v2184_v14  ;;  %v572_v29 = vmul.f32 %v1824_v20, %v2184_v14 }
  0x40   :  { %v573_v32 = vmul.f32 %v1827_v19, %v2184_v14  ;;  %v628_v33 = vadd.f32 %v2189_v15, %v425_v24  ;;  %v629_v34 = vadd.f32 %v2189_v15, %v426_v26  ;;  %v677_v35 = vadd.f32 %v2189_v15, %v474_v25  ;;  %v2024_v19 = vld [vmem:[%s3124_s0 + $0x40] sm:$0xff]  }
  0x41   :  { %v1925_v36 = vpack.c.bf16 %v1043_v30, %v1040_v28  ;;  %v678_v38 = vadd.f32 %v2189_v15, %v475_v27  ;;  %v726_v39 = vadd.f32 %v2189_v15, %v523_v23  ;;  %v727_v40 = vadd.f32 %v2189_v15, %v524_v31  ;;  %v2481_v23 = vld [vmem:[%s3124_s0 + $0x108] sm:$0xff]  }
  0x42   :  { %v775_v42 = vadd.f32 %v2189_v15, %v572_v29  ;;  %v776_v44 = vadd.f32 %v2189_v15, %v573_v32  ;;  %v824_v45 = vmax.f32 %v628_v33, 0.0  ;;  %v825_v43 = vmax.f32 %v629_v34, 0.0  ;;  %v2073_v28 = vld [vmem:[%s3124_s0 + $0x1c8] sm:$0xff]   ;;  %v2492_v33 = vld [vmem:[%s3124_s0 + $0x290] sm:$0xff]  }
  0x43   :  { %2118 = vst [vmem:[%s3127_s3 + $0x28] sm:$0xff] %v1925_v36   ;;  %v873_v48 = vmax.f32 %v677_v35, 0.0  ;;  %v874_v37 = vmax.f32 %v678_v38, 0.0  ;;  %v922_v49 = vmax.f32 %v726_v39, 0.0  ;;  %v923_v50 = vmax.f32 %v727_v40, 0.0 }
  0x44   :  { %v971_v52 = vmax.f32 %v775_v42, 0.0  ;;  %v972_v53 = vmax.f32 %v776_v44, 0.0  ;;  %v1535_v54 = vunpack.c.l.bf16 %v2023_v41  ;;  %v1536_v55 = vunpack.c.h.bf16 %v2023_v41 }
  0x45   :  { %v1044_v56 = vmax.f32 %v824_v45, %v873_v48  ;;  %v1047_v57 = vmax.f32 %v825_v43, %v874_v37  ;;  %v1632_v58 = vunpack.c.h.bf16 %v2406_v4  ;;  %v1635_v60 = vunpack.c.l.bf16 %v2442_v46 }
  0x46   :  { %v1731_v61 = vunpack.c.l.bf16 %v2072_v51  ;;  %v1732_v62 = vunpack.c.h.bf16 %v2072_v51  ;;  %v1828_v63 = vunpack.c.h.bf16 %v2414_v9  ;;  %v1831_v0 = vunpack.c.l.bf16 %v2453_v47 }
  0x47   :  { %v1045_v2 = vmax.f32 %v1044_v56, %v922_v49  ;;  %v1048_v3 = vmax.f32 %v1047_v57, %v923_v50  ;;  %v427_v59 = vmul.f32 %v1535_v54, %v2184_v14  ;;  %v428_v5 = vmul.f32 %v1536_v55, %v2184_v14 }
  0x48   :  { %v476_v6 = vmul.f32 %v1632_v58, %v2184_v14  ;;  %v477_v1 = vmul.f32 %v1635_v60, %v2184_v14  ;;  %v525_v4 = vmul.f32 %v1731_v61, %v2184_v14  ;;  %v526_v7 = vmul.f32 %v1732_v62, %v2184_v14 }
  0x49   :  { %v1046_v8 = vmax.f32 %v1045_v2, %v971_v52  ;;  %v1049_v10 = vmax.f32 %v1048_v3, %v972_v53  ;;  %v574_v9 = vmul.f32 %v1828_v63, %v2184_v14  ;;  %v575_v11 = vmul.f32 %v1831_v0, %v2184_v14 }
  0x4a   :  { %v630_v12 = vadd.f32 %v2189_v15, %v427_v59  ;;  %v631_v13 = vadd.f32 %v2189_v15, %v428_v5  ;;  %v679_v16 = vadd.f32 %v2189_v15, %v476_v6  ;;  %v680_v17 = vadd.f32 %v2189_v15, %v477_v1  ;;  %v2025_v59 = vld [vmem:[%s3124_s0 + $0x48] sm:$0xff]  }
  0x4b   :  { %v1930_v18 = vpack.c.bf16 %v1049_v10, %v1046_v8  ;;  %v728_v20 = vadd.f32 %v2189_v15, %v525_v4  ;;  %v729_v21 = vadd.f32 %v2189_v15, %v526_v7  ;;  %v777_v22 = vadd.f32 %v2189_v15, %v574_v9  ;;  %v2520_v7 = vld [vmem:[%s3124_s0 + $0x110] sm:$0xff]  }
  0x4c   :  { %v778_v24 = vadd.f32 %v2189_v15, %v575_v11  ;;  %v826_v26 = vmax.f32 %v630_v12, 0.0  ;;  %v827_v25 = vmax.f32 %v631_v13, 0.0  ;;  %v875_v27 = vmax.f32 %v679_v16, 0.0  ;;  %v2074_v8 = vld [vmem:[%s3124_s0 + $0x1d0] sm:$0xff]   ;;  %v2531_v13 = vld [vmem:[%s3124_s0 + $0x298] sm:$0xff]  }
  0x4d   :  { %2119 = vst [vmem:[%s3127_s3 + $0x30] sm:$0xff] %v1930_v18   ;;  %v876_v30 = vmax.f32 %v680_v17, 0.0  ;;  %v924_v31 = vmax.f32 %v728_v20, 0.0  ;;  %v925_v29 = vmax.f32 %v729_v21, 0.0  ;;  %v973_v32 = vmax.f32 %v777_v22, 0.0 }
  0x4e   :  { %v974_v34 = vmax.f32 %v778_v24, 0.0  ;;  %v1050_v35 = vmax.f32 %v826_v26, %v875_v27  ;;  %v1539_v36 = vunpack.c.l.bf16 %v2024_v19  ;;  %v1540_v38 = vunpack.c.h.bf16 %v2024_v19 }
  0x4f   :  { %v1053_v39 = vmax.f32 %v827_v25, %v876_v30  ;;  %v1636_v40 = vunpack.c.h.bf16 %v2442_v46  ;;  %v1639_v41 = vunpack.c.l.bf16 %v2481_v23  ;;  %v1735_v42 = vunpack.c.l.bf16 %v2073_v28 }
  0x50   :  { %v1051_v44 = vmax.f32 %v1050_v35, %v924_v31  ;;  %v1736_v45 = vunpack.c.h.bf16 %v2073_v28  ;;  %v1832_v43 = vunpack.c.h.bf16 %v2453_v47  ;;  %v1835_v48 = vunpack.c.l.bf16 %v2492_v33 }
  0x51   :  { %v1054_v37 = vmax.f32 %v1053_v39, %v925_v29  ;;  %v429_v49 = vmul.f32 %v1539_v36, %v2184_v14  ;;  %v430_v50 = vmul.f32 %v1540_v38, %v2184_v14  ;;  %v478_v51 = vmul.f32 %v1636_v40, %v2184_v14 }
  0x52   :  { %v1052_v52 = vmax.f32 %v1051_v44, %v973_v32  ;;  %v479_v53 = vmul.f32 %v1639_v41, %v2184_v14  ;;  %v527_v46 = vmul.f32 %v1735_v42, %v2184_v14  ;;  %v528_v54 = vmul.f32 %v1736_v45, %v2184_v14 }
  0x53   :  { %v1055_v55 = vmax.f32 %v1054_v37, %v974_v34  ;;  %v576_v56 = vmul.f32 %v1832_v43, %v2184_v14  ;;  %v577_v47 = vmul.f32 %v1835_v48, %v2184_v14  ;;  %v632_v57 = vadd.f32 %v2189_v15, %v429_v49  ;;  %v2026_v43 = vld [vmem:[%s3124_s0 + $0x50] sm:$0xff]  }
  0x54   :  { %v633_v58 = vadd.f32 %v2189_v15, %v430_v50  ;;  %v681_v60 = vadd.f32 %v2189_v15, %v478_v51  ;;  %v682_v61 = vadd.f32 %v2189_v15, %v479_v53  ;;  %v730_v62 = vadd.f32 %v2189_v15, %v527_v46 }
  0x55   :  { %v1935_v63 = vpack.c.bf16 %v1055_v55, %v1052_v52  ;;  %v731_v0 = vadd.f32 %v2189_v15, %v528_v54  ;;  %v779_v2 = vadd.f32 %v2189_v15, %v576_v56  ;;  %v780_v3 = vadd.f32 %v2189_v15, %v577_v47  ;;  %v2562_v54 = vld [vmem:[%s3124_s0 + $0x118] sm:$0xff]  }
  0x56   :  { %v828_v5 = vmax.f32 %v632_v57, 0.0  ;;  %v829_v6 = vmax.f32 %v633_v58, 0.0  ;;  %v877_v1 = vmax.f32 %v681_v60, 0.0  ;;  %v878_v4 = vmax.f32 %v682_v61, 0.0  ;;  %v2075_v55 = vld [vmem:[%s3124_s0 + $0x1d8] sm:$0xff]   ;;  %v2570_v60 = vld [vmem:[%s3124_s0 + $0x2a0] sm:$0xff]  }
  0x57   :  { %2120 = vst [vmem:[%s3127_s3 + $0x38] sm:$0xff] %v1935_v63   ;;  %v926_v10 = vmax.f32 %v730_v62, 0.0  ;;  %v927_v9 = vmax.f32 %v731_v0, 0.0  ;;  %v975_v11 = vmax.f32 %v779_v2, 0.0  ;;  %v976_v12 = vmax.f32 %v780_v3, 0.0 }
  0x58   :  { %v1056_v16 = vmax.f32 %v828_v5, %v877_v1  ;;  %v1059_v17 = vmax.f32 %v829_v6, %v878_v4  ;;  %v1543_v18 = vunpack.c.l.bf16 %v2025_v59  ;;  %v1544_v20 = vunpack.c.h.bf16 %v2025_v59 }
  0x59   :  { %v1640_v21 = vunpack.c.h.bf16 %v2481_v23  ;;  %v1643_v22 = vunpack.c.l.bf16 %v2520_v7  ;;  %v1739_v19 = vunpack.c.l.bf16 %v2074_v8  ;;  %v1740_v24 = vunpack.c.h.bf16 %v2074_v8 }
  0x5a   :  { %v1057_v26 = vmax.f32 %v1056_v16, %v926_v10  ;;  %v1060_v25 = vmax.f32 %v1059_v17, %v927_v9  ;;  %v1836_v27 = vunpack.c.h.bf16 %v2492_v33  ;;  %v1839_v28 = vunpack.c.l.bf16 %v2531_v13 }
  0x5b   :  { %v431_v30 = vmul.f32 %v1543_v18, %v2184_v14  ;;  %v432_v31 = vmul.f32 %v1544_v20, %v2184_v14  ;;  %v480_v29 = vmul.f32 %v1640_v21, %v2184_v14  ;;  %v481_v32 = vmul.f32 %v1643_v22, %v2184_v14 }
  0x5c   :  { %v1058_v34 = vmax.f32 %v1057_v26, %v975_v11  ;;  %v1061_v23 = vmax.f32 %v1060_v25, %v976_v12  ;;  %v529_v35 = vmul.f32 %v1739_v19, %v2184_v14  ;;  %v530_v36 = vmul.f32 %v1740_v24, %v2184_v14 }
  0x5d   :  { %v578_v38 = vmul.f32 %v1836_v27, %v2184_v14  ;;  %v579_v33 = vmul.f32 %v1839_v28, %v2184_v14  ;;  %v634_v39 = vadd.f32 %v2189_v15, %v431_v30  ;;  %v635_v40 = vadd.f32 %v2189_v15, %v432_v31  ;;  %v2027_v27 = vld [vmem:[%s3124_s0 + $0x58] sm:$0xff]  }
  0x5e   :  { %v1940_v41 = vpack.c.bf16 %v1061_v23, %v1058_v34  ;;  %v683_v42 = vadd.f32 %v2189_v15, %v480_v29  ;;  %v684_v44 = vadd.f32 %v2189_v15, %v481_v32  ;;  %v732_v45 = vadd.f32 %v2189_v15, %v529_v35  ;;  %v2598_v32 = vld [vmem:[%s3124_s0 + $0x120] sm:$0xff]  }
  0x5f   :  { %v733_v48 = vadd.f32 %v2189_v15, %v530_v36  ;;  %v781_v37 = vadd.f32 %v2189_v15, %v578_v38  ;;  %v782_v49 = vadd.f32 %v2189_v15, %v579_v33  ;;  %v830_v50 = vmax.f32 %v634_v39, 0.0  ;;  %v2076_v38 = vld [vmem:[%s3124_s0 + $0x1e0] sm:$0xff]   ;;  %v2609_v33 = vld [vmem:[%s3124_s0 + $0x2a8] sm:$0xff]  }
  0x60   :  { %2121 = vst [vmem:[%s3127_s3 + $0x40] sm:$0xff] %v1940_v41   ;;  %v831_v51 = vmax.f32 %v635_v40, 0.0  ;;  %v879_v52 = vmax.f32 %v683_v42, 0.0  ;;  %v880_v53 = vmax.f32 %v684_v44, 0.0  ;;  %v928_v46 = vmax.f32 %v732_v45, 0.0 }
  0x61   :  { %v929_v56 = vmax.f32 %v733_v48, 0.0  ;;  %v977_v47 = vmax.f32 %v781_v37, 0.0  ;;  %v978_v57 = vmax.f32 %v782_v49, 0.0  ;;  %v1547_v58 = vunpack.c.l.bf16 %v2026_v43 }
  0x62   :  { %v1062_v61 = vmax.f32 %v830_v50, %v879_v52  ;;  %v1065_v62 = vmax.f32 %v831_v51, %v880_v53  ;;  %v1548_v63 = vunpack.c.h.bf16 %v2026_v43  ;;  %v1644_v0 = vunpack.c.h.bf16 %v2520_v7 }
  0x63   :  { %v1647_v2 = vunpack.c.l.bf16 %v2562_v54  ;;  %v1743_v3 = vunpack.c.l.bf16 %v2075_v55  ;;  %v1744_v59 = vunpack.c.h.bf16 %v2075_v55  ;;  %v1840_v5 = vunpack.c.h.bf16 %v2531_v13 }
  0x64   :  { %v1063_v6 = vmax.f32 %v1062_v61, %v928_v46  ;;  %v1066_v1 = vmax.f32 %v1065_v62, %v929_v56  ;;  %v1843_v4 = vunpack.c.l.bf16 %v2570_v60  ;;  %v433_v8 = vmul.f32 %v1547_v58, %v2184_v14 }
  0x65   :  { %v434_v10 = vmul.f32 %v1548_v63, %v2184_v14  ;;  %v482_v9 = vmul.f32 %v1644_v0, %v2184_v14  ;;  %v483_v11 = vmul.f32 %v1647_v2, %v2184_v14  ;;  %v531_v7 = vmul.f32 %v1743_v3, %v2184_v14 }
  0x66   :  { %v1064_v12 = vmax.f32 %v1063_v6, %v977_v47  ;;  %v1067_v16 = vmax.f32 %v1066_v1, %v978_v57  ;;  %v532_v17 = vmul.f32 %v1744_v59, %v2184_v14  ;;  %v580_v13 = vmul.f32 %v1840_v5, %v2184_v14 }
  0x67   :  { %v581_v18 = vmul.f32 %v1843_v4, %v2184_v14  ;;  %v636_v20 = vadd.f32 %v2189_v15, %v433_v8  ;;  %v637_v21 = vadd.f32 %v2189_v15, %v434_v10  ;;  %v685_v22 = vadd.f32 %v2189_v15, %v482_v9  ;;  %v2028_v4 = vld [vmem:[%s3124_s0 + $0x60] sm:$0xff]  }
  0x68   :  { %v1945_v19 = vpack.c.bf16 %v1067_v16, %v1064_v12  ;;  %v686_v24 = vadd.f32 %v2189_v15, %v483_v11  ;;  %v734_v26 = vadd.f32 %v2189_v15, %v531_v7  ;;  %v735_v25 = vadd.f32 %v2189_v15, %v532_v17  ;;  %v2637_v11 = vld [vmem:[%s3124_s0 + $0x128] sm:$0xff]  }
  0x69   :  { %v783_v28 = vadd.f32 %v2189_v15, %v580_v13  ;;  %v784_v30 = vadd.f32 %v2189_v15, %v581_v18  ;;  %v832_v31 = vmax.f32 %v636_v20, 0.0  ;;  %v833_v29 = vmax.f32 %v637_v21, 0.0  ;;  %v2077_v7 = vld [vmem:[%s3124_s0 + $0x1e8] sm:$0xff]   ;;  %v2648_v13 = vld [vmem:[%s3124_s0 + $0x2b0] sm:$0xff]  }
  0x6a   :  { %2122 = vst [vmem:[%s3127_s3 + $0x48] sm:$0xff] %v1945_v19   ;;  %v881_v34 = vmax.f32 %v685_v22, 0.0  ;;  %v882_v23 = vmax.f32 %v686_v24, 0.0  ;;  %v930_v35 = vmax.f32 %v734_v26, 0.0  ;;  %v931_v36 = vmax.f32 %v735_v25, 0.0 }
  0x6b   :  { %v979_v39 = vmax.f32 %v783_v28, 0.0  ;;  %v980_v40 = vmax.f32 %v784_v30, 0.0  ;;  %v1551_v41 = vunpack.c.l.bf16 %v2027_v27  ;;  %v1552_v42 = vunpack.c.h.bf16 %v2027_v27 }
  0x6c   :  { %v1068_v44 = vmax.f32 %v832_v31, %v881_v34  ;;  %v1071_v45 = vmax.f32 %v833_v29, %v882_v23  ;;  %v1648_v43 = vunpack.c.h.bf16 %v2562_v54  ;;  %v1651_v48 = vunpack.c.l.bf16 %v2598_v32  ;;  %v2657_v34 = vld [vmem:[%s3125_s1] ss:$0 sm:$0xff] }
  0x6d   :  { %v1747_v37 = vunpack.c.l.bf16 %v2076_v38  ;;  %v1748_v49 = vunpack.c.h.bf16 %v2076_v38  ;;  %v1844_v50 = vunpack.c.h.bf16 %v2570_v60  ;;  %v1847_v51 = vunpack.c.l.bf16 %v2609_v33 }
  0x6e   :  { %v1069_v52 = vmax.f32 %v1068_v44, %v930_v35  ;;  %v1072_v53 = vmax.f32 %v1071_v45, %v931_v36  ;;  %v435_v46 = vmul.f32 %v1551_v41, %v2184_v14  ;;  %v436_v55 = vmul.f32 %v1552_v42, %v2184_v14  ;;  %v2670_v44 = vld [vmem:[%s3126_s2] ss:$0 sm:$0xff] }
  0x6f   :  { %v484_v56 = vmul.f32 %v1648_v43, %v2184_v14  ;;  %v485_v47 = vmul.f32 %v1651_v48, %v2184_v14  ;;  %v533_v54 = vmul.f32 %v1747_v37, %v2184_v14  ;;  %v534_v57 = vmul.f32 %v1748_v49, %v2184_v14 }
  0x70   :  { %v1070_v58 = vmax.f32 %v1069_v52, %v979_v39  ;;  %v1073_v61 = vmax.f32 %v1072_v53, %v980_v40  ;;  %v582_v60 = vmul.f32 %v1844_v50, %v2184_v14  ;;  %v583_v62 = vmul.f32 %v1847_v51, %v2184_v14 }
  0x71   :  { %v638_v63 = vadd.f32 %v2189_v15, %v435_v46  ;;  %v639_v0 = vadd.f32 %v2189_v15, %v436_v55  ;;  %v687_v2 = vadd.f32 %v2189_v15, %v484_v56  ;;  %v688_v3 = vadd.f32 %v2189_v15, %v485_v47  ;;  %v2029_v46 = vld [vmem:[%s3124_s0 + $0x68] sm:$0xff]  }
  0x72   :  { %v1950_v59 = vpack.c.bf16 %v1073_v61, %v1070_v58  ;;  %v736_v5 = vadd.f32 %v2189_v15, %v533_v54  ;;  %v737_v6 = vadd.f32 %v2189_v15, %v534_v57  ;;  %v785_v1 = vadd.f32 %v2189_v15, %v582_v60  ;;  %v2686_v57 = vld [vmem:[%s3124_s0 + $0x130] sm:$0xff]  }
  0x73   :  { %v786_v14 = vadd.f32 %v2189_v15, %v583_v62  ;;  %v834_v8 = vmax.f32 %v638_v63, 0.0  ;;  %v835_v10 = vmax.f32 %v639_v0, 0.0  ;;  %v883_v9 = vmax.f32 %v687_v2, 0.0  ;;  %v2078_v58 = vld [vmem:[%s3124_s0 + $0x1f0] sm:$0xff]   ;;  %v2697_v0 = vld [vmem:[%s3124_s0 + $0x2b8] sm:$0xff]  }
  0x74   :  { %2123 = vst [vmem:[%s3127_s3 + $0x50] sm:$0xff] %v1950_v59   ;;  %v884_v12 = vmax.f32 %v688_v3, 0.0  ;;  %v932_v16 = vmax.f32 %v736_v5, 0.0  ;;  %v933_v17 = vmax.f32 %v737_v6, 0.0  ;;  %v981_v15 = vmax.f32 %v785_v1, 0.0 }
  0x75   :  { %v982_v18 = vmax.f32 %v786_v14, 0.0  ;;  %v1074_v20 = vmax.f32 %v834_v8, %v883_v9  ;;  %v1555_v21 = vunpack.c.l.bf16 %v2028_v4  ;;  %v1556_v22 = vunpack.c.h.bf16 %v2028_v4 }
  0x76   :  { %v1077_v19 = vmax.f32 %v835_v10, %v884_v12  ;;  %v1652_v24 = vunpack.c.h.bf16 %v2598_v32  ;;  %v1655_v26 = vunpack.c.l.bf16 %v2637_v11  ;;  %v1751_v25 = vunpack.c.l.bf16 %v2077_v7 }
  0x77   :  { %v1075_v27 = vmax.f32 %v1074_v20, %v932_v16  ;;  %v1752_v28 = vunpack.c.h.bf16 %v2077_v7  ;;  %v1848_v30 = vunpack.c.h.bf16 %v2609_v33  ;;  %v1851_v31 = vunpack.c.l.bf16 %v2648_v13 }
  0x78   :  { %v1078_v29 = vmax.f32 %v1077_v19, %v933_v17  ;;  %v437_v23 = vmul.f32 %v2657_v34, %v1555_v21  ;;  %v438_v35 = vmul.f32 %v2657_v34, %v1556_v22  ;;  %v486_v32 = vmul.f32 %v2657_v34, %v1652_v24 }
  0x79   :  { %v1076_v36 = vmax.f32 %v1075_v27, %v981_v15  ;;  %v487_v38 = vmul.f32 %v2657_v34, %v1655_v26  ;;  %v535_v39 = vmul.f32 %v2657_v34, %v1751_v25  ;;  %v536_v33 = vmul.f32 %v2657_v34, %v1752_v28 }
  0x7a   :  { %v1079_v40 = vmax.f32 %v1078_v29, %v982_v18  ;;  %v584_v41 = vmul.f32 %v2657_v34, %v1848_v30  ;;  %v585_v42 = vmul.f32 %v2657_v34, %v1851_v31  ;;  %v640_v45 = vadd.f32 %v2670_v44, %v437_v23  ;;  %v2030_v30 = vld [vmem:[%s3124_s0 + $0x70] sm:$0xff]  }
  0x7b   :  { %v641_v43 = vadd.f32 %v2670_v44, %v438_v35  ;;  %v689_v48 = vadd.f32 %v2670_v44, %v486_v32  ;;  %v690_v37 = vadd.f32 %v2670_v44, %v487_v38  ;;  %v738_v49 = vadd.f32 %v2670_v44, %v535_v39 }
  0x7c   :  { %v1955_v50 = vpack.c.bf16 %v1079_v40, %v1076_v36  ;;  %v739_v51 = vadd.f32 %v2670_v44, %v536_v33  ;;  %v787_v52 = vadd.f32 %v2670_v44, %v584_v41  ;;  %v788_v53 = vadd.f32 %v2670_v44, %v585_v42  ;;  %v2728_v33 = vld [vmem:[%s3124_s0 + $0x138] sm:$0xff]  }
  0x7d   :  { %v836_v55 = vmax.f32 %v640_v45, 0.0  ;;  %v837_v56 = vmax.f32 %v641_v43, 0.0  ;;  %v885_v47 = vmax.f32 %v689_v48, 0.0  ;;  %v886_v54 = vmax.f32 %v690_v37, 0.0  ;;  %v2079_v40 = vld [vmem:[%s3124_s0 + $0x1f8] sm:$0xff]   ;;  %v2736_v48 = vld [vmem:[%s3124_s0 + $0x2c0] sm:$0xff]  }
  0x7e   :  { %2124 = vst [vmem:[%s3127_s3 + $0x58] sm:$0xff] %v1955_v50   ;;  %v934_v61 = vmax.f32 %v738_v49, 0.0  ;;  %v935_v60 = vmax.f32 %v739_v51, 0.0  ;;  %v983_v62 = vmax.f32 %v787_v52, 0.0  ;;  %v984_v63 = vmax.f32 %v788_v53, 0.0 }
  0x7f   :  { %v1080_v2 = vmax.f32 %v836_v55, %v885_v47  ;;  %v1083_v3 = vmax.f32 %v837_v56, %v886_v54  ;;  %v1559_v59 = vunpack.c.l.bf16 %v2029_v46  ;;  %v1560_v5 = vunpack.c.h.bf16 %v2029_v46 }
  0x80   :  { %v1656_v6 = vunpack.c.h.bf16 %v2637_v11  ;;  %v1659_v1 = vunpack.c.l.bf16 %v2686_v57  ;;  %v1755_v4 = vunpack.c.l.bf16 %v2078_v58  ;;  %v1756_v14 = vunpack.c.h.bf16 %v2078_v58 }
  0x81   :  { %v1081_v8 = vmax.f32 %v1080_v2, %v934_v61  ;;  %v1084_v10 = vmax.f32 %v1083_v3, %v935_v60  ;;  %v1852_v9 = vunpack.c.h.bf16 %v2648_v13  ;;  %v1855_v7 = vunpack.c.l.bf16 %v2697_v0 }
  0x82   :  { %v439_v12 = vmul.f32 %v2657_v34, %v1559_v59  ;;  %v440_v16 = vmul.f32 %v2657_v34, %v1560_v5  ;;  %v488_v17 = vmul.f32 %v2657_v34, %v1656_v6  ;;  %v489_v15 = vmul.f32 %v2657_v34, %v1659_v1 }
  0x83   :  { %v1082_v18 = vmax.f32 %v1081_v8, %v983_v62  ;;  %v1085_v11 = vmax.f32 %v1084_v10, %v984_v63  ;;  %v537_v20 = vmul.f32 %v2657_v34, %v1755_v4  ;;  %v538_v21 = vmul.f32 %v2657_v34, %v1756_v14 }
  0x84   :  { %v586_v22 = vmul.f32 %v2657_v34, %v1852_v9  ;;  %v587_v13 = vmul.f32 %v2657_v34, %v1855_v7  ;;  %v642_v19 = vadd.f32 %v2670_v44, %v439_v12  ;;  %v643_v24 = vadd.f32 %v2670_v44, %v440_v16  ;;  %v2031_v9 = vld [vmem:[%s3124_s0 + $0x78] sm:$0xff]  }
  0x85   :  { %v1960_v26 = vpack.c.bf16 %v1085_v11, %v1082_v18  ;;  %v691_v25 = vadd.f32 %v2670_v44, %v488_v17  ;;  %v692_v27 = vadd.f32 %v2670_v44, %v489_v15  ;;  %v740_v28 = vadd.f32 %v2670_v44, %v537_v20  ;;  %v2764_v15 = vld [vmem:[%s3124_s0 + $0x140] sm:$0xff]  }
  0x86   :  { %v741_v31 = vadd.f32 %v2670_v44, %v538_v21  ;;  %v789_v29 = vadd.f32 %v2670_v44, %v586_v22  ;;  %v790_v23 = vadd.f32 %v2670_v44, %v587_v13  ;;  %v838_v35 = vmax.f32 %v642_v19, 0.0  ;;  %v2080_v22 = vld [vmem:[%s3124_s0 + $0x200] sm:$0xff]   ;;  %v2775_v13 = vld [vmem:[%s3124_s0 + $0x2c8] sm:$0xff]  }
  0x87   :  { %2125 = vst [vmem:[%s3127_s3 + $0x60] sm:$0xff] %v1960_v26   ;;  %v839_v32 = vmax.f32 %v643_v24, 0.0  ;;  %v887_v36 = vmax.f32 %v691_v25, 0.0  ;;  %v888_v38 = vmax.f32 %v692_v27, 0.0  ;;  %v936_v39 = vmax.f32 %v740_v28, 0.0 }
  0x88   :  { %v937_v41 = vmax.f32 %v741_v31, 0.0  ;;  %v985_v42 = vmax.f32 %v789_v29, 0.0  ;;  %v986_v45 = vmax.f32 %v790_v23, 0.0  ;;  %v1563_v43 = vunpack.c.l.bf16 %v2030_v30 }
  0x89   :  { %v1086_v37 = vmax.f32 %v838_v35, %v887_v36  ;;  %v1089_v49 = vmax.f32 %v839_v32, %v888_v38  ;;  %v1564_v50 = vunpack.c.h.bf16 %v2030_v30  ;;  %v1660_v51 = vunpack.c.h.bf16 %v2686_v57 }
  0x8a   :  { %v1663_v52 = vunpack.c.l.bf16 %v2728_v33  ;;  %v1759_v53 = vunpack.c.l.bf16 %v2079_v40  ;;  %v1760_v46 = vunpack.c.h.bf16 %v2079_v40  ;;  %v1856_v55 = vunpack.c.h.bf16 %v2697_v0 }
  0x8b   :  { %v1087_v56 = vmax.f32 %v1086_v37, %v936_v39  ;;  %v1090_v47 = vmax.f32 %v1089_v49, %v937_v41  ;;  %v1859_v54 = vunpack.c.l.bf16 %v2736_v48  ;;  %v441_v58 = vmul.f32 %v2657_v34, %v1563_v43 }
  0x8c   :  { %v442_v61 = vmul.f32 %v2657_v34, %v1564_v50  ;;  %v490_v60 = vmul.f32 %v2657_v34, %v1660_v51  ;;  %v491_v62 = vmul.f32 %v2657_v34, %v1663_v52  ;;  %v539_v57 = vmul.f32 %v2657_v34, %v1759_v53 }
  0x8d   :  { %v1088_v63 = vmax.f32 %v1087_v56, %v985_v42  ;;  %v1091_v2 = vmax.f32 %v1090_v47, %v986_v45  ;;  %v540_v3 = vmul.f32 %v2657_v34, %v1760_v46  ;;  %v588_v0 = vmul.f32 %v2657_v34, %v1856_v55 }
  0x8e   :  { %v589_v59 = vmul.f32 %v2657_v34, %v1859_v54  ;;  %v644_v5 = vadd.f32 %v2670_v44, %v441_v58  ;;  %v645_v6 = vadd.f32 %v2670_v44, %v442_v61  ;;  %v693_v1 = vadd.f32 %v2670_v44, %v490_v60  ;;  %v2032_v54 = vld [vmem:[%s3124_s0 + $0x80] sm:$0xff]  }
  0x8f   :  { %v1965_v4 = vpack.c.bf16 %v1091_v2, %v1088_v63  ;;  %v694_v14 = vadd.f32 %v2670_v44, %v491_v62  ;;  %v742_v8 = vadd.f32 %v2670_v44, %v539_v57  ;;  %v743_v10 = vadd.f32 %v2670_v44, %v540_v3  ;;  %v2803_v57 = vld [vmem:[%s3124_s0 + $0x148] sm:$0xff]  }
  0x90   :  { %v791_v7 = vadd.f32 %v2670_v44, %v588_v0  ;;  %v792_v12 = vadd.f32 %v2670_v44, %v589_v59  ;;  %v840_v16 = vmax.f32 %v644_v5, 0.0  ;;  %v841_v17 = vmax.f32 %v645_v6, 0.0  ;;  %v2081_v63 = vld [vmem:[%s3124_s0 + $0x208] sm:$0xff]   ;;  %v2814_v5 = vld [vmem:[%s3124_s0 + $0x2d0] sm:$0xff]  }
  0x91   :  { %2126 = vst [vmem:[%s3127_s3 + $0x68] sm:$0xff] %v1965_v4   ;;  %v889_v18 = vmax.f32 %v693_v1, 0.0  ;;  %v890_v11 = vmax.f32 %v694_v14, 0.0  ;;  %v938_v20 = vmax.f32 %v742_v8, 0.0  ;;  %v939_v21 = vmax.f32 %v743_v10, 0.0 }
  0x92   :  { %v987_v19 = vmax.f32 %v791_v7, 0.0  ;;  %v988_v24 = vmax.f32 %v792_v12, 0.0  ;;  %v1567_v26 = vunpack.c.l.bf16 %v2031_v9  ;;  %v1568_v25 = vunpack.c.h.bf16 %v2031_v9 }
  0x93   :  { %v1092_v27 = vmax.f32 %v840_v16, %v889_v18  ;;  %v1095_v28 = vmax.f32 %v841_v17, %v890_v11  ;;  %v1664_v30 = vunpack.c.h.bf16 %v2728_v33  ;;  %v1667_v31 = vunpack.c.l.bf16 %v2764_v15 }
  0x94   :  { %v1763_v29 = vunpack.c.l.bf16 %v2080_v22  ;;  %v1764_v23 = vunpack.c.h.bf16 %v2080_v22  ;;  %v1860_v35 = vunpack.c.h.bf16 %v2736_v48  ;;  %v1863_v32 = vunpack.c.l.bf16 %v2775_v13 }
  0x95   :  { %v1093_v36 = vmax.f32 %v1092_v27, %v938_v20  ;;  %v1096_v38 = vmax.f32 %v1095_v28, %v939_v21  ;;  %v443_v39 = vmul.f32 %v2657_v34, %v1567_v26  ;;  %v444_v40 = vmul.f32 %v2657_v34, %v1568_v25 }
  0x96   :  { %v492_v41 = vmul.f32 %v2657_v34, %v1664_v30  ;;  %v493_v42 = vmul.f32 %v2657_v34, %v1667_v31  ;;  %v541_v33 = vmul.f32 %v2657_v34, %v1763_v29  ;;  %v542_v45 = vmul.f32 %v2657_v34, %v1764_v23 }
  0x97   :  { %v1094_v43 = vmax.f32 %v1093_v36, %v987_v19  ;;  %v1097_v37 = vmax.f32 %v1096_v38, %v988_v24  ;;  %v590_v48 = vmul.f32 %v2657_v34, %v1860_v35  ;;  %v591_v49 = vmul.f32 %v2657_v34, %v1863_v32 }
  0x98   :  { %v646_v50 = vadd.f32 %v2670_v44, %v443_v39  ;;  %v647_v51 = vadd.f32 %v2670_v44, %v444_v40  ;;  %v695_v52 = vadd.f32 %v2670_v44, %v492_v41  ;;  %v696_v53 = vadd.f32 %v2670_v44, %v493_v42  ;;  %v2033_v39 = vld [vmem:[%s3124_s0 + $0x88] sm:$0xff]  }
  0x99   :  { %v1970_v46 = vpack.c.bf16 %v1097_v37, %v1094_v43  ;;  %v744_v55 = vadd.f32 %v2670_v44, %v541_v33  ;;  %v745_v56 = vadd.f32 %v2670_v44, %v542_v45  ;;  %v793_v47 = vadd.f32 %v2670_v44, %v590_v48  ;;  %v2842_v45 = vld [vmem:[%s3124_s0 + $0x150] sm:$0xff]  }
  0x9a   :  { %v794_v58 = vadd.f32 %v2670_v44, %v591_v49  ;;  %v842_v61 = vmax.f32 %v646_v50, 0.0  ;;  %v843_v60 = vmax.f32 %v647_v51, 0.0  ;;  %v891_v62 = vmax.f32 %v695_v52, 0.0  ;;  %v2082_v43 = vld [vmem:[%s3124_s0 + $0x210] sm:$0xff]   ;;  %v2853_v51 = vld [vmem:[%s3124_s0 + $0x2d8] sm:$0xff]  }
  0x9b   :  { %2127 = vst [vmem:[%s3127_s3 + $0x70] sm:$0xff] %v1970_v46   ;;  %v892_v2 = vmax.f32 %v696_v53, 0.0  ;;  %v940_v3 = vmax.f32 %v744_v55, 0.0  ;;  %v941_v0 = vmax.f32 %v745_v56, 0.0  ;;  %v989_v59 = vmax.f32 %v793_v47, 0.0 }
  0x9c   :  { %v990_v6 = vmax.f32 %v794_v58, 0.0  ;;  %v1098_v1 = vmax.f32 %v842_v61, %v891_v62  ;;  %v1571_v4 = vunpack.c.l.bf16 %v2032_v54  ;;  %v1572_v14 = vunpack.c.h.bf16 %v2032_v54 }
  0x9d   :  { %v1101_v8 = vmax.f32 %v843_v60, %v892_v2  ;;  %v1668_v10 = vunpack.c.h.bf16 %v2764_v15  ;;  %v1671_v9 = vunpack.c.l.bf16 %v2803_v57  ;;  %v1767_v7 = vunpack.c.l.bf16 %v2081_v63 }
  0x9e   :  { %v1099_v12 = vmax.f32 %v1098_v1, %v940_v3  ;;  %v1768_v16 = vunpack.c.h.bf16 %v2081_v63  ;;  %v1864_v17 = vunpack.c.h.bf16 %v2775_v13  ;;  %v1867_v18 = vunpack.c.l.bf16 %v2814_v5 }
  0x9f   :  { %v1102_v11 = vmax.f32 %v1101_v8, %v941_v0  ;;  %v445_v20 = vmul.f32 %v2657_v34, %v1571_v4  ;;  %v446_v21 = vmul.f32 %v2657_v34, %v1572_v14  ;;  %v494_v22 = vmul.f32 %v2657_v34, %v1668_v10 }
  0xa0   :  { %v1100_v19 = vmax.f32 %v1099_v12, %v989_v59  ;;  %v495_v24 = vmul.f32 %v2657_v34, %v1671_v9  ;;  %v543_v15 = vmul.f32 %v2657_v34, %v1767_v7  ;;  %v544_v26 = vmul.f32 %v2657_v34, %v1768_v16 }
  0xa1   :  { %v1103_v25 = vmax.f32 %v1102_v11, %v990_v6  ;;  %v592_v27 = vmul.f32 %v2657_v34, %v1864_v17  ;;  %v593_v13 = vmul.f32 %v2657_v34, %v1867_v18  ;;  %v648_v28 = vadd.f32 %v2670_v44, %v445_v20  ;;  %v2034_v17 = vld [vmem:[%s3124_s0 + $0x90] sm:$0xff]  }
  0xa2   :  { %v649_v30 = vadd.f32 %v2670_v44, %v446_v21  ;;  %v697_v31 = vadd.f32 %v2670_v44, %v494_v22  ;;  %v698_v29 = vadd.f32 %v2670_v44, %v495_v24  ;;  %v746_v23 = vadd.f32 %v2670_v44, %v543_v15 }
  0xa3   :  { %v1975_v35 = vpack.c.bf16 %v1103_v25, %v1100_v19  ;;  %v747_v32 = vadd.f32 %v2670_v44, %v544_v26  ;;  %v795_v36 = vadd.f32 %v2670_v44, %v592_v27  ;;  %v796_v38 = vadd.f32 %v2670_v44, %v593_v13  ;;  %v2884_v26 = vld [vmem:[%s3124_s0 + $0x158] sm:$0xff]  }
  0xa4   :  { %v844_v40 = vmax.f32 %v648_v28, 0.0  ;;  %v845_v41 = vmax.f32 %v649_v30, 0.0  ;;  %v893_v42 = vmax.f32 %v697_v31, 0.0  ;;  %v894_v33 = vmax.f32 %v698_v29, 0.0  ;;  %v2083_v25 = vld [vmem:[%s3124_s0 + $0x218] sm:$0xff]   ;;  %v2892_v31 = vld [vmem:[%s3124_s0 + $0x2e0] sm:$0xff]  }
  0xa5   :  { %2128 = vst [vmem:[%s3127_s3 + $0x78] sm:$0xff] %v1975_v35   ;;  %v942_v37 = vmax.f32 %v746_v23, 0.0  ;;  %v943_v48 = vmax.f32 %v747_v32, 0.0  ;;  %v991_v49 = vmax.f32 %v795_v36, 0.0  ;;  %v992_v50 = vmax.f32 %v796_v38, 0.0 }
  0xa6   :  { %v1104_v52 = vmax.f32 %v844_v40, %v893_v42  ;;  %v1107_v53 = vmax.f32 %v845_v41, %v894_v33  ;;  %v1575_v46 = vunpack.c.l.bf16 %v2033_v39  ;;  %v1576_v55 = vunpack.c.h.bf16 %v2033_v39 }
  0xa7   :  { %v1672_v56 = vunpack.c.h.bf16 %v2803_v57  ;;  %v1675_v47 = vunpack.c.l.bf16 %v2842_v45  ;;  %v1771_v54 = vunpack.c.l.bf16 %v2082_v43  ;;  %v1772_v58 = vunpack.c.h.bf16 %v2082_v43 }
  0xa8   :  { %v1105_v61 = vmax.f32 %v1104_v52, %v942_v37  ;;  %v1108_v60 = vmax.f32 %v1107_v53, %v943_v48  ;;  %v1868_v62 = vunpack.c.h.bf16 %v2814_v5  ;;  %v1871_v63 = vunpack.c.l.bf16 %v2853_v51 }
  0xa9   :  { %v447_v2 = vmul.f32 %v2657_v34, %v1575_v46  ;;  %v448_v3 = vmul.f32 %v2657_v34, %v1576_v55  ;;  %v496_v0 = vmul.f32 %v2657_v34, %v1672_v56  ;;  %v497_v59 = vmul.f32 %v2657_v34, %v1675_v47 }
  0xaa   :  { %v1106_v6 = vmax.f32 %v1105_v61, %v991_v49  ;;  %v1109_v57 = vmax.f32 %v1108_v60, %v992_v50  ;;  %v545_v1 = vmul.f32 %v2657_v34, %v1771_v54  ;;  %v546_v4 = vmul.f32 %v2657_v34, %v1772_v58 }
  0xab   :  { %v594_v14 = vmul.f32 %v2657_v34, %v1868_v62  ;;  %v595_v5 = vmul.f32 %v2657_v34, %v1871_v63  ;;  %v650_v8 = vadd.f32 %v2670_v44, %v447_v2  ;;  %v651_v10 = vadd.f32 %v2670_v44, %v448_v3  ;;  %v2035_v62 = vld [vmem:[%s3124_s0 + $0x98] sm:$0xff]  }
  0xac   :  { %v1980_v9 = vpack.c.bf16 %v1109_v57, %v1106_v6  ;;  %v699_v7 = vadd.f32 %v2670_v44, %v496_v0  ;;  %v700_v12 = vadd.f32 %v2670_v44, %v497_v59  ;;  %v748_v16 = vadd.f32 %v2670_v44, %v545_v1  ;;  %v2920_v59 = vld [vmem:[%s3124_s0 + $0x160] sm:$0xff]  }
  0xad   :  { %v749_v18 = vadd.f32 %v2670_v44, %v546_v4  ;;  %v797_v11 = vadd.f32 %v2670_v44, %v594_v14  ;;  %v798_v20 = vadd.f32 %v2670_v44, %v595_v5  ;;  %v846_v21 = vmax.f32 %v650_v8, 0.0  ;;  %v2084_v14 = vld [vmem:[%s3124_s0 + $0x220] sm:$0xff]   ;;  %v2931_v5 = vld [vmem:[%s3124_s0 + $0x2e8] sm:$0xff]  }
  0xae   :  { %2129 = vst [vmem:[%s3127_s3 + $0x80] sm:$0xff] %v1980_v9   ;;  %v847_v22 = vmax.f32 %v651_v10, 0.0  ;;  %v895_v19 = vmax.f32 %v699_v7, 0.0  ;;  %v896_v24 = vmax.f32 %v700_v12, 0.0  ;;  %v944_v15 = vmax.f32 %v748_v16, 0.0 }
  0xaf   :  { %v945_v27 = vmax.f32 %v749_v18, 0.0  ;;  %v993_v13 = vmax.f32 %v797_v11, 0.0  ;;  %v994_v28 = vmax.f32 %v798_v20, 0.0  ;;  %v1579_v30 = vunpack.c.l.bf16 %v2034_v17 }
  0xb0   :  { %v1110_v29 = vmax.f32 %v846_v21, %v895_v19  ;;  %v1113_v23 = vmax.f32 %v847_v22, %v896_v24  ;;  %v1580_v35 = vunpack.c.h.bf16 %v2034_v17  ;;  %v1676_v32 = vunpack.c.h.bf16 %v2842_v45 }
  0xb1   :  { %v1679_v36 = vunpack.c.l.bf16 %v2884_v26  ;;  %v1775_v38 = vunpack.c.l.bf16 %v2083_v25  ;;  %v1776_v39 = vunpack.c.h.bf16 %v2083_v25  ;;  %v1872_v40 = vunpack.c.h.bf16 %v2853_v51 }
  0xb2   :  { %v1111_v41 = vmax.f32 %v1110_v29, %v944_v15  ;;  %v1114_v42 = vmax.f32 %v1113_v23, %v945_v27  ;;  %v1875_v33 = vunpack.c.l.bf16 %v2892_v31  ;;  %v449_v43 = vmul.f32 %v2657_v34, %v1579_v30 }
  0xb3   :  { %v450_v37 = vmul.f32 %v2657_v34, %v1580_v35  ;;  %v498_v48 = vmul.f32 %v2657_v34, %v1676_v32  ;;  %v499_v49 = vmul.f32 %v2657_v34, %v1679_v36  ;;  %v547_v45 = vmul.f32 %v2657_v34, %v1775_v38 }
  0xb4   :  { %v1112_v50 = vmax.f32 %v1111_v41, %v993_v13  ;;  %v1115_v52 = vmax.f32 %v1114_v42, %v994_v28  ;;  %v548_v53 = vmul.f32 %v2657_v34, %v1776_v39  ;;  %v596_v51 = vmul.f32 %v2657_v34, %v1872_v40 }
  0xb5   :  { %v597_v46 = vmul.f32 %v2657_v34, %v1875_v33  ;;  %v652_v55 = vadd.f32 %v2670_v44, %v449_v43  ;;  %v653_v56 = vadd.f32 %v2670_v44, %v450_v37  ;;  %v701_v47 = vadd.f32 %v2670_v44, %v498_v48  ;;  %v2036_v33 = vld [vmem:[%s3124_s0 + $0xa0] sm:$0xff]  }
  0xb6   :  { %v1985_v54 = vpack.c.bf16 %v1115_v52, %v1112_v50  ;;  %v702_v58 = vadd.f32 %v2670_v44, %v499_v49  ;;  %v750_v61 = vadd.f32 %v2670_v44, %v547_v45  ;;  %v751_v60 = vadd.f32 %v2670_v44, %v548_v53  ;;  %v2959_v45 = vld [vmem:[%s3124_s0 + $0x168] sm:$0xff]  }
  0xb7   :  { %v799_v63 = vadd.f32 %v2670_v44, %v596_v51  ;;  %v800_v2 = vadd.f32 %v2670_v44, %v597_v46  ;;  %v848_v3 = vmax.f32 %v652_v55, 0.0  ;;  %v849_v0 = vmax.f32 %v653_v56, 0.0  ;;  %v2085_v50 = vld [vmem:[%s3124_s0 + $0x228] sm:$0xff]   ;;  %v2970_v55 = vld [vmem:[%s3124_s0 + $0x2f0] sm:$0xff]  }
  0xb8   :  { %2130 = vst [vmem:[%s3127_s3 + $0x88] sm:$0xff] %v1985_v54   ;;  %v897_v6 = vmax.f32 %v701_v47, 0.0  ;;  %v898_v57 = vmax.f32 %v702_v58, 0.0  ;;  %v946_v1 = vmax.f32 %v750_v61, 0.0  ;;  %v947_v4 = vmax.f32 %v751_v60, 0.0 }
  0xb9   :  { %v995_v8 = vmax.f32 %v799_v63, 0.0  ;;  %v996_v10 = vmax.f32 %v800_v2, 0.0  ;;  %v1583_v9 = vunpack.c.l.bf16 %v2035_v62  ;;  %v1584_v7 = vunpack.c.h.bf16 %v2035_v62 }
  0xba   :  { %v1116_v12 = vmax.f32 %v848_v3, %v897_v6  ;;  %v1119_v16 = vmax.f32 %v849_v0, %v898_v57  ;;  %v1680_v17 = vunpack.c.h.bf16 %v2884_v26  ;;  %v1683_v18 = vunpack.c.l.bf16 %v2920_v59 }
  0xbb   :  { %v1779_v11 = vunpack.c.l.bf16 %v2084_v14  ;;  %v1780_v20 = vunpack.c.h.bf16 %v2084_v14  ;;  %v1876_v21 = vunpack.c.h.bf16 %v2892_v31  ;;  %v1879_v22 = vunpack.c.l.bf16 %v2931_v5 }
  0xbc   :  { %v1117_v19 = vmax.f32 %v1116_v12, %v946_v1  ;;  %v1120_v24 = vmax.f32 %v1119_v16, %v947_v4  ;;  %v451_v15 = vmul.f32 %v2657_v34, %v1583_v9  ;;  %v452_v25 = vmul.f32 %v2657_v34, %v1584_v7 }
  0xbd   :  { %v500_v27 = vmul.f32 %v2657_v34, %v1680_v17  ;;  %v501_v13 = vmul.f32 %v2657_v34, %v1683_v18  ;;  %v549_v26 = vmul.f32 %v2657_v34, %v1779_v11  ;;  %v550_v28 = vmul.f32 %v2657_v34, %v1780_v20 }
  0xbe   :  { %v1118_v30 = vmax.f32 %v1117_v19, %v995_v8  ;;  %v1121_v29 = vmax.f32 %v1120_v24, %v996_v10  ;;  %v598_v31 = vmul.f32 %v2657_v34, %v1876_v21  ;;  %v599_v23 = vmul.f32 %v2657_v34, %v1879_v22 }
  0xbf   :  { %v654_v35 = vadd.f32 %v2670_v44, %v451_v15  ;;  %v655_v32 = vadd.f32 %v2670_v44, %v452_v25  ;;  %v703_v36 = vadd.f32 %v2670_v44, %v500_v27  ;;  %v704_v38 = vadd.f32 %v2670_v44, %v501_v13  ;;  %v2037_v15 = vld [vmem:[%s3124_s0 + $0xa8] sm:$0xff]  }
  0xc0   :  { %v1990_v39 = vpack.c.bf16 %v1121_v29, %v1118_v30  ;;  %v752_v40 = vadd.f32 %v2670_v44, %v549_v26  ;;  %v753_v41 = vadd.f32 %v2670_v44, %v550_v28  ;;  %v801_v42 = vadd.f32 %v2670_v44, %v598_v31  ;;  %v2998_v28 = vld [vmem:[%s3124_s0 + $0x170] sm:$0xff]  }
  0xc1   :  { %v802_v43 = vadd.f32 %v2670_v44, %v599_v23  ;;  %v850_v37 = vmax.f32 %v654_v35, 0.0  ;;  %v851_v48 = vmax.f32 %v655_v32, 0.0  ;;  %v899_v49 = vmax.f32 %v703_v36, 0.0  ;;  %v2086_v30 = vld [vmem:[%s3124_s0 + $0x230] sm:$0xff]   ;;  %v3009_v32 = vld [vmem:[%s3124_s0 + $0x2f8] sm:$0xff]  }
  0xc2   :  { %2131 = vst [vmem:[%s3127_s3 + $0x90] sm:$0xff] %v1990_v39   ;;  %v900_v52 = vmax.f32 %v704_v38, 0.0  ;;  %v948_v53 = vmax.f32 %v752_v40, 0.0  ;;  %v949_v51 = vmax.f32 %v753_v41, 0.0  ;;  %v997_v46 = vmax.f32 %v801_v42, 0.0 }
  0xc3   :  { %v998_v56 = vmax.f32 %v802_v43, 0.0  ;;  %v1122_v47 = vmax.f32 %v850_v37, %v899_v49  ;;  %v1587_v54 = vunpack.c.l.bf16 %v2036_v33  ;;  %v1588_v58 = vunpack.c.h.bf16 %v2036_v33 }
  0xc4   :  { %v1125_v61 = vmax.f32 %v851_v48, %v900_v52  ;;  %v1684_v60 = vunpack.c.h.bf16 %v2920_v59  ;;  %v1687_v62 = vunpack.c.l.bf16 %v2959_v45  ;;  %v1783_v63 = vunpack.c.l.bf16 %v2085_v50 }
  0xc5   :  { %v1123_v2 = vmax.f32 %v1122_v47, %v948_v53  ;;  %v1784_v3 = vunpack.c.h.bf16 %v2085_v50  ;;  %v1880_v0 = vunpack.c.h.bf16 %v2931_v5  ;;  %v1883_v6 = vunpack.c.l.bf16 %v2970_v55 }
  0xc6   :  { %v1126_v57 = vmax.f32 %v1125_v61, %v949_v51  ;;  %v453_v1 = vmul.f32 %v2657_v34, %v1587_v54  ;;  %v454_v4 = vmul.f32 %v2657_v34, %v1588_v58  ;;  %v502_v14 = vmul.f32 %v2657_v34, %v1684_v60 }
  0xc7   :  { %v1124_v8 = vmax.f32 %v1123_v2, %v997_v46  ;;  %v503_v10 = vmul.f32 %v2657_v34, %v1687_v62  ;;  %v551_v59 = vmul.f32 %v2657_v34, %v1783_v63  ;;  %v552_v9 = vmul.f32 %v2657_v34, %v1784_v3 }
  0xc8   :  { %v1127_v7 = vmax.f32 %v1126_v57, %v998_v56  ;;  %v600_v12 = vmul.f32 %v2657_v34, %v1880_v0  ;;  %v601_v5 = vmul.f32 %v2657_v34, %v1883_v6  ;;  %v656_v16 = vadd.f32 %v2670_v44, %v453_v1  ;;  %v2038_v0 = vld [vmem:[%s3124_s0 + $0xb0] sm:$0xff]  }
  0xc9   :  { %v657_v17 = vadd.f32 %v2670_v44, %v454_v4  ;;  %v705_v18 = vadd.f32 %v2670_v44, %v502_v14  ;;  %v706_v11 = vadd.f32 %v2670_v44, %v503_v10  ;;  %v754_v20 = vadd.f32 %v2670_v44, %v551_v59 }
  0xca   :  { %v1995_v21 = vpack.c.bf16 %v1127_v7, %v1124_v8  ;;  %v755_v22 = vadd.f32 %v2670_v44, %v552_v9  ;;  %v803_v19 = vadd.f32 %v2670_v44, %v600_v12  ;;  %v804_v24 = vadd.f32 %v2670_v44, %v601_v5  ;;  %v3040_v9 = vld [vmem:[%s3124_s0 + $0x178] sm:$0xff]  }
  0xcb   :  { %v852_v25 = vmax.f32 %v656_v16, 0.0  ;;  %v853_v27 = vmax.f32 %v657_v17, 0.0  ;;  %v901_v13 = vmax.f32 %v705_v18, 0.0  ;;  %v902_v26 = vmax.f32 %v706_v11, 0.0  ;;  %v2087_v7 = vld [vmem:[%s3124_s0 + $0x238] sm:$0xff]   ;;  %v3048_v18 = vld [vmem:[%s3124_s0 + $0x300] sm:$0xff]  }
  0xcc   :  { %2132 = vst [vmem:[%s3127_s3 + $0x98] sm:$0xff] %v1995_v21   ;;  %v950_v29 = vmax.f32 %v754_v20, 0.0  ;;  %v951_v31 = vmax.f32 %v755_v22, 0.0  ;;  %v999_v23 = vmax.f32 %v803_v19, 0.0  ;;  %v1000_v35 = vmax.f32 %v804_v24, 0.0 }
  0xcd   :  { %v1128_v36 = vmax.f32 %v852_v25, %v901_v13  ;;  %v1131_v38 = vmax.f32 %v853_v27, %v902_v26  ;;  %v1591_v39 = vunpack.c.l.bf16 %v2037_v15  ;;  %v1592_v40 = vunpack.c.h.bf16 %v2037_v15 }
  0xce   :  { %v1688_v41 = vunpack.c.h.bf16 %v2959_v45  ;;  %v1691_v42 = vunpack.c.l.bf16 %v2998_v28  ;;  %v1787_v33 = vunpack.c.l.bf16 %v2086_v30  ;;  %v1788_v43 = vunpack.c.h.bf16 %v2086_v30 }
  0xcf   :  { %v1129_v37 = vmax.f32 %v1128_v36, %v950_v29  ;;  %v1132_v48 = vmax.f32 %v1131_v38, %v951_v31  ;;  %v1884_v49 = vunpack.c.h.bf16 %v2970_v55  ;;  %v1887_v50 = vunpack.c.l.bf16 %v3009_v32 }
  0xd0   :  { %v455_v52 = vmul.f32 %v2657_v34, %v1591_v39  ;;  %v456_v53 = vmul.f32 %v2657_v34, %v1592_v40  ;;  %v504_v51 = vmul.f32 %v2657_v34, %v1688_v41  ;;  %v505_v46 = vmul.f32 %v2657_v34, %v1691_v42 }
  0xd1   :  { %v1130_v56 = vmax.f32 %v1129_v37, %v999_v23  ;;  %v1133_v45 = vmax.f32 %v1132_v48, %v1000_v35  ;;  %v553_v47 = vmul.f32 %v2657_v34, %v1787_v33  ;;  %v554_v54 = vmul.f32 %v2657_v34, %v1788_v43 }
  0xd2   :  { %v602_v58 = vmul.f32 %v2657_v34, %v1884_v49  ;;  %v603_v55 = vmul.f32 %v2657_v34, %v1887_v50  ;;  %v658_v61 = vadd.f32 %v2670_v44, %v455_v52  ;;  %v659_v60 = vadd.f32 %v2670_v44, %v456_v53  ;;  %v2039_v49 = vld [vmem:[%s3124_s0 + $0xb8] sm:$0xff]  }
  0xd3   :  { %v2000_v62 = vpack.c.bf16 %v1133_v45, %v1130_v56  ;;  %v707_v63 = vadd.f32 %v2670_v44, %v504_v51  ;;  %v708_v2 = vadd.f32 %v2670_v44, %v505_v46  ;;  %v756_v3 = vadd.f32 %v2670_v44, %v553_v47  ;;  %v2064_v46 = vld [vmem:[%s3124_s0 + $0x180] sm:$0xff]  }
  0xd4   :  { %v757_v6 = vadd.f32 %v2670_v44, %v554_v54  ;;  %v805_v57 = vadd.f32 %v2670_v44, %v602_v58  ;;  %v806_v1 = vadd.f32 %v2670_v44, %v603_v55  ;;  %v854_v4 = vmax.f32 %v658_v61, 0.0  ;;  %v2088_v58 = vld [vmem:[%s3124_s0 + $0x240] sm:$0xff]   ;;  %v2113_v55 = vld [vmem:[%s3124_s0 + $0x308] sm:$0xff]  }
  0xd5   :  { %2133 = vst [vmem:[%s3127_s3 + $0xa0] sm:$0xff] %v2000_v62   ;;  %v855_v14 = vmax.f32 %v659_v60, 0.0  ;;  %v903_v8 = vmax.f32 %v707_v63, 0.0  ;;  %v904_v10 = vmax.f32 %v708_v2, 0.0  ;;  %v952_v59 = vmax.f32 %v756_v3, 0.0 }
  0xd6   :  { %v953_v12 = vmax.f32 %v757_v6, 0.0  ;;  %v1001_v5 = vmax.f32 %v805_v57, 0.0  ;;  %v1002_v16 = vmax.f32 %v806_v1, 0.0  ;;  %v1595_v17 = vunpack.c.l.bf16 %v2038_v0 }
  0xd7   :  { %v1134_v11 = vmax.f32 %v854_v4, %v903_v8  ;;  %v1137_v20 = vmax.f32 %v855_v14, %v904_v10  ;;  %v1596_v21 = vunpack.c.h.bf16 %v2038_v0  ;;  %v1692_v22 = vunpack.c.h.bf16 %v2998_v28 }
  0xd8   :  { %v1695_v19 = vunpack.c.l.bf16 %v3040_v9  ;;  %v1791_v24 = vunpack.c.l.bf16 %v2087_v7  ;;  %v1792_v15 = vunpack.c.h.bf16 %v2087_v7  ;;  %v1888_v25 = vunpack.c.h.bf16 %v3009_v32 }
  0xd9   :  { %v1135_v27 = vmax.f32 %v1134_v11, %v952_v59  ;;  %v1138_v13 = vmax.f32 %v1137_v20, %v953_v12  ;;  %v1891_v26 = vunpack.c.l.bf16 %v3048_v18  ;;  %v457_v30 = vmul.f32 %v2657_v34, %v1595_v17 }
  0xda   :  { %v458_v29 = vmul.f32 %v2657_v34, %v1596_v21  ;;  %v506_v31 = vmul.f32 %v2657_v34, %v1692_v22  ;;  %v507_v23 = vmul.f32 %v2657_v34, %v1695_v19  ;;  %v555_v28 = vmul.f32 %v2657_v34, %v1791_v24 }
  0xdb   :  { %v1136_v35 = vmax.f32 %v1135_v27, %v1001_v5  ;;  %v1139_v36 = vmax.f32 %v1138_v13, %v1002_v16  ;;  %v556_v38 = vmul.f32 %v2657_v34, %v1792_v15  ;;  %v604_v32 = vmul.f32 %v2657_v34, %v1888_v25 }
  0xdc   :  { %v605_v39 = vmul.f32 %v2657_v34, %v1891_v26  ;;  %v660_v40 = vadd.f32 %v2670_v44, %v457_v30  ;;  %v661_v41 = vadd.f32 %v2670_v44, %v458_v29  ;;  %v709_v42 = vadd.f32 %v2670_v44, %v506_v31 }
  0xdd   :  { %v2005_v33 = vpack.c.bf16 %v1139_v36, %v1136_v35  ;;  %v710_v43 = vadd.f32 %v2670_v44, %v507_v23  ;;  %v758_v37 = vadd.f32 %v2670_v44, %v555_v28  ;;  %v759_v48 = vadd.f32 %v2670_v44, %v556_v38  ;;  %v2139_v38 = vld [vmem:[%s3124_s0 + $0xc0] sm:$0xff]  }
  0xde   :  { %v807_v50 = vadd.f32 %v2670_v44, %v604_v32  ;;  %v808_v52 = vadd.f32 %v2670_v44, %v605_v39  ;;  %v856_v53 = vmax.f32 %v660_v40, 0.0  ;;  %v857_v51 = vmax.f32 %v661_v41, 0.0  ;;  %v2140_v41 = vld [vmem:[%s3124_s0 + $0x248] sm:$0xff]  }
  0xdf   :  { %2134 = vst [vmem:[%s3127_s3 + $0xa8] sm:$0xff] %v2005_v33   ;;  %v905_v56 = vmax.f32 %v709_v42, 0.0  ;;  %v906_v45 = vmax.f32 %v710_v43, 0.0  ;;  %v954_v47 = vmax.f32 %v758_v37, 0.0  ;;  %v955_v54 = vmax.f32 %v759_v48, 0.0 }
  0xe0   :  { %v1003_v61 = vmax.f32 %v807_v50, 0.0  ;;  %v1004_v60 = vmax.f32 %v808_v52, 0.0  ;;  %v1599_v62 = vunpack.c.l.bf16 %v2039_v49  ;;  %v1600_v63 = vunpack.c.h.bf16 %v2039_v49  ;;  %v2141_v37 = vld [vmem:[%s3125_s1] ss:$0 sm:$0xff] }
  0xe1   :  { %v1140_v2 = vmax.f32 %v856_v53, %v905_v56  ;;  %v1143_v3 = vmax.f32 %v857_v51, %v906_v45  ;;  %v1696_v0 = vunpack.c.h.bf16 %v3040_v9  ;;  %v1699_v6 = vunpack.c.l.bf16 %v2064_v46 }
  0xe2   :  { %v1795_v57 = vunpack.c.l.bf16 %v2088_v58  ;;  %v1796_v1 = vunpack.c.h.bf16 %v2088_v58  ;;  %v1892_v4 = vunpack.c.h.bf16 %v3048_v18  ;;  %v1895_v14 = vunpack.c.l.bf16 %v2113_v55 }
  0xe3   :  { %v1141_v8 = vmax.f32 %v1140_v2, %v954_v47  ;;  %v1144_v10 = vmax.f32 %v1143_v3, %v955_v54  ;;  %v459_v59 = vmul.f32 %v2657_v34, %v1599_v62  ;;  %v460_v7 = vmul.f32 %v2657_v34, %v1600_v63 }
  0xe4   :  { %v508_v12 = vmul.f32 %v2657_v34, %v1696_v0  ;;  %v509_v5 = vmul.f32 %v2657_v34, %v1699_v6  ;;  %v557_v16 = vmul.f32 %v2657_v34, %v1795_v57  ;;  %v558_v9 = vmul.f32 %v2657_v34, %v1796_v1 }
  0xe5   :  { %v1142_v17 = vmax.f32 %v1141_v8, %v1003_v61  ;;  %v1145_v11 = vmax.f32 %v1144_v10, %v1004_v60  ;;  %v606_v20 = vmul.f32 %v2657_v34, %v1892_v4  ;;  %v607_v18 = vmul.f32 %v2657_v34, %v1895_v14 }
  0xe6   :  { %v662_v21 = vadd.f32 %v2670_v44, %v459_v59  ;;  %v663_v22 = vadd.f32 %v2670_v44, %v460_v7  ;;  %v711_v19 = vadd.f32 %v2670_v44, %v508_v12  ;;  %v712_v24 = vadd.f32 %v2670_v44, %v509_v5 }
  0xe7   :  { %v2010_v15 = vpack.c.bf16 %v1145_v11, %v1142_v17  ;;  %v760_v25 = vadd.f32 %v2670_v44, %v557_v16  ;;  %v761_v27 = vadd.f32 %v2670_v44, %v558_v9  ;;  %v809_v13 = vadd.f32 %v2670_v44, %v606_v20 }
  0xe8   :  { %v810_v26 = vadd.f32 %v2670_v44, %v607_v18  ;;  %v858_v30 = vmax.f32 %v662_v21, 0.0  ;;  %v859_v29 = vmax.f32 %v663_v22, 0.0  ;;  %v907_v34 = vmax.f32 %v711_v19, 0.0 }
  0xe9   :  { %2135 = vst [vmem:[%s3127_s3 + $0xb0] sm:$0xff] %v2010_v15   ;;  %v908_v31 = vmax.f32 %v712_v24, 0.0  ;;  %v956_v23 = vmax.f32 %v760_v25, 0.0  ;;  %v957_v28 = vmax.f32 %v761_v27, 0.0  ;;  %v1005_v35 = vmax.f32 %v809_v13, 0.0 }
  0xea   :  { %v1146_v36 = vmax.f32 %v858_v30, %v907_v34  ;;  %v1603_v32 = vunpack.c.l.bf16 %v2139_v38  ;;  %v1700_v39 = vunpack.c.h.bf16 %v2064_v46  ;;  %v1006_v40 = vmax.f32 %v810_v26, 0.0  ;;  %v2142_v46 = vld [vmem:[%s3126_s2] ss:$0 sm:$0xff] }
  0xeb   :  { %v1149_v44 = vmax.f32 %v859_v29, %v908_v31  ;;  %v1799_v42 = vunpack.c.l.bf16 %v2140_v41  ;;  %v1896_v33 = vunpack.c.h.bf16 %v2113_v55 }
  0xec   :  { %v1147_v43 = vmax.f32 %v1146_v36, %v956_v23  ;;  %v461_v48 = vmul.f32 %v2141_v37, %v1603_v32  ;;  %v510_v49 = vmul.f32 %v2141_v37, %v1700_v39 }
  0xed   :  { %v1150_v50 = vmax.f32 %v1149_v44, %v957_v28  ;;  %v559_v52 = vmul.f32 %v2141_v37, %v1799_v42  ;;  %v608_v53 = vmul.f32 %v2141_v37, %v1896_v33 }
  0xee   :  { %v1148_v51 = vmax.f32 %v1147_v43, %v1005_v35  ;;  %v664_v56 = vadd.f32 %v2142_v46, %v461_v48  ;;  %v713_v45 = vadd.f32 %v2142_v46, %v510_v49 }
  0xef   :  { %v1151_v47 = vmax.f32 %v1150_v50, %v1006_v40  ;;  %v762_v54 = vadd.f32 %v2142_v46, %v559_v52  ;;  %v811_v58 = vadd.f32 %v2142_v46, %v608_v53 }
  0xf0   :  { %v860_v55 = vmax.f32 %v664_v56, 0.0  ;;  %v909_v61 = vmax.f32 %v713_v45, 0.0 }
  0xf1   :  { %v2015_v60 = vpack.c.bf16 %v1151_v47, %v1148_v51  ;;  %v958_v62 = vmax.f32 %v762_v54, 0.0  ;;  %v1007_v63 = vmax.f32 %v811_v58, 0.0 }
  0xf2   :  { %v1152_v2 = vmax.f32 %v860_v55, %v909_v61 }
  0xf3   :  { %2136 = vst [vmem:[%s3127_s3 + $0xb8] sm:$0xff] %v2015_v60  }
  0xf4   :  { %v1153_v3 = vmax.f32 %v1152_v2, %v958_v62 }
  0xf6   :  { %v1154_v0 = vmax.f32 %v1153_v3, %v1007_v63 }
  0xf8   :  { %v1504_v6 = vpack.c.bf16 %v1154_v0, %v1154_v0 }
  0xfa   :  { %1400 = vst [vmem:[%s3127_s3 + $0xc0] sm:$0xf] %v1504_v6 }

// kernel: usps_feature_extractor.13
= control target key start
LH: loop header
LB: loop body
LE: loop exit
PB: predicated region body
PF: predicated region fallthrough
CT: control target
= control target key end

     0   :  { %s862_s0 = inlined_call_operand.vmem [shape: bf16[4,104,128], index: 0, kind: input, shape index: {}]   ;;  %s863_s1 = inlined_call_operand.vmem [shape: f32[1,128], index: 1, kind: input, shape index: {}]   ;;  %s864_s2 = inlined_call_operand.vmem [shape: f32[1,128], index: 2, kind: input, shape index: {}]   ;;  %s865_s3 = inlined_call_operand.vmem [shape: bf16[104,128], index: 3, kind: output, shape index: {}]  }
   0x1   :  { %v426_v0 = vld [vmem:[%s862_s0] sm:$0xff]   ;;  %v615_v1 = vld [vmem:[%s862_s0 + $0x30] sm:$0xff]   ;;  %v565_v2 = vld [vmem:[%s862_s0 + $0x38] sm:$0xff]  }
   0x2   :  { %v427_v3 = vunpack.c.l.bf16 %v426_v0  ;;  %v428_v4 = vunpack.c.h.bf16 %v426_v0  ;;  %v452_v5 = vunpack.c.h.bf16 %v615_v1  ;;  %v455_v6 = vunpack.c.l.bf16 %v565_v2  ;;  %v571_v7 = vld [vmem:[%s862_s0 + $0x68] sm:$0xff]   ;;  %v627_v8 = vld [vmem:[%s862_s0 + $0x98] sm:$0xff]   ;;  %v578_v9 = vld [vmem:[%s862_s0 + $0xa0] sm:$0xff]  }
   0x3   :  { %v479_v10 = vunpack.c.l.bf16 %v571_v7  ;;  %v480_v11 = vunpack.c.h.bf16 %v571_v7  ;;  %v504_v12 = vunpack.c.h.bf16 %v627_v8  ;;  %v507_v13 = vunpack.c.l.bf16 %v578_v9  ;;  %v636_v14 = vld [vmem:[%s863_s1] ss:$0 sm:$0xff]  ;;  %v559_v32 = vld [vmem:[%s862_s0 + $0x8] sm:$0xff]   ;;  %v572_v38 = vld [vmem:[%s862_s0 + $0x70] sm:$0xff]  }
   0x4   :  { %v641_v15 = vld [vmem:[%s864_s2] ss:$0 sm:$0xff]  ;;  %v125_v16 = vmul.f32 %v427_v3, %v636_v14  ;;  %v126_v17 = vmul.f32 %v428_v4, %v636_v14  ;;  %v138_v18 = vmul.f32 %v452_v5, %v636_v14  ;;  %v139_v19 = vmul.f32 %v455_v6, %v636_v14  ;;  %v673_v43 = vld [vmem:[%s862_s0 + $0xa8] sm:$0xff]  }
   0x5   :  { %v151_v20 = vmul.f32 %v479_v10, %v636_v14  ;;  %v152_v21 = vmul.f32 %v480_v11, %v636_v14  ;;  %v164_v22 = vmul.f32 %v504_v12, %v636_v14  ;;  %v165_v23 = vmul.f32 %v507_v13, %v636_v14  ;;  %v665_v37 = vld [vmem:[%s862_s0 + $0x40] sm:$0xff]   ;;  %v560_v10 = vld [vmem:[%s862_s0 + $0x10] sm:$0xff]  }
   0x6   :  { %v184_v24 = vadd.f32 %v641_v15, %v125_v16  ;;  %v185_v25 = vadd.f32 %v641_v15, %v126_v17  ;;  %v197_v26 = vadd.f32 %v641_v15, %v138_v18  ;;  %v198_v27 = vadd.f32 %v641_v15, %v139_v19 }
   0x7   :  { %v210_v28 = vadd.f32 %v641_v15, %v151_v20  ;;  %v211_v29 = vadd.f32 %v641_v15, %v152_v21  ;;  %v223_v30 = vadd.f32 %v641_v15, %v164_v22  ;;  %v224_v31 = vadd.f32 %v641_v15, %v165_v23  ;;  %v702_v21 = vld [vmem:[%s862_s0 + $0x48] sm:$0xff]   ;;  %v573_v22 = vld [vmem:[%s862_s0 + $0x78] sm:$0xff]  }
   0x8   :  { %v236_v33 = vmax.f32 %v184_v24, 0.0  ;;  %v237_v34 = vmax.f32 %v185_v25, 0.0  ;;  %v249_v35 = vmax.f32 %v197_v26, 0.0  ;;  %v250_v36 = vmax.f32 %v198_v27, 0.0  ;;  %v710_v27 = vld [vmem:[%s862_s0 + $0xb0] sm:$0xff]  }
   0x9   :  { %v262_v39 = vmax.f32 %v210_v28, 0.0  ;;  %v263_v40 = vmax.f32 %v211_v29, 0.0  ;;  %v275_v41 = vmax.f32 %v223_v30, 0.0  ;;  %v276_v42 = vmax.f32 %v224_v31, 0.0 }
   0xa   :  { %v288_v44 = vmax.f32 %v236_v33, %v249_v35  ;;  %v291_v45 = vmax.f32 %v237_v34, %v250_v36  ;;  %v431_v46 = vunpack.c.l.bf16 %v559_v32  ;;  %v432_v47 = vunpack.c.h.bf16 %v559_v32 }
   0xb   :  { %v456_v48 = vunpack.c.h.bf16 %v565_v2  ;;  %v459_v49 = vunpack.c.l.bf16 %v665_v37  ;;  %v483_v50 = vunpack.c.l.bf16 %v572_v38  ;;  %v484_v51 = vunpack.c.h.bf16 %v572_v38 }
   0xc   :  { %v289_v52 = vmax.f32 %v288_v44, %v262_v39  ;;  %v292_v53 = vmax.f32 %v291_v45, %v263_v40  ;;  %v508_v54 = vunpack.c.h.bf16 %v578_v9  ;;  %v511_v55 = vunpack.c.l.bf16 %v673_v43 }
   0xd   :  { %v127_v56 = vmul.f32 %v431_v46, %v636_v14  ;;  %v128_v57 = vmul.f32 %v432_v47, %v636_v14  ;;  %v140_v58 = vmul.f32 %v456_v48, %v636_v14  ;;  %v141_v59 = vmul.f32 %v459_v49, %v636_v14 }
   0xe   :  { %v290_v60 = vmax.f32 %v289_v52, %v275_v41  ;;  %v293_v61 = vmax.f32 %v292_v53, %v276_v42  ;;  %v153_v62 = vmul.f32 %v483_v50, %v636_v14  ;;  %v154_v63 = vmul.f32 %v484_v51, %v636_v14 }
   0xf   :  { %v166_v0 = vmul.f32 %v508_v54, %v636_v14  ;;  %v167_v2 = vmul.f32 %v511_v55, %v636_v14  ;;  %v186_v3 = vadd.f32 %v641_v15, %v127_v56  ;;  %v187_v4 = vadd.f32 %v641_v15, %v128_v57  ;;  %v561_v56 = vld [vmem:[%s862_s0 + $0x18] sm:$0xff]  }
  0x10   :  { %v532_v5 = vpack.c.bf16 %v293_v61, %v290_v60  ;;  %v199_v6 = vadd.f32 %v641_v15, %v140_v58  ;;  %v200_v7 = vadd.f32 %v641_v15, %v141_v59  ;;  %v212_v9 = vadd.f32 %v641_v15, %v153_v62  ;;  %v738_v61 = vld [vmem:[%s862_s0 + $0x50] sm:$0xff]  }
  0x11   :  { %v213_v11 = vadd.f32 %v641_v15, %v154_v63  ;;  %v225_v12 = vadd.f32 %v641_v15, %v166_v0  ;;  %v226_v13 = vadd.f32 %v641_v15, %v167_v2  ;;  %v238_v16 = vmax.f32 %v186_v3, 0.0  ;;  %v574_v3 = vld [vmem:[%s862_s0 + $0x80] sm:$0xff]  }
  0x12   :  { %533 = vst [vmem:[%s865_s3] sm:$0xff] %v532_v5   ;;  %v239_v17 = vmax.f32 %v187_v4, 0.0  ;;  %v251_v18 = vmax.f32 %v199_v6, 0.0  ;;  %v252_v19 = vmax.f32 %v200_v7, 0.0  ;;  %v264_v20 = vmax.f32 %v212_v9, 0.0  ;;  %v749_v4 = vld [vmem:[%s862_s0 + $0xb8] sm:$0xff]  }
  0x13   :  { %v265_v23 = vmax.f32 %v213_v11, 0.0  ;;  %v277_v24 = vmax.f32 %v225_v12, 0.0  ;;  %v278_v25 = vmax.f32 %v226_v13, 0.0  ;;  %v435_v26 = vunpack.c.l.bf16 %v560_v10 }
  0x14   :  { %v294_v28 = vmax.f32 %v238_v16, %v251_v18  ;;  %v297_v29 = vmax.f32 %v239_v17, %v252_v19  ;;  %v436_v30 = vunpack.c.h.bf16 %v560_v10  ;;  %v460_v31 = vunpack.c.h.bf16 %v665_v37 }
  0x15   :  { %v463_v32 = vunpack.c.l.bf16 %v702_v21  ;;  %v487_v33 = vunpack.c.l.bf16 %v573_v22  ;;  %v488_v34 = vunpack.c.h.bf16 %v573_v22  ;;  %v512_v35 = vunpack.c.h.bf16 %v673_v43 }
  0x16   :  { %v295_v36 = vmax.f32 %v294_v28, %v264_v20  ;;  %v298_v38 = vmax.f32 %v297_v29, %v265_v23  ;;  %v515_v39 = vunpack.c.l.bf16 %v710_v27  ;;  %v129_v40 = vmul.f32 %v435_v26, %v636_v14 }
  0x17   :  { %v130_v41 = vmul.f32 %v436_v30, %v636_v14  ;;  %v142_v42 = vmul.f32 %v460_v31, %v636_v14  ;;  %v143_v44 = vmul.f32 %v463_v32, %v636_v14  ;;  %v155_v37 = vmul.f32 %v487_v33, %v636_v14 }
  0x18   :  { %v296_v45 = vmax.f32 %v295_v36, %v277_v24  ;;  %v299_v46 = vmax.f32 %v298_v38, %v278_v25  ;;  %v156_v47 = vmul.f32 %v488_v34, %v636_v14  ;;  %v168_v43 = vmul.f32 %v512_v35, %v636_v14 }
  0x19   :  { %v169_v48 = vmul.f32 %v515_v39, %v636_v14  ;;  %v188_v49 = vadd.f32 %v641_v15, %v129_v40  ;;  %v189_v50 = vadd.f32 %v641_v15, %v130_v41  ;;  %v201_v51 = vadd.f32 %v641_v15, %v142_v42  ;;  %v562_v41 = vld [vmem:[%s862_s0 + $0x20] sm:$0xff]  }
  0x1a   :  { %v537_v52 = vpack.c.bf16 %v299_v46, %v296_v45  ;;  %v202_v53 = vadd.f32 %v641_v15, %v143_v44  ;;  %v214_v54 = vadd.f32 %v641_v15, %v155_v37  ;;  %v215_v55 = vadd.f32 %v641_v15, %v156_v47  ;;  %v777_v46 = vld [vmem:[%s862_s0 + $0x58] sm:$0xff]   ;;  %v575_v47 = vld [vmem:[%s862_s0 + $0x88] sm:$0xff]  }
  0x1b   :  { %v227_v57 = vadd.f32 %v641_v15, %v168_v43  ;;  %v228_v58 = vadd.f32 %v641_v15, %v169_v48  ;;  %v240_v59 = vmax.f32 %v188_v49, 0.0  ;;  %v241_v60 = vmax.f32 %v189_v50, 0.0 }
  0x1c   :  { %584 = vst [vmem:[%s865_s3 + $0x8] sm:$0xff] %v537_v52   ;;  %v253_v62 = vmax.f32 %v201_v51, 0.0  ;;  %v254_v63 = vmax.f32 %v202_v53, 0.0  ;;  %v266_v0 = vmax.f32 %v214_v54, 0.0  ;;  %v267_v2 = vmax.f32 %v215_v55, 0.0  ;;  %v788_v51 = vld [vmem:[%s862_s0 + $0xc0] sm:$0xff]  }
  0x1d   :  { %v279_v5 = vmax.f32 %v227_v57, 0.0  ;;  %v280_v6 = vmax.f32 %v228_v58, 0.0  ;;  %v439_v7 = vunpack.c.l.bf16 %v561_v56  ;;  %v440_v9 = vunpack.c.h.bf16 %v561_v56 }
  0x1e   :  { %v300_v10 = vmax.f32 %v240_v59, %v253_v62  ;;  %v303_v11 = vmax.f32 %v241_v60, %v254_v63  ;;  %v464_v12 = vunpack.c.h.bf16 %v702_v21  ;;  %v467_v13 = vunpack.c.l.bf16 %v738_v61 }
  0x1f   :  { %v491_v16 = vunpack.c.l.bf16 %v574_v3  ;;  %v492_v17 = vunpack.c.h.bf16 %v574_v3  ;;  %v516_v18 = vunpack.c.h.bf16 %v710_v27  ;;  %v519_v19 = vunpack.c.l.bf16 %v749_v4 }
  0x20   :  { %v301_v20 = vmax.f32 %v300_v10, %v266_v0  ;;  %v304_v22 = vmax.f32 %v303_v11, %v267_v2  ;;  %v131_v23 = vmul.f32 %v439_v7, %v636_v14  ;;  %v132_v24 = vmul.f32 %v440_v9, %v636_v14 }
  0x21   :  { %v144_v25 = vmul.f32 %v464_v12, %v636_v14  ;;  %v145_v26 = vmul.f32 %v467_v13, %v636_v14  ;;  %v157_v21 = vmul.f32 %v491_v16, %v636_v14  ;;  %v158_v28 = vmul.f32 %v492_v17, %v636_v14 }
  0x22   :  { %v302_v29 = vmax.f32 %v301_v20, %v279_v5  ;;  %v305_v30 = vmax.f32 %v304_v22, %v280_v6  ;;  %v170_v27 = vmul.f32 %v516_v18, %v636_v14  ;;  %v171_v31 = vmul.f32 %v519_v19, %v636_v14 }
  0x23   :  { %v190_v32 = vadd.f32 %v641_v15, %v131_v23  ;;  %v191_v33 = vadd.f32 %v641_v15, %v132_v24  ;;  %v203_v34 = vadd.f32 %v641_v15, %v144_v25  ;;  %v204_v35 = vadd.f32 %v641_v15, %v145_v26  ;;  %v563_v25 = vld [vmem:[%s862_s0 + $0x28] sm:$0xff]  }
  0x24   :  { %v542_v36 = vpack.c.bf16 %v305_v30, %v302_v29  ;;  %v216_v38 = vadd.f32 %v641_v15, %v157_v21  ;;  %v217_v39 = vadd.f32 %v641_v15, %v158_v28  ;;  %v229_v40 = vadd.f32 %v641_v15, %v170_v27  ;;  %v570_v30 = vld [vmem:[%s862_s0 + $0x60] sm:$0xff]   ;;  %v576_v27 = vld [vmem:[%s862_s0 + $0x90] sm:$0xff]  }
  0x25   :  { %v230_v42 = vadd.f32 %v641_v15, %v171_v31  ;;  %v242_v44 = vmax.f32 %v190_v32, 0.0  ;;  %v243_v37 = vmax.f32 %v191_v33, 0.0  ;;  %v255_v45 = vmax.f32 %v203_v34, 0.0 }
  0x26   :  { %585 = vst [vmem:[%s865_s3 + $0x10] sm:$0xff] %v542_v36   ;;  %v256_v43 = vmax.f32 %v204_v35, 0.0  ;;  %v268_v48 = vmax.f32 %v216_v38, 0.0  ;;  %v269_v49 = vmax.f32 %v217_v39, 0.0  ;;  %v281_v50 = vmax.f32 %v229_v40, 0.0  ;;  %v583_v35 = vld [vmem:[%s862_s0 + $0xc8] sm:$0xff]  }
  0x27   :  { %v282_v52 = vmax.f32 %v230_v42, 0.0  ;;  %v306_v53 = vmax.f32 %v242_v44, %v255_v45  ;;  %v443_v54 = vunpack.c.l.bf16 %v562_v41  ;;  %v444_v55 = vunpack.c.h.bf16 %v562_v41 }
  0x28   :  { %v309_v56 = vmax.f32 %v243_v37, %v256_v43  ;;  %v468_v57 = vunpack.c.h.bf16 %v738_v61  ;;  %v471_v58 = vunpack.c.l.bf16 %v777_v46  ;;  %v495_v59 = vunpack.c.l.bf16 %v575_v47 }
  0x29   :  { %v307_v60 = vmax.f32 %v306_v53, %v268_v48  ;;  %v496_v62 = vunpack.c.h.bf16 %v575_v47  ;;  %v520_v63 = vunpack.c.h.bf16 %v749_v4  ;;  %v523_v0 = vunpack.c.l.bf16 %v788_v51 }
  0x2a   :  { %v310_v2 = vmax.f32 %v309_v56, %v269_v49  ;;  %v133_v3 = vmul.f32 %v443_v54, %v636_v14  ;;  %v134_v5 = vmul.f32 %v444_v55, %v636_v14  ;;  %v146_v6 = vmul.f32 %v468_v57, %v636_v14 }
  0x2b   :  { %v308_v7 = vmax.f32 %v307_v60, %v281_v50  ;;  %v147_v9 = vmul.f32 %v471_v58, %v636_v14  ;;  %v159_v61 = vmul.f32 %v495_v59, %v636_v14  ;;  %v160_v10 = vmul.f32 %v496_v62, %v636_v14 }
  0x2c   :  { %v311_v11 = vmax.f32 %v310_v2, %v282_v52  ;;  %v172_v12 = vmul.f32 %v520_v63, %v636_v14  ;;  %v173_v4 = vmul.f32 %v523_v0, %v636_v14  ;;  %v192_v13 = vadd.f32 %v641_v15, %v133_v3 }
  0x2d   :  { %v193_v16 = vadd.f32 %v641_v15, %v134_v5  ;;  %v205_v17 = vadd.f32 %v641_v15, %v146_v6  ;;  %v206_v18 = vadd.f32 %v641_v15, %v147_v9  ;;  %v218_v19 = vadd.f32 %v641_v15, %v159_v61 }
  0x2e   :  { %v547_v20 = vpack.c.bf16 %v311_v11, %v308_v7  ;;  %v219_v22 = vadd.f32 %v641_v15, %v160_v10  ;;  %v231_v23 = vadd.f32 %v641_v15, %v172_v12  ;;  %v232_v24 = vadd.f32 %v641_v15, %v173_v4 }
  0x2f   :  { %v244_v26 = vmax.f32 %v192_v13, 0.0  ;;  %v245_v21 = vmax.f32 %v193_v16, 0.0  ;;  %v257_v28 = vmax.f32 %v205_v17, 0.0  ;;  %v258_v29 = vmax.f32 %v206_v18, 0.0 }
  0x30   :  { %586 = vst [vmem:[%s865_s3 + $0x18] sm:$0xff] %v547_v20   ;;  %v270_v31 = vmax.f32 %v218_v19, 0.0  ;;  %v271_v32 = vmax.f32 %v219_v22, 0.0  ;;  %v283_v33 = vmax.f32 %v231_v23, 0.0  ;;  %v284_v34 = vmax.f32 %v232_v24, 0.0 }
  0x31   :  { %v312_v36 = vmax.f32 %v244_v26, %v257_v28  ;;  %v315_v38 = vmax.f32 %v245_v21, %v258_v29  ;;  %v447_v39 = vunpack.c.l.bf16 %v563_v25  ;;  %v448_v40 = vunpack.c.h.bf16 %v563_v25 }
  0x32   :  { %v472_v41 = vunpack.c.h.bf16 %v777_v46  ;;  %v475_v42 = vunpack.c.l.bf16 %v570_v30  ;;  %v499_v44 = vunpack.c.l.bf16 %v576_v27  ;;  %v500_v37 = vunpack.c.h.bf16 %v576_v27 }
  0x33   :  { %v313_v45 = vmax.f32 %v312_v36, %v270_v31  ;;  %v316_v47 = vmax.f32 %v315_v38, %v271_v32  ;;  %v524_v43 = vunpack.c.h.bf16 %v788_v51  ;;  %v527_v48 = vunpack.c.l.bf16 %v583_v35 }
  0x34   :  { %v135_v49 = vmul.f32 %v447_v39, %v636_v14  ;;  %v136_v50 = vmul.f32 %v448_v40, %v636_v14  ;;  %v148_v52 = vmul.f32 %v472_v41, %v636_v14  ;;  %v149_v53 = vmul.f32 %v475_v42, %v636_v14 }
  0x35   :  { %v314_v54 = vmax.f32 %v313_v45, %v283_v33  ;;  %v317_v55 = vmax.f32 %v316_v47, %v284_v34  ;;  %v161_v46 = vmul.f32 %v499_v44, %v636_v14  ;;  %v162_v56 = vmul.f32 %v500_v37, %v636_v14 }
  0x36   :  { %v174_v57 = vmul.f32 %v524_v43, %v636_v14  ;;  %v175_v58 = vmul.f32 %v527_v48, %v636_v14  ;;  %v194_v51 = vadd.f32 %v641_v15, %v135_v49  ;;  %v195_v59 = vadd.f32 %v641_v15, %v136_v50 }
  0x37   :  { %v552_v60 = vpack.c.bf16 %v317_v55, %v314_v54  ;;  %v207_v62 = vadd.f32 %v641_v15, %v148_v52  ;;  %v208_v63 = vadd.f32 %v641_v15, %v149_v53  ;;  %v220_v0 = vadd.f32 %v641_v15, %v161_v46 }
  0x38   :  { %v221_v2 = vadd.f32 %v641_v15, %v162_v56  ;;  %v233_v3 = vadd.f32 %v641_v15, %v174_v57  ;;  %v234_v5 = vadd.f32 %v641_v15, %v175_v58  ;;  %v246_v6 = vmax.f32 %v194_v51, 0.0 }
  0x39   :  { %587 = vst [vmem:[%s865_s3 + $0x20] sm:$0xff] %v552_v60   ;;  %v247_v7 = vmax.f32 %v195_v59, 0.0  ;;  %v259_v9 = vmax.f32 %v207_v62, 0.0  ;;  %v260_v61 = vmax.f32 %v208_v63, 0.0  ;;  %v272_v10 = vmax.f32 %v220_v0, 0.0 }
  0x3a   :  { %v273_v11 = vmax.f32 %v221_v2, 0.0  ;;  %v285_v12 = vmax.f32 %v233_v3, 0.0  ;;  %v286_v4 = vmax.f32 %v234_v5, 0.0  ;;  %v451_v13 = vunpack.c.l.bf16 %v615_v1 }
  0x3b   :  { %v318_v16 = vmax.f32 %v246_v6, %v259_v9  ;;  %v321_v17 = vmax.f32 %v247_v7, %v260_v61  ;;  %v476_v18 = vunpack.c.h.bf16 %v570_v30  ;;  %v503_v19 = vunpack.c.l.bf16 %v627_v8 }
  0x3c   :  { %v528_v20 = vunpack.c.h.bf16 %v583_v35  ;;  %v137_v22 = vmul.f32 %v451_v13, %v636_v14 }
  0x3d   :  { %v319_v23 = vmax.f32 %v318_v16, %v272_v10  ;;  %v322_v24 = vmax.f32 %v321_v17, %v273_v11  ;;  %v150_v25 = vmul.f32 %v476_v18, %v636_v14  ;;  %v163_v26 = vmul.f32 %v503_v19, %v636_v14 }
  0x3e   :  { %v176_v21 = vmul.f32 %v528_v20, %v636_v14  ;;  %v196_v28 = vadd.f32 %v641_v15, %v137_v22 }
  0x3f   :  { %v320_v29 = vmax.f32 %v319_v23, %v285_v12  ;;  %v323_v1 = vmax.f32 %v322_v24, %v286_v4  ;;  %v209_v27 = vadd.f32 %v641_v15, %v150_v25  ;;  %v222_v30 = vadd.f32 %v641_v15, %v163_v26 }
  0x40   :  { %v235_v8 = vadd.f32 %v641_v15, %v176_v21  ;;  %v248_v31 = vmax.f32 %v196_v28, 0.0 }
  0x41   :  { %v557_v32 = vpack.c.bf16 %v323_v1, %v320_v29  ;;  %v261_v33 = vmax.f32 %v209_v27, 0.0  ;;  %v274_v34 = vmax.f32 %v222_v30, 0.0 }
  0x42   :  { %v287_v35 = vmax.f32 %v235_v8, 0.0 }
  0x43   :  { %588 = vst [vmem:[%s865_s3 + $0x28] sm:$0xff] %v557_v32   ;;  %v324_v14 = vmax.f32 %v248_v31, %v261_v33 }
  0x45   :  { %v325_v36 = vmax.f32 %v324_v14, %v274_v34 }
  0x47   :  { %v326_v38 = vmax.f32 %v325_v36, %v287_v35 }
  0x49   :  { %v424_v39 = vpack.c.bf16 %v326_v38, %v326_v38 }
  0x4b   :  { %392 = vst [vmem:[%s865_s3 + $0x30] sm:$0xf] %v424_v39 }

// kernel: usps_feature_extractor.15
= control target key start
LH: loop header
LB: loop body
LE: loop exit
PB: predicated region body
PF: predicated region fallthrough
CT: control target
= control target key end

     0   :  { %v37_v0 = vlaneseq  ;;  %s238_s0 = inlined_call_operand.vmem [shape: bf16[56,256], index: 0, kind: input, shape index: {}]   ;;  %s239_s1 = inlined_call_operand.vmem [shape: f32[1,256], index: 1, kind: input, shape index: {}]   ;;  %s240_s2 = inlined_call_operand.vmem [shape: f32[1,256], index: 2, kind: input, shape index: {}]   ;;  %s241_s3 = inlined_call_operand.vmem [shape: bf16[56,256], index: 3, kind: output, shape index: {}]  }
   0x1   :  { %v14_v1 = vld [vmem:[%s238_s0] sm:$0xff]  ;;  %v15_v3 = vld [vmem:[%s238_s0 + $0x8] sm:$0xff]  ;;  %v16_v4 = vld [vmem:[%s238_s0 + $0x10] sm:$0xff] }
   0x2   :  { %v38_v2 = vshrl.u32 %v37_v0, 7  ;;  %v17_v5 = vld [vmem:[%s238_s0 + $0x18] sm:$0xff]  ;;  %v21_v6 = vunpack.c.l.bf16 %v14_v1  ;;  %v22_v7 = vunpack.c.h.bf16 %v14_v1  ;;  %v35_v8 = vld [vmem:[%s239_s1] sm:$0x3]  ;;  %v23_v10 = vunpack.c.l.bf16 %v15_v3  ;;  %v19_v17 = vld [vmem:[%s238_s0 + $0x28] sm:$0xff] }
   0x3   :  { %v61_v9 = vld [vmem:[%s240_s2] sm:$0x3]  ;;  %v24_v11 = vunpack.c.h.bf16 %v15_v3  ;;  %v25_v15 = vunpack.c.l.bf16 %v16_v4  ;;  %v26_v16 = vunpack.c.h.bf16 %v16_v4  ;;  %v20_v18 = vld [vmem:[%s238_s0 + $0x30] sm:$0xff]  ;;  %v27_v19 = vunpack.c.l.bf16 %v17_v5 }
   0x4   :  { %v18_v12 = vld [vmem:[%s238_s0 + $0x20] sm:$0xff]  ;;  %v39_v13 = vsub.s32 0, %v38_v2  ;;  %v43_v14 = vsub.s32 1, %v38_v2  ;;  %v28_v20 = vunpack.c.h.bf16 %v17_v5  ;;  %v31_v27 = vunpack.c.l.bf16 %v19_v17 }
   0x5   :  { %v29_v21 = vunpack.c.l.bf16 %v18_v12  ;;  %v30_v22 = vunpack.c.h.bf16 %v18_v12  ;;  %v32_v28 = vunpack.c.h.bf16 %v19_v17  ;;  %v33_v29 = vunpack.c.l.bf16 %v20_v18 }
   0x6   :  { %v40_v23 = vrot.slane %v35_v8, %v39_v13  ;;  %v44_v24 = vrot.slane %v35_v8, %v43_v14  ;;  %v66_v25 = vrot.slane %v61_v9, %v39_v13  ;;  %v70_v26 = vrot.slane %v61_v9, %v43_v14 }
   0x7   :  { %v34_v30 = vunpack.c.h.bf16 %v20_v18 }
   0x8   :  { %v47_v31 = vmul.f32 %v40_v23, %v21_v6  ;;  %v48_v32 = vmul.f32 %v44_v24, %v22_v7  ;;  %v49_v33 = vmul.f32 %v40_v23, %v23_v10  ;;  %v50_v34 = vmul.f32 %v44_v24, %v24_v11 }
   0x9   :  { %v51_v35 = vmul.f32 %v40_v23, %v25_v15  ;;  %v52_v36 = vmul.f32 %v44_v24, %v26_v16  ;;  %v53_v37 = vmul.f32 %v40_v23, %v27_v19  ;;  %v54_v38 = vmul.f32 %v44_v24, %v28_v20 }
   0xa   :  { %v73_v39 = vadd.f32 %v66_v25, %v47_v31  ;;  %v74_v40 = vadd.f32 %v70_v26, %v48_v32  ;;  %v75_v41 = vadd.f32 %v66_v25, %v49_v33  ;;  %v76_v42 = vadd.f32 %v70_v26, %v50_v34 }
   0xb   :  { %v77_v43 = vadd.f32 %v66_v25, %v51_v35  ;;  %v78_v44 = vadd.f32 %v70_v26, %v52_v36  ;;  %v79_v45 = vadd.f32 %v66_v25, %v53_v37  ;;  %v80_v46 = vadd.f32 %v70_v26, %v54_v38 }
   0xc   :  { %v87_v47 = vmax.f32 %v73_v39, 0.0  ;;  %v88_v48 = vmax.f32 %v74_v40, 0.0  ;;  %v89_v49 = vmax.f32 %v75_v41, 0.0  ;;  %v90_v50 = vmax.f32 %v76_v42, 0.0 }
   0xd   :  { %v91_v51 = vmax.f32 %v77_v43, 0.0  ;;  %v92_v52 = vmax.f32 %v78_v44, 0.0  ;;  %v93_v53 = vmax.f32 %v79_v45, 0.0  ;;  %v94_v54 = vmax.f32 %v80_v46, 0.0 }
   0xe   :  { %v163_v55 = vpack.c.bf16 %v88_v48, %v87_v47  ;;  %v164_v56 = vpack.c.bf16 %v90_v50, %v89_v49  ;;  %v55_v57 = vmul.f32 %v40_v23, %v29_v21  ;;  %v56_v58 = vmul.f32 %v44_v24, %v30_v22 }
   0xf   :  { %v165_v59 = vpack.c.bf16 %v92_v52, %v91_v51  ;;  %v166_v60 = vpack.c.bf16 %v94_v54, %v93_v53  ;;  %v57_v61 = vmul.f32 %v40_v23, %v31_v27  ;;  %v58_v62 = vmul.f32 %v44_v24, %v32_v28 }
  0x10   :  { %145 = vst [vmem:[%s241_s3] sm:$0xff] %v163_v55  ;;  %146 = vst [vmem:[%s241_s3 + $0x8] sm:$0xff] %v164_v56  ;;  %v81_v63 = vadd.f32 %v66_v25, %v55_v57  ;;  %v82_v0 = vadd.f32 %v70_v26, %v56_v58  ;;  %v59_v1 = vmul.f32 %v40_v23, %v33_v29 }
  0x11   :  { %v60_v2 = vmul.f32 %v44_v24, %v34_v30  ;;  %147 = vst [vmem:[%s241_s3 + $0x10] sm:$0xff] %v165_v59  ;;  %148 = vst [vmem:[%s241_s3 + $0x18] sm:$0xff] %v166_v60  ;;  %v83_v3 = vadd.f32 %v66_v25, %v57_v61  ;;  %v84_v4 = vadd.f32 %v70_v26, %v58_v62 }
  0x12   :  { %v95_v5 = vmax.f32 %v81_v63, 0.0  ;;  %v96_v6 = vmax.f32 %v82_v0, 0.0  ;;  %v85_v7 = vadd.f32 %v66_v25, %v59_v1 }
  0x13   :  { %v86_v8 = vadd.f32 %v70_v26, %v60_v2  ;;  %v97_v9 = vmax.f32 %v83_v3, 0.0  ;;  %v98_v10 = vmax.f32 %v84_v4, 0.0 }
  0x14   :  { %v167_v11 = vpack.c.bf16 %v96_v6, %v95_v5  ;;  %v99_v12 = vmax.f32 %v85_v7, 0.0 }
  0x15   :  { %v100_v13 = vmax.f32 %v86_v8, 0.0  ;;  %v168_v14 = vpack.c.bf16 %v98_v10, %v97_v9 }
  0x16   :  { %149 = vst [vmem:[%s241_s3 + $0x20] sm:$0xff] %v167_v11 }
  0x17   :  { %v169_v15 = vpack.c.bf16 %v100_v13, %v99_v12  ;;  %150 = vst [vmem:[%s241_s3 + $0x28] sm:$0xff] %v168_v14 }
  0x19   :  { %151 = vst [vmem:[%s241_s3 + $0x30] sm:$0xff] %v169_v15 }

// kernel: usps_feature_extractor.12
= control target key start
LH: loop header
LB: loop body
LE: loop exit
PB: predicated region body
PF: predicated region fallthrough
CT: control target
= control target key end

     0   :  { %v5025_v0 = vmov 0   ;;  %vm5027_vm0 = vmmov 0   ;;  %vm3534_vm1 = vcmask 1040384   ;;  %s6269_s1 = inlined_call_operand.vmem [shape: bf16[1152,128], index: 1, kind: input, shape index: {}]   ;;  %s6270_s0 = inlined_call_operand.vmem [shape: bf16[392,1152], index: 0, kind: input, shape index: {}]   ;;  %s6271_s2 = inlined_call_operand.vmem [shape: bf16[392,128], index: 2, kind: output, shape index: {0}]   ;;  %s6272_s3 = inlined_call_operand.vmem [shape: f32[1,2,128], index: 3, kind: output, shape index: {1}]  }
   0x1   :  { %1971 = vmatprep.subr.bf16.mxu1 %v5025_v0  ;;  %2435 = vmatprep.subr.bf16.mxu0 %v5025_v0  ;;  %v4616_v1 = vld [vmem:[%s6269_s1] sm:$0xff]   ;;  %v4618_v3 = vld [vmem:[%s6269_s1 + $0x8] sm:$0xff]   ;;  %v4620_v5 = vld [vmem:[%s6269_s1 + $0x10] sm:$0xff]  }
   0x2   :  { %v4617_v2 = vld [vmem:[%s6269_s1 + $0x100] sm:$0xff]   ;;  %1972 = vmatpush1.bf16.msra.mxu1 %v4616_v1  ;;  %v4619_v4 = vld [vmem:[%s6269_s1 + $0x108] sm:$0xff]   ;;  %v4621_v6 = vld [vmem:[%s6269_s1 + $0x110] sm:$0xff]  }
   0x3   :  { %2436 = vmatpush1.bf16.msra.mxu0 %v4617_v2  ;;  %1973 = vmatprep.subr.bf16.mxu1 %v5025_v0  ;;  %v4622_v7 = vld [vmem:[%s6269_s1 + $0x18] sm:$0xff]   ;;  %v4624_v9 = vld [vmem:[%s6269_s1 + $0x20] sm:$0xff]   ;;  %v4626_v11 = vld [vmem:[%s6269_s1 + $0x28] sm:$0xff]  }
   0x4   :  { %2437 = vmatprep.subr.bf16.mxu0 %v5025_v0  ;;  %v4623_v8 = vld [vmem:[%s6269_s1 + $0x118] sm:$0xff]   ;;  %v4625_v10 = vld [vmem:[%s6269_s1 + $0x120] sm:$0xff]   ;;  %v4627_v12 = vld [vmem:[%s6269_s1 + $0x128] sm:$0xff]  }
   0x5   :  { %v4628_v13 = vld [vmem:[%s6269_s1 + $0x30] sm:$0xff]   ;;  %v4630_v15 = vld [vmem:[%s6269_s1 + $0x38] sm:$0xff]   ;;  %v4632_v17 = vld [vmem:[%s6269_s1 + $0x40] sm:$0xff]  }
   0x6   :  { %1974 = vmatpush1.bf16.msra.mxu1 %v4618_v3  ;;  %v4629_v14 = vld [vmem:[%s6269_s1 + $0x130] sm:$0xff]   ;;  %v4631_v16 = vld [vmem:[%s6269_s1 + $0x138] sm:$0xff]   ;;  %v4633_v18 = vld [vmem:[%s6269_s1 + $0x140] sm:$0xff]  }
   0x7   :  { %2438 = vmatpush1.bf16.msra.mxu0 %v4619_v4  ;;  %1975 = vmatprep.subr.bf16.mxu1 %v5025_v0  ;;  %v4650_v19 = vld [vmem:[%s6270_s0 + $0x4] ss:$36 sps:$4 sm:$0xff]   ;;  %v4653_v21 = vld [vmem:[%s6270_s0 + $0x14] ss:$36 sps:$4 sm:$0xff]   ;;  %v4655_v38 = vld [vmem:[%s6270_s0 + $0x4c] ss:$36 sps:$4 sm:$0xff]  }
   0x8   :  { %2439 = vmatprep.subr.bf16.mxu0 %v5025_v0  ;;  %v4634_v20 = vld [vmem:[%s6269_s1 + $0x48] sm:$0xff]   ;;  %2003 = vmatprep.mubr.bf16.mxu1 %v4650_v19  ;;  %v4636_v23 = vld [vmem:[%s6269_s1 + $0x50] sm:$0xff]   ;;  %v4638_v25 = vld [vmem:[%s6269_s1 + $0x58] sm:$0xff]  }
   0x9   :  { %v4635_v22 = vld [vmem:[%s6269_s1 + $0x148] sm:$0xff]   ;;  %2467 = vmatprep.mubr.bf16.mxu0 %v4653_v21  ;;  %v4637_v24 = vld [vmem:[%s6269_s1 + $0x150] sm:$0xff]   ;;  %v4639_v26 = vld [vmem:[%s6269_s1 + $0x158] sm:$0xff]  }
   0xa   :  { %1976 = vmatpush1.bf16.msra.mxu1 %v4620_v5  ;;  %v4640_v27 = vld [vmem:[%s6269_s1 + $0x60] sm:$0xff]   ;;  %v4642_v29 = vld [vmem:[%s6269_s1 + $0x68] sm:$0xff]   ;;  %v4644_v31 = vld [vmem:[%s6269_s1 + $0x70] sm:$0xff]  }
   0xb   :  { %2440 = vmatpush1.bf16.msra.mxu0 %v4621_v6  ;;  %1977 = vmatprep.subr.bf16.mxu1 %v5025_v0  ;;  %v4641_v28 = vld [vmem:[%s6269_s1 + $0x160] sm:$0xff]   ;;  %v4643_v30 = vld [vmem:[%s6269_s1 + $0x168] sm:$0xff]   ;;  %v4645_v32 = vld [vmem:[%s6269_s1 + $0x170] sm:$0xff]  }
   0xc   :  { %2441 = vmatprep.subr.bf16.mxu0 %v5025_v0  ;;  %v4646_v33 = vld [vmem:[%s6269_s1 + $0x78] sm:$0xff]   ;;  %v4648_v35 = vld [vmem:[%s6270_s0] ss:$36 sps:$4 sm:$0xff]   ;;  %v4651_v36 = vld [vmem:[%s6270_s0 + $0x10] ss:$36 sps:$4 sm:$0xff]  }
   0xd   :  { %v4647_v34 = vld [vmem:[%s6269_s1 + $0x178] sm:$0xff]   ;;  %v4654_v37 = vld [vmem:[%s6269_s1 + $0x180] sm:$0xff]   ;;  %v4661_v41 = vld [vmem:[%s6269_s1 + $0x188] sm:$0xff]  }
   0xe   :  { %1978 = vmatpush1.bf16.msra.mxu1 %v4622_v7  ;;  %v4657_v39 = vld [vmem:[%s6270_s0 + $0x5c] ss:$36 sps:$4 sm:$0xff]   ;;  %v4671_v42 = vld [vmem:[%s6269_s1 + $0x88] sm:$0xff]   ;;  %v4663_v45 = vld [vmem:[%s6269_s1 + $0x190] sm:$0xff]  }
   0xf   :  { %2442 = vmatpush1.bf16.msra.mxu0 %v4623_v8  ;;  %1979 = vmatprep.subr.bf16.mxu1 %v5025_v0  ;;  %v4662_v40 = vld [vmem:[%s6269_s1 + $0x80] sm:$0xff]   ;;  %v4659_v43 = vld [vmem:[%s6270_s0 + $0x48] ss:$36 sps:$4 sm:$0xff]   ;;  %v4660_v44 = vld [vmem:[%s6270_s0 + $0x58] ss:$36 sps:$4 sm:$0xff]  }
  0x10   :  { %2443 = vmatprep.subr.bf16.mxu0 %v5025_v0  ;;  %v4664_v46 = vld [vmem:[%s6270_s0 + $0x94] ss:$36 sps:$4 sm:$0xff]   ;;  %v4666_v47 = vld [vmem:[%s6270_s0 + $0xa4] ss:$36 sps:$4 sm:$0xff]   ;;  %v4672_v53 = vld [vmem:[%s6270_s0 + $0xdc] ss:$36 sps:$4 sm:$0xff]  }
  0x11   :  { %v4685_v48 = vld [vmem:[%s6269_s1 + $0x90] sm:$0xff]   ;;  %v4670_v50 = vld [vmem:[%s6269_s1 + $0x198] sm:$0xff]   ;;  %v4669_v52 = vld [vmem:[%s6270_s0 + $0xa0] ss:$36 sps:$4 sm:$0xff]  }
  0x12   :  { %1980 = vmatpush1.bf16.msra.mxu1 %v4624_v9  ;;  %v4668_v49 = vld [vmem:[%s6270_s0 + $0x90] ss:$36 sps:$4 sm:$0xff]   ;;  %v4696_v51 = vld [vmem:[%s6269_s1 + $0x98] sm:$0xff]   ;;  %v4678_v55 = vld [vmem:[%s6269_s1 + $0x1a0] sm:$0xff]  }
  0x13   :  { %2444 = vmatpush1.bf16.msra.mxu0 %v4625_v10  ;;  %1981 = vmatprep.subr.bf16.mxu1 %v5025_v0  ;;  %v4674_v54 = vld [vmem:[%s6270_s0 + $0xec] ss:$36 sps:$4 sm:$0xff]   ;;  %v4709_v56 = vld [vmem:[%s6269_s1 + $0xa0] sm:$0xff]   ;;  %v4676_v58 = vld [vmem:[%s6270_s0 + $0xd8] ss:$36 sps:$4 sm:$0xff]  }
  0x14   :  { %2445 = vmatprep.subr.bf16.mxu0 %v5025_v0  ;;  %v4686_v57 = vld [vmem:[%s6269_s1 + $0x1a8] sm:$0xff]   ;;  %v4681_v62 = vld [vmem:[%s6270_s0 + $0x134] ss:$36 sps:$4 sm:$0xff]   ;;  %v4683_v2 = vld [vmem:[%s6270_s0 + $0x120] ss:$36 sps:$4 sm:$0xff]  }
  0x15   :  { %v4677_v59 = vld [vmem:[%s6270_s0 + $0xe8] ss:$36 sps:$4 sm:$0xff]   ;;  %v4693_v63 = vld [vmem:[%s6269_s1 + $0x1b0] sm:$0xff]   ;;  %v4699_v3 = vld [vmem:[%s6269_s1 + $0x1b8] sm:$0xff]  }
  0x16   :  { %1982 = vmatpush1.bf16.msra.mxu1 %v4626_v11  ;;  %v4723_v60 = vld [vmem:[%s6269_s1 + $0xa8] sm:$0xff]   ;;  %v4733_v1 = vld [vmem:[%s6269_s1 + $0xb0] sm:$0xff]   ;;  %v4748_v5 = vld [vmem:[%s6269_s1 + $0xb8] sm:$0xff]  }
  0x17   :  { %2446 = vmatpush1.bf16.msra.mxu0 %v4627_v12  ;;  %1983 = vmatprep.subr.bf16.mxu1 %v5025_v0  ;;  %v4679_v61 = vld [vmem:[%s6270_s0 + $0x124] ss:$36 sps:$4 sm:$0xff]   ;;  %v4684_v4 = vld [vmem:[%s6270_s0 + $0x130] ss:$36 sps:$4 sm:$0xff]   ;;  %v4689_v7 = vld [vmem:[%s6270_s0 + $0x17c] ss:$36 sps:$4 sm:$0xff]  }
  0x18   :  { %2447 = vmatprep.subr.bf16.mxu0 %v5025_v0  ;;  %v4687_v6 = vld [vmem:[%s6270_s0 + $0x16c] ss:$36 sps:$4 sm:$0xff]   ;;  %v4702_v8 = vld [vmem:[%s6269_s1 + $0x1c0] sm:$0xff]   ;;  %v4692_v12 = vld [vmem:[%s6270_s0 + $0x178] ss:$36 sps:$4 sm:$0xff]  }
  0x19   :  { %v4757_v9 = vld [vmem:[%s6269_s1 + $0xc0] sm:$0xff]   ;;  %v4710_v10 = vld [vmem:[%s6269_s1 + $0x1c8] sm:$0xff]   ;;  %v4700_v19 = vld [vmem:[%s6270_s0 + $0x1b0] ss:$36 sps:$4 sm:$0xff]  }
  0x1a   :  { %1984 = vmatpush1.bf16.msra.mxu1 %v4628_v13  ;;  %v4691_v11 = vld [vmem:[%s6270_s0 + $0x168] ss:$36 sps:$4 sm:$0xff]   ;;  %v4703_v21 = vld [vmem:[%s6270_s0 + $0x1fc] ss:$36 sps:$4 sm:$0xff]  }
  0x1b   :  { %2448 = vmatpush1.bf16.msra.mxu0 %v4629_v14  ;;  %1985 = vmatprep.subr.bf16.mxu1 %v5025_v0  ;;  %v4770_v13 = vld [vmem:[%s6269_s1 + $0xc8] sm:$0xff]   ;;  %v4694_v14 = vld [vmem:[%s6270_s0 + $0x1b4] ss:$36 sps:$4 sm:$0xff]  }
  0x1c   :  { %2449 = vmatprep.subr.bf16.mxu0 %v5025_v0 }
  0x1e   :  { %1986 = vmatpush1.bf16.msra.mxu1 %v4630_v15  ;;  %v4697_v15 = vld [vmem:[%s6270_s0 + $0x1c4] ss:$36 sps:$4 sm:$0xff]  }
  0x1f   :  { %2450 = vmatpush1.bf16.msra.mxu0 %v4631_v16  ;;  %1987 = vmatprep.subr.bf16.mxu1 %v5025_v0  ;;  %v4717_v16 = vld [vmem:[%s6269_s1 + $0x1d0] sm:$0xff]  }
  0x20   :  { %2451 = vmatprep.subr.bf16.mxu0 %v5025_v0 }
  0x22   :  { %1988 = vmatpush1.bf16.msra.mxu1 %v4632_v17  ;;  %v4778_v17 = vld [vmem:[%s6269_s1 + $0xd0] sm:$0xff]  }
  0x23   :  { %2452 = vmatpush1.bf16.msra.mxu0 %v4633_v18  ;;  %1989 = vmatprep.subr.bf16.mxu1 %v5025_v0  ;;  %v4725_v18 = vld [vmem:[%s6269_s1 + $0x1d8] sm:$0xff]  }
  0x24   :  { %2453 = vmatprep.subr.bf16.mxu0 %v5025_v0 }
  0x26   :  { %1990 = vmatpush1.bf16.msra.mxu1 %v4634_v20  ;;  %v4701_v20 = vld [vmem:[%s6270_s0 + $0x1c0] ss:$36 sps:$4 sm:$0xff]  }
  0x27   :  { %2454 = vmatpush1.bf16.msra.mxu0 %v4635_v22  ;;  %1991 = vmatprep.subr.bf16.mxu1 %v5025_v0  ;;  %v4705_v22 = vld [vmem:[%s6270_s0 + $0x20c] ss:$36 sps:$4 sm:$0xff]  }
  0x28   :  { %2455 = vmatprep.subr.bf16.mxu0 %v5025_v0 }
  0x2a   :  { %1992 = vmatpush1.bf16.msra.mxu1 %v4636_v23  ;;  %v4730_v23 = vld [vmem:[%s6269_s1 + $0x1e0] sm:$0xff]  }
  0x2b   :  { %2456 = vmatpush1.bf16.msra.mxu0 %v4637_v24  ;;  %1993 = vmatprep.subr.bf16.mxu1 %v5025_v0  ;;  %v4791_v24 = vld [vmem:[%s6269_s1 + $0xd8] sm:$0xff]  }
  0x2c   :  { %2457 = vmatprep.subr.bf16.mxu0 %v5025_v0 }
  0x2e   :  { %1994 = vmatpush1.bf16.msra.mxu1 %v4638_v25  ;;  %v4707_v25 = vld [vmem:[%s6270_s0 + $0x1f8] ss:$36 sps:$4 sm:$0xff]  }
  0x2f   :  { %2458 = vmatpush1.bf16.msra.mxu0 %v4639_v26  ;;  %1995 = vmatprep.subr.bf16.mxu1 %v5025_v0  ;;  %v4734_v26 = vld [vmem:[%s6269_s1 + $0x1e8] sm:$0xff]  }
  0x30   :  { %2459 = vmatprep.subr.bf16.mxu0 %v5025_v0 }
  0x32   :  { %1996 = vmatpush1.bf16.msra.mxu1 %v4640_v27  ;;  %v4708_v27 = vld [vmem:[%s6270_s0 + $0x208] ss:$36 sps:$4 sm:$0xff]  }
  0x33   :  { %2460 = vmatpush1.bf16.msra.mxu0 %v4641_v28  ;;  %1997 = vmatprep.subr.bf16.mxu1 %v5025_v0  ;;  %v4711_v28 = vld [vmem:[%s6270_s0 + $0x244] ss:$36 sps:$4 sm:$0xff]  }
  0x34   :  { %2461 = vmatprep.subr.bf16.mxu0 %v5025_v0 }
  0x36   :  { %1998 = vmatpush1.bf16.msra.mxu1 %v4642_v29  ;;  %v4801_v29 = vld [vmem:[%s6269_s1 + $0xe0] sm:$0xff]  }
  0x37   :  { %2462 = vmatpush1.bf16.msra.mxu0 %v4643_v30  ;;  %1999 = vmatprep.subr.bf16.mxu1 %v5025_v0  ;;  %v4713_v30 = vld [vmem:[%s6270_s0 + $0x254] ss:$36 sps:$4 sm:$0xff]  }
  0x38   :  { %2463 = vmatprep.subr.bf16.mxu0 %v5025_v0 }
  0x3a   :  { %2000 = vmatpush1.bf16.msra.mxu1 %v4644_v31  ;;  %v4741_v31 = vld [vmem:[%s6269_s1 + $0x1f0] sm:$0xff]  }
  0x3b   :  { %2464 = vmatpush1.bf16.msra.mxu0 %v4645_v32  ;;  %2001 = vmatprep.subr.bf16.mxu1 %v5025_v0  ;;  %v4749_v32 = vld [vmem:[%s6269_s1 + $0x1f8] sm:$0xff]  }
  0x3c   :  { %2465 = vmatprep.subr.bf16.mxu0 %v5025_v0 }
  0x3e   :  { %2002 = vmatpush1.bf16.msra.mxu1 %v4646_v33  ;;  %v4812_v33 = vld [vmem:[%s6269_s1 + $0xe8] sm:$0xff]  }
  0x3f   :  { %2466 = vmatpush1.bf16.msra.mxu0 %v4647_v34  ;;  %2203 = vmatprep.subr.bf16.mxu1 %v5025_v0  ;;  %v4715_v34 = vld [vmem:[%s6270_s0 + $0x240] ss:$36 sps:$4 sm:$0xff]  }
  0x40   :  { %2667 = vmatprep.subr.bf16.mxu0 %v5025_v0 }
  0x41   :  { %2004 = vmatmul.mubr.bf16.vlgmr.msra.gmra.mrb[0].mxu1 %v4648_v35  ;;  %v4716_v35 = vld [vmem:[%s6270_s0 + $0x250] ss:$36 sps:$4 sm:$0xff]  }
  0x42   :  { %2468 = vmatmul.mubr.bf16.vlgmr.msra.gmra.mrb[0].mxu0 %v4651_v36  ;;  %2011 = vmatprep.mubr.bf16.mxu1 %v4655_v38  ;;  %v4718_v36 = vld [vmem:[%s6270_s0 + $0x28c] ss:$36 sps:$4 sm:$0xff]   ;;  %v5026_v38 = vmov 0.0  }
  0x43   :  { %2668 = vmatpush1.bf16.msra.mxu0 %v4654_v37  ;;  %2475 = vmatprep.mubr.bf16.mxu0 %v4657_v39  ;;  %v4720_v37 = vld [vmem:[%s6270_s0 + $0x29c] ss:$36 sps:$4 sm:$0xff]   ;;  %v4825_v39 = vld [vmem:[%s6269_s1 + $0xf0] sm:$0xff]  }
  0x44   :  { %2669 = vmatprep.subr.bf16.mxu0 %v5025_v0  ;;  %2204 = vmatpush1.bf16.msra.mxu1 %v4662_v40  ;;  %v4722_v40 = vld [vmem:[%s6270_s0 + $0x288] ss:$36 sps:$4 sm:$0xff]  }
  0x45   :  { %2205 = vmatprep.subr.bf16.mxu1 %v5025_v0 }
  0x47   :  { %2670 = vmatpush1.bf16.msra.mxu0 %v4661_v41  ;;  %v4832_v41 = vld [vmem:[%s6269_s1 + $0xf8] sm:$0xff]  }
  0x48   :  { %2671 = vmatprep.subr.bf16.mxu0 %v5025_v0  ;;  %2206 = vmatpush1.bf16.msra.mxu1 %v4671_v42  ;;  %v4724_v42 = vld [vmem:[%s6270_s0 + $0x298] ss:$36 sps:$4 sm:$0xff]  }
  0x49   :  { %2012 = vmatmul.mubr.bf16.gmra.mrb[4].mxu1 %v4659_v43  ;;  %2207 = vmatprep.subr.bf16.mxu1 %v5025_v0  ;;  %v4726_v43 = vld [vmem:[%s6270_s0 + $0x2d4] ss:$36 sps:$4 sm:$0xff]  }
  0x4a   :  { %2476 = vmatmul.mubr.bf16.gmra.mrb[4].mxu0 %v4660_v44  ;;  %2019 = vmatprep.mubr.bf16.mxu1 %v4664_v46  ;;  %v4728_v44 = vld [vmem:[%s6270_s0 + $0x2e4] ss:$36 sps:$4 sm:$0xff]  }
  0x4b   :  { %2672 = vmatpush1.bf16.msra.mxu0 %v4663_v45  ;;  %2483 = vmatprep.mubr.bf16.mxu0 %v4666_v47  ;;  %v4731_v45 = vld [vmem:[%s6270_s0 + $0x2d0] ss:$36 sps:$4 sm:$0xff]   ;;  %v4732_v46 = vld [vmem:[%s6270_s0 + $0x2e0] ss:$36 sps:$4 sm:$0xff]  }
  0x4c   :  { %2673 = vmatprep.subr.bf16.mxu0 %v5025_v0  ;;  %2208 = vmatpush1.bf16.msra.mxu1 %v4685_v48  ;;  %v4735_v47 = vld [vmem:[%s6270_s0 + $0x31c] ss:$36 sps:$4 sm:$0xff]   ;;  %v4737_v48 = vld [vmem:[%s6270_s0 + $0x32c] ss:$36 sps:$4 sm:$0xff]  }
  0x4d   :  { %2209 = vmatprep.subr.bf16.mxu1 %v5025_v0 }
  0x4f   :  { %2674 = vmatpush1.bf16.msra.mxu0 %v4670_v50  ;;  %v4740_v50 = vld [vmem:[%s6270_s0 + $0x328] ss:$36 sps:$4 sm:$0xff]  }
  0x50   :  { %2675 = vmatprep.subr.bf16.mxu0 %v5025_v0  ;;  %2210 = vmatpush1.bf16.msra.mxu1 %v4696_v51  ;;  %v4742_v51 = vld [vmem:[%s6270_s0 + $0x364] ss:$36 sps:$4 sm:$0xff]  }
  0x51   :  { %2020 = vmatmul.mubr.bf16.gmra.mrb[8].mxu1 %v4668_v49  ;;  %2211 = vmatprep.subr.bf16.mxu1 %v5025_v0  ;;  %v4739_v49 = vld [vmem:[%s6270_s0 + $0x318] ss:$36 sps:$4 sm:$0xff]  }
  0x52   :  { %2484 = vmatmul.mubr.bf16.gmra.mrb[8].mxu0 %v4669_v52  ;;  %2027 = vmatprep.mubr.bf16.mxu1 %v4672_v53  ;;  %v4744_v52 = vld [vmem:[%s6270_s0 + $0x374] ss:$36 sps:$4 sm:$0xff]   ;;  %v4746_v53 = vld [vmem:[%s6270_s0 + $0x360] ss:$36 sps:$4 sm:$0xff]  }
  0x53   :  { %2491 = vmatprep.mubr.bf16.mxu0 %v4674_v54  ;;  %2676 = vmatpush1.bf16.msra.mxu0 %v4678_v55  ;;  %v4747_v54 = vld [vmem:[%s6270_s0 + $0x370] ss:$36 sps:$4 sm:$0xff]  }
  0x54   :  { %2677 = vmatprep.subr.bf16.mxu0 %v5025_v0  ;;  %2212 = vmatpush1.bf16.msra.mxu1 %v4709_v56  ;;  %v4750_v55 = vld [vmem:[%s6270_s0 + $0x3ac] ss:$36 sps:$4 sm:$0xff]   ;;  %v4754_v56 = vld [vmem:[%s6270_s0 + $0x1c] ss:$36 sps:$4 sm:$0xff]  }
  0x55   :  { %2213 = vmatprep.subr.bf16.mxu1 %v5025_v0 }
  0x57   :  { %2678 = vmatpush1.bf16.msra.mxu0 %v4686_v57  ;;  %v4755_v57 = vld [vmem:[%s6270_s0 + $0x3a8] ss:$36 sps:$4 sm:$0xff]  }
  0x58   :  { %2679 = vmatprep.subr.bf16.mxu0 %v5025_v0  ;;  %2214 = vmatpush1.bf16.msra.mxu1 %v4723_v60  ;;  %v4756_v60 = vld [vmem:[%s6269_s1 + $0x200] sm:$0xff]  }
  0x59   :  { %2028 = vmatmul.mubr.bf16.gmra.mrb[12].mxu1 %v4676_v58  ;;  %2215 = vmatprep.subr.bf16.mxu1 %v5025_v0  ;;  %v4752_v58 = vld [vmem:[%s6270_s0 + $0x18] ss:$36 sps:$4 sm:$0xff]  }
  0x5a   :  { %2492 = vmatmul.mubr.bf16.gmra.mrb[12].mxu0 %v4677_v59  ;;  %2035 = vmatprep.mubr.bf16.mxu1 %v4679_v61  ;;  %v4758_v59 = vld [vmem:[%s6270_s0 + $0x3f4] ss:$36 sps:$4 sm:$0xff]   ;;  %v4760_v61 = vld [vmem:[%s6270_s0 + $0x64] ss:$36 sps:$4 sm:$0xff]  }
  0x5b   :  { %2499 = vmatprep.mubr.bf16.mxu0 %v4681_v62  ;;  %2680 = vmatpush1.bf16.msra.mxu0 %v4693_v63  ;;  %v4762_v62 = vld [vmem:[%s6270_s0 + $0x3f0] ss:$36 sps:$4 sm:$0xff]   ;;  %v4777_v63 = vld [vmem:[%s6269_s1 + $0x208] sm:$0xff]  }
  0x5c   :  { %2681 = vmatprep.subr.bf16.mxu0 %v5025_v0  ;;  %2216 = vmatpush1.bf16.msra.mxu1 %v4733_v1  ;;  %v4763_v1 = vld [vmem:[%s6270_s0 + $0x60] ss:$36 sps:$4 sm:$0xff]  }
  0x5d   :  { %2217 = vmatprep.subr.bf16.mxu1 %v5025_v0 }
  0x5f   :  { %2682 = vmatpush1.bf16.msra.mxu0 %v4699_v3  ;;  %v4766_v3 = vld [vmem:[%s6270_s0 + $0xac] ss:$36 sps:$4 sm:$0xff]  }
  0x60   :  { %2683 = vmatprep.subr.bf16.mxu0 %v5025_v0  ;;  %2218 = vmatpush1.bf16.msra.mxu1 %v4748_v5  ;;  %v4768_v5 = vld [vmem:[%s6270_s0 + $0x438] ss:$36 sps:$4 sm:$0xff]  }
  0x61   :  { %2036 = vmatmul.mubr.bf16.gmra.mrb[16].mxu1 %v4683_v2  ;;  %2219 = vmatprep.subr.bf16.mxu1 %v5025_v0  ;;  %v4764_v2 = vld [vmem:[%s6270_s0 + $0x43c] ss:$36 sps:$4 sm:$0xff]  }
  0x62   :  { %2500 = vmatmul.mubr.bf16.gmra.mrb[16].mxu0 %v4684_v4  ;;  %2043 = vmatprep.mubr.bf16.mxu1 %v4687_v6  ;;  %v4798_v4 = vld [vmem:[%s6269_s1 + $0x210] sm:$0xff]   ;;  %v4819_v6 = vld [vmem:[%s6269_s1 + $0x218] sm:$0xff]  }
  0x63   :  { %2507 = vmatprep.mubr.bf16.mxu0 %v4689_v7  ;;  %2684 = vmatpush1.bf16.msra.mxu0 %v4702_v8  ;;  %v4769_v7 = vld [vmem:[%s6270_s0 + $0xa8] ss:$36 sps:$4 sm:$0xff]  }
  0x64   :  { %2685 = vmatprep.subr.bf16.mxu0 %v5025_v0  ;;  %2220 = vmatpush1.bf16.msra.mxu1 %v4757_v9  ;;  %v4771_v8 = vld [vmem:[%s6270_s0 + $0x484] ss:$36 sps:$4 sm:$0xff]   ;;  %v4773_v9 = vld [vmem:[%s6270_s0 + $0xf4] ss:$36 sps:$4 sm:$0xff]  }
  0x65   :  { %2221 = vmatprep.subr.bf16.mxu1 %v5025_v0 }
  0x67   :  { %2686 = vmatpush1.bf16.msra.mxu0 %v4710_v10  ;;  %v4839_v10 = vld [vmem:[%s6269_s1 + $0x220] sm:$0xff]  }
  0x68   :  { %2687 = vmatprep.subr.bf16.mxu0 %v5025_v0  ;;  %2222 = vmatpush1.bf16.msra.mxu1 %v4770_v13  ;;  %v4776_v13 = vld [vmem:[%s6270_s0 + $0xf0] ss:$36 sps:$4 sm:$0xff]  }
  0x69   :  { %2044 = vmatmul.mubr.bf16.gmra.mrb[20].mxu1 %v4691_v11  ;;  %2223 = vmatprep.subr.bf16.mxu1 %v5025_v0  ;;  %v4775_v11 = vld [vmem:[%s6270_s0 + $0x480] ss:$36 sps:$4 sm:$0xff]  }
  0x6a   :  { %2508 = vmatmul.mubr.bf16.gmra.mrb[20].mxu0 %v4692_v12  ;;  %2051 = vmatprep.mubr.bf16.mxu1 %v4694_v14  ;;  %v4858_v12 = vld [vmem:[%s6269_s1 + $0x228] sm:$0xff]  }
  0x6b   :  { %2515 = vmatprep.mubr.bf16.mxu0 %v4697_v15  ;;  %2688 = vmatpush1.bf16.msra.mxu0 %v4717_v16  ;;  %v4779_v14 = vld [vmem:[%s6270_s0 + $0x4cc] ss:$36 sps:$4 sm:$0xff]   ;;  %v4781_v15 = vld [vmem:[%s6270_s0 + $0x13c] ss:$36 sps:$4 sm:$0xff]  }
  0x6c   :  { %2689 = vmatprep.subr.bf16.mxu0 %v5025_v0  ;;  %2224 = vmatpush1.bf16.msra.mxu1 %v4778_v17  ;;  %v4881_v16 = vld [vmem:[%s6269_s1 + $0x230] sm:$0xff]   ;;  %v4783_v17 = vld [vmem:[%s6270_s0 + $0x4c8] ss:$36 sps:$4 sm:$0xff]  }
  0x6d   :  { %2225 = vmatprep.subr.bf16.mxu1 %v5025_v0 }
  0x6f   :  { %2690 = vmatpush1.bf16.msra.mxu0 %v4725_v18  ;;  %v4784_v18 = vld [vmem:[%s6270_s0 + $0x138] ss:$36 sps:$4 sm:$0xff]  }
  0x70   :  { %2691 = vmatprep.subr.bf16.mxu0 %v5025_v0  ;;  %2226 = vmatpush1.bf16.msra.mxu1 %v4791_v24  ;;  %v4794_v24 = vld [vmem:[%s6270_s0 + $0x1cc] ss:$36 sps:$4 sm:$0xff]  }
  0x71   :  { %2052 = vmatmul.mubr.bf16.gmra.mrb[24].mxu1 %v4700_v19  ;;  %2227 = vmatprep.subr.bf16.mxu1 %v5025_v0  ;;  %v4785_v19 = vld [vmem:[%s6270_s0 + $0x514] ss:$36 sps:$4 sm:$0xff]  }
  0x72   :  { %2516 = vmatmul.mubr.bf16.gmra.mrb[24].mxu0 %v4701_v20  ;;  %2059 = vmatprep.mubr.bf16.mxu1 %v4703_v21  ;;  %v4787_v20 = vld [vmem:[%s6270_s0 + $0x184] ss:$36 sps:$4 sm:$0xff]   ;;  %v4789_v21 = vld [vmem:[%s6270_s0 + $0x510] ss:$36 sps:$4 sm:$0xff]  }
  0x73   :  { %2523 = vmatprep.mubr.bf16.mxu0 %v4705_v22  ;;  %2692 = vmatpush1.bf16.msra.mxu0 %v4730_v23  ;;  %v4790_v22 = vld [vmem:[%s6270_s0 + $0x180] ss:$36 sps:$4 sm:$0xff]  }
  0x74   :  { %2693 = vmatprep.subr.bf16.mxu0 %v5025_v0  ;;  %2228 = vmatpush1.bf16.msra.mxu1 %v4801_v29  ;;  %v4792_v23 = vld [vmem:[%s6270_s0 + $0x55c] ss:$36 sps:$4 sm:$0xff]  }
  0x75   :  { %2229 = vmatprep.subr.bf16.mxu1 %v5025_v0  ;;  %v4902_v29 = vld [vmem:[%s6269_s1 + $0x238] sm:$0xff]  }
  0x77   :  { %2694 = vmatpush1.bf16.msra.mxu0 %v4734_v26  ;;  %v4797_v26 = vld [vmem:[%s6270_s0 + $0x1c8] ss:$36 sps:$4 sm:$0xff]  }
  0x78   :  { %2695 = vmatprep.subr.bf16.mxu0 %v5025_v0  ;;  %2230 = vmatpush1.bf16.msra.mxu1 %v4812_v33  ;;  %v4808_v33 = vld [vmem:[%s6270_s0 + $0x25c] ss:$36 sps:$4 sm:$0xff]  }
  0x79   :  { %2060 = vmatmul.mubr.bf16.gmra.mrb[28].mxu1 %v4707_v25  ;;  %2231 = vmatprep.subr.bf16.mxu1 %v5025_v0  ;;  %v4796_v25 = vld [vmem:[%s6270_s0 + $0x558] ss:$36 sps:$4 sm:$0xff]  }
  0x7a   :  { %2524 = vmatmul.mubr.bf16.gmra.mrb[28].mxu0 %v4708_v27  ;;  %2067 = vmatprep.mubr.bf16.mxu1 %v4711_v28  ;;  %v4799_v27 = vld [vmem:[%s6270_s0 + $0x5a4] ss:$36 sps:$4 sm:$0xff]   ;;  %v4802_v28 = vld [vmem:[%s6270_s0 + $0x214] ss:$36 sps:$4 sm:$0xff]  }
  0x7b   :  { %2531 = vmatprep.mubr.bf16.mxu0 %v4713_v30  ;;  %2696 = vmatpush1.bf16.msra.mxu0 %v4741_v31  ;;  %v4804_v30 = vld [vmem:[%s6270_s0 + $0x5a0] ss:$36 sps:$4 sm:$0xff]   ;;  %v4805_v31 = vld [vmem:[%s6270_s0 + $0x210] ss:$36 sps:$4 sm:$0xff]  }
  0x7c   :  { %2697 = vmatprep.subr.bf16.mxu0 %v5025_v0  ;;  %2232 = vmatpush1.bf16.msra.mxu1 %v4825_v39  ;;  %v4817_v39 = vld [vmem:[%s6270_s0 + $0x630] ss:$36 sps:$4 sm:$0xff]  }
  0x7d   :  { %2233 = vmatprep.subr.bf16.mxu1 %v5025_v0 }
  0x7f   :  { %2698 = vmatpush1.bf16.msra.mxu0 %v4749_v32  ;;  %v4806_v32 = vld [vmem:[%s6270_s0 + $0x5ec] ss:$36 sps:$4 sm:$0xff]  }
  0x80   :  { %4116 = vmatprep.subr.bf16.mxu0 %v5026_v38  ;;  %2234 = vmatpush1.bf16.msra.mxu1 %v4832_v41  ;;  %v4820_v41 = vld [vmem:[%s6270_s0 + $0x67c] ss:$36 sps:$4 sm:$0xff]  }
  0x81   :  { %2068 = vmatmul.mubr.bf16.gmra.mrb[32].mxu1 %v4715_v34  ;;  %4232 = vmatprep.subr.bf16.mxu1 %v5025_v0  ;;  %v4810_v34 = vld [vmem:[%s6270_s0 + $0x5e8] ss:$36 sps:$4 sm:$0xff]  }
  0x82   :  { %2532 = vmatmul.mubr.bf16.gmra.mrb[32].mxu0 %v4716_v35  ;;  %2075 = vmatprep.mubr.bf16.mxu1 %v4718_v36  ;;  %v4811_v35 = vld [vmem:[%s6270_s0 + $0x258] ss:$36 sps:$4 sm:$0xff]  }
  0x83   :  { %2539 = vmatprep.mubr.bf16.mxu0 %v4720_v37  ;;  %v4813_v36 = vld [vmem:[%s6270_s0 + $0x634] ss:$36 sps:$4 sm:$0xff]   ;;  %v4815_v37 = vld [vmem:[%s6270_s0 + $0x2a4] ss:$36 sps:$4 sm:$0xff]  }
  0x89   :  { %2076 = vmatmul.mubr.bf16.gmra.mrb[36].mxu1 %v4722_v40  ;;  %v4818_v40 = vld [vmem:[%s6270_s0 + $0x2a0] ss:$36 sps:$4 sm:$0xff]  }
  0x8a   :  { %2540 = vmatmul.mubr.bf16.gmra.mrb[36].mxu0 %v4724_v42  ;;  %2083 = vmatprep.mubr.bf16.mxu1 %v4726_v43  ;;  %v4822_v42 = vld [vmem:[%s6270_s0 + $0x2ec] ss:$36 sps:$4 sm:$0xff]   ;;  %v254_v43 = vld [vmem:[%s6270_s0 + $0x6c0] sm:$0xff] }
  0x8b   :  { %2547 = vmatprep.mubr.bf16.mxu0 %v4728_v44  ;;  %v4824_v44 = vld [vmem:[%s6270_s0 + $0x678] ss:$36 sps:$4 sm:$0xff]  }
  0x91   :  { %2084 = vmatmul.mubr.bf16.gmra.mrb[40].mxu1 %v4731_v45  ;;  %v4826_v45 = vld [vmem:[%s6270_s0 + $0x2e8] ss:$36 sps:$4 sm:$0xff]  }
  0x92   :  { %2548 = vmatmul.mubr.bf16.gmra.mrb[40].mxu0 %v4732_v46  ;;  %2091 = vmatprep.mubr.bf16.mxu1 %v4735_v47  ;;  %v3762_v46 = vcombine.high %v254_v43, %v254_v43  ;;  %v4828_v47 = vld [vmem:[%s6270_s0 + $0x334] ss:$36 sps:$4 sm:$0xff]  }
  0x93   :  { %2555 = vmatprep.mubr.bf16.mxu0 %v4737_v48  ;;  %v3761_v48 = vcombine.low %v254_v43, %v254_v43  ;;  %v4896_v43 = vld [vmem:[%s6270_s0 + $0x2dc] ss:$36 sps:$4 sm:$0xff]  }
  0x99   :  { %2092 = vmatmul.mubr.bf16.gmra.mrb[44].mxu1 %v4739_v49  ;;  %v4831_v49 = vld [vmem:[%s6270_s0 + $0x330] ss:$36 sps:$4 sm:$0xff]  }
  0x9a   :  { %2556 = vmatmul.mubr.bf16.gmra.mrb[44].mxu0 %v4740_v50  ;;  %2099 = vmatprep.mubr.bf16.mxu1 %v4742_v51  ;;  %v4835_v50 = vld [vmem:[%s6270_s0 + $0xc] ss:$36 sps:$4 sm:$0xff]   ;;  %v4836_v51 = vld [vmem:[%s6270_s0 + $0x37c] ss:$36 sps:$4 sm:$0xff]  }
  0x9b   :  { %2563 = vmatprep.mubr.bf16.mxu0 %v4744_v52  ;;  %v4833_v52 = vld [vmem:[%s6270_s0 + $0x8] ss:$36 sps:$4 sm:$0xff]  }
  0xa1   :  { %2100 = vmatmul.mubr.bf16.gmra.mrb[48].mxu1 %v4746_v53  ;;  %v4838_v53 = vld [vmem:[%s6270_s0 + $0x378] ss:$36 sps:$4 sm:$0xff]  }
  0xa2   :  { %2564 = vmatmul.mubr.bf16.gmra.mrb[48].mxu0 %v4747_v54  ;;  %2107 = vmatprep.mubr.bf16.mxu1 %v4750_v55  ;;  %v4840_v54 = vld [vmem:[%s6270_s0 + $0x54] ss:$36 sps:$4 sm:$0xff]   ;;  %v4842_v55 = vld [vmem:[%s6270_s0 + $0x3c4] ss:$36 sps:$4 sm:$0xff]  }
  0xa3   :  { %2699 = vmatprep.mubr.bf16.mxu0 %v4754_v56  ;;  %v5009_v56 = vld [vmem:[%s6269_s1 + $0x100] sm:$0xff]  }
  0xa9   :  { %2108 = vmatmul.mubr.bf16.gmra.mrb[52].mxu1 %v4755_v57  ;;  %v4844_v57 = vld [vmem:[%s6270_s0 + $0x50] ss:$36 sps:$4 sm:$0xff]  }
  0xaa   :  { %2700 = vmatmul.mubr.bf16.vlgmr.msra.gmra.mrb[0].mxu0 %v4752_v58  ;;  %2115 = vmatprep.mubr.bf16.mxu1 %v4758_v59  ;;  %v4845_v58 = vld [vmem:[%s6270_s0 + $0x3c0] ss:$36 sps:$4 sm:$0xff]  }
  0xab   :  { %4117 = vmatpush3.bf16.msra.mxu0 %v4756_v60  ;;  %2707 = vmatprep.mubr.bf16.mxu0 %v4760_v61  ;;  %v4846_v59 = vld [vmem:[%s6270_s0 + $0x9c] ss:$36 sps:$4 sm:$0xff]   ;;  %v4848_v60 = vld [vmem:[%s6270_s0 + $0x40c] ss:$36 sps:$4 sm:$0xff]  }
  0xac   :  { %4118 = vmatprep.subr.bf16.mxu0 %v5026_v38  ;;  %v5010_v61 = vld [vmem:[%s6269_s1 + $0x108] sm:$0xff]  }
  0xaf   :  { %4119 = vmatpush3.bf16.msra.mxu0 %v4777_v63  ;;  %v4850_v63 = vld [vmem:[%s6270_s0 + $0x98] ss:$36 sps:$4 sm:$0xff]  }
  0xb0   :  { %4120 = vmatprep.subr.bf16.mxu0 %v5026_v38 }
  0xb1   :  { %2116 = vmatmul.mubr.bf16.gmra.mrb[56].mxu1 %v4762_v62  ;;  %v5011_v62 = vld [vmem:[%s6269_s1 + $0x110] sm:$0xff]  }
  0xb2   :  { %2708 = vmatmul.mubr.bf16.gmra.mrb[4].mxu0 %v4763_v1  ;;  %2123 = vmatprep.mubr.bf16.mxu1 %v4764_v2  ;;  %v4851_v1 = vld [vmem:[%s6270_s0 + $0x408] ss:$36 sps:$4 sm:$0xff]  }
  0xb3   :  { %2715 = vmatprep.mubr.bf16.mxu0 %v4766_v3  ;;  %4121 = vmatpush3.bf16.msra.mxu0 %v4798_v4  ;;  %v4852_v2 = vld [vmem:[%s6270_s0 + $0xe4] ss:$36 sps:$4 sm:$0xff]   ;;  %v4854_v3 = vld [vmem:[%s6270_s0 + $0x454] ss:$36 sps:$4 sm:$0xff]  }
  0xb4   :  { %4122 = vmatprep.subr.bf16.mxu0 %v5026_v38  ;;  %v5012_v4 = vld [vmem:[%s6269_s1 + $0x118] sm:$0xff]  }
  0xb7   :  { %4123 = vmatpush3.bf16.msra.mxu0 %v4819_v6  ;;  %v4856_v6 = vld [vmem:[%s6270_s0 + $0xe0] ss:$36 sps:$4 sm:$0xff]  }
  0xb8   :  { %4124 = vmatprep.subr.bf16.mxu0 %v5026_v38 }
  0xb9   :  { %2124 = vmatmul.mubr.bf16.gmra.mrb[60].mxu1 %v4768_v5  ;;  %v5013_v5 = vld [vmem:[%s6269_s1 + $0x120] sm:$0xff]  }
  0xba   :  { %2716 = vmatmul.mubr.bf16.gmra.mrb[8].mxu0 %v4769_v7  ;;  %2131 = vmatprep.mubr.bf16.mxu1 %v4771_v8  ;;  %v4857_v7 = vld [vmem:[%s6270_s0 + $0x450] ss:$36 sps:$4 sm:$0xff]  }
  0xbb   :  { %2723 = vmatprep.mubr.bf16.mxu0 %v4773_v9  ;;  %4125 = vmatpush3.bf16.msra.mxu0 %v4839_v10  ;;  %v4859_v8 = vld [vmem:[%s6270_s0 + $0x12c] ss:$36 sps:$4 sm:$0xff]   ;;  %v4861_v9 = vld [vmem:[%s6270_s0 + $0x49c] ss:$36 sps:$4 sm:$0xff]  }
  0xbc   :  { %4126 = vmatprep.subr.bf16.mxu0 %v5026_v38  ;;  %v5014_v10 = vld [vmem:[%s6269_s1 + $0x128] sm:$0xff]  }
  0xbf   :  { %4127 = vmatpush3.bf16.msra.mxu0 %v4858_v12  ;;  %v4863_v12 = vld [vmem:[%s6270_s0 + $0x128] ss:$36 sps:$4 sm:$0xff]  }
  0xc0   :  { %4128 = vmatprep.subr.bf16.mxu0 %v5026_v38 }
  0xc1   :  { %2132 = vmatmul.mubr.bf16.gmra.mrb[64].mxu1 %v4775_v11  ;;  %v5015_v11 = vld [vmem:[%s6269_s1 + $0x130] sm:$0xff]  }
  0xc2   :  { %2724 = vmatmul.mubr.bf16.gmra.mrb[12].mxu0 %v4776_v13  ;;  %2139 = vmatprep.mubr.bf16.mxu1 %v4779_v14  ;;  %v4864_v13 = vld [vmem:[%s6270_s0 + $0x498] ss:$36 sps:$4 sm:$0xff]  }
  0xc3   :  { %2731 = vmatprep.mubr.bf16.mxu0 %v4781_v15  ;;  %4129 = vmatpush3.bf16.msra.mxu0 %v4881_v16  ;;  %v4865_v14 = vld [vmem:[%s6270_s0 + $0x174] ss:$36 sps:$4 sm:$0xff]   ;;  %v4867_v15 = vld [vmem:[%s6270_s0 + $0x4e4] ss:$36 sps:$4 sm:$0xff]  }
  0xc4   :  { %4130 = vmatprep.subr.bf16.mxu0 %v5026_v38  ;;  %v5016_v16 = vld [vmem:[%s6269_s1 + $0x138] sm:$0xff]  }
  0xc7   :  { %4131 = vmatpush3.bf16.msra.mxu0 %v4902_v29  ;;  %v5021_v29 = vld [vmem:[%s6269_s1 + $0x160] sm:$0xff]  }
  0xc9   :  { %2140 = vmatmul.mubr.bf16.gmra.mrb[68].mxu1 %v4783_v17  ;;  %v5017_v17 = vld [vmem:[%s6269_s1 + $0x140] sm:$0xff]  }
  0xca   :  { %2732 = vmatmul.mubr.bf16.gmra.mrb[16].mxu0 %v4784_v18  ;;  %2147 = vmatprep.mubr.bf16.mxu1 %v4785_v19  ;;  %v4869_v18 = vld [vmem:[%s6270_s0 + $0x170] ss:$36 sps:$4 sm:$0xff]   ;;  %v4870_v19 = vld [vmem:[%s6270_s0 + $0x4e0] ss:$36 sps:$4 sm:$0xff]  }
  0xcb   :  { %2739 = vmatprep.mubr.bf16.mxu0 %v4787_v20  ;;  %v4871_v20 = vld [vmem:[%s6270_s0 + $0x1bc] ss:$36 sps:$4 sm:$0xff]  }
  0xd1   :  { %2148 = vmatmul.mubr.bf16.gmra.mrb[72].mxu1 %v4789_v21  ;;  %v4873_v21 = vld [vmem:[%s6270_s0 + $0x52c] ss:$36 sps:$4 sm:$0xff]  }
  0xd2   :  { %2740 = vmatmul.mubr.bf16.gmra.mrb[20].mxu0 %v4790_v22  ;;  %2155 = vmatprep.mubr.bf16.mxu1 %v4792_v23  ;;  %v5018_v22 = vld [vmem:[%s6269_s1 + $0x148] sm:$0xff]   ;;  %v5019_v23 = vld [vmem:[%s6269_s1 + $0x150] sm:$0xff]  }
  0xd3   :  { %2747 = vmatprep.mubr.bf16.mxu0 %v4794_v24  ;;  %v4875_v24 = vld [vmem:[%s6270_s0 + $0x1b8] ss:$36 sps:$4 sm:$0xff]  }
  0xd9   :  { %2156 = vmatmul.mubr.bf16.gmra.mrb[76].mxu1 %v4796_v25  ;;  %v4876_v25 = vld [vmem:[%s6270_s0 + $0x528] ss:$36 sps:$4 sm:$0xff]  }
  0xda   :  { %2748 = vmatmul.mubr.bf16.gmra.mrb[24].mxu0 %v4797_v26  ;;  %2163 = vmatprep.mubr.bf16.mxu1 %v4799_v27  ;;  %v4877_v26 = vld [vmem:[%s6270_s0 + $0x204] ss:$36 sps:$4 sm:$0xff]   ;;  %v4879_v27 = vld [vmem:[%s6270_s0 + $0x574] ss:$36 sps:$4 sm:$0xff]  }
  0xdb   :  { %2755 = vmatprep.mubr.bf16.mxu0 %v4802_v28  ;;  %v5020_v28 = vld [vmem:[%s6269_s1 + $0x158] sm:$0xff]  }
  0xe1   :  { %2164 = vmatmul.mubr.bf16.gmra.mrb[80].mxu1 %v4804_v30  ;;  %v4882_v30 = vld [vmem:[%s6270_s0 + $0x200] ss:$36 sps:$4 sm:$0xff]  }
  0xe2   :  { %2756 = vmatmul.mubr.bf16.gmra.mrb[28].mxu0 %v4805_v31  ;;  %2171 = vmatprep.mubr.bf16.mxu1 %v4806_v32  ;;  %v4883_v31 = vld [vmem:[%s6270_s0 + $0x570] ss:$36 sps:$4 sm:$0xff]  }
  0xe3   :  { %2763 = vmatprep.mubr.bf16.mxu0 %v4808_v33  ;;  %v4884_v32 = vld [vmem:[%s6270_s0 + $0x24c] ss:$36 sps:$4 sm:$0xff]   ;;  %v4886_v33 = vld [vmem:[%s6270_s0 + $0x5bc] ss:$36 sps:$4 sm:$0xff]  }
  0xe9   :  { %2172 = vmatmul.mubr.bf16.gmra.mrb[84].mxu1 %v4810_v34  ;;  %v5022_v34 = vld [vmem:[%s6269_s1 + $0x168] sm:$0xff]  }
  0xea   :  { %2764 = vmatmul.mubr.bf16.gmra.mrb[32].mxu0 %v4811_v35  ;;  %2179 = vmatprep.mubr.bf16.mxu1 %v4813_v36  ;;  %v5023_v35 = vld [vmem:[%s6269_s1 + $0x170] sm:$0xff]   ;;  %v4888_v36 = vld [vmem:[%s6270_s0 + $0x248] ss:$36 sps:$4 sm:$0xff]  }
  0xeb   :  { %2771 = vmatprep.mubr.bf16.mxu0 %v4815_v37  ;;  %v4889_v37 = vld [vmem:[%s6270_s0 + $0x5b8] ss:$36 sps:$4 sm:$0xff]  }
  0xf1   :  { %2180 = vmatmul.mubr.bf16.gmra.mrb[88].mxu1 %v4817_v39  ;;  %v4890_v39 = vld [vmem:[%s6270_s0 + $0x294] ss:$36 sps:$4 sm:$0xff]  }
  0xf2   :  { %2772 = vmatmul.mubr.bf16.gmra.mrb[36].mxu0 %v4818_v40  ;;  %2187 = vmatprep.mubr.bf16.mxu1 %v4820_v41  ;;  %v4892_v40 = vld [vmem:[%s6270_s0 + $0x604] ss:$36 sps:$4 sm:$0xff]   ;;  %v4894_v41 = vld [vmem:[%s6270_s0 + $0x290] ss:$36 sps:$4 sm:$0xff]  }
  0xf3   :  { %2779 = vmatprep.mubr.bf16.mxu0 %v4822_v42  ;;  %v4895_v42 = vld [vmem:[%s6270_s0 + $0x600] ss:$36 sps:$4 sm:$0xff]  }
  0xf9   :  { %2188 = vmatmul.mubr.bf16.gmra.mrb[92].mxu1 %v4824_v44  ;;  %v4898_v44 = vld [vmem:[%s6270_s0 + $0x64c] ss:$36 sps:$4 sm:$0xff]  }
  0xfa   :  { %2780 = vmatmul.mubr.bf16.gmra.mrb[40].mxu0 %v4826_v45  ;;  %2195 = vmatprep.mubr.bf16.mxu1 %v3762_v46  ;;  %v4900_v45 = vld [vmem:[%s6270_s0 + $0x2d8] ss:$36 sps:$4 sm:$0xff]   ;;  %v4901_v46 = vld [vmem:[%s6270_s0 + $0x648] ss:$36 sps:$4 sm:$0xff]  }
  0xfb   :  { %2787 = vmatprep.mubr.bf16.mxu0 %v4828_v47  ;;  %v4903_v47 = vld [vmem:[%s6270_s0 + $0x324] ss:$36 sps:$4 sm:$0xff]  }
 0x101   :  { %2196 = vmatmul.mubr.bf16.gmra.mrb[96].mxu1 %v3761_v48  ;;  %v4905_v48 = vld [vmem:[%s6270_s0 + $0x694] ss:$36 sps:$4 sm:$0xff]  }
 0x102   :  { %2788 = vmatmul.mubr.bf16.gmra.mrb[44].mxu0 %v4831_v49  ;;  %2235 = vmatprep.mubr.bf16.mxu1 %v4835_v50  ;;  %v257_v49 = vld [vmem:[%s6270_s0 + $0x6d8] sm:$0xff]  ;;  %v4907_v50 = vld [vmem:[%s6270_s0 + $0x320] ss:$36 sps:$4 sm:$0xff]  }
 0x103   :  { %2795 = vmatprep.mubr.bf16.mxu0 %v4836_v51  ;;  %v4908_v51 = vld [vmem:[%s6270_s0 + $0x690] ss:$36 sps:$4 sm:$0xff]  }
 0x109   :  { %2236 = vmatmul.mubr.bf16.vlgmr.msra.gmra.mrb[0].mxu1 %v4833_v52  ;;  %v4909_v52 = vld [vmem:[%s6270_s0 + $0x36c] ss:$36 sps:$4 sm:$0xff]  }
 0x10a   :  { %2796 = vmatmul.mubr.bf16.gmra.mrb[48].mxu0 %v4838_v53  ;;  %2243 = vmatprep.mubr.bf16.mxu1 %v4840_v54  ;;  %v3768_v53 = vcombine.high %v257_v49, %v257_v49  ;;  %v4912_v54 = vld [vmem:[%s6270_s0 + $0x368] ss:$36 sps:$4 sm:$0xff]  }
 0x10b   :  { %2803 = vmatprep.mubr.bf16.mxu0 %v4842_v55  ;;  %4248 = vmatpush1.bf16.msra.mxu1 %v5009_v56  ;;  %v3767_v55 = vcombine.low %v257_v49, %v257_v49  ;;  %v4914_v56 = vld [vmem:[%s6270_s0 + $0x3b4] ss:$36 sps:$4 sm:$0xff]   ;;  %v4977_v49 = vld [vmem:[%s6270_s0 + $0x4dc] ss:$36 sps:$4 sm:$0xff]  }
 0x10c   :  { %4233 = vmatprep.subr.bf16.mxu1 %v5025_v0 }
 0x10f   :  { %4249 = vmatpush1.bf16.msra.mxu1 %v5010_v61  ;;  %v4921_v61 = vld [vmem:[%s6270_s0 + $0x68] ss:$36 sps:$4 sm:$0xff]  }
 0x110   :  { %4234 = vmatprep.subr.bf16.mxu1 %v5025_v0 }
 0x111   :  { %2244 = vmatmul.mubr.bf16.gmra.mrb[4].mxu1 %v4844_v57  ;;  %v4916_v57 = vld [vmem:[%s6270_s0 + $0x3b0] ss:$36 sps:$4 sm:$0xff]  }
 0x112   :  { %2804 = vmatmul.mubr.bf16.gmra.mrb[52].mxu0 %v4845_v58  ;;  %2251 = vmatprep.mubr.bf16.mxu1 %v4846_v59  ;;  %v4917_v58 = vld [vmem:[%s6270_s0 + $0x20] ss:$36 sps:$4 sm:$0xff]  }
 0x113   :  { %2811 = vmatprep.mubr.bf16.mxu0 %v4848_v60  ;;  %4250 = vmatpush1.bf16.msra.mxu1 %v5011_v62  ;;  %v4918_v59 = vld [vmem:[%s6270_s0 + $0x3fc] ss:$36 sps:$4 sm:$0xff]   ;;  %v4922_v62 = vld [vmem:[%s6270_s0 + $0x444] ss:$36 sps:$4 sm:$0xff]  }
 0x114   :  { %4235 = vmatprep.subr.bf16.mxu1 %v5025_v0  ;;  %v4920_v60 = vld [vmem:[%s6270_s0 + $0x3f8] ss:$36 sps:$4 sm:$0xff]  }
 0x117   :  { %4251 = vmatpush1.bf16.msra.mxu1 %v5012_v4  ;;  %v4929_v4 = vld [vmem:[%s6270_s0 + $0xf8] ss:$36 sps:$4 sm:$0xff]  }
 0x118   :  { %4236 = vmatprep.subr.bf16.mxu1 %v5025_v0 }
 0x119   :  { %2252 = vmatmul.mubr.bf16.gmra.mrb[8].mxu1 %v4850_v63  ;;  %v4924_v63 = vld [vmem:[%s6270_s0 + $0x440] ss:$36 sps:$4 sm:$0xff]  }
 0x11a   :  { %2812 = vmatmul.mubr.bf16.gmra.mrb[56].mxu0 %v4851_v1  ;;  %2259 = vmatprep.mubr.bf16.mxu1 %v4852_v2  ;;  %v4925_v1 = vld [vmem:[%s6270_s0 + $0xb0] ss:$36 sps:$4 sm:$0xff]  }
 0x11b   :  { %2819 = vmatprep.mubr.bf16.mxu0 %v4854_v3  ;;  %4252 = vmatpush1.bf16.msra.mxu1 %v5013_v5  ;;  %v4926_v2 = vld [vmem:[%s6270_s0 + $0x48c] ss:$36 sps:$4 sm:$0xff]   ;;  %v4930_v5 = vld [vmem:[%s6270_s0 + $0x4d4] ss:$36 sps:$4 sm:$0xff]  }
 0x11c   :  { %4237 = vmatprep.subr.bf16.mxu1 %v5025_v0  ;;  %v4928_v3 = vld [vmem:[%s6270_s0 + $0x488] ss:$36 sps:$4 sm:$0xff]  }
 0x11f   :  { %4253 = vmatpush1.bf16.msra.mxu1 %v5014_v10  ;;  %v4937_v10 = vld [vmem:[%s6270_s0 + $0x188] ss:$36 sps:$4 sm:$0xff]  }
 0x120   :  { %4238 = vmatprep.subr.bf16.mxu1 %v5025_v0 }
 0x121   :  { %2260 = vmatmul.mubr.bf16.gmra.mrb[12].mxu1 %v4856_v6  ;;  %v4932_v6 = vld [vmem:[%s6270_s0 + $0x4d0] ss:$36 sps:$4 sm:$0xff]  }
 0x122   :  { %2820 = vmatmul.mubr.bf16.gmra.mrb[60].mxu0 %v4857_v7  ;;  %2267 = vmatprep.mubr.bf16.mxu1 %v4859_v8  ;;  %v4933_v7 = vld [vmem:[%s6270_s0 + $0x140] ss:$36 sps:$4 sm:$0xff]  }
 0x123   :  { %2827 = vmatprep.mubr.bf16.mxu0 %v4861_v9  ;;  %4254 = vmatpush1.bf16.msra.mxu1 %v5015_v11  ;;  %v4934_v8 = vld [vmem:[%s6270_s0 + $0x51c] ss:$36 sps:$4 sm:$0xff]   ;;  %v4938_v11 = vld [vmem:[%s6270_s0 + $0x564] ss:$36 sps:$4 sm:$0xff]  }
 0x124   :  { %4239 = vmatprep.subr.bf16.mxu1 %v5025_v0  ;;  %v4936_v9 = vld [vmem:[%s6270_s0 + $0x518] ss:$36 sps:$4 sm:$0xff]  }
 0x127   :  { %4255 = vmatpush1.bf16.msra.mxu1 %v5016_v16  ;;  %v4945_v16 = vld [vmem:[%s6270_s0 + $0x218] ss:$36 sps:$4 sm:$0xff]  }
 0x128   :  { %4240 = vmatprep.subr.bf16.mxu1 %v5025_v0 }
 0x129   :  { %2268 = vmatmul.mubr.bf16.gmra.mrb[16].mxu1 %v4863_v12  ;;  %v4940_v12 = vld [vmem:[%s6270_s0 + $0x560] ss:$36 sps:$4 sm:$0xff]  }
 0x12a   :  { %2828 = vmatmul.mubr.bf16.gmra.mrb[64].mxu0 %v4864_v13  ;;  %2275 = vmatprep.mubr.bf16.mxu1 %v4865_v14  ;;  %v4941_v13 = vld [vmem:[%s6270_s0 + $0x1d0] ss:$36 sps:$4 sm:$0xff]  }
 0x12b   :  { %2835 = vmatprep.mubr.bf16.mxu0 %v4867_v15  ;;  %4256 = vmatpush1.bf16.msra.mxu1 %v5017_v17  ;;  %v4942_v14 = vld [vmem:[%s6270_s0 + $0x5ac] ss:$36 sps:$4 sm:$0xff]   ;;  %v4946_v17 = vld [vmem:[%s6270_s0 + $0x5f4] ss:$36 sps:$4 sm:$0xff]  }
 0x12c   :  { %4241 = vmatprep.subr.bf16.mxu1 %v5025_v0  ;;  %v4944_v15 = vld [vmem:[%s6270_s0 + $0x5a8] ss:$36 sps:$4 sm:$0xff]  }
 0x12f   :  { %4257 = vmatpush1.bf16.msra.mxu1 %v5018_v22  ;;  %v4953_v22 = vld [vmem:[%s6270_s0 + $0x2a8] ss:$36 sps:$4 sm:$0xff]  }
 0x130   :  { %4242 = vmatprep.subr.bf16.mxu1 %v5025_v0 }
 0x131   :  { %2276 = vmatmul.mubr.bf16.gmra.mrb[20].mxu1 %v4869_v18  ;;  %v4948_v18 = vld [vmem:[%s6270_s0 + $0x5f0] ss:$36 sps:$4 sm:$0xff]  }
 0x132   :  { %2836 = vmatmul.mubr.bf16.gmra.mrb[68].mxu0 %v4870_v19  ;;  %2283 = vmatprep.mubr.bf16.mxu1 %v4871_v20  ;;  %v4949_v19 = vld [vmem:[%s6270_s0 + $0x260] ss:$36 sps:$4 sm:$0xff]  }
 0x133   :  { %2843 = vmatprep.mubr.bf16.mxu0 %v4873_v21  ;;  %4258 = vmatpush1.bf16.msra.mxu1 %v5019_v23  ;;  %v4950_v20 = vld [vmem:[%s6270_s0 + $0x63c] ss:$36 sps:$4 sm:$0xff]   ;;  %v4954_v23 = vld [vmem:[%s6270_s0 + $0x684] ss:$36 sps:$4 sm:$0xff]  }
 0x134   :  { %4243 = vmatprep.subr.bf16.mxu1 %v5025_v0  ;;  %v4952_v21 = vld [vmem:[%s6270_s0 + $0x638] ss:$36 sps:$4 sm:$0xff]  }
 0x137   :  { %4259 = vmatpush1.bf16.msra.mxu1 %v5020_v28 }
 0x138   :  { %4244 = vmatprep.subr.bf16.mxu1 %v5025_v0 }
 0x139   :  { %2284 = vmatmul.mubr.bf16.gmra.mrb[24].mxu1 %v4875_v24  ;;  %v255_v24 = vld [vmem:[%s6270_s0 + $0x6c8] sm:$0xff] }
 0x13a   :  { %2844 = vmatmul.mubr.bf16.gmra.mrb[72].mxu0 %v4876_v25  ;;  %2291 = vmatprep.mubr.bf16.mxu1 %v4877_v26  ;;  %v4956_v25 = vld [vmem:[%s6270_s0 + $0x680] ss:$36 sps:$4 sm:$0xff]   ;;  %v4957_v26 = vld [vmem:[%s6270_s0 + $0x2f0] ss:$36 sps:$4 sm:$0xff]   ;;  %v3763_v28 = vcombine.low %v255_v24, %v255_v24 }
 0x13b   :  { %2851 = vmatprep.mubr.bf16.mxu0 %v4879_v27  ;;  %4260 = vmatpush1.bf16.msra.mxu1 %v5021_v29  ;;  %v3764_v27 = vcombine.high %v255_v24, %v255_v24  ;;  %v4960_v29 = vld [vmem:[%s6270_s0 + $0x338] ss:$36 sps:$4 sm:$0xff]  }
 0x13c   :  { %4245 = vmatprep.subr.bf16.mxu1 %v5025_v0 }
 0x13f   :  { %4261 = vmatpush1.bf16.msra.mxu1 %v5022_v34  ;;  %v4967_v34 = vld [vmem:[%s6270_s0 + $0x400] ss:$36 sps:$4 sm:$0xff]  }
 0x140   :  { %4246 = vmatprep.subr.bf16.mxu1 %v5025_v0 }
 0x141   :  { %2292 = vmatmul.mubr.bf16.gmra.mrb[28].mxu1 %v4882_v30  ;;  %v4963_v30 = vld [vmem:[%s6270_s0 + $0x3bc] ss:$36 sps:$4 sm:$0xff]  }
 0x142   :  { %2852 = vmatmul.mubr.bf16.gmra.mrb[76].mxu0 %v4883_v31  ;;  %2299 = vmatprep.mubr.bf16.mxu1 %v4884_v32  ;;  %v4961_v31 = vld [vmem:[%s6270_s0 + $0x3b8] ss:$36 sps:$4 sm:$0xff]   ;;  %v4964_v32 = vld [vmem:[%s6270_s0 + $0x380] ss:$36 sps:$4 sm:$0xff]  }
 0x143   :  { %2859 = vmatprep.mubr.bf16.mxu0 %v4886_v33  ;;  %4262 = vmatpush1.bf16.msra.mxu1 %v5023_v35  ;;  %v4965_v33 = vld [vmem:[%s6270_s0 + $0x404] ss:$36 sps:$4 sm:$0xff]  }
 0x144   :  { %4247 = vmatprep.subr.bf16.mxu1 %v5025_v0  ;;  %v5024_v0 = vld [vmem:[%s6269_s1 + $0x178] sm:$0xff]   ;;  %v4968_v35 = vld [vmem:[%s6270_s0 + $0x3c8] ss:$36 sps:$4 sm:$0xff]  }
 0x147   :  { %4263 = vmatpush1.bf16.msra.mxu1 %v5024_v0 }
 0x149   :  { %2300 = vmatmul.mubr.bf16.gmra.mrb[32].mxu1 %v4888_v36  ;;  %v4969_v36 = vld [vmem:[%s6270_s0 + $0x44c] ss:$36 sps:$4 sm:$0xff]  }
 0x14a   :  { %2860 = vmatmul.mubr.bf16.gmra.mrb[80].mxu0 %v4889_v37  ;;  %2307 = vmatprep.mubr.bf16.mxu1 %v4890_v39 }
 0x14b   :  { %2867 = vmatprep.mubr.bf16.mxu0 %v4892_v40  ;;  %v4971_v40 = vld [vmem:[%s6270_s0 + $0x448] ss:$36 sps:$4 sm:$0xff]  }
 0x151   :  { %2308 = vmatmul.mubr.bf16.gmra.mrb[36].mxu1 %v4894_v41  ;;  %v4972_v41 = vld [vmem:[%s6270_s0 + $0x410] ss:$36 sps:$4 sm:$0xff]  }
 0x152   :  { %2868 = vmatmul.mubr.bf16.gmra.mrb[84].mxu0 %v4895_v42  ;;  %2315 = vmatprep.mubr.bf16.mxu1 %v4896_v43  ;;  %v4973_v42 = vld [vmem:[%s6270_s0 + $0x494] ss:$36 sps:$4 sm:$0xff]  }
 0x153   :  { %2875 = vmatprep.mubr.bf16.mxu0 %v4898_v44 }
 0x159   :  { %2316 = vmatmul.mubr.bf16.gmra.mrb[40].mxu1 %v4900_v45 }
 0x15a   :  { %2876 = vmatmul.mubr.bf16.gmra.mrb[88].mxu0 %v4901_v46  ;;  %2323 = vmatprep.mubr.bf16.mxu1 %v4903_v47  ;;  %v4975_v46 = vld [vmem:[%s6270_s0 + $0x490] ss:$36 sps:$4 sm:$0xff]  }
 0x15b   :  { %2883 = vmatprep.mubr.bf16.mxu0 %v4905_v48  ;;  %v4976_v48 = vld [vmem:[%s6270_s0 + $0x458] ss:$36 sps:$4 sm:$0xff]  }
 0x161   :  { %2324 = vmatmul.mubr.bf16.gmra.mrb[44].mxu1 %v4907_v50 }
 0x162   :  { %2884 = vmatmul.mubr.bf16.gmra.mrb[92].mxu0 %v4908_v51  ;;  %2331 = vmatprep.mubr.bf16.mxu1 %v4909_v52 }
 0x163   :  { %2891 = vmatprep.mubr.bf16.mxu0 %v3768_v53  ;;  %v4979_v53 = vld [vmem:[%s6270_s0 + $0x4d8] ss:$36 sps:$4 sm:$0xff]  }
 0x169   :  { %2332 = vmatmul.mubr.bf16.gmra.mrb[48].mxu1 %v4912_v54 }
 0x16a   :  { %2892 = vmatmul.mubr.bf16.gmra.mrb[96].mxu0 %v3767_v55  ;;  %2339 = vmatprep.mubr.bf16.mxu1 %v4914_v56  ;;  %v4980_v55 = vld [vmem:[%s6270_s0 + $0x4a0] ss:$36 sps:$4 sm:$0xff]  }
 0x16b   :  { %4132 = vmatprep.mubr.msk.bf16.mxu0 %vm5027_vm0, %v5026_v38  ;;  %v4981_v56 = vld [vmem:[%s6270_s0 + $0x524] ss:$36 sps:$4 sm:$0xff]  }
 0x171   :  { %2340 = vmatmul.mubr.bf16.gmra.mrb[52].mxu1 %v4916_v57 }
 0x172   :  { %4133 = vmatmul.mubr.bf16.vlgmr.msra.gmra.mrb[0].mxu0 %v4917_v58  ;;  %2347 = vmatprep.mubr.bf16.mxu1 %v4918_v59 }
 0x173   :  { %4136 = vmatprep.mubr.msk.bf16.mxu0 %vm5027_vm0, %v5026_v38 }
 0x179   :  { %2348 = vmatmul.mubr.bf16.gmra.mrb[56].mxu1 %v4920_v60  ;;  %v4983_v60 = vld [vmem:[%s6270_s0 + $0x520] ss:$36 sps:$4 sm:$0xff]  }
 0x17a   :  { %4137 = vmatmul.mubr.bf16.gmra.mrb[4].mxu0 %v4921_v61  ;;  %2355 = vmatprep.mubr.bf16.mxu1 %v4922_v62  ;;  %v4984_v62 = vld [vmem:[%s6270_s0 + $0x4e8] ss:$36 sps:$4 sm:$0xff]  }
 0x17b   :  { %4140 = vmatprep.mubr.msk.bf16.mxu0 %vm5027_vm0, %v5026_v38 }
 0x181   :  { %2356 = vmatmul.mubr.bf16.gmra.mrb[60].mxu1 %v4924_v63  ;;  %v4985_v63 = vld [vmem:[%s6270_s0 + $0x56c] ss:$36 sps:$4 sm:$0xff]  }
 0x182   :  { %4141 = vmatmul.mubr.bf16.gmra.mrb[8].mxu0 %v4925_v1  ;;  %2363 = vmatprep.mubr.bf16.mxu1 %v4926_v2 }
 0x183   :  { %4144 = vmatprep.mubr.msk.bf16.mxu0 %vm5027_vm0, %v5026_v38 }
 0x189   :  { %2364 = vmatmul.mubr.bf16.gmra.mrb[64].mxu1 %v4928_v3 }
 0x18a   :  { %4145 = vmatmul.mubr.bf16.gmra.mrb[12].mxu0 %v4929_v4  ;;  %2371 = vmatprep.mubr.bf16.mxu1 %v4930_v5  ;;  %v4987_v4 = vld [vmem:[%s6270_s0 + $0x568] ss:$36 sps:$4 sm:$0xff]  }
 0x18b   :  { %4148 = vmatprep.mubr.msk.bf16.mxu0 %vm5027_vm0, %v5026_v38 }
 0x191   :  { %2372 = vmatmul.mubr.bf16.gmra.mrb[68].mxu1 %v4932_v6  ;;  %v4988_v6 = vld [vmem:[%s6270_s0 + $0x530] ss:$36 sps:$4 sm:$0xff]  }
 0x192   :  { %4149 = vmatmul.mubr.bf16.gmra.mrb[16].mxu0 %v4933_v7  ;;  %2379 = vmatprep.mubr.bf16.mxu1 %v4934_v8  ;;  %v4989_v7 = vld [vmem:[%s6270_s0 + $0x5b4] ss:$36 sps:$4 sm:$0xff]  }
 0x193   :  { %4152 = vmatprep.mubr.msk.bf16.mxu0 %vm5027_vm0, %v5026_v38 }
 0x199   :  { %2380 = vmatmul.mubr.bf16.gmra.mrb[72].mxu1 %v4936_v9 }
 0x19a   :  { %4153 = vmatmul.mubr.bf16.gmra.mrb[20].mxu0 %v4937_v10  ;;  %2387 = vmatprep.mubr.bf16.mxu1 %v4938_v11  ;;  %v4991_v11 = vld [vmem:[%s6270_s0 + $0x5b0] ss:$36 sps:$4 sm:$0xff]  }
 0x19b   :  { %4156 = vmatprep.mubr.msk.bf16.mxu0 %vm5027_vm0, %v5026_v38 }
 0x1a1   :  { %2388 = vmatmul.mubr.bf16.gmra.mrb[76].mxu1 %v4940_v12 }
 0x1a2   :  { %4157 = vmatmul.mubr.bf16.gmra.mrb[24].mxu0 %v4941_v13  ;;  %2395 = vmatprep.mubr.bf16.mxu1 %v4942_v14  ;;  %v4992_v13 = vld [vmem:[%s6270_s0 + $0x578] ss:$36 sps:$4 sm:$0xff]  }
 0x1a3   :  { %4160 = vmatprep.mubr.msk.bf16.mxu0 %vm5027_vm0, %v5026_v38  ;;  %v4993_v14 = vld [vmem:[%s6270_s0 + $0x5fc] ss:$36 sps:$4 sm:$0xff]  }
 0x1a9   :  { %2396 = vmatmul.mubr.bf16.gmra.mrb[80].mxu1 %v4944_v15 }
 0x1aa   :  { %4161 = vmatmul.mubr.bf16.gmra.mrb[28].mxu0 %v4945_v16  ;;  %2403 = vmatprep.mubr.bf16.mxu1 %v4946_v17 }
 0x1ab   :  { %4164 = vmatprep.mubr.msk.bf16.mxu0 %vm5027_vm0, %v5026_v38 }
 0x1b1   :  { %2404 = vmatmul.mubr.bf16.gmra.mrb[84].mxu1 %v4948_v18  ;;  %v4995_v18 = vld [vmem:[%s6270_s0 + $0x5f8] ss:$36 sps:$4 sm:$0xff]  }
 0x1b2   :  { %4165 = vmatmul.mubr.bf16.gmra.mrb[32].mxu0 %v4949_v19  ;;  %2411 = vmatprep.mubr.bf16.mxu1 %v4950_v20  ;;  %v4996_v20 = vld [vmem:[%s6270_s0 + $0x5c0] ss:$36 sps:$4 sm:$0xff]  }
 0x1b3   :  { %4168 = vmatprep.mubr.msk.bf16.mxu0 %vm5027_vm0, %v5026_v38 }
 0x1b9   :  { %2412 = vmatmul.mubr.bf16.gmra.mrb[88].mxu1 %v4952_v21  ;;  %v4997_v21 = vld [vmem:[%s6270_s0 + $0x644] ss:$36 sps:$4 sm:$0xff]  }
 0x1ba   :  { %4169 = vmatmul.mubr.bf16.gmra.mrb[36].mxu0 %v4953_v22  ;;  %2419 = vmatprep.mubr.bf16.mxu1 %v4954_v23 }
 0x1bb   :  { %4172 = vmatprep.mubr.msk.bf16.mxu0 %vm5027_vm0, %v5026_v38 }
 0x1c1   :  { %2420 = vmatmul.mubr.bf16.gmra.mrb[92].mxu1 %v4956_v25  ;;  %v4999_v25 = vld [vmem:[%s6270_s0 + $0x640] ss:$36 sps:$4 sm:$0xff]  }
 0x1c2   :  { %4173 = vmatmul.mubr.bf16.gmra.mrb[40].mxu0 %v4957_v26  ;;  %2427 = vmatprep.mubr.bf16.mxu1 %v3764_v27  ;;  %v5000_v27 = vld [vmem:[%s6270_s0 + $0x608] ss:$36 sps:$4 sm:$0xff]  }
 0x1c3   :  { %4176 = vmatprep.mubr.msk.bf16.mxu0 %vm5027_vm0, %v5026_v38 }
 0x1c9   :  { %2428 = vmatmul.mubr.bf16.gmra.mrb[96].mxu1 %v3763_v28  ;;  %v5001_v28 = vld [vmem:[%s6270_s0 + $0x68c] ss:$36 sps:$4 sm:$0xff]  }
 0x1ca   :  { %4177 = vmatmul.mubr.bf16.gmra.mrb[44].mxu0 %v4960_v29  ;;  %2571 = vmatprep.mubr.bf16.mxu1 %v4963_v30  ;;  %v256_v30 = vld [vmem:[%s6270_s0 + $0x6d0] sm:$0xff] }
 0x1cb   :  { %4180 = vmatprep.mubr.msk.bf16.mxu0 %vm5027_vm0, %v5026_v38 }
 0x1d1   :  { %2572 = vmatmul.mubr.bf16.vlgmr.msra.gmra.mrb[52].mxu1 %v4961_v31 }
 0x1d2   :  { %4181 = vmatmul.mubr.bf16.gmra.mrb[48].mxu0 %v4964_v32  ;;  %2579 = vmatprep.mubr.bf16.mxu1 %v4965_v33  ;;  %v5003_v33 = vld [vmem:[%s6270_s0 + $0x688] ss:$36 sps:$4 sm:$0xff]  }
 0x1d3   :  { %4184 = vmatprep.mubr.msk.bf16.mxu0 %vm5027_vm0, %v5026_v38 }
 0x1d9   :  { %2580 = vmatmul.mubr.bf16.gmra.mrb[56].mxu1 %v4967_v34 }
 0x1da   :  { %4185 = vmatmul.mubr.bf16.gmra.mrb[52].mxu0 %v4968_v35  ;;  %2587 = vmatprep.mubr.bf16.mxu1 %v4969_v36  ;;  %v5004_v35 = vld [vmem:[%s6270_s0 + $0x650] ss:$36 sps:$4 sm:$0xff]   ;;  %v3766_v36 = vcombine.high %v256_v30, %v256_v30 }
 0x1db   :  { %4188 = vmatprep.mubr.msk.bf16.mxu0 %vm5027_vm0, %v5026_v38 }
 0x1dc   :  { %v6006_v37 = vpop.f32.mrb[0].mxu1 }
 0x1dd   :  { %v2239_v39 = vpop.f32.mrb[1].mxu1 }
 0x1de   :  { %v6011_v0 = vpop.f32.mrb[2].mxu1 }
 0x1df   :  { %v2242_v43 = vpop.f32.mrb[3].mxu1 }
 0x1e1   :  { %2588 = vmatmul.mubr.bf16.gmra.mrb[60].mxu1 %v4971_v40 }
 0x1e2   :  { %4189 = vmatmul.mubr.bf16.gmra.mrb[56].mxu0 %v4972_v41  ;;  %2595 = vmatprep.mubr.bf16.mxu1 %v4973_v42  ;;  %v3765_v42 = vcombine.low %v256_v30, %v256_v30 }
 0x1e3   :  { %4192 = vmatprep.mubr.msk.bf16.mxu0 %vm5027_vm0, %v5026_v38 }
 0x1e4   :  { %v6021_v44 = vpop.f32.mrb[4].mxu1 }
 0x1e5   :  { %v2247_v45 = vpop.f32.mrb[5].mxu1 }
 0x1e6   :  { %v6026_v47 = vpop.f32.mrb[6].mxu1  ;;  %v5007_v45 = vld [vmem:[%s6270_s0 + $0x698] ss:$36 sps:$4 sm:$0xff]  }
 0x1e7   :  { %v2250_v50 = vpop.f32.mrb[7].mxu1 }
 0x1e9   :  { %2596 = vmatmul.mubr.bf16.gmra.mrb[64].mxu1 %v4975_v46 }
 0x1ea   :  { %4193 = vmatmul.mubr.bf16.gmra.mrb[60].mxu0 %v4976_v48  ;;  %2603 = vmatprep.mubr.bf16.mxu1 %v4977_v49 }
 0x1eb   :  { %4196 = vmatprep.mubr.msk.bf16.mxu0 %vm5027_vm0, %v5026_v38 }
 0x1ec   :  { %v6036_v51 = vpop.f32.mrb[8].mxu1 }
 0x1ed   :  { %v2255_v52 = vpop.f32.mrb[9].mxu1 }
 0x1ee   :  { %v6041_v54 = vpop.f32.mrb[10].mxu1  ;;  %v5008_v52 = vld [vmem:[%s6270_s0 + $0x6e0] ss:$0 sps:$4 sm:$0xff]  }
 0x1ef   :  { %v2258_v57 = vpop.f32.mrb[11].mxu1 }
 0x1f1   :  { %2604 = vmatmul.mubr.bf16.gmra.mrb[68].mxu1 %v4979_v53 }
 0x1f2   :  { %4197 = vmatmul.mubr.bf16.gmra.mrb[64].mxu0 %v4980_v55  ;;  %2611 = vmatprep.mubr.bf16.mxu1 %v4981_v56 }
 0x1f3   :  { %4200 = vmatprep.mubr.msk.bf16.mxu0 %vm5027_vm0, %v5026_v38 }
 0x1f4   :  { %v6051_v58 = vpop.f32.mrb[12].mxu1 }
 0x1f5   :  { %v2263_v59 = vpop.f32.mrb[13].mxu1 }
 0x1f6   :  { %v6056_v61 = vpop.f32.mrb[14].mxu1 }
 0x1f7   :  { %v2266_v1 = vpop.f32.mrb[15].mxu1 }
 0x1f9   :  { %2612 = vmatmul.mubr.bf16.gmra.mrb[72].mxu1 %v4983_v60 }
 0x1fa   :  { %4201 = vmatmul.mubr.bf16.gmra.mrb[68].mxu0 %v4984_v62  ;;  %2619 = vmatprep.mubr.bf16.mxu1 %v4985_v63 }
 0x1fb   :  { %4204 = vmatprep.mubr.msk.bf16.mxu0 %vm5027_vm0, %v5026_v38 }
 0x1fc   :  { %v6066_v2 = vpop.f32.mrb[16].mxu1 }
 0x1fd   :  { %v2271_v3 = vpop.f32.mrb[17].mxu1 }
 0x1fe   :  { %v6071_v5 = vpop.f32.mrb[18].mxu1 }
 0x1ff   :  { %v2274_v8 = vpop.f32.mrb[19].mxu1 }
 0x201   :  { %2620 = vmatmul.mubr.bf16.gmra.mrb[76].mxu1 %v4987_v4 }
 0x202   :  { %4205 = vmatmul.mubr.bf16.gmra.mrb[72].mxu0 %v4988_v6  ;;  %2627 = vmatprep.mubr.bf16.mxu1 %v4989_v7 }
 0x203   :  { %4208 = vmatprep.mubr.msk.bf16.mxu0 %vm5027_vm0, %v5026_v38 }
 0x204   :  { %v6081_v9 = vpop.f32.mrb[20].mxu1 }
 0x205   :  { %v2279_v10 = vpop.f32.mrb[21].mxu1 }
 0x206   :  { %v6086_v12 = vpop.f32.mrb[22].mxu1 }
 0x207   :  { %v2282_v15 = vpop.f32.mrb[23].mxu1 }
 0x209   :  { %2628 = vmatmul.mubr.bf16.gmra.mrb[80].mxu1 %v4991_v11 }
 0x20a   :  { %4209 = vmatmul.mubr.bf16.gmra.mrb[76].mxu0 %v4992_v13  ;;  %2635 = vmatprep.mubr.bf16.mxu1 %v4993_v14 }
 0x20b   :  { %4212 = vmatprep.mubr.msk.bf16.mxu0 %vm5027_vm0, %v5026_v38 }
 0x20c   :  { %v6096_v16 = vpop.f32.mrb[24].mxu1 }
 0x20d   :  { %v2287_v17 = vpop.f32.mrb[25].mxu1 }
 0x20e   :  { %v6101_v19 = vpop.f32.mrb[26].mxu1 }
 0x20f   :  { %v2290_v22 = vpop.f32.mrb[27].mxu1 }
 0x211   :  { %2636 = vmatmul.mubr.bf16.gmra.mrb[84].mxu1 %v4995_v18 }
 0x212   :  { %4213 = vmatmul.mubr.bf16.gmra.mrb[80].mxu0 %v4996_v20  ;;  %2643 = vmatprep.mubr.bf16.mxu1 %v4997_v21 }
 0x213   :  { %4216 = vmatprep.mubr.msk.bf16.mxu0 %vm5027_vm0, %v5026_v38 }
 0x214   :  { %v6111_v23 = vpop.f32.mrb[28].mxu1 }
 0x215   :  { %v2295_v24 = vpop.f32.mrb[29].mxu1 }
 0x216   :  { %v6116_v26 = vpop.f32.mrb[30].mxu1 }
 0x217   :  { %v2298_v29 = vpop.f32.mrb[31].mxu1 }
 0x219   :  { %2644 = vmatmul.mubr.bf16.gmra.mrb[88].mxu1 %v4999_v25 }
 0x21a   :  { %4217 = vmatmul.mubr.bf16.gmra.mrb[84].mxu0 %v5000_v27  ;;  %2651 = vmatprep.mubr.bf16.mxu1 %v5001_v28 }
 0x21b   :  { %4220 = vmatprep.mubr.msk.bf16.mxu0 %vm5027_vm0, %v5026_v38 }
 0x21c   :  { %v6129_v31 = vpop.f32.mrb[32].mxu1 }
 0x21d   :  { %v2303_v32 = vpop.f32.mrb[33].mxu1 }
 0x21e   :  { %v6134_v34 = vpop.f32.mrb[34].mxu1 }
 0x21f   :  { %v2306_v39 = vpop.f32.mrb[35].mxu1 }
 0x221   :  { %2652 = vmatmul.mubr.bf16.gmra.mrb[92].mxu1 %v5003_v33 }
 0x222   :  { %4221 = vmatmul.mubr.bf16.gmra.mrb[88].mxu0 %v5004_v35  ;;  %2659 = vmatprep.mubr.bf16.mxu1 %v3766_v36 }
 0x223   :  { %4224 = vmatprep.mubr.msk.bf16.mxu0 %vm5027_vm0, %v5026_v38 }
 0x224   :  { %v6141_v40 = vpop.f32.mrb[36].mxu1 }
 0x225   :  { %v2311_v41 = vpop.f32.mrb[37].mxu1 }
 0x226   :  { %v6143_v43 = vpop.f32.mrb[38].mxu1 }
 0x227   :  { %v2314_v46 = vpop.f32.mrb[39].mxu1 }
 0x229   :  { %2660 = vmatmul.mubr.bf16.gmra.mrb[96].mxu1 %v3765_v42 }
 0x22a   :  { %4225 = vmatmul.mubr.bf16.gmra.mrb[92].mxu0 %v5007_v45 }
 0x22b   :  { %4228 = vmatprep.mubr.msk.bf16.mxu0 %vm5027_vm0, %v5026_v38 }
 0x22c   :  { %v6150_v48 = vpop.f32.mrb[40].mxu1 }
 0x22d   :  { %v2319_v49 = vpop.f32.mrb[41].mxu1 }
 0x22e   :  { %v6152_v50 = vpop.f32.mrb[42].mxu1 }
 0x22f   :  { %v2322_v53 = vpop.f32.mrb[43].mxu1 }
 0x232   :  { %4229 = vmatmul.mubr.bf16.gmra.mrb[96].mxu0 %v5008_v52 }
 0x234   :  { %v6157_v55 = vpop.f32.mrb[44].mxu1 }
 0x235   :  { %v2327_v56 = vpop.f32.mrb[45].mxu1 }
 0x236   :  { %v6159_v57 = vpop.f32.mrb[46].mxu1 }
 0x237   :  { %v2330_v59 = vpop.f32.mrb[47].mxu1 }
 0x23c   :  { %v6161_v60 = vpop.f32.mrb[48].mxu1 }
 0x23d   :  { %v2335_v38 = vpop.f32.mrb[49].mxu1 }
 0x23e   :  { %v6163_v62 = vpop.f32.mrb[50].mxu1 }
 0x23f   :  { %v2338_v63 = vpop.f32.mrb[51].mxu1 }
 0x245   :  { %v2933_v1 = vpop.f32.mrb[0].mxu0 }
 0x246   :  { %v4264_v3 = vadd.f32 %v2933_v1, %v6006_v37  ;;  %v4134_v4 = vpop.f32.mrb[1].mxu0 }
 0x247   :  { %v2936_v6 = vpop.f32.mrb[2].mxu0 }
 0x248   :  { %v4265_v7 = vadd.f32 %v2936_v6, %v6011_v0  ;;  %v4135_v8 = vpop.f32.mrb[3].mxu0  ;;  %v3431_v10 = vmul.f32 %v4264_v3, %v4264_v3 }
 0x24a   :  { %v3943_v11 = vpack.c.bf16 %v4265_v7, %v4264_v3  ;;  %v3377_v13 = vadd.f32 %v4265_v7, %v4264_v3  ;;  %v3432_v14 = vmul.f32 %v4265_v7, %v4265_v7 }
 0x24c   :  { %3944 = vst [vmem:[%s6271_s2] sm:$0xff] %v3943_v11   ;;  %v3480_v15 = vadd.f32 %v3432_v14, %v3431_v10 }
 0x24d   :  { %v2941_v17 = vpop.f32.mrb[4].mxu0 }
 0x24e   :  { %v4266_v18 = vadd.f32 %v2941_v17, %v6021_v44  ;;  %v4138_v20 = vpop.f32.mrb[5].mxu0 }
 0x24f   :  { %v2944_v21 = vpop.f32.mrb[6].mxu0 }
 0x250   :  { %v3378_v37 = vadd.f32 %v4266_v18, %v3377_v13  ;;  %v3433_v22 = vmul.f32 %v4266_v18, %v4266_v18  ;;  %v4267_v24 = vadd.f32 %v2944_v21, %v6026_v47  ;;  %v4139_v0 = vpop.f32.mrb[7].mxu0 }
 0x252   :  { %v3481_v25 = vadd.f32 %v3480_v15, %v3433_v22  ;;  %v3948_v27 = vpack.c.bf16 %v4267_v24, %v4266_v18  ;;  %v3379_v28 = vadd.f32 %v4267_v24, %v3378_v37  ;;  %v3434_v29 = vmul.f32 %v4267_v24, %v4267_v24 }
 0x254   :  { %4060 = vst [vmem:[%s6271_s2 + $0x8] sm:$0xff] %v3948_v27   ;;  %v3482_v30 = vadd.f32 %v3481_v25, %v3434_v29 }
 0x255   :  { %v2949_v32 = vpop.f32.mrb[8].mxu0 }
 0x256   :  { %v4268_v33 = vadd.f32 %v2949_v32, %v6036_v51  ;;  %v4142_v44 = vpop.f32.mrb[9].mxu0 }
 0x257   :  { %v2952_v35 = vpop.f32.mrb[10].mxu0 }
 0x258   :  { %v3380_v36 = vadd.f32 %v4268_v33, %v3379_v28  ;;  %v3435_v39 = vmul.f32 %v4268_v33, %v4268_v33  ;;  %v4269_v41 = vadd.f32 %v2952_v35, %v6041_v54  ;;  %v4143_v47 = vpop.f32.mrb[11].mxu0 }
 0x25a   :  { %v3483_v42 = vadd.f32 %v3482_v30, %v3435_v39  ;;  %v3953_v45 = vpack.c.bf16 %v4269_v41, %v4268_v33  ;;  %v3381_v46 = vadd.f32 %v4269_v41, %v3380_v36  ;;  %v3436_v49 = vmul.f32 %v4269_v41, %v4269_v41 }
 0x25c   :  { %4061 = vst [vmem:[%s6271_s2 + $0x10] sm:$0xff] %v3953_v45   ;;  %v3484_v52 = vadd.f32 %v3483_v42, %v3436_v49 }
 0x25d   :  { %v2957_v53 = vpop.f32.mrb[12].mxu0 }
 0x25e   :  { %v4270_v56 = vadd.f32 %v2957_v53, %v6051_v58  ;;  %v4146_v51 = vpop.f32.mrb[13].mxu0 }
 0x25f   :  { %v2960_v59 = vpop.f32.mrb[14].mxu0 }
 0x260   :  { %v3382_v38 = vadd.f32 %v4270_v56, %v3381_v46  ;;  %v3437_v63 = vmul.f32 %v4270_v56, %v4270_v56  ;;  %v4271_v1 = vadd.f32 %v2960_v59, %v6056_v61  ;;  %v4147_v54 = vpop.f32.mrb[15].mxu0 }
 0x262   :  { %v3485_v3 = vadd.f32 %v3484_v52, %v3437_v63  ;;  %v3958_v4 = vpack.c.bf16 %v4271_v1, %v4270_v56  ;;  %v3383_v6 = vadd.f32 %v4271_v1, %v3382_v38  ;;  %v3438_v7 = vmul.f32 %v4271_v1, %v4271_v1 }
 0x264   :  { %4062 = vst [vmem:[%s6271_s2 + $0x18] sm:$0xff] %v3958_v4   ;;  %v3486_v8 = vadd.f32 %v3485_v3, %v3438_v7 }
 0x265   :  { %v2965_v10 = vpop.f32.mrb[16].mxu0 }
 0x266   :  { %v4272_v11 = vadd.f32 %v2965_v10, %v6066_v2  ;;  %v4150_v58 = vpop.f32.mrb[17].mxu0 }
 0x267   :  { %v2968_v13 = vpop.f32.mrb[18].mxu0 }
 0x268   :  { %v3384_v14 = vadd.f32 %v4272_v11, %v3383_v6  ;;  %v3439_v15 = vmul.f32 %v4272_v11, %v4272_v11  ;;  %v4273_v17 = vadd.f32 %v2968_v13, %v6071_v5  ;;  %v4151_v61 = vpop.f32.mrb[19].mxu0 }
 0x26a   :  { %v3487_v18 = vadd.f32 %v3486_v8, %v3439_v15  ;;  %v3963_v20 = vpack.c.bf16 %v4273_v17, %v4272_v11  ;;  %v3385_v21 = vadd.f32 %v4273_v17, %v3384_v14  ;;  %v3440_v37 = vmul.f32 %v4273_v17, %v4273_v17 }
 0x26c   :  { %4063 = vst [vmem:[%s6271_s2 + $0x20] sm:$0xff] %v3963_v20   ;;  %v3488_v22 = vadd.f32 %v3487_v18, %v3440_v37 }
 0x26d   :  { %v2973_v24 = vpop.f32.mrb[20].mxu0 }
 0x26e   :  { %v4274_v0 = vadd.f32 %v2973_v24, %v6081_v9  ;;  %v4154_v2 = vpop.f32.mrb[21].mxu0 }
 0x26f   :  { %v2976_v25 = vpop.f32.mrb[22].mxu0 }
 0x270   :  { %v3386_v27 = vadd.f32 %v4274_v0, %v3385_v21  ;;  %v3441_v28 = vmul.f32 %v4274_v0, %v4274_v0  ;;  %v4275_v29 = vadd.f32 %v2976_v25, %v6086_v12  ;;  %v4155_v5 = vpop.f32.mrb[23].mxu0 }
 0x272   :  { %v3489_v30 = vadd.f32 %v3488_v22, %v3441_v28  ;;  %v3968_v32 = vpack.c.bf16 %v4275_v29, %v4274_v0  ;;  %v3387_v33 = vadd.f32 %v4275_v29, %v3386_v27  ;;  %v3442_v44 = vmul.f32 %v4275_v29, %v4275_v29 }
 0x274   :  { %4064 = vst [vmem:[%s6271_s2 + $0x28] sm:$0xff] %v3968_v32   ;;  %v3490_v35 = vadd.f32 %v3489_v30, %v3442_v44 }
 0x275   :  { %v2981_v36 = vpop.f32.mrb[24].mxu0 }
 0x276   :  { %v4276_v39 = vadd.f32 %v2981_v36, %v6096_v16  ;;  %v4158_v9 = vpop.f32.mrb[25].mxu0 }
 0x277   :  { %v2984_v41 = vpop.f32.mrb[26].mxu0 }
 0x278   :  { %v3388_v47 = vadd.f32 %v4276_v39, %v3387_v33  ;;  %v3443_v42 = vmul.f32 %v4276_v39, %v4276_v39  ;;  %v4277_v45 = vadd.f32 %v2984_v41, %v6101_v19  ;;  %v4159_v12 = vpop.f32.mrb[27].mxu0 }
 0x27a   :  { %v3491_v46 = vadd.f32 %v3490_v35, %v3443_v42  ;;  %v3973_v49 = vpack.c.bf16 %v4277_v45, %v4276_v39  ;;  %v3389_v52 = vadd.f32 %v4277_v45, %v3388_v47  ;;  %v3444_v53 = vmul.f32 %v4277_v45, %v4277_v45 }
 0x27c   :  { %4065 = vst [vmem:[%s6271_s2 + $0x30] sm:$0xff] %v3973_v49   ;;  %v3492_v56 = vadd.f32 %v3491_v46, %v3444_v53 }
 0x27d   :  { %v2989_v51 = vpop.f32.mrb[28].mxu0 }
 0x27e   :  { %v4278_v59 = vadd.f32 %v2989_v51, %v6111_v23  ;;  %v4162_v16 = vpop.f32.mrb[29].mxu0 }
 0x27f   :  { %v2992_v38 = vpop.f32.mrb[30].mxu0 }
 0x280   :  { %v3390_v63 = vadd.f32 %v4278_v59, %v3389_v52  ;;  %v3445_v1 = vmul.f32 %v4278_v59, %v4278_v59  ;;  %v4279_v54 = vadd.f32 %v2992_v38, %v6116_v26  ;;  %v4163_v19 = vpop.f32.mrb[31].mxu0 }
 0x282   :  { %v3493_v3 = vadd.f32 %v3492_v56, %v3445_v1  ;;  %v3978_v4 = vpack.c.bf16 %v4279_v54, %v4278_v59  ;;  %v3391_v6 = vadd.f32 %v4279_v54, %v3390_v63  ;;  %v3446_v7 = vmul.f32 %v4279_v54, %v4279_v54 }
 0x284   :  { %4066 = vst [vmem:[%s6271_s2 + $0x38] sm:$0xff] %v3978_v4   ;;  %v3494_v8 = vadd.f32 %v3493_v3, %v3446_v7 }
 0x285   :  { %v2997_v10 = vpop.f32.mrb[32].mxu0 }
 0x286   :  { %v4280_v11 = vadd.f32 %v2997_v10, %v6129_v31  ;;  %v4166_v23 = vpop.f32.mrb[33].mxu0 }
 0x287   :  { %v3000_v58 = vpop.f32.mrb[34].mxu0 }
 0x288   :  { %v3392_v13 = vadd.f32 %v4280_v11, %v3391_v6  ;;  %v3447_v14 = vmul.f32 %v4280_v11, %v4280_v11  ;;  %v4281_v15 = vadd.f32 %v3000_v58, %v6134_v34  ;;  %v4167_v26 = vpop.f32.mrb[35].mxu0 }
 0x28a   :  { %v3495_v17 = vadd.f32 %v3494_v8, %v3447_v14  ;;  %v3983_v61 = vpack.c.bf16 %v4281_v15, %v4280_v11  ;;  %v3393_v18 = vadd.f32 %v4281_v15, %v3392_v13  ;;  %v3448_v20 = vmul.f32 %v4281_v15, %v4281_v15 }
 0x28c   :  { %4067 = vst [vmem:[%s6271_s2 + $0x40] sm:$0xff] %v3983_v61   ;;  %v3496_v21 = vadd.f32 %v3495_v17, %v3448_v20 }
 0x28d   :  { %v3005_v37 = vpop.f32.mrb[36].mxu0 }
 0x28e   :  { %v4282_v22 = vadd.f32 %v3005_v37, %v6141_v40  ;;  %v4170_v31 = vpop.f32.mrb[37].mxu0 }
 0x28f   :  { %v3008_v24 = vpop.f32.mrb[38].mxu0 }
 0x290   :  { %v3394_v0 = vadd.f32 %v4282_v22, %v3393_v18  ;;  %v3449_v2 = vmul.f32 %v4282_v22, %v4282_v22  ;;  %v4283_v25 = vadd.f32 %v3008_v24, %v6143_v43  ;;  %v4171_v34 = vpop.f32.mrb[39].mxu0 }
 0x292   :  { %v3497_v27 = vadd.f32 %v3496_v21, %v3449_v2  ;;  %v3988_v28 = vpack.c.bf16 %v4283_v25, %v4282_v22  ;;  %v3395_v29 = vadd.f32 %v4283_v25, %v3394_v0  ;;  %v3450_v5 = vmul.f32 %v4283_v25, %v4283_v25 }
 0x294   :  { %4068 = vst [vmem:[%s6271_s2 + $0x48] sm:$0xff] %v3988_v28   ;;  %v3498_v30 = vadd.f32 %v3497_v27, %v3450_v5 }
 0x295   :  { %v3013_v32 = vpop.f32.mrb[40].mxu0 }
 0x296   :  { %v4284_v33 = vadd.f32 %v3013_v32, %v6150_v48  ;;  %v4174_v40 = vpop.f32.mrb[41].mxu0 }
 0x297   :  { %v3016_v44 = vpop.f32.mrb[42].mxu0 }
 0x298   :  { %v3396_v35 = vadd.f32 %v4284_v33, %v3395_v29  ;;  %v3451_v36 = vmul.f32 %v4284_v33, %v4284_v33  ;;  %v4285_v39 = vadd.f32 %v3016_v44, %v6152_v50  ;;  %v4175_v43 = vpop.f32.mrb[43].mxu0 }
 0x29a   :  { %v3499_v9 = vadd.f32 %v3498_v30, %v3451_v36  ;;  %v3993_v41 = vpack.c.bf16 %v4285_v39, %v4284_v33  ;;  %v3397_v47 = vadd.f32 %v4285_v39, %v3396_v35  ;;  %v3452_v42 = vmul.f32 %v4285_v39, %v4285_v39 }
 0x29c   :  { %4069 = vst [vmem:[%s6271_s2 + $0x50] sm:$0xff] %v3993_v41   ;;  %v3500_v45 = vadd.f32 %v3499_v9, %v3452_v42 }
 0x29d   :  { %v3021_v12 = vpop.f32.mrb[44].mxu0 }
 0x29e   :  { %v4286_v46 = vadd.f32 %v3021_v12, %v6157_v55  ;;  %v4178_v48 = vpop.f32.mrb[45].mxu0 }
 0x29f   :  { %v3024_v49 = vpop.f32.mrb[46].mxu0 }
 0x2a0   :  { %v3398_v52 = vadd.f32 %v4286_v46, %v3397_v47  ;;  %v3453_v53 = vmul.f32 %v4286_v46, %v4286_v46  ;;  %v4287_v56 = vadd.f32 %v3024_v49, %v6159_v57  ;;  %v4179_v50 = vpop.f32.mrb[47].mxu0 }
 0x2a2   :  { %v3501_v51 = vadd.f32 %v3500_v45, %v3453_v53  ;;  %v3998_v59 = vpack.c.bf16 %v4287_v56, %v4286_v46  ;;  %v3399_v16 = vadd.f32 %v4287_v56, %v3398_v52  ;;  %v3454_v38 = vmul.f32 %v4287_v56, %v4287_v56 }
 0x2a4   :  { %4070 = vst [vmem:[%s6271_s2 + $0x58] sm:$0xff] %v3998_v59   ;;  %v3502_v63 = vadd.f32 %v3501_v51, %v3454_v38  ;;  %v2573_v1 = vpop.f32.mrb[52].mxu1 }
 0x2a5   :  { %v3029_v54 = vpop.f32.mrb[48].mxu0  ;;  %v2575_v19 = vpop.f32.mrb[53].mxu1 }
 0x2a6   :  { %v4288_v55 = vadd.f32 %v3029_v54, %v6161_v60  ;;  %v4182_v3 = vpop.f32.mrb[49].mxu0  ;;  %v2576_v4 = vpop.f32.mrb[54].mxu1 }
 0x2a7   :  { %v3032_v6 = vpop.f32.mrb[50].mxu0  ;;  %v2578_v7 = vpop.f32.mrb[55].mxu1 }
 0x2a8   :  { %v3400_v57 = vadd.f32 %v4288_v55, %v3399_v16  ;;  %v3455_v8 = vmul.f32 %v4288_v55, %v4288_v55  ;;  %v4289_v10 = vadd.f32 %v3032_v6, %v6163_v62  ;;  %v4183_v11 = vpop.f32.mrb[51].mxu0 }
 0x2aa   :  { %v3503_v23 = vadd.f32 %v3502_v63, %v3455_v8  ;;  %v4003_v58 = vpack.c.bf16 %v4289_v10, %v4288_v55  ;;  %v3401_v13 = vadd.f32 %v4289_v10, %v3400_v57  ;;  %v3456_v14 = vmul.f32 %v4289_v10, %v4289_v10 }
 0x2ac   :  { %4071 = vst [vmem:[%s6271_s2 + $0x60] sm:$0xff] %v4003_v58   ;;  %v3504_v15 = vadd.f32 %v3503_v23, %v3456_v14  ;;  %v2581_v26 = vpop.f32.mrb[56].mxu1 }
 0x2ad   :  { %v3037_v60 = vpop.f32.mrb[52].mxu0  ;;  %v2583_v17 = vpop.f32.mrb[57].mxu1 }
 0x2ae   :  { %v4290_v61 = vadd.f32 %v3037_v60, %v2573_v1  ;;  %v4186_v18 = vpop.f32.mrb[53].mxu0  ;;  %v2584_v20 = vpop.f32.mrb[58].mxu1 }
 0x2af   :  { %v3040_v21 = vpop.f32.mrb[54].mxu0  ;;  %v2586_v37 = vpop.f32.mrb[59].mxu1 }
 0x2b0   :  { %v3402_v22 = vadd.f32 %v4290_v61, %v3401_v13  ;;  %v3457_v62 = vmul.f32 %v4290_v61, %v4290_v61  ;;  %v4291_v31 = vadd.f32 %v3040_v21, %v2576_v4  ;;  %v4187_v24 = vpop.f32.mrb[55].mxu0 }
 0x2b2   :  { %v3505_v0 = vadd.f32 %v3504_v15, %v3457_v62  ;;  %v4008_v2 = vpack.c.bf16 %v4291_v31, %v4290_v61  ;;  %v3403_v25 = vadd.f32 %v4291_v31, %v3402_v22  ;;  %v3458_v34 = vmul.f32 %v4291_v31, %v4291_v31 }
 0x2b4   :  { %4072 = vst [vmem:[%s6271_s2 + $0x68] sm:$0xff] %v4008_v2   ;;  %v3506_v27 = vadd.f32 %v3505_v0, %v3458_v34  ;;  %v2589_v28 = vpop.f32.mrb[60].mxu1 }
 0x2b5   :  { %v3045_v29 = vpop.f32.mrb[56].mxu0  ;;  %v2591_v5 = vpop.f32.mrb[61].mxu1 }
 0x2b6   :  { %v4292_v30 = vadd.f32 %v3045_v29, %v2581_v26  ;;  %v4190_v32 = vpop.f32.mrb[57].mxu0  ;;  %v2592_v33 = vpop.f32.mrb[62].mxu1 }
 0x2b7   :  { %v3048_v40 = vpop.f32.mrb[58].mxu0  ;;  %v2594_v44 = vpop.f32.mrb[63].mxu1 }
 0x2b8   :  { %v3404_v35 = vadd.f32 %v4292_v30, %v3403_v25  ;;  %v3459_v36 = vmul.f32 %v4292_v30, %v4292_v30  ;;  %v4293_v39 = vadd.f32 %v3048_v40, %v2584_v20  ;;  %v4191_v43 = vpop.f32.mrb[59].mxu0 }
 0x2ba   :  { %v3507_v9 = vadd.f32 %v3506_v27, %v3459_v36  ;;  %v4013_v41 = vpack.c.bf16 %v4293_v39, %v4292_v30  ;;  %v3405_v47 = vadd.f32 %v4293_v39, %v3404_v35  ;;  %v3460_v42 = vmul.f32 %v4293_v39, %v4293_v39 }
 0x2bc   :  { %4073 = vst [vmem:[%s6271_s2 + $0x70] sm:$0xff] %v4013_v41   ;;  %v3508_v45 = vadd.f32 %v3507_v9, %v3460_v42  ;;  %v2597_v12 = vpop.f32.mrb[64].mxu1 }
 0x2bd   :  { %v3053_v46 = vpop.f32.mrb[60].mxu0  ;;  %v2599_v48 = vpop.f32.mrb[65].mxu1 }
 0x2be   :  { %v4294_v49 = vadd.f32 %v3053_v46, %v2589_v28  ;;  %v4194_v52 = vpop.f32.mrb[61].mxu0  ;;  %v2600_v53 = vpop.f32.mrb[66].mxu1 }
 0x2bf   :  { %v3056_v56 = vpop.f32.mrb[62].mxu0  ;;  %v2602_v50 = vpop.f32.mrb[67].mxu1 }
 0x2c0   :  { %v3406_v51 = vadd.f32 %v4294_v49, %v3405_v47  ;;  %v3461_v59 = vmul.f32 %v4294_v49, %v4294_v49  ;;  %v4295_v16 = vadd.f32 %v3056_v56, %v2592_v33  ;;  %v4195_v38 = vpop.f32.mrb[63].mxu0 }
 0x2c2   :  { %v3509_v63 = vadd.f32 %v3508_v45, %v3461_v59  ;;  %v4018_v1 = vpack.c.bf16 %v4295_v16, %v4294_v49  ;;  %v3407_v54 = vadd.f32 %v4295_v16, %v3406_v51  ;;  %v3462_v19 = vmul.f32 %v4295_v16, %v4295_v16 }
 0x2c4   :  { %4074 = vst [vmem:[%s6271_s2 + $0x78] sm:$0xff] %v4018_v1   ;;  %v3510_v55 = vadd.f32 %v3509_v63, %v3462_v19  ;;  %v2605_v3 = vpop.f32.mrb[68].mxu1 }
 0x2c5   :  { %v3061_v4 = vpop.f32.mrb[64].mxu0  ;;  %v2607_v6 = vpop.f32.mrb[69].mxu1 }
 0x2c6   :  { %v4296_v7 = vadd.f32 %v3061_v4, %v2597_v12  ;;  %v4198_v57 = vpop.f32.mrb[65].mxu0  ;;  %v2608_v8 = vpop.f32.mrb[70].mxu1 }
 0x2c7   :  { %v3064_v10 = vpop.f32.mrb[66].mxu0  ;;  %v2610_v11 = vpop.f32.mrb[71].mxu1 }
 0x2c8   :  { %v3408_v23 = vadd.f32 %v4296_v7, %v3407_v54  ;;  %v3463_v58 = vmul.f32 %v4296_v7, %v4296_v7  ;;  %v4297_v13 = vadd.f32 %v3064_v10, %v2600_v53  ;;  %v4199_v14 = vpop.f32.mrb[67].mxu0 }
 0x2ca   :  { %v3511_v15 = vadd.f32 %v3510_v55, %v3463_v58  ;;  %v4023_v26 = vpack.c.bf16 %v4297_v13, %v4296_v7  ;;  %v3409_v60 = vadd.f32 %v4297_v13, %v3408_v23  ;;  %v3464_v17 = vmul.f32 %v4297_v13, %v4297_v13 }
 0x2cc   :  { %4075 = vst [vmem:[%s6271_s2 + $0x80] sm:$0xff] %v4023_v26   ;;  %v3512_v61 = vadd.f32 %v3511_v15, %v3464_v17  ;;  %v2613_v18 = vpop.f32.mrb[72].mxu1 }
 0x2cd   :  { %v3069_v20 = vpop.f32.mrb[68].mxu0  ;;  %v2615_v21 = vpop.f32.mrb[73].mxu1 }
 0x2ce   :  { %v4298_v37 = vadd.f32 %v3069_v20, %v2605_v3  ;;  %v4202_v22 = vpop.f32.mrb[69].mxu0  ;;  %v2616_v62 = vpop.f32.mrb[74].mxu1 }
 0x2cf   :  { %v3072_v31 = vpop.f32.mrb[70].mxu0  ;;  %v2618_v24 = vpop.f32.mrb[75].mxu1 }
 0x2d0   :  { %v3410_v0 = vadd.f32 %v4298_v37, %v3409_v60  ;;  %v3465_v2 = vmul.f32 %v4298_v37, %v4298_v37  ;;  %v4299_v25 = vadd.f32 %v3072_v31, %v2608_v8  ;;  %v4203_v34 = vpop.f32.mrb[71].mxu0 }
 0x2d2   :  { %v3513_v27 = vadd.f32 %v3512_v61, %v3465_v2  ;;  %v4028_v28 = vpack.c.bf16 %v4299_v25, %v4298_v37  ;;  %v3411_v29 = vadd.f32 %v4299_v25, %v3410_v0  ;;  %v3466_v5 = vmul.f32 %v4299_v25, %v4299_v25 }
 0x2d4   :  { %4076 = vst [vmem:[%s6271_s2 + $0x88] sm:$0xff] %v4028_v28   ;;  %v3514_v30 = vadd.f32 %v3513_v27, %v3466_v5  ;;  %v2621_v32 = vpop.f32.mrb[76].mxu1 }
 0x2d5   :  { %v3077_v33 = vpop.f32.mrb[72].mxu0  ;;  %v2623_v40 = vpop.f32.mrb[77].mxu1 }
 0x2d6   :  { %v4300_v44 = vadd.f32 %v3077_v33, %v2613_v18  ;;  %v4206_v35 = vpop.f32.mrb[73].mxu0  ;;  %v2624_v36 = vpop.f32.mrb[78].mxu1 }
 0x2d7   :  { %v3080_v39 = vpop.f32.mrb[74].mxu0  ;;  %v2626_v43 = vpop.f32.mrb[79].mxu1 }
 0x2d8   :  { %v3412_v9 = vadd.f32 %v4300_v44, %v3411_v29  ;;  %v3467_v41 = vmul.f32 %v4300_v44, %v4300_v44  ;;  %v4301_v47 = vadd.f32 %v3080_v39, %v2616_v62  ;;  %v4207_v42 = vpop.f32.mrb[75].mxu0 }
 0x2da   :  { %v3515_v45 = vadd.f32 %v3514_v30, %v3467_v41  ;;  %v4033_v12 = vpack.c.bf16 %v4301_v47, %v4300_v44  ;;  %v3413_v46 = vadd.f32 %v4301_v47, %v3412_v9  ;;  %v3468_v48 = vmul.f32 %v4301_v47, %v4301_v47 }
 0x2dc   :  { %4077 = vst [vmem:[%s6271_s2 + $0x90] sm:$0xff] %v4033_v12   ;;  %v3516_v49 = vadd.f32 %v3515_v45, %v3468_v48  ;;  %v2629_v52 = vpop.f32.mrb[80].mxu1 }
 0x2dd   :  { %v3085_v53 = vpop.f32.mrb[76].mxu0  ;;  %v2631_v56 = vpop.f32.mrb[81].mxu1 }
 0x2de   :  { %v4302_v50 = vadd.f32 %v3085_v53, %v2621_v32  ;;  %v4210_v51 = vpop.f32.mrb[77].mxu0  ;;  %v2632_v59 = vpop.f32.mrb[82].mxu1 }
 0x2df   :  { %v3088_v16 = vpop.f32.mrb[78].mxu0  ;;  %v2634_v38 = vpop.f32.mrb[83].mxu1 }
 0x2e0   :  { %v3414_v63 = vadd.f32 %v4302_v50, %v3413_v46  ;;  %v3469_v1 = vmul.f32 %v4302_v50, %v4302_v50  ;;  %v4303_v54 = vadd.f32 %v3088_v16, %v2624_v36  ;;  %v4211_v19 = vpop.f32.mrb[79].mxu0 }
 0x2e2   :  { %v3517_v55 = vadd.f32 %v3516_v49, %v3469_v1  ;;  %v4038_v3 = vpack.c.bf16 %v4303_v54, %v4302_v50  ;;  %v3415_v4 = vadd.f32 %v4303_v54, %v3414_v63  ;;  %v3470_v6 = vmul.f32 %v4303_v54, %v4303_v54 }
 0x2e4   :  { %4078 = vst [vmem:[%s6271_s2 + $0x98] sm:$0xff] %v4038_v3   ;;  %v3518_v7 = vadd.f32 %v3517_v55, %v3470_v6  ;;  %v2637_v57 = vpop.f32.mrb[84].mxu1 }
 0x2e5   :  { %v3093_v8 = vpop.f32.mrb[80].mxu0  ;;  %v2639_v10 = vpop.f32.mrb[85].mxu1 }
 0x2e6   :  { %v4304_v11 = vadd.f32 %v3093_v8, %v2629_v52  ;;  %v4214_v23 = vpop.f32.mrb[81].mxu0  ;;  %v2640_v58 = vpop.f32.mrb[86].mxu1 }
 0x2e7   :  { %v3096_v13 = vpop.f32.mrb[82].mxu0  ;;  %v2642_v14 = vpop.f32.mrb[87].mxu1 }
 0x2e8   :  { %v3416_v15 = vadd.f32 %v4304_v11, %v3415_v4  ;;  %v3471_v26 = vmul.f32 %v4304_v11, %v4304_v11  ;;  %v4305_v60 = vadd.f32 %v3096_v13, %v2632_v59  ;;  %v4215_v17 = vpop.f32.mrb[83].mxu0 }
 0x2ea   :  { %v3519_v61 = vadd.f32 %v3518_v7, %v3471_v26  ;;  %v4043_v18 = vpack.c.bf16 %v4305_v60, %v4304_v11  ;;  %v3417_v20 = vadd.f32 %v4305_v60, %v3416_v15  ;;  %v3472_v21 = vmul.f32 %v4305_v60, %v4305_v60 }
 0x2ec   :  { %4079 = vst [vmem:[%s6271_s2 + $0xa0] sm:$0xff] %v4043_v18   ;;  %v3520_v37 = vadd.f32 %v3519_v61, %v3472_v21  ;;  %v2645_v22 = vpop.f32.mrb[88].mxu1 }
 0x2ed   :  { %v3101_v62 = vpop.f32.mrb[84].mxu0  ;;  %v2647_v31 = vpop.f32.mrb[89].mxu1 }
 0x2ee   :  { %v4306_v24 = vadd.f32 %v3101_v62, %v2637_v57  ;;  %v4218_v0 = vpop.f32.mrb[85].mxu0  ;;  %v2648_v2 = vpop.f32.mrb[90].mxu1 }
 0x2ef   :  { %v3104_v25 = vpop.f32.mrb[86].mxu0  ;;  %v2650_v34 = vpop.f32.mrb[91].mxu1 }
 0x2f0   :  { %v3418_v27 = vadd.f32 %v4306_v24, %v3417_v20  ;;  %v3473_v28 = vmul.f32 %v4306_v24, %v4306_v24  ;;  %v4307_v29 = vadd.f32 %v3104_v25, %v2640_v58  ;;  %v4219_v5 = vpop.f32.mrb[87].mxu0 }
 0x2f2   :  { %v3521_v30 = vadd.f32 %v3520_v37, %v3473_v28  ;;  %v4048_v32 = vpack.c.bf16 %v4307_v29, %v4306_v24  ;;  %v3419_v33 = vadd.f32 %v4307_v29, %v3418_v27  ;;  %v3474_v40 = vmul.f32 %v4307_v29, %v4307_v29 }
 0x2f4   :  { %4080 = vst [vmem:[%s6271_s2 + $0xa8] sm:$0xff] %v4048_v32   ;;  %v3522_v44 = vadd.f32 %v3521_v30, %v3474_v40  ;;  %v2653_v35 = vpop.f32.mrb[92].mxu1 }
 0x2f5   :  { %v3109_v36 = vpop.f32.mrb[88].mxu0  ;;  %v2655_v39 = vpop.f32.mrb[93].mxu1 }
 0x2f6   :  { %v4308_v43 = vadd.f32 %v3109_v36, %v2645_v22  ;;  %v4222_v9 = vpop.f32.mrb[89].mxu0  ;;  %v2656_v41 = vpop.f32.mrb[94].mxu1 }
 0x2f7   :  { %v3112_v47 = vpop.f32.mrb[90].mxu0  ;;  %v2658_v42 = vpop.f32.mrb[95].mxu1 }
 0x2f8   :  { %v3420_v45 = vadd.f32 %v4308_v43, %v3419_v33  ;;  %v3475_v12 = vmul.f32 %v4308_v43, %v4308_v43  ;;  %v4309_v46 = vadd.f32 %v3112_v47, %v2648_v2  ;;  %v4223_v48 = vpop.f32.mrb[91].mxu0 }
 0x2fa   :  { %v3523_v49 = vadd.f32 %v3522_v44, %v3475_v12  ;;  %v4053_v52 = vpack.c.bf16 %v4309_v46, %v4308_v43  ;;  %v3421_v53 = vadd.f32 %v4309_v46, %v3420_v45  ;;  %v3476_v56 = vmul.f32 %v4309_v46, %v4309_v46 }
 0x2fc   :  { %4081 = vst [vmem:[%s6271_s2 + $0xb0] sm:$0xff] %v4053_v52   ;;  %v3524_v50 = vadd.f32 %v3523_v49, %v3476_v56  ;;  %v2661_v51 = vpop.f32.mrb[96].mxu1 }
 0x2fd   :  { %v3117_v59 = vpop.f32.mrb[92].mxu0  ;;  %v2663_v16 = vpop.f32.mrb[97].mxu1 }
 0x2fe   :  { %v4310_v38 = vadd.f32 %v3117_v59, %v2653_v35  ;;  %v4226_v63 = vpop.f32.mrb[93].mxu0  ;;  %v2664_v1 = vpop.f32.mrb[98].mxu1 }
 0x2ff   :  { %v3120_v54 = vpop.f32.mrb[94].mxu0  ;;  %v2665_v19 = vpop.f32.mrb[99].mxu1 }
 0x300   :  { %v3422_v55 = vadd.f32 %v4310_v38, %v3421_v53  ;;  %v3477_v3 = vmul.f32 %v4310_v38, %v4310_v38  ;;  %v4311_v4 = vadd.f32 %v3120_v54, %v2656_v41  ;;  %v4227_v6 = vpop.f32.mrb[95].mxu0 }
 0x302   :  { %v3525_v7 = vadd.f32 %v3524_v50, %v3477_v3  ;;  %v4058_v57 = vpack.c.bf16 %v4311_v4, %v4310_v38  ;;  %v3423_v8 = vadd.f32 %v4311_v4, %v3422_v55  ;;  %v3478_v10 = vmul.f32 %v4311_v4, %v4311_v4 }
 0x304   :  { %4082 = vst [vmem:[%s6271_s2 + $0xb8] sm:$0xff] %v4058_v57   ;;  %v3526_v11 = vadd.f32 %v3525_v7, %v3478_v10 }
 0x305   :  { %v3125_v23 = vpop.f32.mrb[96].mxu0 }
 0x306   :  { %v4312_v58 = vadd.f32 %v3125_v23, %v2661_v51  ;;  %v4230_v13 = vpop.f32.mrb[97].mxu0 }
 0x307   :  { %v3128_v14 = vpop.f32.mrb[98].mxu0 }
 0x308   :  { %v3939_v15 = vpack.c.bf16 %v4312_v58, %v4312_v58  ;;  %v3424_v26 = vadd.f32 %v4312_v58, %v3423_v8  ;;  %v3479_v60 = vmul.f32 %v4312_v58, %v4312_v58  ;;  %v4231_v17 = vpop.f32.mrb[99].mxu0 }
 0x30a   :  { %3376 = vst [vmem:[%s6271_s2 + $0xc0] sm:$0xf] %v3939_v15  ;;  %v3425_v61 = vrot.slane %v3424_v26, 4  ;;  %v3527_v18 = vadd.f32 %v3526_v11, %v3479_v60 }
 0x30c   :  { %v3426_v20 = vadd.f32 %v3425_v61, %v3424_v26  ;;  %v3528_v21 = vrot.slane %v3527_v18, 4 }
 0x30e   :  { %v3427_v37 = vrot.slane %v3426_v20, 2  ;;  %v3529_v22 = vadd.f32 %v3528_v21, %v3527_v18 }
 0x310   :  { %v3428_v62 = vadd.f32 %v3427_v37, %v3426_v20  ;;  %v3530_v31 = vrot.slane %v3529_v22, 2 }
 0x312   :  { %v3429_v24 = vrot.slane %v3428_v62, 1  ;;  %v3531_v0 = vadd.f32 %v3530_v31, %v3529_v22 }
 0x314   :  { %v3532_v2 = vrot.slane %v3531_v0, 1  ;;  %v3430_v25 = vadd.f32 %v3429_v24, %v3428_v62 }
 0x316   :  { %v3533_v34 = vadd.f32 %v3532_v2, %v3531_v0 }
 0x318   :  { %v3535_v27 = vsel %vm3534_vm1, %v3430_v25, %v3533_v34 }
 0x319   :  { %3536 = vst [vmem:[%s6272_s3] sm:$0x3] %v3535_v27 }

// kernel: usps_feature_extractor.14
= control target key start
LH: loop header
LB: loop body
LE: loop exit
PB: predicated region body
PF: predicated region fallthrough
CT: control target
= control target key end

     0   :  { %vm1551_vm0 = vcmask 1040384   ;;  %s2698_s1 = inlined_call_operand.vmem [shape: bf16[1152,256], index: 1, kind: input, shape index: {}]   ;;  %s2699_s0 = inlined_call_operand.vmem [shape: bf16[56,1152], index: 0, kind: input, shape index: {}]   ;;  %s2700_s2 = inlined_call_operand.vmem [shape: bf16[56,256], index: 2, kind: output, shape index: {0}]   ;;  %s2701_s3 = inlined_call_operand.vmem [shape: f32[1,2,256], index: 3, kind: output, shape index: {1}]  }
   0x1   :  { %v1846_v0 = vld [vmem:[%s2698_s1 + $0x4] ss:$8 sps:$4 sm:$0xff]   ;;  %v1850_v2 = vld [vmem:[%s2698_s1] ss:$8 sps:$4 sm:$0xff]   ;;  %v1852_v4 = vld [vmem:[%s2698_s1 + $0x14] ss:$8 sps:$4 sm:$0xff]  }
   0x2   :  { %v1848_v1 = vld [vmem:[%s2698_s1 + $0x204] ss:$8 sps:$4 sm:$0xff]   ;;  %1083 = vmatprep.subr.bf16.mxu1 %v1846_v0  ;;  %v1851_v3 = vld [vmem:[%s2698_s1 + $0x200] ss:$8 sps:$4 sm:$0xff]   ;;  %v1854_v5 = vld [vmem:[%s2698_s1 + $0x214] ss:$8 sps:$4 sm:$0xff]  }
   0x3   :  { %1225 = vmatprep.subr.bf16.mxu0 %v1848_v1  ;;  %1084 = vmatpush1.bf16.msra.mxu1 %v1850_v2  ;;  %v1856_v6 = vld [vmem:[%s2698_s1 + $0x10] ss:$8 sps:$4 sm:$0xff]   ;;  %v1858_v8 = vld [vmem:[%s2698_s1 + $0x24] ss:$8 sps:$4 sm:$0xff]   ;;  %v1862_v10 = vld [vmem:[%s2698_s1 + $0x20] ss:$8 sps:$4 sm:$0xff]  }
   0x4   :  { %1226 = vmatpush1.bf16.msra.mxu0 %v1851_v3  ;;  %1085 = vmatprep.subr.bf16.mxu1 %v1852_v4  ;;  %v1857_v7 = vld [vmem:[%s2698_s1 + $0x210] ss:$8 sps:$4 sm:$0xff]   ;;  %v1860_v9 = vld [vmem:[%s2698_s1 + $0x224] ss:$8 sps:$4 sm:$0xff]   ;;  %v1863_v11 = vld [vmem:[%s2698_s1 + $0x220] ss:$8 sps:$4 sm:$0xff]  }
   0x5   :  { %1227 = vmatprep.subr.bf16.mxu0 %v1854_v5  ;;  %v1864_v12 = vld [vmem:[%s2698_s1 + $0x34] ss:$8 sps:$4 sm:$0xff]   ;;  %v1868_v14 = vld [vmem:[%s2698_s1 + $0x30] ss:$8 sps:$4 sm:$0xff]   ;;  %v1870_v16 = vld [vmem:[%s2698_s1 + $0x44] ss:$8 sps:$4 sm:$0xff]  }
   0x6   :  { %v1866_v13 = vld [vmem:[%s2698_s1 + $0x234] ss:$8 sps:$4 sm:$0xff]   ;;  %v1869_v15 = vld [vmem:[%s2698_s1 + $0x230] ss:$8 sps:$4 sm:$0xff]   ;;  %v1872_v17 = vld [vmem:[%s2698_s1 + $0x244] ss:$8 sps:$4 sm:$0xff]  }
   0x7   :  { %1086 = vmatpush1.bf16.msra.mxu1 %v1856_v6  ;;  %v1874_v18 = vld [vmem:[%s2698_s1 + $0x40] ss:$8 sps:$4 sm:$0xff]   ;;  %v1876_v20 = vld [vmem:[%s2698_s1 + $0x54] ss:$8 sps:$4 sm:$0xff]   ;;  %v1880_v22 = vld [vmem:[%s2698_s1 + $0x50] ss:$8 sps:$4 sm:$0xff]  }
   0x8   :  { %1228 = vmatpush1.bf16.msra.mxu0 %v1857_v7  ;;  %1087 = vmatprep.subr.bf16.mxu1 %v1858_v8  ;;  %v1875_v19 = vld [vmem:[%s2698_s1 + $0x240] ss:$8 sps:$4 sm:$0xff]   ;;  %v1878_v21 = vld [vmem:[%s2698_s1 + $0x254] ss:$8 sps:$4 sm:$0xff]   ;;  %v1881_v23 = vld [vmem:[%s2698_s1 + $0x250] ss:$8 sps:$4 sm:$0xff]  }
   0x9   :  { %1229 = vmatprep.subr.bf16.mxu0 %v1860_v9  ;;  %v1882_v24 = vld [vmem:[%s2698_s1 + $0x64] ss:$8 sps:$4 sm:$0xff]   ;;  %v1886_v26 = vld [vmem:[%s2698_s1 + $0x60] ss:$8 sps:$4 sm:$0xff]   ;;  %v1888_v28 = vld [vmem:[%s2698_s1 + $0x74] ss:$8 sps:$4 sm:$0xff]  }
   0xa   :  { %v1884_v25 = vld [vmem:[%s2698_s1 + $0x264] ss:$8 sps:$4 sm:$0xff]   ;;  %v1887_v27 = vld [vmem:[%s2698_s1 + $0x260] ss:$8 sps:$4 sm:$0xff]   ;;  %v1890_v29 = vld [vmem:[%s2698_s1 + $0x274] ss:$8 sps:$4 sm:$0xff]  }
   0xb   :  { %1088 = vmatpush1.bf16.msra.mxu1 %v1862_v10  ;;  %v1892_v30 = vld [vmem:[%s2698_s1 + $0x70] ss:$8 sps:$4 sm:$0xff]   ;;  %v1894_v32 = vld [vmem:[%s2698_s1 + $0x84] ss:$8 sps:$4 sm:$0xff]   ;;  %v1898_v34 = vld [vmem:[%s2698_s1 + $0x80] ss:$8 sps:$4 sm:$0xff]  }
   0xc   :  { %1230 = vmatpush1.bf16.msra.mxu0 %v1863_v11  ;;  %1089 = vmatprep.subr.bf16.mxu1 %v1864_v12  ;;  %v1893_v31 = vld [vmem:[%s2698_s1 + $0x270] ss:$8 sps:$4 sm:$0xff]   ;;  %v1896_v33 = vld [vmem:[%s2698_s1 + $0x284] ss:$8 sps:$4 sm:$0xff]   ;;  %v1899_v35 = vld [vmem:[%s2698_s1 + $0x280] ss:$8 sps:$4 sm:$0xff]  }
   0xd   :  { %1231 = vmatprep.subr.bf16.mxu0 %v1866_v13  ;;  %v1900_v36 = vld [vmem:[%s2698_s1 + $0x94] ss:$8 sps:$4 sm:$0xff]   ;;  %v1904_v38 = vld [vmem:[%s2698_s1 + $0x90] ss:$8 sps:$4 sm:$0xff]   ;;  %v1906_v40 = vld [vmem:[%s2698_s1 + $0xa4] ss:$8 sps:$4 sm:$0xff]  }
   0xe   :  { %v1902_v37 = vld [vmem:[%s2698_s1 + $0x294] ss:$8 sps:$4 sm:$0xff]   ;;  %v1905_v39 = vld [vmem:[%s2698_s1 + $0x290] ss:$8 sps:$4 sm:$0xff]   ;;  %v1908_v41 = vld [vmem:[%s2698_s1 + $0x2a4] ss:$8 sps:$4 sm:$0xff]  }
   0xf   :  { %1090 = vmatpush1.bf16.msra.mxu1 %v1868_v14  ;;  %v1910_v42 = vld [vmem:[%s2698_s1 + $0xa0] ss:$8 sps:$4 sm:$0xff]   ;;  %v1912_v44 = vld [vmem:[%s2698_s1 + $0xb4] ss:$8 sps:$4 sm:$0xff]   ;;  %v1916_v46 = vld [vmem:[%s2698_s1 + $0xb0] ss:$8 sps:$4 sm:$0xff]  }
  0x10   :  { %1232 = vmatpush1.bf16.msra.mxu0 %v1869_v15  ;;  %1091 = vmatprep.subr.bf16.mxu1 %v1870_v16  ;;  %v1911_v43 = vld [vmem:[%s2698_s1 + $0x2a0] ss:$8 sps:$4 sm:$0xff]   ;;  %v1914_v45 = vld [vmem:[%s2698_s1 + $0x2b4] ss:$8 sps:$4 sm:$0xff]   ;;  %v1917_v47 = vld [vmem:[%s2698_s1 + $0x2b0] ss:$8 sps:$4 sm:$0xff]  }
  0x11   :  { %1233 = vmatprep.subr.bf16.mxu0 %v1872_v17  ;;  %v1944_v48 = vld [vmem:[%s2699_s0 + $0x4] ss:$36 sps:$4 sm:$0xff]   ;;  %v1950_v51 = vld [vmem:[%s2699_s0 + $0x14] ss:$36 sps:$4 sm:$0xff]  }
  0x12   :  { %v1918_v49 = vld [vmem:[%s2698_s1 + $0xc4] ss:$8 sps:$4 sm:$0xff]   ;;  %1115 = vmatprep.mubr.bf16.mxu1 %v1944_v48  ;;  %v1922_v52 = vld [vmem:[%s2698_s1 + $0xc0] ss:$8 sps:$4 sm:$0xff]   ;;  %v1924_v54 = vld [vmem:[%s2698_s1 + $0xd4] ss:$8 sps:$4 sm:$0xff]   ;;  %1257 = vmatprep.mubr.bf16.mxu0 %v1950_v51 }
  0x13   :  { %1092 = vmatpush1.bf16.msra.mxu1 %v1874_v18  ;;  %v1920_v50 = vld [vmem:[%s2698_s1 + $0x2c4] ss:$8 sps:$4 sm:$0xff]   ;;  %v1923_v53 = vld [vmem:[%s2698_s1 + $0x2c0] ss:$8 sps:$4 sm:$0xff]   ;;  %v1926_v55 = vld [vmem:[%s2698_s1 + $0x2d4] ss:$8 sps:$4 sm:$0xff]  }
  0x14   :  { %1234 = vmatpush1.bf16.msra.mxu0 %v1875_v19  ;;  %1093 = vmatprep.subr.bf16.mxu1 %v1876_v20  ;;  %v1928_v56 = vld [vmem:[%s2698_s1 + $0xd0] ss:$8 sps:$4 sm:$0xff]   ;;  %v1930_v58 = vld [vmem:[%s2698_s1 + $0xe4] ss:$8 sps:$4 sm:$0xff]   ;;  %v1934_v60 = vld [vmem:[%s2698_s1 + $0xe0] ss:$8 sps:$4 sm:$0xff]  }
  0x15   :  { %1235 = vmatprep.subr.bf16.mxu0 %v1878_v21  ;;  %v1929_v57 = vld [vmem:[%s2698_s1 + $0x2d0] ss:$8 sps:$4 sm:$0xff]   ;;  %v1932_v59 = vld [vmem:[%s2698_s1 + $0x2e4] ss:$8 sps:$4 sm:$0xff]   ;;  %v1935_v61 = vld [vmem:[%s2698_s1 + $0x2e0] ss:$8 sps:$4 sm:$0xff]  }
  0x16   :  { %v1936_v62 = vld [vmem:[%s2698_s1 + $0xf4] ss:$8 sps:$4 sm:$0xff]   ;;  %v1940_v0 = vld [vmem:[%s2698_s1 + $0xf0] ss:$8 sps:$4 sm:$0xff]   ;;  %v1947_v2 = vld [vmem:[%s2698_s1 + $0x104] ss:$8 sps:$4 sm:$0xff]  }
  0x17   :  { %1094 = vmatpush1.bf16.msra.mxu1 %v1880_v22  ;;  %v1938_v63 = vld [vmem:[%s2698_s1 + $0x2f4] ss:$8 sps:$4 sm:$0xff]   ;;  %v1941_v1 = vld [vmem:[%s2698_s1 + $0x2f0] ss:$8 sps:$4 sm:$0xff]   ;;  %v1953_v3 = vld [vmem:[%s2698_s1 + $0x304] ss:$8 sps:$4 sm:$0xff]  }
  0x18   :  { %1236 = vmatpush1.bf16.msra.mxu0 %v1881_v23  ;;  %1095 = vmatprep.subr.bf16.mxu1 %v1882_v24  ;;  %v1942_v4 = vld [vmem:[%s2699_s0] ss:$36 sps:$4 sm:$0xff]   ;;  %v1948_v6 = vld [vmem:[%s2699_s0 + $0x10] ss:$36 sps:$4 sm:$0xff]   ;;  %v2012_v20 = vld [vmem:[%s2699_s0 + $0x48] ss:$36 sps:$4 sm:$0xff]  }
  0x19   :  { %1237 = vmatprep.subr.bf16.mxu0 %v1884_v25  ;;  %v1945_v5 = vld [vmem:[%s2698_s1 + $0x100] ss:$8 sps:$4 sm:$0xff]   ;;  %v1956_v8 = vld [vmem:[%s2698_s1 + $0x114] ss:$8 sps:$4 sm:$0xff]   ;;  %v1954_v10 = vld [vmem:[%s2698_s1 + $0x110] ss:$8 sps:$4 sm:$0xff]  }
  0x1a   :  { %v1951_v7 = vld [vmem:[%s2698_s1 + $0x300] ss:$8 sps:$4 sm:$0xff]   ;;  %v1959_v9 = vld [vmem:[%s2698_s1 + $0x314] ss:$8 sps:$4 sm:$0xff]   ;;  %v1957_v11 = vld [vmem:[%s2698_s1 + $0x310] ss:$8 sps:$4 sm:$0xff]  }
  0x1b   :  { %1096 = vmatpush1.bf16.msra.mxu1 %v1886_v26  ;;  %v1962_v12 = vld [vmem:[%s2698_s1 + $0x124] ss:$8 sps:$4 sm:$0xff]   ;;  %v1960_v14 = vld [vmem:[%s2698_s1 + $0x120] ss:$8 sps:$4 sm:$0xff]   ;;  %v1968_v16 = vld [vmem:[%s2698_s1 + $0x134] ss:$8 sps:$4 sm:$0xff]  }
  0x1c   :  { %1238 = vmatpush1.bf16.msra.mxu0 %v1887_v27  ;;  %1097 = vmatprep.subr.bf16.mxu1 %v1888_v28  ;;  %v1965_v13 = vld [vmem:[%s2698_s1 + $0x324] ss:$8 sps:$4 sm:$0xff]   ;;  %v1963_v15 = vld [vmem:[%s2698_s1 + $0x320] ss:$8 sps:$4 sm:$0xff]   ;;  %v1971_v17 = vld [vmem:[%s2698_s1 + $0x334] ss:$8 sps:$4 sm:$0xff]  }
  0x1d   :  { %1239 = vmatprep.subr.bf16.mxu0 %v1890_v29  ;;  %v2008_v18 = vld [vmem:[%s2699_s0 + $0x4c] ss:$36 sps:$4 sm:$0xff]   ;;  %v2010_v19 = vld [vmem:[%s2699_s0 + $0x5c] ss:$36 sps:$4 sm:$0xff]  }
  0x1e   :  { %v1966_v21 = vld [vmem:[%s2698_s1 + $0x130] ss:$8 sps:$4 sm:$0xff]   ;;  %v1974_v24 = vld [vmem:[%s2698_s1 + $0x144] ss:$8 sps:$4 sm:$0xff]   ;;  %v1972_v26 = vld [vmem:[%s2698_s1 + $0x140] ss:$8 sps:$4 sm:$0xff]  }
  0x1f   :  { %1098 = vmatpush1.bf16.msra.mxu1 %v1892_v30  ;;  %v1969_v22 = vld [vmem:[%s2698_s1 + $0x330] ss:$8 sps:$4 sm:$0xff]   ;;  %v1977_v25 = vld [vmem:[%s2698_s1 + $0x344] ss:$8 sps:$4 sm:$0xff]   ;;  %v1975_v27 = vld [vmem:[%s2698_s1 + $0x340] ss:$8 sps:$4 sm:$0xff]  }
  0x20   :  { %1240 = vmatpush1.bf16.msra.mxu0 %v1893_v31  ;;  %1099 = vmatprep.subr.bf16.mxu1 %v1894_v32  ;;  %v2016_v23 = vld [vmem:[%s2699_s0 + $0x58] ss:$36 sps:$4 sm:$0xff]   ;;  %v2028_v31 = vld [vmem:[%s2699_s0 + $0xa4] ss:$36 sps:$4 sm:$0xff]   ;;  %v2030_v32 = vld [vmem:[%s2699_s0 + $0x90] ss:$36 sps:$4 sm:$0xff]  }
  0x21   :  { %1241 = vmatprep.subr.bf16.mxu0 %v1896_v33  ;;  %v1980_v28 = vld [vmem:[%s2698_s1 + $0x154] ss:$8 sps:$4 sm:$0xff]   ;;  %v1978_v33 = vld [vmem:[%s2698_s1 + $0x150] ss:$8 sps:$4 sm:$0xff]   ;;  %v2001_v51 = vld [vmem:[%s2698_s1 + $0x384] ss:$8 sps:$4 sm:$0xff]  }
  0x22   :  { %v1983_v29 = vld [vmem:[%s2698_s1 + $0x354] ss:$8 sps:$4 sm:$0xff]   ;;  %v1990_v48 = vld [vmem:[%s2698_s1 + $0x170] ss:$8 sps:$4 sm:$0xff]  }
  0x23   :  { %1100 = vmatpush1.bf16.msra.mxu1 %v1898_v34  ;;  %v2026_v30 = vld [vmem:[%s2699_s0 + $0x94] ss:$36 sps:$4 sm:$0xff]  }
  0x24   :  { %1242 = vmatpush1.bf16.msra.mxu0 %v1899_v35  ;;  %1101 = vmatprep.subr.bf16.mxu1 %v1900_v36  ;;  %v1981_v34 = vld [vmem:[%s2698_s1 + $0x350] ss:$8 sps:$4 sm:$0xff]   ;;  %v2034_v35 = vld [vmem:[%s2699_s0 + $0xa0] ss:$36 sps:$4 sm:$0xff]  }
  0x25   :  { %1243 = vmatprep.subr.bf16.mxu0 %v1902_v37  ;;  %v1986_v36 = vld [vmem:[%s2698_s1 + $0x164] ss:$8 sps:$4 sm:$0xff]  }
  0x26   :  { %v1989_v37 = vld [vmem:[%s2698_s1 + $0x364] ss:$8 sps:$4 sm:$0xff]  }
  0x27   :  { %1102 = vmatpush1.bf16.msra.mxu1 %v1904_v38  ;;  %v1984_v38 = vld [vmem:[%s2698_s1 + $0x160] ss:$8 sps:$4 sm:$0xff]  }
  0x28   :  { %1244 = vmatpush1.bf16.msra.mxu0 %v1905_v39  ;;  %1103 = vmatprep.subr.bf16.mxu1 %v1906_v40  ;;  %v1987_v39 = vld [vmem:[%s2698_s1 + $0x360] ss:$8 sps:$4 sm:$0xff]   ;;  %v44_v40 = vld [vmem:[%s2699_s0 + $0xd8] sm:$0xff] }
  0x29   :  { %1245 = vmatprep.subr.bf16.mxu0 %v1908_v41  ;;  %v46_v41 = vld [vmem:[%s2699_s0 + $0xe8] sm:$0xff] }
  0x2b   :  { %1104 = vmatpush1.bf16.msra.mxu1 %v1910_v42  ;;  %v1992_v42 = vld [vmem:[%s2698_s1 + $0x174] ss:$8 sps:$4 sm:$0xff]  }
  0x2c   :  { %1246 = vmatpush1.bf16.msra.mxu0 %v1911_v43  ;;  %1105 = vmatprep.subr.bf16.mxu1 %v1912_v44  ;;  %v1995_v43 = vld [vmem:[%s2698_s1 + $0x374] ss:$8 sps:$4 sm:$0xff]   ;;  %v1602_v44 = vcombine.high %v44_v40, %v44_v40 }
  0x2d   :  { %1247 = vmatprep.subr.bf16.mxu0 %v1914_v45  ;;  %v1606_v45 = vcombine.high %v46_v41, %v46_v41 }
  0x2f   :  { %1106 = vmatpush1.bf16.msra.mxu1 %v1916_v46  ;;  %v1601_v46 = vcombine.low %v44_v40, %v44_v40  ;;  %v47_v40 = vld [vmem:[%s2699_s0 + $0xf0] sm:$0xff] }
  0x30   :  { %1248 = vmatpush1.bf16.msra.mxu0 %v1917_v47  ;;  %1107 = vmatprep.subr.bf16.mxu1 %v1918_v49  ;;  %v1605_v47 = vcombine.low %v46_v41, %v46_v41  ;;  %v1993_v49 = vld [vmem:[%s2698_s1 + $0x370] ss:$8 sps:$4 sm:$0xff]   ;;  %v2090_v41 = vld [vmem:[%s2698_s1 + $0x440] ss:$8 sps:$4 sm:$0xff]  }
  0x31   :  { %1249 = vmatprep.subr.bf16.mxu0 %v1920_v50  ;;  %v1998_v50 = vld [vmem:[%s2698_s1 + $0x184] ss:$8 sps:$4 sm:$0xff]  }
  0x33   :  { %1108 = vmatpush1.bf16.msra.mxu1 %v1922_v52  ;;  %v1996_v52 = vld [vmem:[%s2698_s1 + $0x180] ss:$8 sps:$4 sm:$0xff]  }
  0x34   :  { %1250 = vmatpush1.bf16.msra.mxu0 %v1923_v53  ;;  %1109 = vmatprep.subr.bf16.mxu1 %v1924_v54  ;;  %v2062_v53 = vld [vmem:[%s2699_s0 + $0xc] ss:$36 sps:$4 sm:$0xff]   ;;  %v1999_v54 = vld [vmem:[%s2698_s1 + $0x380] ss:$8 sps:$4 sm:$0xff]  }
  0x35   :  { %1251 = vmatprep.subr.bf16.mxu0 %v1926_v55  ;;  %v2065_v55 = vld [vmem:[%s2699_s0 + $0x1c] ss:$36 sps:$4 sm:$0xff]  }
  0x37   :  { %1110 = vmatpush1.bf16.msra.mxu1 %v1928_v56  ;;  %v2004_v56 = vld [vmem:[%s2698_s1 + $0x194] ss:$8 sps:$4 sm:$0xff]  }
  0x38   :  { %1252 = vmatpush1.bf16.msra.mxu0 %v1929_v57  ;;  %1111 = vmatprep.subr.bf16.mxu1 %v1930_v58  ;;  %v2007_v57 = vld [vmem:[%s2698_s1 + $0x394] ss:$8 sps:$4 sm:$0xff]   ;;  %v2002_v58 = vld [vmem:[%s2698_s1 + $0x190] ss:$8 sps:$4 sm:$0xff]  }
  0x39   :  { %1253 = vmatprep.subr.bf16.mxu0 %v1932_v59  ;;  %v2005_v59 = vld [vmem:[%s2698_s1 + $0x390] ss:$8 sps:$4 sm:$0xff]  }
  0x3b   :  { %1112 = vmatpush1.bf16.msra.mxu1 %v1934_v60  ;;  %v2015_v60 = vld [vmem:[%s2698_s1 + $0x1a4] ss:$8 sps:$4 sm:$0xff]  }
  0x3c   :  { %1254 = vmatpush1.bf16.msra.mxu0 %v1935_v61  ;;  %1113 = vmatprep.subr.bf16.mxu1 %v1936_v62  ;;  %v2019_v61 = vld [vmem:[%s2698_s1 + $0x3a4] ss:$8 sps:$4 sm:$0xff]   ;;  %v2013_v62 = vld [vmem:[%s2698_s1 + $0x1a0] ss:$8 sps:$4 sm:$0xff]  }
  0x3d   :  { %1255 = vmatprep.subr.bf16.mxu0 %v1938_v63  ;;  %v2017_v63 = vld [vmem:[%s2698_s1 + $0x3a0] ss:$8 sps:$4 sm:$0xff]  }
  0x3f   :  { %1114 = vmatpush1.bf16.msra.mxu1 %v1940_v0  ;;  %v2022_v0 = vld [vmem:[%s2698_s1 + $0x1b4] ss:$8 sps:$4 sm:$0xff]  }
  0x40   :  { %1256 = vmatpush1.bf16.msra.mxu0 %v1941_v1  ;;  %1154 = vmatprep.subr.bf16.mxu1 %v1947_v2  ;;  %v2025_v1 = vld [vmem:[%s2698_s1 + $0x3b4] ss:$8 sps:$4 sm:$0xff]   ;;  %v2020_v2 = vld [vmem:[%s2698_s1 + $0x1b0] ss:$8 sps:$4 sm:$0xff]  }
  0x41   :  { %1296 = vmatprep.subr.bf16.mxu0 %v1953_v3  ;;  %v2023_v3 = vld [vmem:[%s2698_s1 + $0x3b0] ss:$8 sps:$4 sm:$0xff]  }
  0x42   :  { %1116 = vmatmul.mubr.bf16.vlgmr.msra.gmra.mrb[0].mxu1 %v1942_v4  ;;  %v2033_v4 = vld [vmem:[%s2698_s1 + $0x1c4] ss:$8 sps:$4 sm:$0xff]  }
  0x43   :  { %1258 = vmatmul.mubr.bf16.vlgmr.msra.gmra.mrb[0].mxu0 %v1948_v6  ;;  %1155 = vmatpush1.bf16.msra.mxu1 %v1945_v5  ;;  %v2037_v5 = vld [vmem:[%s2698_s1 + $0x3c4] ss:$8 sps:$4 sm:$0xff]   ;;  %v2031_v6 = vld [vmem:[%s2698_s1 + $0x1c0] ss:$8 sps:$4 sm:$0xff]  }
  0x44   :  { %1297 = vmatpush1.bf16.msra.mxu0 %v1951_v7  ;;  %1156 = vmatprep.subr.bf16.mxu1 %v1956_v8  ;;  %v2035_v7 = vld [vmem:[%s2698_s1 + $0x3c0] ss:$8 sps:$4 sm:$0xff]   ;;  %v2040_v8 = vld [vmem:[%s2698_s1 + $0x1d4] ss:$8 sps:$4 sm:$0xff]  }
  0x45   :  { %1298 = vmatprep.subr.bf16.mxu0 %v1959_v9  ;;  %1125 = vmatprep.mubr.bf16.mxu1 %v2008_v18  ;;  %v2043_v9 = vld [vmem:[%s2698_s1 + $0x3d4] ss:$8 sps:$4 sm:$0xff]   ;;  %v2054_v18 = vld [vmem:[%s2698_s1 + $0x1f0] ss:$8 sps:$4 sm:$0xff]  }
  0x46   :  { %1267 = vmatprep.mubr.bf16.mxu0 %v2010_v19  ;;  %v2057_v19 = vld [vmem:[%s2698_s1 + $0x3f0] ss:$8 sps:$4 sm:$0xff]  }
  0x47   :  { %1157 = vmatpush1.bf16.msra.mxu1 %v1954_v10  ;;  %v2038_v10 = vld [vmem:[%s2698_s1 + $0x1d0] ss:$8 sps:$4 sm:$0xff]  }
  0x48   :  { %1299 = vmatpush1.bf16.msra.mxu0 %v1957_v11  ;;  %1158 = vmatprep.subr.bf16.mxu1 %v1962_v12  ;;  %v2041_v11 = vld [vmem:[%s2698_s1 + $0x3d0] ss:$8 sps:$4 sm:$0xff]   ;;  %v2049_v12 = vld [vmem:[%s2698_s1 + $0x1e4] ss:$8 sps:$4 sm:$0xff]  }
  0x49   :  { %1300 = vmatprep.subr.bf16.mxu0 %v1965_v13  ;;  %v2053_v13 = vld [vmem:[%s2698_s1 + $0x3e4] ss:$8 sps:$4 sm:$0xff]  }
  0x4a   :  { %1126 = vmatmul.mubr.bf16.gmra.mrb[4].mxu1 %v2012_v20  ;;  %v2068_v20 = vld [vmem:[%s2698_s1 + $0x404] ss:$8 sps:$4 sm:$0xff]  }
  0x4b   :  { %1159 = vmatpush1.bf16.msra.mxu1 %v1960_v14  ;;  %1268 = vmatmul.mubr.bf16.gmra.mrb[4].mxu0 %v2016_v23  ;;  %v2047_v14 = vld [vmem:[%s2698_s1 + $0x1e0] ss:$8 sps:$4 sm:$0xff]  }
  0x4c   :  { %1301 = vmatpush1.bf16.msra.mxu0 %v1963_v15  ;;  %1160 = vmatprep.subr.bf16.mxu1 %v1968_v16  ;;  %v2051_v15 = vld [vmem:[%s2698_s1 + $0x3e0] ss:$8 sps:$4 sm:$0xff]   ;;  %v2056_v16 = vld [vmem:[%s2698_s1 + $0x1f4] ss:$8 sps:$4 sm:$0xff]  }
  0x4d   :  { %1302 = vmatprep.subr.bf16.mxu0 %v1971_v17  ;;  %1135 = vmatprep.mubr.bf16.mxu1 %v2026_v30  ;;  %v2059_v17 = vld [vmem:[%s2698_s1 + $0x3f4] ss:$8 sps:$4 sm:$0xff]   ;;  %v2066_v23 = vld [vmem:[%s2698_s1 + $0x400] ss:$8 sps:$4 sm:$0xff]  }
  0x4e   :  { %1277 = vmatprep.mubr.bf16.mxu0 %v2028_v31  ;;  %v2077_v30 = vld [vmem:[%s2699_s0 + $0x60] ss:$36 sps:$4 sm:$0xff]  }
  0x4f   :  { %1161 = vmatpush1.bf16.msra.mxu1 %v1966_v21  ;;  %v2060_v21 = vld [vmem:[%s2699_s0 + $0x8] ss:$36 sps:$4 sm:$0xff]  }
  0x50   :  { %1303 = vmatpush1.bf16.msra.mxu0 %v1969_v22  ;;  %1162 = vmatprep.subr.bf16.mxu1 %v1974_v24  ;;  %v2063_v22 = vld [vmem:[%s2699_s0 + $0x18] ss:$36 sps:$4 sm:$0xff]   ;;  %v2078_v31 = vld [vmem:[%s2698_s1 + $0x420] ss:$8 sps:$4 sm:$0xff]  }
  0x51   :  { %1304 = vmatprep.subr.bf16.mxu0 %v1977_v25  ;;  %v2071_v24 = vld [vmem:[%s2698_s1 + $0x414] ss:$8 sps:$4 sm:$0xff]  }
  0x52   :  { %1136 = vmatmul.mubr.bf16.gmra.mrb[8].mxu1 %v2030_v32  ;;  %v2072_v25 = vld [vmem:[%s2699_s0 + $0x54] ss:$36 sps:$4 sm:$0xff]  }
  0x53   :  { %1163 = vmatpush1.bf16.msra.mxu1 %v1972_v26  ;;  %1278 = vmatmul.mubr.bf16.gmra.mrb[8].mxu0 %v2034_v35  ;;  %v2074_v26 = vld [vmem:[%s2699_s0 + $0x64] ss:$36 sps:$4 sm:$0xff]   ;;  %v2083_v32 = vld [vmem:[%s2698_s1 + $0x434] ss:$8 sps:$4 sm:$0xff]   ;;  %v2081_v35 = vld [vmem:[%s2698_s1 + $0x430] ss:$8 sps:$4 sm:$0xff]  }
  0x54   :  { %1305 = vmatpush1.bf16.msra.mxu0 %v1975_v27  ;;  %1164 = vmatprep.subr.bf16.mxu1 %v1980_v28  ;;  %v2069_v27 = vld [vmem:[%s2698_s1 + $0x410] ss:$8 sps:$4 sm:$0xff]   ;;  %v2080_v28 = vld [vmem:[%s2698_s1 + $0x424] ss:$8 sps:$4 sm:$0xff]  }
  0x55   :  { %1306 = vmatprep.subr.bf16.mxu0 %v1983_v29  ;;  %1145 = vmatprep.mubr.bf16.mxu1 %v1602_v44  ;;  %v2076_v29 = vld [vmem:[%s2699_s0 + $0x50] ss:$36 sps:$4 sm:$0xff]   ;;  %v1608_v44 = vcombine.high %v47_v40, %v47_v40 }
  0x56   :  { %1287 = vmatprep.mubr.bf16.mxu0 %v1606_v45  ;;  %v2093_v45 = vld [vmem:[%s2698_s1 + $0x450] ss:$8 sps:$4 sm:$0xff]  }
  0x57   :  { %1165 = vmatpush1.bf16.msra.mxu1 %v1978_v33  ;;  %v2084_v33 = vld [vmem:[%s2699_s0 + $0x9c] ss:$36 sps:$4 sm:$0xff]  }
  0x58   :  { %1307 = vmatpush1.bf16.msra.mxu0 %v1981_v34  ;;  %1166 = vmatprep.subr.bf16.mxu1 %v1986_v36  ;;  %v2086_v34 = vld [vmem:[%s2699_s0 + $0xac] ss:$36 sps:$4 sm:$0xff]  }
  0x59   :  { %1308 = vmatprep.subr.bf16.mxu0 %v1989_v37  ;;  %v2092_v36 = vld [vmem:[%s2698_s1 + $0x444] ss:$8 sps:$4 sm:$0xff]   ;;  %v2088_v37 = vld [vmem:[%s2699_s0 + $0x98] ss:$36 sps:$4 sm:$0xff]  }
  0x5a   :  { %1146 = vmatmul.mubr.bf16.gmra.mrb[12].mxu1 %v1601_v46  ;;  %v2102_v46 = vld [vmem:[%s2698_s1 + $0x464] ss:$8 sps:$4 sm:$0xff]  }
  0x5b   :  { %1167 = vmatpush1.bf16.msra.mxu1 %v1984_v38  ;;  %1288 = vmatmul.mubr.bf16.gmra.mrb[12].mxu0 %v1605_v47  ;;  %v2089_v38 = vld [vmem:[%s2699_s0 + $0xa8] ss:$36 sps:$4 sm:$0xff]  }
  0x5c   :  { %1309 = vmatpush1.bf16.msra.mxu0 %v1987_v39  ;;  %1168 = vmatprep.subr.bf16.mxu1 %v1992_v42  ;;  %v45_v39 = vld [vmem:[%s2699_s0 + $0xe0] sm:$0xff]  ;;  %v2095_v42 = vld [vmem:[%s2698_s1 + $0x454] ss:$8 sps:$4 sm:$0xff]  }
  0x5d   :  { %1310 = vmatprep.subr.bf16.mxu0 %v1995_v43  ;;  %1186 = vmatprep.mubr.bf16.mxu1 %v2062_v53  ;;  %v1604_v43 = vcombine.high %v45_v39, %v45_v39  ;;  %v1603_v47 = vcombine.low %v45_v39, %v45_v39  ;;  %v2106_v53 = vld [vmem:[%s2699_s0 + $0x20] ss:$36 sps:$4 sm:$0xff]  }
  0x5e   :  { %1328 = vmatprep.mubr.bf16.mxu0 %v2065_v55  ;;  %v2108_v55 = vld [vmem:[%s2699_s0 + $0x68] ss:$36 sps:$4 sm:$0xff]  }
  0x5f   :  { %1169 = vmatpush1.bf16.msra.mxu1 %v1990_v48  ;;  %v1607_v48 = vcombine.low %v47_v40, %v47_v40 }
  0x60   :  { %1311 = vmatpush1.bf16.msra.mxu0 %v1993_v49  ;;  %1170 = vmatprep.subr.bf16.mxu1 %v1998_v50  ;;  %v2100_v49 = vld [vmem:[%s2698_s1 + $0x460] ss:$8 sps:$4 sm:$0xff]   ;;  %v2105_v50 = vld [vmem:[%s2698_s1 + $0x474] ss:$8 sps:$4 sm:$0xff]  }
  0x61   :  { %1312 = vmatprep.subr.bf16.mxu0 %v2001_v51  ;;  %v2103_v51 = vld [vmem:[%s2698_s1 + $0x470] ss:$8 sps:$4 sm:$0xff]  }
  0x63   :  { %1171 = vmatpush1.bf16.msra.mxu1 %v1996_v52  ;;  %v2110_v52 = vmov 0  }
  0x64   :  { %1313 = vmatpush1.bf16.msra.mxu0 %v1999_v54  ;;  %1172 = vmatprep.subr.bf16.mxu1 %v2004_v56  ;;  %v2107_v54 = vld [vmem:[%s2699_s0 + $0xb0] ss:$36 sps:$4 sm:$0xff]   ;;  %v2109_v56 = vld [vmem:[%s2699_s0 + $0xf8] ss:$0 sps:$4 sm:$0xff]  }
  0x65   :  { %1314 = vmatprep.subr.bf16.mxu0 %v2007_v57 }
  0x67   :  { %1173 = vmatpush1.bf16.msra.mxu1 %v2002_v58 }
  0x68   :  { %1315 = vmatpush1.bf16.msra.mxu0 %v2005_v59  ;;  %1174 = vmatprep.subr.bf16.mxu1 %v2015_v60 }
  0x69   :  { %1316 = vmatprep.subr.bf16.mxu0 %v2019_v61 }
  0x6b   :  { %1175 = vmatpush1.bf16.msra.mxu1 %v2013_v62 }
  0x6c   :  { %1317 = vmatpush1.bf16.msra.mxu0 %v2017_v63  ;;  %1176 = vmatprep.subr.bf16.mxu1 %v2022_v0 }
  0x6d   :  { %1318 = vmatprep.subr.bf16.mxu0 %v2025_v1 }
  0x6f   :  { %1177 = vmatpush1.bf16.msra.mxu1 %v2020_v2 }
  0x70   :  { %1319 = vmatpush1.bf16.msra.mxu0 %v2023_v3  ;;  %1178 = vmatprep.subr.bf16.mxu1 %v2033_v4 }
  0x71   :  { %1320 = vmatprep.subr.bf16.mxu0 %v2037_v5 }
  0x73   :  { %1179 = vmatpush1.bf16.msra.mxu1 %v2031_v6 }
  0x74   :  { %1321 = vmatpush1.bf16.msra.mxu0 %v2035_v7  ;;  %1180 = vmatprep.subr.bf16.mxu1 %v2040_v8 }
  0x75   :  { %1322 = vmatprep.subr.bf16.mxu0 %v2043_v9 }
  0x77   :  { %1181 = vmatpush1.bf16.msra.mxu1 %v2038_v10 }
  0x78   :  { %1323 = vmatpush1.bf16.msra.mxu0 %v2041_v11  ;;  %1182 = vmatprep.subr.bf16.mxu1 %v2049_v12 }
  0x79   :  { %1324 = vmatprep.subr.bf16.mxu0 %v2053_v13 }
  0x7b   :  { %1183 = vmatpush1.bf16.msra.mxu1 %v2047_v14 }
  0x7c   :  { %1325 = vmatpush1.bf16.msra.mxu0 %v2051_v15  ;;  %1184 = vmatprep.subr.bf16.mxu1 %v2056_v16 }
  0x7d   :  { %1326 = vmatprep.subr.bf16.mxu0 %v2059_v17 }
  0x7f   :  { %1185 = vmatpush1.bf16.msra.mxu1 %v2054_v18 }
  0x80   :  { %1327 = vmatpush1.bf16.msra.mxu0 %v2057_v19  ;;  %1769 = vmatprep.subr.bf16.mxu1 %v2068_v20 }
  0x81   :  { %1367 = vmatprep.subr.bf16.mxu0 %v2068_v20 }
  0x82   :  { %1187 = vmatmul.mubr.bf16.vlgmr.msra.gmra.mrb[0].mxu1 %v2060_v21 }
  0x83   :  { %1329 = vmatmul.mubr.bf16.vlgmr.msra.gmra.mrb[0].mxu0 %v2063_v22  ;;  %1777 = vmatpush1.bf16.msra.mxu1 %v2066_v23 }
  0x84   :  { %1368 = vmatpush1.bf16.msra.mxu0 %v2066_v23  ;;  %1770 = vmatprep.subr.bf16.mxu1 %v2071_v24 }
  0x85   :  { %1369 = vmatprep.subr.bf16.mxu0 %v2071_v24  ;;  %1196 = vmatprep.mubr.bf16.mxu1 %v2072_v25 }
  0x86   :  { %1338 = vmatprep.mubr.bf16.mxu0 %v2074_v26 }
  0x87   :  { %1778 = vmatpush1.bf16.msra.mxu1 %v2069_v27 }
  0x88   :  { %1370 = vmatpush1.bf16.msra.mxu0 %v2069_v27  ;;  %1771 = vmatprep.subr.bf16.mxu1 %v2080_v28 }
  0x89   :  { %1371 = vmatprep.subr.bf16.mxu0 %v2080_v28 }
  0x8a   :  { %1197 = vmatmul.mubr.bf16.gmra.mrb[4].mxu1 %v2076_v29 }
  0x8b   :  { %1339 = vmatmul.mubr.bf16.gmra.mrb[4].mxu0 %v2077_v30  ;;  %1779 = vmatpush1.bf16.msra.mxu1 %v2078_v31 }
  0x8c   :  { %1372 = vmatpush1.bf16.msra.mxu0 %v2078_v31  ;;  %1772 = vmatprep.subr.bf16.mxu1 %v2083_v32 }
  0x8d   :  { %1373 = vmatprep.subr.bf16.mxu0 %v2083_v32  ;;  %1206 = vmatprep.mubr.bf16.mxu1 %v2084_v33 }
  0x8e   :  { %1348 = vmatprep.mubr.bf16.mxu0 %v2086_v34 }
  0x8f   :  { %1780 = vmatpush1.bf16.msra.mxu1 %v2081_v35 }
  0x90   :  { %1374 = vmatpush1.bf16.msra.mxu0 %v2081_v35  ;;  %1773 = vmatprep.subr.bf16.mxu1 %v2092_v36 }
  0x91   :  { %1375 = vmatprep.subr.bf16.mxu0 %v2092_v36 }
  0x92   :  { %1207 = vmatmul.mubr.bf16.gmra.mrb[8].mxu1 %v2088_v37 }
  0x93   :  { %1349 = vmatmul.mubr.bf16.gmra.mrb[8].mxu0 %v2089_v38  ;;  %1781 = vmatpush1.bf16.msra.mxu1 %v2090_v41 }
  0x94   :  { %1376 = vmatpush1.bf16.msra.mxu0 %v2090_v41  ;;  %1774 = vmatprep.subr.bf16.mxu1 %v2095_v42 }
  0x95   :  { %1377 = vmatprep.subr.bf16.mxu0 %v2095_v42  ;;  %1216 = vmatprep.mubr.bf16.mxu1 %v1604_v43 }
  0x96   :  { %1358 = vmatprep.mubr.bf16.mxu0 %v1608_v44 }
  0x97   :  { %1782 = vmatpush1.bf16.msra.mxu1 %v2093_v45 }
  0x98   :  { %1378 = vmatpush1.bf16.msra.mxu0 %v2093_v45  ;;  %1775 = vmatprep.subr.bf16.mxu1 %v2102_v46 }
  0x99   :  { %1379 = vmatprep.subr.bf16.mxu0 %v2102_v46 }
  0x9a   :  { %1217 = vmatmul.mubr.bf16.gmra.mrb[12].mxu1 %v1603_v47 }
  0x9b   :  { %1359 = vmatmul.mubr.bf16.gmra.mrb[12].mxu0 %v1607_v48  ;;  %1783 = vmatpush1.bf16.msra.mxu1 %v2100_v49 }
  0x9c   :  { %1380 = vmatpush1.bf16.msra.mxu0 %v2100_v49  ;;  %1776 = vmatprep.subr.bf16.mxu1 %v2105_v50 }
  0x9d   :  { %1381 = vmatprep.subr.bf16.mxu0 %v2105_v50  ;;  %1399 = vmatprep.mubr.bf16.mxu0 %v2110_v52 }
  0x9e   :  { %1419 = vmatprep.mubr.bf16.mxu1 %v2110_v52 }
  0x9f   :  { %1784 = vmatpush1.bf16.msra.mxu1 %v2103_v51 }
  0xa0   :  { %1382 = vmatpush1.bf16.msra.mxu0 %v2103_v51 }
  0xa2   :  { %1420 = vmatmul.mubr.bf16.vlgmr.msra.gmra.mrb[16].mxu1 %v2107_v54 }
  0xa3   :  { %1400 = vmatmul.mubr.bf16.vlgmr.msra.gmra.mrb[0].mxu0 %v2106_v53  ;;  %1429 = vmatprep.mubr.bf16.mxu1 %v2110_v52 }
  0xa4   :  { %1409 = vmatprep.mubr.bf16.mxu0 %v2110_v52 }
  0xaa   :  { %1430 = vmatmul.mubr.bf16.gmra.mrb[20].mxu1 %v2109_v56 }
  0xab   :  { %1410 = vmatmul.mubr.bf16.gmra.mrb[4].mxu0 %v2108_v55 }
 0x155   :  { %v1188_v57 = vpop.f32.mrb[0].mxu1 }
 0x156   :  { %v1190_v58 = vpop.f32.mrb[1].mxu1 }
 0x157   :  { %v1192_v59 = vpop.f32.mrb[2].mxu1 }
 0x158   :  { %v1194_v60 = vpop.f32.mrb[3].mxu1 }
 0x15d   :  { %v1198_v61 = vpop.f32.mrb[4].mxu1 }
 0x15e   :  { %v2659_v62 = vpop.f32.mrb[5].mxu1 }
 0x15f   :  { %v2661_v63 = vpop.f32.mrb[6].mxu1 }
 0x160   :  { %v2663_v0 = vpop.f32.mrb[7].mxu1 }
 0x165   :  { %v1208_v1 = vpop.f32.mrb[8].mxu1 }
 0x166   :  { %v1350_v2 = vpop.f32.mrb[8].mxu0  ;;  %v1210_v4 = vpop.f32.mrb[9].mxu1 }
 0x167   :  { %v1793_v3 = vadd.f32 %v1350_v2, %v1208_v1  ;;  %v1352_v5 = vpop.f32.mrb[9].mxu0  ;;  %v1212_v7 = vpop.f32.mrb[10].mxu1 }
 0x168   :  { %v1795_v6 = vadd.f32 %v1352_v5, %v1210_v4  ;;  %v1354_v8 = vpop.f32.mrb[10].mxu0  ;;  %v1214_v10 = vpop.f32.mrb[11].mxu1 }
 0x169   :  { %v1797_v9 = vadd.f32 %v1354_v8, %v1212_v7  ;;  %v1356_v11 = vpop.f32.mrb[11].mxu0 }
 0x16a   :  { %v1799_v12 = vadd.f32 %v1356_v11, %v1214_v10 }
 0x16d   :  { %v1218_v13 = vpop.f32.mrb[12].mxu1 }
 0x16e   :  { %v1360_v14 = vpop.f32.mrb[12].mxu0  ;;  %v1220_v16 = vpop.f32.mrb[13].mxu1 }
 0x16f   :  { %v1801_v15 = vadd.f32 %v1360_v14, %v1218_v13  ;;  %v1362_v17 = vpop.f32.mrb[13].mxu0  ;;  %v1222_v19 = vpop.f32.mrb[14].mxu1 }
 0x170   :  { %v1803_v18 = vadd.f32 %v1362_v17, %v1220_v16  ;;  %v1364_v20 = vpop.f32.mrb[14].mxu0  ;;  %v1223_v21 = vpop.f32.mrb[15].mxu1 }
 0x171   :  { %v1365_v22 = vpop.f32.mrb[15].mxu0 }
 0x175   :  { %v1421_v24 = vpop.f32.mrb[16].mxu1 }
 0x176   :  { %v1401_v23 = vpop.f32.mrb[0].mxu0  ;;  %v1794_v26 = vadd.f32 %v1793_v3, %v1421_v24  ;;  %v1423_v28 = vpop.f32.mrb[17].mxu1 }
 0x177   :  { %v1785_v25 = vadd.f32 %v1401_v23, %v1188_v57  ;;  %v1403_v27 = vpop.f32.mrb[1].mxu0  ;;  %v2665_v30 = vadd.f32 %v1795_v6, %v1423_v28  ;;  %v1425_v32 = vpop.f32.mrb[18].mxu1 }
 0x178   :  { %v1786_v29 = vadd.f32 %v1403_v27, %v1190_v58  ;;  %v1405_v31 = vpop.f32.mrb[2].mxu0  ;;  %v1798_v34 = vadd.f32 %v1797_v9, %v1425_v32  ;;  %v1427_v36 = vpop.f32.mrb[19].mxu1 }
 0x179   :  { %v1787_v33 = vadd.f32 %v1405_v31, %v1192_v59  ;;  %v1407_v35 = vpop.f32.mrb[3].mxu0  ;;  %v1766_v38 = vpack.c.bf16 %v2665_v30, %v1794_v26  ;;  %v1513_v39 = vmul.f32 %v1785_v25, %v1785_v25  ;;  %v1800_v44 = vadd.f32 %v1799_v12, %v1427_v36 }
 0x17a   :  { %v1762_v37 = vpack.c.bf16 %v1786_v29, %v1785_v25  ;;  %v1788_v42 = vadd.f32 %v1407_v35, %v1194_v60  ;;  %v1514_v43 = vmul.f32 %v1786_v29, %v1786_v29  ;;  %v1521_v12 = vmul.f32 %v1794_v26, %v1794_v26 }
 0x17b   :  { %v1489_v40 = vadd.f32 %v1787_v33, %v1785_v25  ;;  %v1515_v41 = vmul.f32 %v1787_v33, %v1787_v33  ;;  %1486 = vst [vmem:[%s2700_s2 + $0x20] sm:$0xff] %v1766_v38  ;;  %v1767_v49 = vpack.c.bf16 %v1800_v44, %v1798_v34  ;;  %v1522_v21 = vmul.f32 %v2665_v30, %v2665_v30 }
 0x17c   :  { %1482 = vst [vmem:[%s2700_s2] sm:$0xff] %v1762_v37  ;;  %v1763_v46 = vpack.c.bf16 %v1788_v42, %v1787_v33  ;;  %v1501_v47 = vadd.f32 %v1788_v42, %v1786_v29  ;;  %v1516_v48 = vmul.f32 %v1788_v42, %v1788_v42 }
 0x17d   :  { %v1527_v45 = vadd.f32 %v1515_v41, %v1513_v39  ;;  %v1431_v51 = vpop.f32.mrb[20].mxu1  ;;  %1487 = vst [vmem:[%s2700_s2 + $0x28] sm:$0xff] %v1767_v49 }
 0x17e   :  { %v1411_v50 = vpop.f32.mrb[4].mxu0  ;;  %1483 = vst [vmem:[%s2700_s2 + $0x8] sm:$0xff] %v1763_v46  ;;  %v1539_v52 = vadd.f32 %v1516_v48, %v1514_v43  ;;  %v1802_v54 = vadd.f32 %v1801_v15, %v1431_v51  ;;  %v1433_v56 = vpop.f32.mrb[21].mxu1 }
 0x17f   :  { %v1789_v53 = vadd.f32 %v1411_v50, %v1198_v61  ;;  %v1413_v55 = vpop.f32.mrb[5].mxu0  ;;  %v1804_v58 = vadd.f32 %v1803_v18, %v1433_v56  ;;  %v1435_v60 = vpop.f32.mrb[22].mxu1  ;;  %v1523_v18 = vmul.f32 %v1798_v34, %v1798_v34 }
 0x180   :  { %v1790_v57 = vadd.f32 %v1413_v55, %v2659_v62  ;;  %v1415_v59 = vpop.f32.mrb[6].mxu0  ;;  %v1436_v5 = vpop.f32.mrb[23].mxu1 }
 0x181   :  { %v1490_v1 = vadd.f32 %v1789_v53, %v1489_v40  ;;  %v1517_v2 = vmul.f32 %v1789_v53, %v1789_v53  ;;  %v1791_v3 = vadd.f32 %v1415_v59, %v2661_v63  ;;  %v1417_v4 = vpop.f32.mrb[7].mxu0  ;;  %v1768_v8 = vpack.c.bf16 %v1804_v58, %v1802_v54 }
 0x182   :  { %v1764_v6 = vpack.c.bf16 %v1790_v57, %v1789_v53  ;;  %v1502_v61 = vadd.f32 %v1790_v57, %v1501_v47  ;;  %v1518_v7 = vmul.f32 %v1790_v57, %v1790_v57  ;;  %v1792_v63 = vadd.f32 %v1417_v4, %v2663_v0 }
 0x183   :  { %v1528_v9 = vadd.f32 %v1527_v45, %v1517_v2  ;;  %v1491_v10 = vadd.f32 %v1791_v3, %v1490_v1  ;;  %v1519_v11 = vmul.f32 %v1791_v3, %v1791_v3  ;;  %1488 = vst [vmem:[%s2700_s2 + $0x30] sm:$0xff] %v1768_v8  ;;  %v1525_v0 = vmul.f32 %v1802_v54, %v1802_v54 }
 0x184   :  { %1484 = vst [vmem:[%s2700_s2 + $0x10] sm:$0xff] %v1764_v6  ;;  %v1540_v62 = vadd.f32 %v1539_v52, %v1518_v7  ;;  %v1765_v15 = vpack.c.bf16 %v1792_v63, %v1791_v3  ;;  %v1503_v16 = vadd.f32 %v1792_v63, %v1502_v61  ;;  %v1520_v17 = vmul.f32 %v1792_v63, %v1792_v63 }
 0x185   :  { %v1492_v13 = vadd.f32 %v1794_v26, %v1491_v10  ;;  %v1529_v14 = vadd.f32 %v1528_v9, %v1519_v11  ;;  %v1524_v26 = vmul.f32 %v1800_v44, %v1800_v44  ;;  %v1526_v32 = vmul.f32 %v1804_v58, %v1804_v58 }
 0x186   :  { %1485 = vst [vmem:[%s2700_s2 + $0x18] sm:$0xff] %v1765_v15  ;;  %v1504_v22 = vadd.f32 %v2665_v30, %v1503_v16  ;;  %v1541_v23 = vadd.f32 %v1540_v62, %v1520_v17 }
 0x187   :  { %v1493_v19 = vadd.f32 %v1798_v34, %v1492_v13  ;;  %v1530_v20 = vadd.f32 %v1529_v14, %v1521_v12 }
 0x188   :  { %v1505_v27 = vadd.f32 %v1800_v44, %v1504_v22  ;;  %v1542_v28 = vadd.f32 %v1541_v23, %v1522_v21 }
 0x189   :  { %v1494_v24 = vadd.f32 %v1802_v54, %v1493_v19  ;;  %v1531_v25 = vadd.f32 %v1530_v20, %v1523_v18 }
 0x18a   :  { %v1506_v33 = vadd.f32 %v1804_v58, %v1505_v27  ;;  %v1543_v34 = vadd.f32 %v1542_v28, %v1524_v26 }
 0x18b   :  { %v1495_v29 = vrot.slane %v1494_v24, 4  ;;  %v1532_v31 = vadd.f32 %v1531_v25, %v1525_v0 }
 0x18c   :  { %v1507_v37 = vrot.slane %v1506_v33, 4  ;;  %v1544_v38 = vadd.f32 %v1543_v34, %v1526_v32 }
 0x18d   :  { %v1496_v35 = vadd.f32 %v1495_v29, %v1494_v24  ;;  %v1533_v36 = vrot.slane %v1532_v31, 4 }
 0x18e   :  { %v1508_v41 = vadd.f32 %v1507_v37, %v1506_v33  ;;  %v1545_v30 = vrot.slane %v1544_v38, 4 }
 0x18f   :  { %v1497_v39 = vrot.slane %v1496_v35, 2  ;;  %v1534_v40 = vadd.f32 %v1533_v36, %v1532_v31 }
 0x190   :  { %v1509_v45 = vrot.slane %v1508_v41, 2  ;;  %v1546_v46 = vadd.f32 %v1545_v30, %v1544_v38 }
 0x191   :  { %v1498_v42 = vadd.f32 %v1497_v39, %v1496_v35  ;;  %v1535_v43 = vrot.slane %v1534_v40, 2 }
 0x192   :  { %v1510_v48 = vadd.f32 %v1509_v45, %v1508_v41  ;;  %v1547_v49 = vrot.slane %v1546_v46, 2 }
 0x193   :  { %v1499_v47 = vrot.slane %v1498_v42, 1  ;;  %v1536_v44 = vadd.f32 %v1535_v43, %v1534_v40 }
 0x194   :  { %v1511_v51 = vrot.slane %v1510_v48, 1  ;;  %v1548_v52 = vadd.f32 %v1547_v49, %v1546_v46 }
 0x195   :  { %v1537_v50 = vrot.slane %v1536_v44, 1  ;;  %v1500_v53 = vadd.f32 %v1499_v47, %v1498_v42 }
 0x196   :  { %v1549_v55 = vrot.slane %v1548_v52, 1  ;;  %v1512_v57 = vadd.f32 %v1511_v51, %v1510_v48 }
 0x197   :  { %v1538_v54 = vadd.f32 %v1537_v50, %v1536_v44 }
 0x198   :  { %v1550_v58 = vadd.f32 %v1549_v55, %v1548_v52 }
 0x199   :  { %v1552_v56 = vsel %vm1551_vm0, %v1500_v53, %v1538_v54 }
 0x19a   :  { %v1553_v59 = vsel %vm1551_vm0, %v1512_v57, %v1550_v58 }
 0x19b   :  { %v1556_v60 = vcombine.low %v1552_v56, %v1553_v59 }
 0x19d   :  { %1761 = vst.sshfl [vmem:[%s2701_s3] sm:$0x33 pattern:$0x76325410] %v1556_v60 }

// kernel: usps_feature_extractor.17
= control target key start
LH: loop header
LB: loop body
LE: loop exit
PB: predicated region body
PF: predicated region fallthrough
CT: control target
= control target key end

     0   :  { %v25_v0 = vlaneseq  ;;  %s142_s0 = inlined_call_operand.vmem [shape: bf16[24,256], index: 0, kind: input, shape index: {}]   ;;  %s143_s1 = inlined_call_operand.vmem [shape: f32[1,256], index: 1, kind: input, shape index: {}]   ;;  %s144_s2 = inlined_call_operand.vmem [shape: f32[1,256], index: 2, kind: input, shape index: {}]   ;;  %s145_s3 = inlined_call_operand.vmem [shape: bf16[24,256], index: 3, kind: output, shape index: {}]  }
   0x1   :  { %v14_v1 = vld [vmem:[%s142_s0] sm:$0xff]  ;;  %v15_v3 = vld [vmem:[%s142_s0 + $0x8] sm:$0xff]  ;;  %v16_v4 = vld [vmem:[%s142_s0 + $0x10] sm:$0xff] }
   0x2   :  { %v26_v2 = vshrl.u32 %v25_v0, 7  ;;  %v17_v5 = vunpack.c.l.bf16 %v14_v1  ;;  %v18_v6 = vunpack.c.h.bf16 %v14_v1  ;;  %v23_v7 = vld [vmem:[%s143_s1] sm:$0x3]  ;;  %v19_v11 = vunpack.c.l.bf16 %v15_v3 }
   0x3   :  { %v41_v8 = vld [vmem:[%s144_s2] sm:$0x3]  ;;  %v20_v12 = vunpack.c.h.bf16 %v15_v3  ;;  %v21_v13 = vunpack.c.l.bf16 %v16_v4  ;;  %v22_v14 = vunpack.c.h.bf16 %v16_v4 }
   0x4   :  { %v27_v9 = vsub.s32 0, %v26_v2  ;;  %v31_v10 = vsub.s32 1, %v26_v2 }
   0x6   :  { %v28_v15 = vrot.slane %v23_v7, %v27_v9  ;;  %v32_v16 = vrot.slane %v23_v7, %v31_v10  ;;  %v46_v17 = vrot.slane %v41_v8, %v27_v9  ;;  %v50_v18 = vrot.slane %v41_v8, %v31_v10 }
   0x8   :  { %v35_v19 = vmul.f32 %v28_v15, %v17_v5  ;;  %v36_v20 = vmul.f32 %v32_v16, %v18_v6  ;;  %v37_v21 = vmul.f32 %v28_v15, %v19_v11  ;;  %v38_v22 = vmul.f32 %v32_v16, %v20_v12 }
   0x9   :  { %v39_v23 = vmul.f32 %v28_v15, %v21_v13  ;;  %v40_v24 = vmul.f32 %v32_v16, %v22_v14 }
   0xa   :  { %v53_v25 = vadd.f32 %v46_v17, %v35_v19  ;;  %v54_v26 = vadd.f32 %v50_v18, %v36_v20  ;;  %v55_v27 = vadd.f32 %v46_v17, %v37_v21  ;;  %v56_v28 = vadd.f32 %v50_v18, %v38_v22 }
   0xb   :  { %v57_v29 = vadd.f32 %v46_v17, %v39_v23  ;;  %v58_v30 = vadd.f32 %v50_v18, %v40_v24 }
   0xc   :  { %v59_v31 = vmax.f32 %v53_v25, 0.0  ;;  %v60_v32 = vmax.f32 %v54_v26, 0.0  ;;  %v61_v33 = vmax.f32 %v55_v27, 0.0  ;;  %v62_v34 = vmax.f32 %v56_v28, 0.0 }
   0xd   :  { %v63_v35 = vmax.f32 %v57_v29, 0.0  ;;  %v64_v36 = vmax.f32 %v58_v30, 0.0 }
   0xe   :  { %v95_v37 = vpack.c.bf16 %v60_v32, %v59_v31  ;;  %v96_v38 = vpack.c.bf16 %v62_v34, %v61_v33 }
   0xf   :  { %v97_v39 = vpack.c.bf16 %v64_v36, %v63_v35 }
  0x10   :  { %85 = vst [vmem:[%s145_s3] sm:$0xff] %v95_v37  ;;  %86 = vst [vmem:[%s145_s3 + $0x8] sm:$0xff] %v96_v38 }
  0x11   :  { %87 = vst [vmem:[%s145_s3 + $0x10] sm:$0xff] %v97_v39 }

// kernel: usps_feature_extractor.16
= control target key start
LH: loop header
LB: loop body
LE: loop exit
PB: predicated region body
PF: predicated region fallthrough
CT: control target
= control target key end

     0   :  { %vm2441_vm0 = vcmask 1040384   ;;  %s4347_s1 = inlined_call_operand.vmem [shape: bf16[2304,256], index: 1, kind: input, shape index: {}]   ;;  %s4348_s0 = inlined_call_operand.vmem [shape: bf16[24,2304], index: 0, kind: input, shape index: {}]   ;;  %s4349_s2 = inlined_call_operand.vmem [shape: bf16[24,256], index: 2, kind: output, shape index: {0}]   ;;  %s4350_s3 = inlined_call_operand.vmem [shape: f32[1,2,256], index: 3, kind: output, shape index: {1}]  }
   0x1   :  { %v2887_v0 = vld [vmem:[%s4347_s1 + $0x4] ss:$8 sps:$4 sm:$0xff]   ;;  %v2891_v2 = vld [vmem:[%s4347_s1] ss:$8 sps:$4 sm:$0xff]   ;;  %v2893_v4 = vld [vmem:[%s4347_s1 + $0x14] ss:$8 sps:$4 sm:$0xff]  }
   0x2   :  { %v2889_v1 = vld [vmem:[%s4347_s1 + $0x404] ss:$8 sps:$4 sm:$0xff]   ;;  %1921 = vmatprep.subr.bf16.mxu1 %v2887_v0  ;;  %v2892_v3 = vld [vmem:[%s4347_s1 + $0x400] ss:$8 sps:$4 sm:$0xff]   ;;  %v2895_v5 = vld [vmem:[%s4347_s1 + $0x414] ss:$8 sps:$4 sm:$0xff]  }
   0x3   :  { %2125 = vmatprep.subr.bf16.mxu0 %v2889_v1  ;;  %1922 = vmatpush1.bf16.msra.mxu1 %v2891_v2  ;;  %v2897_v6 = vld [vmem:[%s4347_s1 + $0x10] ss:$8 sps:$4 sm:$0xff]   ;;  %v2899_v8 = vld [vmem:[%s4347_s1 + $0x24] ss:$8 sps:$4 sm:$0xff]   ;;  %v2903_v10 = vld [vmem:[%s4347_s1 + $0x20] ss:$8 sps:$4 sm:$0xff]  }
   0x4   :  { %2126 = vmatpush1.bf16.msra.mxu0 %v2892_v3  ;;  %1923 = vmatprep.subr.bf16.mxu1 %v2893_v4  ;;  %v2898_v7 = vld [vmem:[%s4347_s1 + $0x410] ss:$8 sps:$4 sm:$0xff]   ;;  %v2901_v9 = vld [vmem:[%s4347_s1 + $0x424] ss:$8 sps:$4 sm:$0xff]   ;;  %v2904_v11 = vld [vmem:[%s4347_s1 + $0x420] ss:$8 sps:$4 sm:$0xff]  }
   0x5   :  { %2127 = vmatprep.subr.bf16.mxu0 %v2895_v5  ;;  %v2905_v12 = vld [vmem:[%s4347_s1 + $0x34] ss:$8 sps:$4 sm:$0xff]   ;;  %v2909_v14 = vld [vmem:[%s4347_s1 + $0x30] ss:$8 sps:$4 sm:$0xff]   ;;  %v2911_v16 = vld [vmem:[%s4347_s1 + $0x44] ss:$8 sps:$4 sm:$0xff]  }
   0x6   :  { %v2907_v13 = vld [vmem:[%s4347_s1 + $0x434] ss:$8 sps:$4 sm:$0xff]   ;;  %v2910_v15 = vld [vmem:[%s4347_s1 + $0x430] ss:$8 sps:$4 sm:$0xff]   ;;  %v2913_v17 = vld [vmem:[%s4347_s1 + $0x444] ss:$8 sps:$4 sm:$0xff]  }
   0x7   :  { %1924 = vmatpush1.bf16.msra.mxu1 %v2897_v6  ;;  %v2915_v18 = vld [vmem:[%s4347_s1 + $0x40] ss:$8 sps:$4 sm:$0xff]   ;;  %v2917_v20 = vld [vmem:[%s4347_s1 + $0x54] ss:$8 sps:$4 sm:$0xff]   ;;  %v2921_v22 = vld [vmem:[%s4347_s1 + $0x50] ss:$8 sps:$4 sm:$0xff]  }
   0x8   :  { %2128 = vmatpush1.bf16.msra.mxu0 %v2898_v7  ;;  %1925 = vmatprep.subr.bf16.mxu1 %v2899_v8  ;;  %v2916_v19 = vld [vmem:[%s4347_s1 + $0x440] ss:$8 sps:$4 sm:$0xff]   ;;  %v2919_v21 = vld [vmem:[%s4347_s1 + $0x454] ss:$8 sps:$4 sm:$0xff]   ;;  %v2922_v23 = vld [vmem:[%s4347_s1 + $0x450] ss:$8 sps:$4 sm:$0xff]  }
   0x9   :  { %2129 = vmatprep.subr.bf16.mxu0 %v2901_v9  ;;  %v2923_v24 = vld [vmem:[%s4347_s1 + $0x64] ss:$8 sps:$4 sm:$0xff]   ;;  %v2927_v26 = vld [vmem:[%s4347_s1 + $0x60] ss:$8 sps:$4 sm:$0xff]   ;;  %v2929_v28 = vld [vmem:[%s4347_s1 + $0x74] ss:$8 sps:$4 sm:$0xff]  }
   0xa   :  { %v2925_v25 = vld [vmem:[%s4347_s1 + $0x464] ss:$8 sps:$4 sm:$0xff]   ;;  %v2928_v27 = vld [vmem:[%s4347_s1 + $0x460] ss:$8 sps:$4 sm:$0xff]   ;;  %v2931_v29 = vld [vmem:[%s4347_s1 + $0x474] ss:$8 sps:$4 sm:$0xff]  }
   0xb   :  { %1926 = vmatpush1.bf16.msra.mxu1 %v2903_v10  ;;  %v2933_v30 = vld [vmem:[%s4347_s1 + $0x70] ss:$8 sps:$4 sm:$0xff]   ;;  %v2935_v32 = vld [vmem:[%s4347_s1 + $0x84] ss:$8 sps:$4 sm:$0xff]   ;;  %v2939_v34 = vld [vmem:[%s4347_s1 + $0x80] ss:$8 sps:$4 sm:$0xff]  }
   0xc   :  { %2130 = vmatpush1.bf16.msra.mxu0 %v2904_v11  ;;  %1927 = vmatprep.subr.bf16.mxu1 %v2905_v12  ;;  %v2934_v31 = vld [vmem:[%s4347_s1 + $0x470] ss:$8 sps:$4 sm:$0xff]   ;;  %v2937_v33 = vld [vmem:[%s4347_s1 + $0x484] ss:$8 sps:$4 sm:$0xff]   ;;  %v2940_v35 = vld [vmem:[%s4347_s1 + $0x480] ss:$8 sps:$4 sm:$0xff]  }
   0xd   :  { %2131 = vmatprep.subr.bf16.mxu0 %v2907_v13  ;;  %v2941_v36 = vld [vmem:[%s4347_s1 + $0x94] ss:$8 sps:$4 sm:$0xff]   ;;  %v2945_v38 = vld [vmem:[%s4347_s1 + $0x90] ss:$8 sps:$4 sm:$0xff]   ;;  %v2947_v40 = vld [vmem:[%s4347_s1 + $0xa4] ss:$8 sps:$4 sm:$0xff]  }
   0xe   :  { %v2943_v37 = vld [vmem:[%s4347_s1 + $0x494] ss:$8 sps:$4 sm:$0xff]   ;;  %v2946_v39 = vld [vmem:[%s4347_s1 + $0x490] ss:$8 sps:$4 sm:$0xff]   ;;  %v2949_v41 = vld [vmem:[%s4347_s1 + $0x4a4] ss:$8 sps:$4 sm:$0xff]  }
   0xf   :  { %1928 = vmatpush1.bf16.msra.mxu1 %v2909_v14  ;;  %v2951_v42 = vld [vmem:[%s4347_s1 + $0xa0] ss:$8 sps:$4 sm:$0xff]   ;;  %v2953_v44 = vld [vmem:[%s4347_s1 + $0xb4] ss:$8 sps:$4 sm:$0xff]   ;;  %v2957_v46 = vld [vmem:[%s4347_s1 + $0xb0] ss:$8 sps:$4 sm:$0xff]  }
  0x10   :  { %2132 = vmatpush1.bf16.msra.mxu0 %v2910_v15  ;;  %1929 = vmatprep.subr.bf16.mxu1 %v2911_v16  ;;  %v2952_v43 = vld [vmem:[%s4347_s1 + $0x4a0] ss:$8 sps:$4 sm:$0xff]   ;;  %v2955_v45 = vld [vmem:[%s4347_s1 + $0x4b4] ss:$8 sps:$4 sm:$0xff]   ;;  %v2958_v47 = vld [vmem:[%s4347_s1 + $0x4b0] ss:$8 sps:$4 sm:$0xff]  }
  0x11   :  { %2133 = vmatprep.subr.bf16.mxu0 %v2913_v17  ;;  %v2985_v48 = vld [vmem:[%s4348_s0 + $0x4] ss:$72 sps:$4 sm:$0xff]   ;;  %v2963_v52 = vld [vmem:[%s4347_s1 + $0xc0] ss:$8 sps:$4 sm:$0xff]   ;;  %v2965_v54 = vld [vmem:[%s4347_s1 + $0xd4] ss:$8 sps:$4 sm:$0xff]  }
  0x12   :  { %v2959_v49 = vld [vmem:[%s4347_s1 + $0xc4] ss:$8 sps:$4 sm:$0xff]   ;;  %1953 = vmatprep.mubr.bf16.mxu1 %v2985_v48  ;;  %v2964_v53 = vld [vmem:[%s4347_s1 + $0x4c0] ss:$8 sps:$4 sm:$0xff]   ;;  %v2967_v55 = vld [vmem:[%s4347_s1 + $0x4d4] ss:$8 sps:$4 sm:$0xff]  }
  0x13   :  { %1930 = vmatpush1.bf16.msra.mxu1 %v2915_v18  ;;  %v2961_v50 = vld [vmem:[%s4347_s1 + $0x4c4] ss:$8 sps:$4 sm:$0xff]   ;;  %v2969_v56 = vld [vmem:[%s4347_s1 + $0xd0] ss:$8 sps:$4 sm:$0xff]   ;;  %v2975_v60 = vld [vmem:[%s4347_s1 + $0xe0] ss:$8 sps:$4 sm:$0xff]  }
  0x14   :  { %2134 = vmatpush1.bf16.msra.mxu0 %v2916_v19  ;;  %1931 = vmatprep.subr.bf16.mxu1 %v2917_v20  ;;  %v2991_v51 = vld [vmem:[%s4348_s0 + $0x24] ss:$72 sps:$4 sm:$0xff]   ;;  %v2970_v57 = vld [vmem:[%s4347_s1 + $0x4d0] ss:$8 sps:$4 sm:$0xff]   ;;  %v2976_v61 = vld [vmem:[%s4347_s1 + $0x4e0] ss:$8 sps:$4 sm:$0xff]  }
  0x15   :  { %2135 = vmatprep.subr.bf16.mxu0 %v2919_v21  ;;  %2157 = vmatprep.mubr.bf16.mxu0 %v2991_v51  ;;  %v2971_v58 = vld [vmem:[%s4347_s1 + $0xe4] ss:$8 sps:$4 sm:$0xff]   ;;  %v2977_v62 = vld [vmem:[%s4347_s1 + $0xf4] ss:$8 sps:$4 sm:$0xff]   ;;  %v2981_v0 = vld [vmem:[%s4347_s1 + $0xf0] ss:$8 sps:$4 sm:$0xff]  }
  0x16   :  { %v2973_v59 = vld [vmem:[%s4347_s1 + $0x4e4] ss:$8 sps:$4 sm:$0xff]   ;;  %v2979_v63 = vld [vmem:[%s4347_s1 + $0x4f4] ss:$8 sps:$4 sm:$0xff]   ;;  %v2982_v1 = vld [vmem:[%s4347_s1 + $0x4f0] ss:$8 sps:$4 sm:$0xff]  }
  0x17   :  { %1932 = vmatpush1.bf16.msra.mxu1 %v2921_v22  ;;  %v2988_v2 = vld [vmem:[%s4347_s1 + $0x104] ss:$8 sps:$4 sm:$0xff]   ;;  %v2983_v4 = vld [vmem:[%s4348_s0] ss:$72 sps:$4 sm:$0xff]   ;;  %v2997_v8 = vld [vmem:[%s4347_s1 + $0x114] ss:$8 sps:$4 sm:$0xff]  }
  0x18   :  { %2136 = vmatpush1.bf16.msra.mxu0 %v2922_v23  ;;  %1933 = vmatprep.subr.bf16.mxu1 %v2923_v24  ;;  %v2994_v3 = vld [vmem:[%s4347_s1 + $0x504] ss:$8 sps:$4 sm:$0xff]   ;;  %v2986_v5 = vld [vmem:[%s4347_s1 + $0x100] ss:$8 sps:$4 sm:$0xff]   ;;  %v3000_v9 = vld [vmem:[%s4347_s1 + $0x514] ss:$8 sps:$4 sm:$0xff]  }
  0x19   :  { %2137 = vmatprep.subr.bf16.mxu0 %v2925_v25  ;;  %v2989_v6 = vld [vmem:[%s4348_s0 + $0x20] ss:$72 sps:$4 sm:$0xff]   ;;  %v2995_v10 = vld [vmem:[%s4347_s1 + $0x110] ss:$8 sps:$4 sm:$0xff]   ;;  %v3003_v12 = vld [vmem:[%s4347_s1 + $0x124] ss:$8 sps:$4 sm:$0xff]  }
  0x1a   :  { %v2992_v7 = vld [vmem:[%s4347_s1 + $0x500] ss:$8 sps:$4 sm:$0xff]   ;;  %v2998_v11 = vld [vmem:[%s4347_s1 + $0x510] ss:$8 sps:$4 sm:$0xff]   ;;  %v3006_v13 = vld [vmem:[%s4347_s1 + $0x524] ss:$8 sps:$4 sm:$0xff]  }
  0x1b   :  { %1934 = vmatpush1.bf16.msra.mxu1 %v2927_v26  ;;  %v3001_v14 = vld [vmem:[%s4347_s1 + $0x120] ss:$8 sps:$4 sm:$0xff]   ;;  %v3009_v16 = vld [vmem:[%s4347_s1 + $0x134] ss:$8 sps:$4 sm:$0xff]   ;;  %v3007_v18 = vld [vmem:[%s4347_s1 + $0x130] ss:$8 sps:$4 sm:$0xff]  }
  0x1c   :  { %2138 = vmatpush1.bf16.msra.mxu0 %v2928_v27  ;;  %1935 = vmatprep.subr.bf16.mxu1 %v2929_v28  ;;  %v3004_v15 = vld [vmem:[%s4347_s1 + $0x520] ss:$8 sps:$4 sm:$0xff]   ;;  %v3012_v17 = vld [vmem:[%s4347_s1 + $0x534] ss:$8 sps:$4 sm:$0xff]   ;;  %v3010_v19 = vld [vmem:[%s4347_s1 + $0x530] ss:$8 sps:$4 sm:$0xff]  }
  0x1d   :  { %2139 = vmatprep.subr.bf16.mxu0 %v2931_v29  ;;  %v3015_v20 = vld [vmem:[%s4347_s1 + $0x144] ss:$8 sps:$4 sm:$0xff]   ;;  %v3013_v22 = vld [vmem:[%s4347_s1 + $0x140] ss:$8 sps:$4 sm:$0xff]   ;;  %v3021_v24 = vld [vmem:[%s4347_s1 + $0x154] ss:$8 sps:$4 sm:$0xff]  }
  0x1e   :  { %v3018_v21 = vld [vmem:[%s4347_s1 + $0x544] ss:$8 sps:$4 sm:$0xff]   ;;  %v3016_v23 = vld [vmem:[%s4347_s1 + $0x540] ss:$8 sps:$4 sm:$0xff]   ;;  %v3024_v25 = vld [vmem:[%s4347_s1 + $0x554] ss:$8 sps:$4 sm:$0xff]  }
  0x1f   :  { %1936 = vmatpush1.bf16.msra.mxu1 %v2933_v30  ;;  %v31_v26 = vld [vmem:[%s4348_s0 + $0x90] sm:$0xff] }
  0x20   :  { %2140 = vmatpush1.bf16.msra.mxu0 %v2934_v31  ;;  %1937 = vmatprep.subr.bf16.mxu1 %v2935_v32  ;;  %v3019_v27 = vld [vmem:[%s4347_s1 + $0x150] ss:$8 sps:$4 sm:$0xff]   ;;  %v2483_v28 = vcombine.high %v31_v26, %v31_v26  ;;  %v2482_v29 = vcombine.low %v31_v26, %v31_v26  ;;  %v3027_v32 = vld [vmem:[%s4347_s1 + $0x164] ss:$8 sps:$4 sm:$0xff]   ;;  %v3045_v48 = vld [vmem:[%s4347_s1 + $0x194] ss:$8 sps:$4 sm:$0xff]  }
  0x21   :  { %2141 = vmatprep.subr.bf16.mxu0 %v2937_v33  ;;  %v3022_v30 = vld [vmem:[%s4347_s1 + $0x550] ss:$8 sps:$4 sm:$0xff]   ;;  %v3030_v33 = vld [vmem:[%s4347_s1 + $0x564] ss:$8 sps:$4 sm:$0xff]  }
  0x22   :  { %v35_v31 = vld [vmem:[%s4348_s0 + $0xb0] sm:$0xff]  ;;  %v3109_v26 = vld [vmem:[%s4347_s1 + $0x224] ss:$8 sps:$4 sm:$0xff]  }
  0x23   :  { %1938 = vmatpush1.bf16.msra.mxu1 %v2939_v34  ;;  %v2491_v34 = vcombine.high %v35_v31, %v35_v31  ;;  %v3046_v51 = vld [vmem:[%s4347_s1 + $0x590] ss:$8 sps:$4 sm:$0xff]  }
  0x24   :  { %2142 = vmatpush1.bf16.msra.mxu0 %v2940_v35  ;;  %1939 = vmatprep.subr.bf16.mxu1 %v2941_v36  ;;  %v2490_v35 = vcombine.low %v35_v31, %v35_v31  ;;  %v3025_v36 = vld [vmem:[%s4347_s1 + $0x160] ss:$8 sps:$4 sm:$0xff]  }
  0x25   :  { %2143 = vmatprep.subr.bf16.mxu0 %v2943_v37  ;;  %v3028_v37 = vld [vmem:[%s4347_s1 + $0x560] ss:$8 sps:$4 sm:$0xff]  }
  0x27   :  { %1940 = vmatpush1.bf16.msra.mxu1 %v2945_v38  ;;  %v3033_v38 = vld [vmem:[%s4347_s1 + $0x174] ss:$8 sps:$4 sm:$0xff]  }
  0x28   :  { %2144 = vmatpush1.bf16.msra.mxu0 %v2946_v39  ;;  %1941 = vmatprep.subr.bf16.mxu1 %v2947_v40  ;;  %v3036_v39 = vld [vmem:[%s4347_s1 + $0x574] ss:$8 sps:$4 sm:$0xff]  }
  0x29   :  { %2145 = vmatprep.subr.bf16.mxu0 %v2949_v41  ;;  %v3091_v40 = vld [vmem:[%s4348_s0 + $0xc] ss:$72 sps:$4 sm:$0xff]   ;;  %v3031_v41 = vld [vmem:[%s4347_s1 + $0x170] ss:$8 sps:$4 sm:$0xff]  }
  0x2b   :  { %1942 = vmatpush1.bf16.msra.mxu1 %v2951_v42  ;;  %v3034_v42 = vld [vmem:[%s4347_s1 + $0x570] ss:$8 sps:$4 sm:$0xff]  }
  0x2c   :  { %2146 = vmatpush1.bf16.msra.mxu0 %v2952_v43  ;;  %1943 = vmatprep.subr.bf16.mxu1 %v2953_v44  ;;  %v3097_v43 = vld [vmem:[%s4348_s0 + $0x2c] ss:$72 sps:$4 sm:$0xff]  }
  0x2d   :  { %2147 = vmatprep.subr.bf16.mxu0 %v2955_v45  ;;  %v3039_v44 = vld [vmem:[%s4347_s1 + $0x184] ss:$8 sps:$4 sm:$0xff]  }
  0x2e   :  { %v3042_v45 = vld [vmem:[%s4347_s1 + $0x584] ss:$8 sps:$4 sm:$0xff]  }
  0x2f   :  { %1944 = vmatpush1.bf16.msra.mxu1 %v2957_v46  ;;  %v3037_v46 = vld [vmem:[%s4347_s1 + $0x180] ss:$8 sps:$4 sm:$0xff]  }
  0x30   :  { %2148 = vmatpush1.bf16.msra.mxu0 %v2958_v47  ;;  %1945 = vmatprep.subr.bf16.mxu1 %v2959_v49  ;;  %v3040_v47 = vld [vmem:[%s4347_s1 + $0x580] ss:$8 sps:$4 sm:$0xff]   ;;  %v3048_v49 = vld [vmem:[%s4347_s1 + $0x594] ss:$8 sps:$4 sm:$0xff]  }
  0x31   :  { %2149 = vmatprep.subr.bf16.mxu0 %v2961_v50  ;;  %v3043_v50 = vld [vmem:[%s4347_s1 + $0x190] ss:$8 sps:$4 sm:$0xff]  }
  0x33   :  { %1946 = vmatpush1.bf16.msra.mxu1 %v2963_v52  ;;  %v3051_v52 = vld [vmem:[%s4347_s1 + $0x1a4] ss:$8 sps:$4 sm:$0xff]  }
  0x34   :  { %2150 = vmatpush1.bf16.msra.mxu0 %v2964_v53  ;;  %1947 = vmatprep.subr.bf16.mxu1 %v2965_v54  ;;  %v3054_v53 = vld [vmem:[%s4347_s1 + $0x5a4] ss:$8 sps:$4 sm:$0xff]   ;;  %v3049_v54 = vld [vmem:[%s4347_s1 + $0x1a0] ss:$8 sps:$4 sm:$0xff]  }
  0x35   :  { %2151 = vmatprep.subr.bf16.mxu0 %v2967_v55  ;;  %v3052_v55 = vld [vmem:[%s4347_s1 + $0x5a0] ss:$8 sps:$4 sm:$0xff]  }
  0x37   :  { %1948 = vmatpush1.bf16.msra.mxu1 %v2969_v56  ;;  %v3057_v56 = vld [vmem:[%s4347_s1 + $0x1b4] ss:$8 sps:$4 sm:$0xff]  }
  0x38   :  { %2152 = vmatpush1.bf16.msra.mxu0 %v2970_v57  ;;  %1949 = vmatprep.subr.bf16.mxu1 %v2971_v58  ;;  %v3060_v57 = vld [vmem:[%s4347_s1 + $0x5b4] ss:$8 sps:$4 sm:$0xff]   ;;  %v3055_v58 = vld [vmem:[%s4347_s1 + $0x1b0] ss:$8 sps:$4 sm:$0xff]  }
  0x39   :  { %2153 = vmatprep.subr.bf16.mxu0 %v2973_v59  ;;  %v3058_v59 = vld [vmem:[%s4347_s1 + $0x5b0] ss:$8 sps:$4 sm:$0xff]  }
  0x3b   :  { %1950 = vmatpush1.bf16.msra.mxu1 %v2975_v60  ;;  %v3063_v60 = vld [vmem:[%s4347_s1 + $0x1c4] ss:$8 sps:$4 sm:$0xff]  }
  0x3c   :  { %2154 = vmatpush1.bf16.msra.mxu0 %v2976_v61  ;;  %1951 = vmatprep.subr.bf16.mxu1 %v2977_v62  ;;  %v3066_v61 = vld [vmem:[%s4347_s1 + $0x5c4] ss:$8 sps:$4 sm:$0xff]   ;;  %v3061_v62 = vld [vmem:[%s4347_s1 + $0x1c0] ss:$8 sps:$4 sm:$0xff]  }
  0x3d   :  { %2155 = vmatprep.subr.bf16.mxu0 %v2979_v63  ;;  %v3064_v63 = vld [vmem:[%s4347_s1 + $0x5c0] ss:$8 sps:$4 sm:$0xff]  }
  0x3f   :  { %1952 = vmatpush1.bf16.msra.mxu1 %v2981_v0  ;;  %v3069_v0 = vld [vmem:[%s4347_s1 + $0x1d4] ss:$8 sps:$4 sm:$0xff]  }
  0x40   :  { %2156 = vmatpush1.bf16.msra.mxu0 %v2982_v1  ;;  %1972 = vmatprep.subr.bf16.mxu1 %v2988_v2  ;;  %v3072_v1 = vld [vmem:[%s4347_s1 + $0x5d4] ss:$8 sps:$4 sm:$0xff]   ;;  %v3067_v2 = vld [vmem:[%s4347_s1 + $0x1d0] ss:$8 sps:$4 sm:$0xff]  }
  0x41   :  { %2176 = vmatprep.subr.bf16.mxu0 %v2994_v3  ;;  %v3070_v3 = vld [vmem:[%s4347_s1 + $0x5d0] ss:$8 sps:$4 sm:$0xff]  }
  0x42   :  { %1954 = vmatmul.mubr.bf16.vlgmr.msra.gmra.mrb[0].mxu1 %v2983_v4  ;;  %v3076_v4 = vld [vmem:[%s4347_s1 + $0x1e4] ss:$8 sps:$4 sm:$0xff]  }
  0x43   :  { %2158 = vmatmul.mubr.bf16.vlgmr.msra.gmra.mrb[0].mxu0 %v2989_v6  ;;  %1973 = vmatpush1.bf16.msra.mxu1 %v2986_v5  ;;  %v3080_v5 = vld [vmem:[%s4347_s1 + $0x5e4] ss:$8 sps:$4 sm:$0xff]   ;;  %v3074_v6 = vld [vmem:[%s4347_s1 + $0x1e0] ss:$8 sps:$4 sm:$0xff]  }
  0x44   :  { %2177 = vmatpush1.bf16.msra.mxu0 %v2992_v7  ;;  %1974 = vmatprep.subr.bf16.mxu1 %v2997_v8  ;;  %v3078_v7 = vld [vmem:[%s4347_s1 + $0x5e0] ss:$8 sps:$4 sm:$0xff]   ;;  %v3085_v8 = vld [vmem:[%s4347_s1 + $0x1f4] ss:$8 sps:$4 sm:$0xff]  }
  0x45   :  { %2178 = vmatprep.subr.bf16.mxu0 %v3000_v9  ;;  %1963 = vmatprep.mubr.bf16.mxu1 %v2483_v28  ;;  %v3088_v9 = vld [vmem:[%s4347_s1 + $0x5f4] ss:$8 sps:$4 sm:$0xff]   ;;  %v3107_v28 = vld [vmem:[%s4347_s1 + $0x220] ss:$8 sps:$4 sm:$0xff]  }
  0x46   :  { %2167 = vmatprep.mubr.bf16.mxu0 %v2491_v34  ;;  %v3197_v34 = vld [vmem:[%s4348_s0 + $0x14] ss:$72 sps:$4 sm:$0xff]  }
  0x47   :  { %1975 = vmatpush1.bf16.msra.mxu1 %v2995_v10  ;;  %v3083_v10 = vld [vmem:[%s4347_s1 + $0x1f0] ss:$8 sps:$4 sm:$0xff]  }
  0x48   :  { %2179 = vmatpush1.bf16.msra.mxu0 %v2998_v11  ;;  %1976 = vmatprep.subr.bf16.mxu1 %v3003_v12  ;;  %v3086_v11 = vld [vmem:[%s4347_s1 + $0x5f0] ss:$8 sps:$4 sm:$0xff]  }
  0x49   :  { %2180 = vmatprep.subr.bf16.mxu0 %v3006_v13  ;;  %v3089_v12 = vld [vmem:[%s4348_s0 + $0x8] ss:$72 sps:$4 sm:$0xff]   ;;  %v3094_v13 = vld [vmem:[%s4347_s1 + $0x204] ss:$8 sps:$4 sm:$0xff]  }
  0x4a   :  { %1964 = vmatmul.mubr.bf16.gmra.mrb[4].mxu1 %v2482_v29  ;;  %v3110_v29 = vld [vmem:[%s4347_s1 + $0x620] ss:$8 sps:$4 sm:$0xff]  }
  0x4b   :  { %1977 = vmatpush1.bf16.msra.mxu1 %v3001_v14  ;;  %2168 = vmatmul.mubr.bf16.gmra.mrb[4].mxu0 %v2490_v35  ;;  %v3100_v14 = vld [vmem:[%s4347_s1 + $0x604] ss:$8 sps:$4 sm:$0xff]   ;;  %v3203_v35 = vld [vmem:[%s4348_s0 + $0x34] ss:$72 sps:$4 sm:$0xff]  }
  0x4c   :  { %2181 = vmatpush1.bf16.msra.mxu0 %v3004_v15  ;;  %1978 = vmatprep.subr.bf16.mxu1 %v3009_v16  ;;  %v3092_v15 = vld [vmem:[%s4347_s1 + $0x200] ss:$8 sps:$4 sm:$0xff]  }
  0x4d   :  { %2182 = vmatprep.subr.bf16.mxu0 %v3012_v17  ;;  %2004 = vmatprep.mubr.bf16.mxu1 %v3091_v40  ;;  %v3095_v16 = vld [vmem:[%s4348_s0 + $0x28] ss:$72 sps:$4 sm:$0xff]  }
  0x4e   :  { %2208 = vmatprep.mubr.bf16.mxu0 %v3097_v43  ;;  %v3098_v17 = vld [vmem:[%s4347_s1 + $0x600] ss:$8 sps:$4 sm:$0xff]   ;;  %v3130_v43 = vld [vmem:[%s4347_s1 + $0x654] ss:$8 sps:$4 sm:$0xff]  }
  0x4f   :  { %1979 = vmatpush1.bf16.msra.mxu1 %v3007_v18  ;;  %v3103_v18 = vld [vmem:[%s4347_s1 + $0x214] ss:$8 sps:$4 sm:$0xff]   ;;  %v3119_v40 = vld [vmem:[%s4347_s1 + $0x240] ss:$8 sps:$4 sm:$0xff]  }
  0x50   :  { %2183 = vmatpush1.bf16.msra.mxu0 %v3010_v19  ;;  %1980 = vmatprep.subr.bf16.mxu1 %v3015_v20  ;;  %v32_v19 = vld [vmem:[%s4348_s0 + $0x98] sm:$0xff] }
  0x51   :  { %2184 = vmatprep.subr.bf16.mxu0 %v3018_v21  ;;  %v3106_v20 = vld [vmem:[%s4347_s1 + $0x614] ss:$8 sps:$4 sm:$0xff]   ;;  %v2485_v21 = vcombine.high %v32_v19, %v32_v19 }
  0x53   :  { %1981 = vmatpush1.bf16.msra.mxu1 %v3013_v22  ;;  %v36_v22 = vld [vmem:[%s4348_s0 + $0xb8] sm:$0xff] }
  0x54   :  { %2185 = vmatpush1.bf16.msra.mxu0 %v3016_v23  ;;  %1982 = vmatprep.subr.bf16.mxu1 %v3021_v24  ;;  %v3101_v23 = vld [vmem:[%s4347_s1 + $0x210] ss:$8 sps:$4 sm:$0xff]   ;;  %v2492_v31 = vcombine.low %v36_v22, %v36_v22 }
  0x55   :  { %2186 = vmatprep.subr.bf16.mxu0 %v3024_v25  ;;  %v3104_v24 = vld [vmem:[%s4347_s1 + $0x610] ss:$8 sps:$4 sm:$0xff]   ;;  %v2493_v25 = vcombine.high %v36_v22, %v36_v22  ;;  %v3200_v22 = vld [vmem:[%s4347_s1 + $0x304] ss:$8 sps:$4 sm:$0xff]  }
  0x57   :  { %1983 = vmatpush1.bf16.msra.mxu1 %v3019_v27  ;;  %v3112_v27 = vld [vmem:[%s4347_s1 + $0x624] ss:$8 sps:$4 sm:$0xff]  }
  0x58   :  { %2187 = vmatpush1.bf16.msra.mxu0 %v3022_v30  ;;  %1984 = vmatprep.subr.bf16.mxu1 %v3027_v32  ;;  %v2484_v30 = vcombine.low %v32_v19, %v32_v19  ;;  %v3115_v32 = vld [vmem:[%s4347_s1 + $0x234] ss:$8 sps:$4 sm:$0xff]  }
  0x59   :  { %2188 = vmatprep.subr.bf16.mxu0 %v3030_v33  ;;  %v3118_v33 = vld [vmem:[%s4347_s1 + $0x634] ss:$8 sps:$4 sm:$0xff]  }
  0x5a   :  { %v3194_v19 = vld [vmem:[%s4347_s1 + $0x6f4] ss:$8 sps:$4 sm:$0xff]  }
  0x5b   :  { %1985 = vmatpush1.bf16.msra.mxu1 %v3025_v36  ;;  %v3113_v36 = vld [vmem:[%s4347_s1 + $0x230] ss:$8 sps:$4 sm:$0xff]  }
  0x5c   :  { %2189 = vmatpush1.bf16.msra.mxu0 %v3028_v37  ;;  %1986 = vmatprep.subr.bf16.mxu1 %v3033_v38  ;;  %v3116_v37 = vld [vmem:[%s4347_s1 + $0x630] ss:$8 sps:$4 sm:$0xff]   ;;  %v3121_v38 = vld [vmem:[%s4347_s1 + $0x244] ss:$8 sps:$4 sm:$0xff]  }
  0x5d   :  { %2190 = vmatprep.subr.bf16.mxu0 %v3036_v39  ;;  %v3124_v39 = vld [vmem:[%s4347_s1 + $0x644] ss:$8 sps:$4 sm:$0xff]  }
  0x5f   :  { %1987 = vmatpush1.bf16.msra.mxu1 %v3031_v41  ;;  %v3122_v41 = vld [vmem:[%s4347_s1 + $0x640] ss:$8 sps:$4 sm:$0xff]  }
  0x60   :  { %2191 = vmatpush1.bf16.msra.mxu0 %v3034_v42  ;;  %1988 = vmatprep.subr.bf16.mxu1 %v3039_v44  ;;  %v3127_v42 = vld [vmem:[%s4347_s1 + $0x254] ss:$8 sps:$4 sm:$0xff]   ;;  %v3125_v44 = vld [vmem:[%s4347_s1 + $0x250] ss:$8 sps:$4 sm:$0xff]  }
  0x61   :  { %2192 = vmatprep.subr.bf16.mxu0 %v3042_v45  ;;  %v3128_v45 = vld [vmem:[%s4347_s1 + $0x650] ss:$8 sps:$4 sm:$0xff]  }
  0x63   :  { %1989 = vmatpush1.bf16.msra.mxu1 %v3037_v46  ;;  %v3133_v46 = vld [vmem:[%s4347_s1 + $0x264] ss:$8 sps:$4 sm:$0xff]  }
  0x64   :  { %2193 = vmatpush1.bf16.msra.mxu0 %v3040_v47  ;;  %1990 = vmatprep.subr.bf16.mxu1 %v3045_v48  ;;  %v3136_v47 = vld [vmem:[%s4347_s1 + $0x664] ss:$8 sps:$4 sm:$0xff]   ;;  %v3131_v48 = vld [vmem:[%s4347_s1 + $0x260] ss:$8 sps:$4 sm:$0xff]  }
  0x65   :  { %2194 = vmatprep.subr.bf16.mxu0 %v3048_v49  ;;  %v3134_v49 = vld [vmem:[%s4347_s1 + $0x660] ss:$8 sps:$4 sm:$0xff]  }
  0x67   :  { %1991 = vmatpush1.bf16.msra.mxu1 %v3043_v50  ;;  %v3139_v50 = vld [vmem:[%s4347_s1 + $0x274] ss:$8 sps:$4 sm:$0xff]  }
  0x68   :  { %2195 = vmatpush1.bf16.msra.mxu0 %v3046_v51  ;;  %1992 = vmatprep.subr.bf16.mxu1 %v3051_v52  ;;  %v3142_v51 = vld [vmem:[%s4347_s1 + $0x674] ss:$8 sps:$4 sm:$0xff]   ;;  %v3137_v52 = vld [vmem:[%s4347_s1 + $0x270] ss:$8 sps:$4 sm:$0xff]  }
  0x69   :  { %2196 = vmatprep.subr.bf16.mxu0 %v3054_v53  ;;  %v3140_v53 = vld [vmem:[%s4347_s1 + $0x670] ss:$8 sps:$4 sm:$0xff]  }
  0x6b   :  { %1993 = vmatpush1.bf16.msra.mxu1 %v3049_v54  ;;  %v3145_v54 = vld [vmem:[%s4347_s1 + $0x284] ss:$8 sps:$4 sm:$0xff]  }
  0x6c   :  { %2197 = vmatpush1.bf16.msra.mxu0 %v3052_v55  ;;  %1994 = vmatprep.subr.bf16.mxu1 %v3057_v56  ;;  %v3148_v55 = vld [vmem:[%s4347_s1 + $0x684] ss:$8 sps:$4 sm:$0xff]   ;;  %v3143_v56 = vld [vmem:[%s4347_s1 + $0x280] ss:$8 sps:$4 sm:$0xff]  }
  0x6d   :  { %2198 = vmatprep.subr.bf16.mxu0 %v3060_v57  ;;  %v3146_v57 = vld [vmem:[%s4347_s1 + $0x680] ss:$8 sps:$4 sm:$0xff]  }
  0x6f   :  { %1995 = vmatpush1.bf16.msra.mxu1 %v3055_v58  ;;  %v3151_v58 = vld [vmem:[%s4347_s1 + $0x294] ss:$8 sps:$4 sm:$0xff]  }
  0x70   :  { %2199 = vmatpush1.bf16.msra.mxu0 %v3058_v59  ;;  %1996 = vmatprep.subr.bf16.mxu1 %v3063_v60  ;;  %v3154_v59 = vld [vmem:[%s4347_s1 + $0x694] ss:$8 sps:$4 sm:$0xff]   ;;  %v3149_v60 = vld [vmem:[%s4347_s1 + $0x290] ss:$8 sps:$4 sm:$0xff]  }
  0x71   :  { %2200 = vmatprep.subr.bf16.mxu0 %v3066_v61  ;;  %v3152_v61 = vld [vmem:[%s4347_s1 + $0x690] ss:$8 sps:$4 sm:$0xff]  }
  0x73   :  { %1997 = vmatpush1.bf16.msra.mxu1 %v3061_v62  ;;  %v3157_v62 = vld [vmem:[%s4347_s1 + $0x2a4] ss:$8 sps:$4 sm:$0xff]  }
  0x74   :  { %2201 = vmatpush1.bf16.msra.mxu0 %v3064_v63  ;;  %1998 = vmatprep.subr.bf16.mxu1 %v3069_v0  ;;  %v3160_v63 = vld [vmem:[%s4347_s1 + $0x6a4] ss:$8 sps:$4 sm:$0xff]   ;;  %v3155_v0 = vld [vmem:[%s4347_s1 + $0x2a0] ss:$8 sps:$4 sm:$0xff]  }
  0x75   :  { %2202 = vmatprep.subr.bf16.mxu0 %v3072_v1  ;;  %v3158_v1 = vld [vmem:[%s4347_s1 + $0x6a0] ss:$8 sps:$4 sm:$0xff]  }
  0x77   :  { %1999 = vmatpush1.bf16.msra.mxu1 %v3067_v2  ;;  %v3163_v2 = vld [vmem:[%s4347_s1 + $0x2b4] ss:$8 sps:$4 sm:$0xff]  }
  0x78   :  { %2203 = vmatpush1.bf16.msra.mxu0 %v3070_v3  ;;  %2000 = vmatprep.subr.bf16.mxu1 %v3076_v4  ;;  %v3166_v3 = vld [vmem:[%s4347_s1 + $0x6b4] ss:$8 sps:$4 sm:$0xff]   ;;  %v3161_v4 = vld [vmem:[%s4347_s1 + $0x2b0] ss:$8 sps:$4 sm:$0xff]  }
  0x79   :  { %2204 = vmatprep.subr.bf16.mxu0 %v3080_v5  ;;  %v3164_v5 = vld [vmem:[%s4347_s1 + $0x6b0] ss:$8 sps:$4 sm:$0xff]  }
  0x7b   :  { %2001 = vmatpush1.bf16.msra.mxu1 %v3074_v6  ;;  %v3169_v6 = vld [vmem:[%s4347_s1 + $0x2c4] ss:$8 sps:$4 sm:$0xff]  }
  0x7c   :  { %2205 = vmatpush1.bf16.msra.mxu0 %v3078_v7  ;;  %2002 = vmatprep.subr.bf16.mxu1 %v3085_v8  ;;  %v3172_v7 = vld [vmem:[%s4347_s1 + $0x6c4] ss:$8 sps:$4 sm:$0xff]   ;;  %v3167_v8 = vld [vmem:[%s4347_s1 + $0x2c0] ss:$8 sps:$4 sm:$0xff]  }
  0x7d   :  { %2206 = vmatprep.subr.bf16.mxu0 %v3088_v9  ;;  %v3170_v9 = vld [vmem:[%s4347_s1 + $0x6c0] ss:$8 sps:$4 sm:$0xff]  }
  0x7f   :  { %2003 = vmatpush1.bf16.msra.mxu1 %v3083_v10  ;;  %v3175_v10 = vld [vmem:[%s4347_s1 + $0x2d4] ss:$8 sps:$4 sm:$0xff]  }
  0x80   :  { %2207 = vmatpush1.bf16.msra.mxu0 %v3086_v11  ;;  %2023 = vmatprep.subr.bf16.mxu1 %v3094_v13  ;;  %v3178_v11 = vld [vmem:[%s4347_s1 + $0x6d4] ss:$8 sps:$4 sm:$0xff]   ;;  %v3176_v13 = vld [vmem:[%s4347_s1 + $0x6d0] ss:$8 sps:$4 sm:$0xff]  }
  0x81   :  { %2227 = vmatprep.subr.bf16.mxu0 %v3100_v14  ;;  %v3182_v14 = vld [vmem:[%s4347_s1 + $0x2e4] ss:$8 sps:$4 sm:$0xff]  }
  0x82   :  { %2005 = vmatmul.mubr.bf16.vlgmr.msra.gmra.mrb[0].mxu1 %v3089_v12  ;;  %v3173_v12 = vld [vmem:[%s4347_s1 + $0x2d0] ss:$8 sps:$4 sm:$0xff]  }
  0x83   :  { %2209 = vmatmul.mubr.bf16.vlgmr.msra.gmra.mrb[0].mxu0 %v3095_v16  ;;  %2024 = vmatpush1.bf16.msra.mxu1 %v3092_v15  ;;  %v3186_v15 = vld [vmem:[%s4347_s1 + $0x6e4] ss:$8 sps:$4 sm:$0xff]   ;;  %v3180_v16 = vld [vmem:[%s4347_s1 + $0x2e0] ss:$8 sps:$4 sm:$0xff]  }
  0x84   :  { %2228 = vmatpush1.bf16.msra.mxu0 %v3098_v17  ;;  %2025 = vmatprep.subr.bf16.mxu1 %v3103_v18  ;;  %v3184_v17 = vld [vmem:[%s4347_s1 + $0x6e0] ss:$8 sps:$4 sm:$0xff]   ;;  %v3191_v18 = vld [vmem:[%s4347_s1 + $0x2f4] ss:$8 sps:$4 sm:$0xff]  }
  0x85   :  { %2229 = vmatprep.subr.bf16.mxu0 %v3106_v20  ;;  %2014 = vmatprep.mubr.bf16.mxu1 %v2485_v21  ;;  %v3189_v20 = vld [vmem:[%s4347_s1 + $0x2f0] ss:$8 sps:$4 sm:$0xff]  }
  0x86   :  { %2218 = vmatprep.mubr.bf16.mxu0 %v2493_v25  ;;  %v3192_v21 = vld [vmem:[%s4347_s1 + $0x6f0] ss:$8 sps:$4 sm:$0xff]   ;;  %v3198_v25 = vld [vmem:[%s4347_s1 + $0x300] ss:$8 sps:$4 sm:$0xff]  }
  0x87   :  { %2026 = vmatpush1.bf16.msra.mxu1 %v3101_v23  ;;  %v3195_v23 = vld [vmem:[%s4348_s0 + $0x10] ss:$72 sps:$4 sm:$0xff]  }
  0x88   :  { %2230 = vmatpush1.bf16.msra.mxu0 %v3104_v24  ;;  %2027 = vmatprep.subr.bf16.mxu1 %v3109_v26  ;;  %v3206_v24 = vld [vmem:[%s4347_s1 + $0x704] ss:$8 sps:$4 sm:$0xff]   ;;  %v3201_v26 = vld [vmem:[%s4348_s0 + $0x30] ss:$72 sps:$4 sm:$0xff]  }
  0x89   :  { %2231 = vmatprep.subr.bf16.mxu0 %v3112_v27  ;;  %v3204_v27 = vld [vmem:[%s4347_s1 + $0x700] ss:$8 sps:$4 sm:$0xff]  }
  0x8a   :  { %2015 = vmatmul.mubr.bf16.gmra.mrb[4].mxu1 %v2484_v30  ;;  %v3209_v30 = vld [vmem:[%s4347_s1 + $0x314] ss:$8 sps:$4 sm:$0xff]  }
  0x8b   :  { %2219 = vmatmul.mubr.bf16.gmra.mrb[4].mxu0 %v2492_v31  ;;  %2028 = vmatpush1.bf16.msra.mxu1 %v3107_v28  ;;  %v33_v28 = vld [vmem:[%s4348_s0 + $0xa0] sm:$0xff]  ;;  %v3212_v31 = vld [vmem:[%s4347_s1 + $0x714] ss:$8 sps:$4 sm:$0xff]  }
  0x8c   :  { %2232 = vmatpush1.bf16.msra.mxu0 %v3110_v29  ;;  %2029 = vmatprep.subr.bf16.mxu1 %v3115_v32  ;;  %v37_v29 = vld [vmem:[%s4348_s0 + $0xc0] sm:$0xff]  ;;  %v2487_v32 = vcombine.high %v33_v28, %v33_v28 }
  0x8d   :  { %2233 = vmatprep.subr.bf16.mxu0 %v3118_v33  ;;  %2055 = vmatprep.mubr.bf16.mxu1 %v3197_v34  ;;  %v2495_v33 = vcombine.high %v37_v29, %v37_v29  ;;  %v3207_v34 = vld [vmem:[%s4347_s1 + $0x310] ss:$8 sps:$4 sm:$0xff]  }
  0x8e   :  { %2259 = vmatprep.mubr.bf16.mxu0 %v3203_v35  ;;  %v3210_v35 = vld [vmem:[%s4347_s1 + $0x710] ss:$8 sps:$4 sm:$0xff]  }
  0x8f   :  { %2030 = vmatpush1.bf16.msra.mxu1 %v3113_v36  ;;  %v3215_v36 = vld [vmem:[%s4347_s1 + $0x324] ss:$8 sps:$4 sm:$0xff]  }
  0x90   :  { %2234 = vmatpush1.bf16.msra.mxu0 %v3116_v37  ;;  %2031 = vmatprep.subr.bf16.mxu1 %v3121_v38  ;;  %v3218_v37 = vld [vmem:[%s4347_s1 + $0x724] ss:$8 sps:$4 sm:$0xff]   ;;  %v3213_v38 = vld [vmem:[%s4347_s1 + $0x320] ss:$8 sps:$4 sm:$0xff]  }
  0x91   :  { %2235 = vmatprep.subr.bf16.mxu0 %v3124_v39  ;;  %v3216_v39 = vld [vmem:[%s4347_s1 + $0x720] ss:$8 sps:$4 sm:$0xff]  }
  0x93   :  { %2032 = vmatpush1.bf16.msra.mxu1 %v3119_v40  ;;  %v2486_v40 = vcombine.low %v33_v28, %v33_v28  ;;  %v3297_v28 = vld [vmem:[%s4347_s1 + $0x3f4] ss:$8 sps:$4 sm:$0xff]  }
  0x94   :  { %2236 = vmatpush1.bf16.msra.mxu0 %v3122_v41  ;;  %2033 = vmatprep.subr.bf16.mxu1 %v3127_v42  ;;  %v2494_v41 = vcombine.low %v37_v29, %v37_v29  ;;  %v3221_v42 = vld [vmem:[%s4347_s1 + $0x334] ss:$8 sps:$4 sm:$0xff]  }
  0x95   :  { %2237 = vmatprep.subr.bf16.mxu0 %v3130_v43  ;;  %v3224_v43 = vld [vmem:[%s4347_s1 + $0x734] ss:$8 sps:$4 sm:$0xff]  }
  0x96   :  { %v3300_v29 = vld [vmem:[%s4347_s1 + $0x7f4] ss:$8 sps:$4 sm:$0xff]  }
  0x97   :  { %2034 = vmatpush1.bf16.msra.mxu1 %v3125_v44  ;;  %v3303_v44 = vld [vmem:[%s4348_s0 + $0x1c] ss:$72 sps:$4 sm:$0xff]  }
  0x98   :  { %2238 = vmatpush1.bf16.msra.mxu0 %v3128_v45  ;;  %2035 = vmatprep.subr.bf16.mxu1 %v3133_v46  ;;  %v3306_v45 = vld [vmem:[%s4348_s0 + $0x3c] ss:$72 sps:$4 sm:$0xff]   ;;  %v3219_v46 = vld [vmem:[%s4347_s1 + $0x330] ss:$8 sps:$4 sm:$0xff]  }
  0x99   :  { %2239 = vmatprep.subr.bf16.mxu0 %v3136_v47  ;;  %v3222_v47 = vld [vmem:[%s4347_s1 + $0x730] ss:$8 sps:$4 sm:$0xff]  }
  0x9b   :  { %2036 = vmatpush1.bf16.msra.mxu1 %v3131_v48  ;;  %v3227_v48 = vld [vmem:[%s4347_s1 + $0x344] ss:$8 sps:$4 sm:$0xff]  }
  0x9c   :  { %2240 = vmatpush1.bf16.msra.mxu0 %v3134_v49  ;;  %2037 = vmatprep.subr.bf16.mxu1 %v3139_v50  ;;  %v3230_v49 = vld [vmem:[%s4347_s1 + $0x744] ss:$8 sps:$4 sm:$0xff]   ;;  %v3225_v50 = vld [vmem:[%s4347_s1 + $0x340] ss:$8 sps:$4 sm:$0xff]  }
  0x9d   :  { %2241 = vmatprep.subr.bf16.mxu0 %v3142_v51  ;;  %v3228_v51 = vld [vmem:[%s4347_s1 + $0x740] ss:$8 sps:$4 sm:$0xff]  }
  0x9f   :  { %2038 = vmatpush1.bf16.msra.mxu1 %v3137_v52  ;;  %v3233_v52 = vld [vmem:[%s4347_s1 + $0x354] ss:$8 sps:$4 sm:$0xff]  }
  0xa0   :  { %2242 = vmatpush1.bf16.msra.mxu0 %v3140_v53  ;;  %2039 = vmatprep.subr.bf16.mxu1 %v3145_v54  ;;  %v3236_v53 = vld [vmem:[%s4347_s1 + $0x754] ss:$8 sps:$4 sm:$0xff]   ;;  %v3231_v54 = vld [vmem:[%s4347_s1 + $0x350] ss:$8 sps:$4 sm:$0xff]  }
  0xa1   :  { %2243 = vmatprep.subr.bf16.mxu0 %v3148_v55  ;;  %v3234_v55 = vld [vmem:[%s4347_s1 + $0x750] ss:$8 sps:$4 sm:$0xff]  }
  0xa3   :  { %2040 = vmatpush1.bf16.msra.mxu1 %v3143_v56  ;;  %v3239_v56 = vld [vmem:[%s4347_s1 + $0x364] ss:$8 sps:$4 sm:$0xff]  }
  0xa4   :  { %2244 = vmatpush1.bf16.msra.mxu0 %v3146_v57  ;;  %2041 = vmatprep.subr.bf16.mxu1 %v3151_v58  ;;  %v3242_v57 = vld [vmem:[%s4347_s1 + $0x764] ss:$8 sps:$4 sm:$0xff]   ;;  %v3237_v58 = vld [vmem:[%s4347_s1 + $0x360] ss:$8 sps:$4 sm:$0xff]  }
  0xa5   :  { %2245 = vmatprep.subr.bf16.mxu0 %v3154_v59  ;;  %v3240_v59 = vld [vmem:[%s4347_s1 + $0x760] ss:$8 sps:$4 sm:$0xff]  }
  0xa7   :  { %2042 = vmatpush1.bf16.msra.mxu1 %v3149_v60  ;;  %v3245_v60 = vld [vmem:[%s4347_s1 + $0x374] ss:$8 sps:$4 sm:$0xff]  }
  0xa8   :  { %2246 = vmatpush1.bf16.msra.mxu0 %v3152_v61  ;;  %2043 = vmatprep.subr.bf16.mxu1 %v3157_v62  ;;  %v3248_v61 = vld [vmem:[%s4347_s1 + $0x774] ss:$8 sps:$4 sm:$0xff]   ;;  %v3243_v62 = vld [vmem:[%s4347_s1 + $0x370] ss:$8 sps:$4 sm:$0xff]  }
  0xa9   :  { %2247 = vmatprep.subr.bf16.mxu0 %v3160_v63  ;;  %v3246_v63 = vld [vmem:[%s4347_s1 + $0x770] ss:$8 sps:$4 sm:$0xff]  }
  0xab   :  { %2044 = vmatpush1.bf16.msra.mxu1 %v3155_v0  ;;  %v3251_v0 = vld [vmem:[%s4347_s1 + $0x384] ss:$8 sps:$4 sm:$0xff]  }
  0xac   :  { %2248 = vmatpush1.bf16.msra.mxu0 %v3158_v1  ;;  %2045 = vmatprep.subr.bf16.mxu1 %v3163_v2  ;;  %v3254_v1 = vld [vmem:[%s4347_s1 + $0x784] ss:$8 sps:$4 sm:$0xff]   ;;  %v3249_v2 = vld [vmem:[%s4347_s1 + $0x380] ss:$8 sps:$4 sm:$0xff]  }
  0xad   :  { %2249 = vmatprep.subr.bf16.mxu0 %v3166_v3  ;;  %v3252_v3 = vld [vmem:[%s4347_s1 + $0x780] ss:$8 sps:$4 sm:$0xff]  }
  0xaf   :  { %2046 = vmatpush1.bf16.msra.mxu1 %v3161_v4  ;;  %v3257_v4 = vld [vmem:[%s4347_s1 + $0x394] ss:$8 sps:$4 sm:$0xff]  }
  0xb0   :  { %2250 = vmatpush1.bf16.msra.mxu0 %v3164_v5  ;;  %2047 = vmatprep.subr.bf16.mxu1 %v3169_v6  ;;  %v3260_v5 = vld [vmem:[%s4347_s1 + $0x794] ss:$8 sps:$4 sm:$0xff]   ;;  %v3255_v6 = vld [vmem:[%s4347_s1 + $0x390] ss:$8 sps:$4 sm:$0xff]  }
  0xb1   :  { %2251 = vmatprep.subr.bf16.mxu0 %v3172_v7  ;;  %v3258_v7 = vld [vmem:[%s4347_s1 + $0x790] ss:$8 sps:$4 sm:$0xff]  }
  0xb3   :  { %2048 = vmatpush1.bf16.msra.mxu1 %v3167_v8  ;;  %v3263_v8 = vld [vmem:[%s4347_s1 + $0x3a4] ss:$8 sps:$4 sm:$0xff]  }
  0xb4   :  { %2252 = vmatpush1.bf16.msra.mxu0 %v3170_v9  ;;  %2049 = vmatprep.subr.bf16.mxu1 %v3175_v10  ;;  %v3266_v9 = vld [vmem:[%s4347_s1 + $0x7a4] ss:$8 sps:$4 sm:$0xff]   ;;  %v3261_v10 = vld [vmem:[%s4347_s1 + $0x3a0] ss:$8 sps:$4 sm:$0xff]  }
  0xb5   :  { %2253 = vmatprep.subr.bf16.mxu0 %v3178_v11  ;;  %v3264_v11 = vld [vmem:[%s4347_s1 + $0x7a0] ss:$8 sps:$4 sm:$0xff]  }
  0xb7   :  { %2050 = vmatpush1.bf16.msra.mxu1 %v3173_v12  ;;  %v3269_v12 = vld [vmem:[%s4347_s1 + $0x3b4] ss:$8 sps:$4 sm:$0xff]  }
  0xb8   :  { %2254 = vmatpush1.bf16.msra.mxu0 %v3176_v13  ;;  %2051 = vmatprep.subr.bf16.mxu1 %v3182_v14  ;;  %v3272_v13 = vld [vmem:[%s4347_s1 + $0x7b4] ss:$8 sps:$4 sm:$0xff]   ;;  %v3267_v14 = vld [vmem:[%s4347_s1 + $0x3b0] ss:$8 sps:$4 sm:$0xff]  }
  0xb9   :  { %2255 = vmatprep.subr.bf16.mxu0 %v3186_v15  ;;  %v3270_v15 = vld [vmem:[%s4347_s1 + $0x7b0] ss:$8 sps:$4 sm:$0xff]  }
  0xbb   :  { %2052 = vmatpush1.bf16.msra.mxu1 %v3180_v16  ;;  %v3275_v16 = vld [vmem:[%s4347_s1 + $0x3c4] ss:$8 sps:$4 sm:$0xff]  }
  0xbc   :  { %2256 = vmatpush1.bf16.msra.mxu0 %v3184_v17  ;;  %2053 = vmatprep.subr.bf16.mxu1 %v3191_v18  ;;  %v3278_v17 = vld [vmem:[%s4347_s1 + $0x7c4] ss:$8 sps:$4 sm:$0xff]   ;;  %v3273_v18 = vld [vmem:[%s4347_s1 + $0x3c0] ss:$8 sps:$4 sm:$0xff]  }
  0xbd   :  { %2257 = vmatprep.subr.bf16.mxu0 %v3194_v19  ;;  %v3276_v19 = vld [vmem:[%s4347_s1 + $0x7c0] ss:$8 sps:$4 sm:$0xff]  }
  0xbf   :  { %2054 = vmatpush1.bf16.msra.mxu1 %v3189_v20  ;;  %v3281_v20 = vld [vmem:[%s4347_s1 + $0x3d4] ss:$8 sps:$4 sm:$0xff]  }
  0xc0   :  { %2258 = vmatpush1.bf16.msra.mxu0 %v3192_v21  ;;  %2074 = vmatprep.subr.bf16.mxu1 %v3200_v22  ;;  %v3284_v21 = vld [vmem:[%s4347_s1 + $0x7d4] ss:$8 sps:$4 sm:$0xff]   ;;  %v3279_v22 = vld [vmem:[%s4347_s1 + $0x3d0] ss:$8 sps:$4 sm:$0xff]  }
  0xc1   :  { %2278 = vmatprep.subr.bf16.mxu0 %v3206_v24  ;;  %v3290_v24 = vld [vmem:[%s4347_s1 + $0x3e4] ss:$8 sps:$4 sm:$0xff]  }
  0xc2   :  { %2056 = vmatmul.mubr.bf16.vlgmr.msra.gmra.mrb[0].mxu1 %v3195_v23  ;;  %v3282_v23 = vld [vmem:[%s4347_s1 + $0x7d0] ss:$8 sps:$4 sm:$0xff]  }
  0xc3   :  { %2260 = vmatmul.mubr.bf16.vlgmr.msra.gmra.mrb[0].mxu0 %v3201_v26  ;;  %2075 = vmatpush1.bf16.msra.mxu1 %v3198_v25  ;;  %v3294_v25 = vld [vmem:[%s4347_s1 + $0x7e4] ss:$8 sps:$4 sm:$0xff]   ;;  %v3288_v26 = vld [vmem:[%s4347_s1 + $0x3e0] ss:$8 sps:$4 sm:$0xff]  }
  0xc4   :  { %2279 = vmatpush1.bf16.msra.mxu0 %v3204_v27  ;;  %2076 = vmatprep.subr.bf16.mxu1 %v3209_v30  ;;  %v3292_v27 = vld [vmem:[%s4347_s1 + $0x7e0] ss:$8 sps:$4 sm:$0xff]   ;;  %v3295_v30 = vld [vmem:[%s4347_s1 + $0x3f0] ss:$8 sps:$4 sm:$0xff]  }
  0xc5   :  { %2280 = vmatprep.subr.bf16.mxu0 %v3212_v31  ;;  %2065 = vmatprep.mubr.bf16.mxu1 %v2487_v32  ;;  %v3298_v31 = vld [vmem:[%s4347_s1 + $0x7f0] ss:$8 sps:$4 sm:$0xff]   ;;  %v3309_v32 = vld [vmem:[%s4347_s1 + $0x804] ss:$8 sps:$4 sm:$0xff]  }
  0xc6   :  { %2269 = vmatprep.mubr.bf16.mxu0 %v2495_v33  ;;  %v3301_v33 = vld [vmem:[%s4348_s0 + $0x18] ss:$72 sps:$4 sm:$0xff]  }
  0xc7   :  { %2077 = vmatpush1.bf16.msra.mxu1 %v3207_v34  ;;  %v3304_v34 = vld [vmem:[%s4348_s0 + $0x38] ss:$72 sps:$4 sm:$0xff]  }
  0xc8   :  { %2281 = vmatpush1.bf16.msra.mxu0 %v3210_v35  ;;  %2078 = vmatprep.subr.bf16.mxu1 %v3215_v36  ;;  %v34_v35 = vld [vmem:[%s4348_s0 + $0xa8] sm:$0xff] }
  0xc9   :  { %2282 = vmatprep.subr.bf16.mxu0 %v3218_v37  ;;  %v38_v36 = vld [vmem:[%s4348_s0 + $0xc8] sm:$0xff] }
  0xca   :  { %2066 = vmatmul.mubr.bf16.gmra.mrb[4].mxu1 %v2486_v40  ;;  %v3307_v37 = vld [vmem:[%s4347_s1 + $0x800] ss:$8 sps:$4 sm:$0xff]   ;;  %v2497_v40 = vcombine.high %v38_v36, %v38_v36 }
  0xcb   :  { %2270 = vmatmul.mubr.bf16.gmra.mrb[4].mxu0 %v2494_v41  ;;  %2079 = vmatpush1.bf16.msra.mxu1 %v3213_v38  ;;  %v3312_v38 = vld [vmem:[%s4347_s1 + $0x814] ss:$8 sps:$4 sm:$0xff]   ;;  %v3310_v41 = vld [vmem:[%s4347_s1 + $0x810] ss:$8 sps:$4 sm:$0xff]  }
  0xcc   :  { %2283 = vmatpush1.bf16.msra.mxu0 %v3216_v39  ;;  %2080 = vmatprep.subr.bf16.mxu1 %v3221_v42  ;;  %v2489_v39 = vcombine.high %v34_v35, %v34_v35  ;;  %v3319_v42 = vld [vmem:[%s4347_s1 + $0x824] ss:$8 sps:$4 sm:$0xff]  }
  0xcd   :  { %2284 = vmatprep.subr.bf16.mxu0 %v3224_v43  ;;  %2106 = vmatprep.mubr.bf16.mxu1 %v3303_v44  ;;  %v2488_v43 = vcombine.low %v34_v35, %v34_v35  ;;  %v2496_v44 = vcombine.low %v38_v36, %v38_v36 }
  0xce   :  { %2310 = vmatprep.mubr.bf16.mxu0 %v3306_v45  ;;  %v4242_v45 = vld [vmem:[%s4348_s0 + $0xd0] sm:$0xff] }
  0xcf   :  { %2081 = vmatpush1.bf16.msra.mxu1 %v3219_v46  ;;  %v3317_v46 = vld [vmem:[%s4347_s1 + $0x820] ss:$8 sps:$4 sm:$0xff]  }
  0xd0   :  { %2285 = vmatpush1.bf16.msra.mxu0 %v3222_v47  ;;  %2082 = vmatprep.subr.bf16.mxu1 %v3227_v48  ;;  %v3322_v47 = vld [vmem:[%s4347_s1 + $0x834] ss:$8 sps:$4 sm:$0xff]   ;;  %v3361_v48 = vld [vmem:[%s4348_s0 + $0x44] ss:$72 sps:$4 sm:$0xff]  }
  0xd1   :  { %2286 = vmatprep.subr.bf16.mxu0 %v3230_v49  ;;  %v2499_v49 = vcombine.high %v4242_v45, %v4242_v45 }
  0xd3   :  { %2083 = vmatpush1.bf16.msra.mxu1 %v3225_v50  ;;  %v3320_v50 = vld [vmem:[%s4347_s1 + $0x830] ss:$8 sps:$4 sm:$0xff]  }
  0xd4   :  { %2287 = vmatpush1.bf16.msra.mxu0 %v3228_v51  ;;  %2084 = vmatprep.subr.bf16.mxu1 %v3233_v52  ;;  %v3325_v51 = vld [vmem:[%s4347_s1 + $0x844] ss:$8 sps:$4 sm:$0xff]   ;;  %v3323_v52 = vld [vmem:[%s4347_s1 + $0x840] ss:$8 sps:$4 sm:$0xff]  }
  0xd5   :  { %2288 = vmatprep.subr.bf16.mxu0 %v3236_v53  ;;  %v3328_v53 = vld [vmem:[%s4347_s1 + $0x854] ss:$8 sps:$4 sm:$0xff]  }
  0xd7   :  { %2085 = vmatpush1.bf16.msra.mxu1 %v3231_v54  ;;  %v3326_v54 = vld [vmem:[%s4347_s1 + $0x850] ss:$8 sps:$4 sm:$0xff]  }
  0xd8   :  { %2289 = vmatpush1.bf16.msra.mxu0 %v3234_v55  ;;  %2086 = vmatprep.subr.bf16.mxu1 %v3239_v56  ;;  %v3331_v55 = vld [vmem:[%s4347_s1 + $0x864] ss:$8 sps:$4 sm:$0xff]   ;;  %v3329_v56 = vld [vmem:[%s4347_s1 + $0x860] ss:$8 sps:$4 sm:$0xff]  }
  0xd9   :  { %2290 = vmatprep.subr.bf16.mxu0 %v3242_v57  ;;  %v3334_v57 = vld [vmem:[%s4347_s1 + $0x874] ss:$8 sps:$4 sm:$0xff]  }
  0xdb   :  { %2087 = vmatpush1.bf16.msra.mxu1 %v3237_v58  ;;  %v3332_v58 = vld [vmem:[%s4347_s1 + $0x870] ss:$8 sps:$4 sm:$0xff]  }
  0xdc   :  { %2291 = vmatpush1.bf16.msra.mxu0 %v3240_v59  ;;  %2088 = vmatprep.subr.bf16.mxu1 %v3245_v60  ;;  %v3337_v59 = vld [vmem:[%s4347_s1 + $0x884] ss:$8 sps:$4 sm:$0xff]   ;;  %v3335_v60 = vld [vmem:[%s4347_s1 + $0x880] ss:$8 sps:$4 sm:$0xff]  }
  0xdd   :  { %2292 = vmatprep.subr.bf16.mxu0 %v3248_v61  ;;  %v3340_v61 = vld [vmem:[%s4347_s1 + $0x894] ss:$8 sps:$4 sm:$0xff]  }
  0xdf   :  { %2089 = vmatpush1.bf16.msra.mxu1 %v3243_v62  ;;  %v3338_v62 = vld [vmem:[%s4347_s1 + $0x890] ss:$8 sps:$4 sm:$0xff]  }
  0xe0   :  { %2293 = vmatpush1.bf16.msra.mxu0 %v3246_v63  ;;  %2090 = vmatprep.subr.bf16.mxu1 %v3251_v0  ;;  %v3343_v63 = vld [vmem:[%s4347_s1 + $0x8a4] ss:$8 sps:$4 sm:$0xff]   ;;  %v3341_v0 = vld [vmem:[%s4347_s1 + $0x8a0] ss:$8 sps:$4 sm:$0xff]  }
  0xe1   :  { %2294 = vmatprep.subr.bf16.mxu0 %v3254_v1  ;;  %v3346_v1 = vld [vmem:[%s4347_s1 + $0x8b4] ss:$8 sps:$4 sm:$0xff]  }
  0xe3   :  { %2091 = vmatpush1.bf16.msra.mxu1 %v3249_v2  ;;  %v3344_v2 = vld [vmem:[%s4347_s1 + $0x8b0] ss:$8 sps:$4 sm:$0xff]  }
  0xe4   :  { %2295 = vmatpush1.bf16.msra.mxu0 %v3252_v3  ;;  %2092 = vmatprep.subr.bf16.mxu1 %v3257_v4  ;;  %v3349_v3 = vld [vmem:[%s4347_s1 + $0x8c4] ss:$8 sps:$4 sm:$0xff]   ;;  %v3347_v4 = vld [vmem:[%s4347_s1 + $0x8c0] ss:$8 sps:$4 sm:$0xff]  }
  0xe5   :  { %2296 = vmatprep.subr.bf16.mxu0 %v3260_v5  ;;  %v3352_v5 = vld [vmem:[%s4347_s1 + $0x8d4] ss:$8 sps:$4 sm:$0xff]  }
  0xe7   :  { %2093 = vmatpush1.bf16.msra.mxu1 %v3255_v6  ;;  %v3350_v6 = vld [vmem:[%s4347_s1 + $0x8d0] ss:$8 sps:$4 sm:$0xff]  }
  0xe8   :  { %2297 = vmatpush1.bf16.msra.mxu0 %v3258_v7  ;;  %2094 = vmatprep.subr.bf16.mxu1 %v3263_v8  ;;  %v3355_v7 = vld [vmem:[%s4347_s1 + $0x8e4] ss:$8 sps:$4 sm:$0xff]   ;;  %v3353_v8 = vld [vmem:[%s4347_s1 + $0x8e0] ss:$8 sps:$4 sm:$0xff]  }
  0xe9   :  { %2298 = vmatprep.subr.bf16.mxu0 %v3266_v9  ;;  %v3358_v9 = vld [vmem:[%s4347_s1 + $0x8f4] ss:$8 sps:$4 sm:$0xff]  }
  0xeb   :  { %2095 = vmatpush1.bf16.msra.mxu1 %v3261_v10  ;;  %v3356_v10 = vld [vmem:[%s4347_s1 + $0x8f0] ss:$8 sps:$4 sm:$0xff]  }
  0xec   :  { %2299 = vmatpush1.bf16.msra.mxu0 %v3264_v11  ;;  %2096 = vmatprep.subr.bf16.mxu1 %v3269_v12  ;;  %v3359_v11 = vld [vmem:[%s4348_s0 + $0x40] ss:$72 sps:$4 sm:$0xff]   ;;  %v2498_v12 = vcombine.low %v4242_v45, %v4242_v45 }
  0xed   :  { %2300 = vmatprep.subr.bf16.mxu0 %v3272_v13 }
  0xef   :  { %2097 = vmatpush1.bf16.msra.mxu1 %v3267_v14 }
  0xf0   :  { %2301 = vmatpush1.bf16.msra.mxu0 %v3270_v15  ;;  %2098 = vmatprep.subr.bf16.mxu1 %v3275_v16 }
  0xf1   :  { %2302 = vmatprep.subr.bf16.mxu0 %v3278_v17 }
  0xf3   :  { %2099 = vmatpush1.bf16.msra.mxu1 %v3273_v18 }
  0xf4   :  { %2303 = vmatpush1.bf16.msra.mxu0 %v3276_v19  ;;  %2100 = vmatprep.subr.bf16.mxu1 %v3281_v20 }
  0xf5   :  { %2304 = vmatprep.subr.bf16.mxu0 %v3284_v21 }
  0xf7   :  { %2101 = vmatpush1.bf16.msra.mxu1 %v3279_v22 }
  0xf8   :  { %2305 = vmatpush1.bf16.msra.mxu0 %v3282_v23  ;;  %2102 = vmatprep.subr.bf16.mxu1 %v3290_v24 }
  0xf9   :  { %2306 = vmatprep.subr.bf16.mxu0 %v3294_v25 }
  0xfb   :  { %2103 = vmatpush1.bf16.msra.mxu1 %v3288_v26 }
  0xfc   :  { %2307 = vmatpush1.bf16.msra.mxu0 %v3292_v27  ;;  %2104 = vmatprep.subr.bf16.mxu1 %v3297_v28 }
  0xfd   :  { %2308 = vmatprep.subr.bf16.mxu0 %v3300_v29 }
  0xff   :  { %2105 = vmatpush1.bf16.msra.mxu1 %v3295_v30 }
 0x100   :  { %2309 = vmatpush1.bf16.msra.mxu0 %v3298_v31  ;;  %2795 = vmatprep.subr.bf16.mxu1 %v3309_v32 }
 0x101   :  { %2329 = vmatprep.subr.bf16.mxu0 %v3309_v32 }
 0x102   :  { %2107 = vmatmul.mubr.bf16.vlgmr.msra.gmra.mrb[0].mxu1 %v3301_v33 }
 0x103   :  { %2311 = vmatmul.mubr.bf16.vlgmr.msra.gmra.mrb[0].mxu0 %v3304_v34  ;;  %2811 = vmatpush1.bf16.msra.mxu1 %v3307_v37 }
 0x104   :  { %2330 = vmatpush1.bf16.msra.mxu0 %v3307_v37  ;;  %2796 = vmatprep.subr.bf16.mxu1 %v3312_v38 }
 0x105   :  { %2331 = vmatprep.subr.bf16.mxu0 %v3312_v38  ;;  %2116 = vmatprep.mubr.bf16.mxu1 %v2489_v39 }
 0x106   :  { %2320 = vmatprep.mubr.bf16.mxu0 %v2497_v40 }
 0x107   :  { %2812 = vmatpush1.bf16.msra.mxu1 %v3310_v41 }
 0x108   :  { %2332 = vmatpush1.bf16.msra.mxu0 %v3310_v41  ;;  %2797 = vmatprep.subr.bf16.mxu1 %v3319_v42 }
 0x109   :  { %2333 = vmatprep.subr.bf16.mxu0 %v3319_v42 }
 0x10a   :  { %2117 = vmatmul.mubr.bf16.gmra.mrb[4].mxu1 %v2488_v43 }
 0x10b   :  { %2321 = vmatmul.mubr.bf16.gmra.mrb[4].mxu0 %v2496_v44  ;;  %2813 = vmatpush1.bf16.msra.mxu1 %v3317_v46 }
 0x10c   :  { %2334 = vmatpush1.bf16.msra.mxu0 %v3317_v46  ;;  %2798 = vmatprep.subr.bf16.mxu1 %v3322_v47 }
 0x10d   :  { %2335 = vmatprep.subr.bf16.mxu0 %v3322_v47  ;;  %2361 = vmatprep.mubr.bf16.mxu0 %v3361_v48 }
 0x10e   :  { %2371 = vmatprep.mubr.bf16.mxu1 %v2499_v49 }
 0x10f   :  { %2814 = vmatpush1.bf16.msra.mxu1 %v3320_v50 }
 0x110   :  { %2336 = vmatpush1.bf16.msra.mxu0 %v3320_v50  ;;  %2799 = vmatprep.subr.bf16.mxu1 %v3325_v51 }
 0x111   :  { %2337 = vmatprep.subr.bf16.mxu0 %v3325_v51 }
 0x113   :  { %2815 = vmatpush1.bf16.msra.mxu1 %v3323_v52 }
 0x114   :  { %2338 = vmatpush1.bf16.msra.mxu0 %v3323_v52  ;;  %2800 = vmatprep.subr.bf16.mxu1 %v3328_v53 }
 0x115   :  { %2339 = vmatprep.subr.bf16.mxu0 %v3328_v53 }
 0x117   :  { %2816 = vmatpush1.bf16.msra.mxu1 %v3326_v54 }
 0x118   :  { %2340 = vmatpush1.bf16.msra.mxu0 %v3326_v54  ;;  %2801 = vmatprep.subr.bf16.mxu1 %v3331_v55 }
 0x119   :  { %2341 = vmatprep.subr.bf16.mxu0 %v3331_v55 }
 0x11b   :  { %2817 = vmatpush1.bf16.msra.mxu1 %v3329_v56 }
 0x11c   :  { %2342 = vmatpush1.bf16.msra.mxu0 %v3329_v56  ;;  %2802 = vmatprep.subr.bf16.mxu1 %v3334_v57 }
 0x11d   :  { %2343 = vmatprep.subr.bf16.mxu0 %v3334_v57 }
 0x11f   :  { %2818 = vmatpush1.bf16.msra.mxu1 %v3332_v58 }
 0x120   :  { %2344 = vmatpush1.bf16.msra.mxu0 %v3332_v58  ;;  %2803 = vmatprep.subr.bf16.mxu1 %v3337_v59 }
 0x121   :  { %2345 = vmatprep.subr.bf16.mxu0 %v3337_v59 }
 0x123   :  { %2819 = vmatpush1.bf16.msra.mxu1 %v3335_v60 }
 0x124   :  { %2346 = vmatpush1.bf16.msra.mxu0 %v3335_v60  ;;  %2804 = vmatprep.subr.bf16.mxu1 %v3340_v61 }
 0x125   :  { %2347 = vmatprep.subr.bf16.mxu0 %v3340_v61 }
 0x127   :  { %2820 = vmatpush1.bf16.msra.mxu1 %v3338_v62 }
 0x128   :  { %2348 = vmatpush1.bf16.msra.mxu0 %v3338_v62  ;;  %2805 = vmatprep.subr.bf16.mxu1 %v3343_v63 }
 0x129   :  { %2349 = vmatprep.subr.bf16.mxu0 %v3343_v63 }
 0x12b   :  { %2821 = vmatpush1.bf16.msra.mxu1 %v3341_v0 }
 0x12c   :  { %2350 = vmatpush1.bf16.msra.mxu0 %v3341_v0  ;;  %2806 = vmatprep.subr.bf16.mxu1 %v3346_v1 }
 0x12d   :  { %2351 = vmatprep.subr.bf16.mxu0 %v3346_v1 }
 0x12f   :  { %2822 = vmatpush1.bf16.msra.mxu1 %v3344_v2 }
 0x130   :  { %2352 = vmatpush1.bf16.msra.mxu0 %v3344_v2  ;;  %2807 = vmatprep.subr.bf16.mxu1 %v3349_v3 }
 0x131   :  { %2353 = vmatprep.subr.bf16.mxu0 %v3349_v3 }
 0x133   :  { %2823 = vmatpush1.bf16.msra.mxu1 %v3347_v4 }
 0x134   :  { %2354 = vmatpush1.bf16.msra.mxu0 %v3347_v4  ;;  %2808 = vmatprep.subr.bf16.mxu1 %v3352_v5 }
 0x135   :  { %2355 = vmatprep.subr.bf16.mxu0 %v3352_v5 }
 0x137   :  { %2824 = vmatpush1.bf16.msra.mxu1 %v3350_v6 }
 0x138   :  { %2356 = vmatpush1.bf16.msra.mxu0 %v3350_v6  ;;  %2809 = vmatprep.subr.bf16.mxu1 %v3355_v7 }
 0x139   :  { %2357 = vmatprep.subr.bf16.mxu0 %v3355_v7 }
 0x13b   :  { %2825 = vmatpush1.bf16.msra.mxu1 %v3353_v8 }
 0x13c   :  { %2358 = vmatpush1.bf16.msra.mxu0 %v3353_v8  ;;  %2810 = vmatprep.subr.bf16.mxu1 %v3358_v9 }
 0x13d   :  { %2359 = vmatprep.subr.bf16.mxu0 %v3358_v9 }
 0x13f   :  { %2826 = vmatpush1.bf16.msra.mxu1 %v3356_v10 }
 0x140   :  { %2360 = vmatpush1.bf16.msra.mxu0 %v3356_v10 }
 0x142   :  { %2372 = vmatmul.mubr.bf16.vlgmr.msra.gmra.mrb[8].mxu1 %v2498_v12 }
 0x143   :  { %2362 = vmatmul.mubr.bf16.vlgmr.msra.gmra.mrb[0].mxu0 %v3359_v11 }
 0x1d5   :  { %v2108_v13 = vpop.f32.mrb[0].mxu1 }
 0x1d6   :  { %v2110_v14 = vpop.f32.mrb[1].mxu1 }
 0x1d7   :  { %v2112_v15 = vpop.f32.mrb[2].mxu1 }
 0x1d8   :  { %v2114_v16 = vpop.f32.mrb[3].mxu1 }
 0x1dd   :  { %v2118_v17 = vpop.f32.mrb[4].mxu1 }
 0x1de   :  { %v2322_v18 = vpop.f32.mrb[4].mxu0  ;;  %v2120_v20 = vpop.f32.mrb[5].mxu1 }
 0x1df   :  { %v2831_v19 = vadd.f32 %v2322_v18, %v2118_v17  ;;  %v2324_v21 = vpop.f32.mrb[5].mxu0  ;;  %v2122_v23 = vpop.f32.mrb[6].mxu1 }
 0x1e0   :  { %v2833_v22 = vadd.f32 %v2324_v21, %v2120_v20  ;;  %v2326_v24 = vpop.f32.mrb[6].mxu0  ;;  %v2123_v25 = vpop.f32.mrb[7].mxu1 }
 0x1e1   :  { %v2327_v26 = vpop.f32.mrb[7].mxu0 }
 0x215   :  { %v2373_v28 = vpop.f32.mrb[8].mxu1 }
 0x216   :  { %v2363_v27 = vpop.f32.mrb[0].mxu0  ;;  %v2832_v30 = vadd.f32 %v2831_v19, %v2373_v28  ;;  %v2375_v32 = vpop.f32.mrb[9].mxu1 }
 0x217   :  { %v2827_v29 = vadd.f32 %v2363_v27, %v2108_v13  ;;  %v2365_v31 = vpop.f32.mrb[1].mxu0  ;;  %v2834_v34 = vadd.f32 %v2833_v22, %v2375_v32  ;;  %v2377_v36 = vpop.f32.mrb[10].mxu1 }
 0x218   :  { %v2828_v33 = vadd.f32 %v2365_v31, %v2110_v14  ;;  %v2367_v35 = vpop.f32.mrb[2].mxu0  ;;  %v2378_v39 = vpop.f32.mrb[11].mxu1  ;;  %v2423_v46 = vmul.f32 %v2832_v30, %v2832_v30 }
 0x219   :  { %v2829_v37 = vadd.f32 %v2367_v35, %v2112_v15  ;;  %v2369_v38 = vpop.f32.mrb[3].mxu0  ;;  %v2794_v41 = vpack.c.bf16 %v2834_v34, %v2832_v30  ;;  %v2419_v42 = vmul.f32 %v2827_v29, %v2827_v29  ;;  %v2424_v56 = vmul.f32 %v2834_v34, %v2834_v34 }
 0x21a   :  { %v2792_v40 = vpack.c.bf16 %v2828_v33, %v2827_v29  ;;  %v2830_v45 = vadd.f32 %v2369_v38, %v2114_v16  ;;  %v2420_v51 = vmul.f32 %v2828_v33, %v2828_v33 }
 0x21b   :  { %v2403_v43 = vadd.f32 %v2829_v37, %v2827_v29  ;;  %v2421_v44 = vmul.f32 %v2829_v37, %v2829_v37  ;;  %2402 = vst [vmem:[%s4349_s2 + $0x10] sm:$0xff] %v2794_v41 }
 0x21c   :  { %2400 = vst [vmem:[%s4349_s2] sm:$0xff] %v2792_v40  ;;  %v2793_v49 = vpack.c.bf16 %v2830_v45, %v2829_v37  ;;  %v2411_v50 = vadd.f32 %v2830_v45, %v2828_v33  ;;  %v2422_v52 = vmul.f32 %v2830_v45, %v2830_v45 }
 0x21d   :  { %v2404_v47 = vadd.f32 %v2832_v30, %v2403_v43  ;;  %v2425_v48 = vadd.f32 %v2421_v44, %v2419_v42 }
 0x21e   :  { %2401 = vst [vmem:[%s4349_s2 + $0x8] sm:$0xff] %v2793_v49  ;;  %v2412_v55 = vadd.f32 %v2834_v34, %v2411_v50  ;;  %v2433_v57 = vadd.f32 %v2422_v52, %v2420_v51 }
 0x21f   :  { %v2405_v53 = vrot.slane %v2404_v47, 4  ;;  %v2426_v54 = vadd.f32 %v2425_v48, %v2423_v46 }
 0x220   :  { %v2413_v60 = vrot.slane %v2412_v55, 4  ;;  %v2434_v61 = vadd.f32 %v2433_v57, %v2424_v56 }
 0x221   :  { %v2406_v58 = vadd.f32 %v2405_v53, %v2404_v47  ;;  %v2427_v59 = vrot.slane %v2426_v54, 4 }
 0x222   :  { %v2414_v0 = vadd.f32 %v2413_v60, %v2412_v55  ;;  %v2435_v1 = vrot.slane %v2434_v61, 4 }
 0x223   :  { %v2407_v62 = vrot.slane %v2406_v58, 2  ;;  %v2428_v63 = vadd.f32 %v2427_v59, %v2426_v54 }
 0x224   :  { %v2415_v4 = vrot.slane %v2414_v0, 2  ;;  %v2436_v5 = vadd.f32 %v2435_v1, %v2434_v61 }
 0x225   :  { %v2408_v2 = vadd.f32 %v2407_v62, %v2406_v58  ;;  %v2429_v3 = vrot.slane %v2428_v63, 2 }
 0x226   :  { %v2416_v8 = vadd.f32 %v2415_v4, %v2414_v0  ;;  %v2437_v9 = vrot.slane %v2436_v5, 2 }
 0x227   :  { %v2409_v6 = vrot.slane %v2408_v2, 1  ;;  %v2430_v7 = vadd.f32 %v2429_v3, %v2428_v63 }
 0x228   :  { %v2417_v11 = vrot.slane %v2416_v8, 1  ;;  %v2438_v12 = vadd.f32 %v2437_v9, %v2436_v5 }
 0x229   :  { %v2431_v10 = vrot.slane %v2430_v7, 1  ;;  %v2410_v13 = vadd.f32 %v2409_v6, %v2408_v2 }
 0x22a   :  { %v2439_v15 = vrot.slane %v2438_v12, 1  ;;  %v2418_v17 = vadd.f32 %v2417_v11, %v2416_v8 }
 0x22b   :  { %v2432_v14 = vadd.f32 %v2431_v10, %v2430_v7 }
 0x22c   :  { %v2440_v18 = vadd.f32 %v2439_v15, %v2438_v12 }
 0x22d   :  { %v2442_v16 = vsel %vm2441_vm0, %v2410_v13, %v2432_v14 }
 0x22e   :  { %v2443_v19 = vsel %vm2441_vm0, %v2418_v17, %v2440_v18 }
 0x22f   :  { %v2446_v20 = vcombine.low %v2442_v16, %v2443_v19 }
 0x231   :  { %2791 = vst.sshfl [vmem:[%s4350_s3] sm:$0x33 pattern:$0x76325410] %v2446_v20 }

// kernel: usps_feature_extractor.19
= control target key start
LH: loop header
LB: loop body
LE: loop exit
PB: predicated region body
PF: predicated region fallthrough
CT: control target
= control target key end

     0   :  { %v22_v0 = vlaneseq  ;;  %s128_s0 = inlined_call_operand.vmem [shape: bf16[8,512], index: 0, kind: input, shape index: {}]   ;;  %s129_s1 = inlined_call_operand.vmem [shape: f32[1,512], index: 1, kind: input, shape index: {}]   ;;  %s130_s2 = inlined_call_operand.vmem [shape: f32[1,512], index: 2, kind: input, shape index: {}]   ;;  %s131_s3 = inlined_call_operand.vmem [shape: f32[8,512], index: 3, kind: output, shape index: {}]  }
   0x1   :  { %v14_v1 = vld [vmem:[%s128_s0] sm:$0xff]  ;;  %v15_v3 = vld [vmem:[%s128_s0 + $0x8] sm:$0xff] }
   0x2   :  { %v23_v2 = vshrl.u32 %v22_v0, 7  ;;  %v16_v4 = vunpack.c.l.bf16 %v14_v1  ;;  %v20_v5 = vld [vmem:[%s129_s1] sm:$0xf]  ;;  %v17_v7 = vunpack.c.h.bf16 %v14_v1  ;;  %v18_v12 = vunpack.c.l.bf16 %v15_v3 }
   0x3   :  { %v46_v6 = vld [vmem:[%s130_s2] sm:$0xf]  ;;  %v19_v13 = vunpack.c.h.bf16 %v15_v3 }
   0x4   :  { %v24_v8 = vsub.s32 0, %v23_v2  ;;  %v28_v9 = vsub.s32 1, %v23_v2  ;;  %v32_v10 = vsub.s32 2, %v23_v2  ;;  %v36_v11 = vsub.s32 3, %v23_v2 }
   0x6   :  { %v25_v14 = vrot.slane %v20_v5, %v24_v8  ;;  %v51_v15 = vrot.slane %v46_v6, %v24_v8  ;;  %v29_v16 = vrot.slane %v20_v5, %v28_v9  ;;  %v55_v17 = vrot.slane %v46_v6, %v28_v9 }
   0x7   :  { %v33_v18 = vrot.slane %v20_v5, %v32_v10  ;;  %v59_v19 = vrot.slane %v46_v6, %v32_v10  ;;  %v37_v20 = vrot.slane %v20_v5, %v36_v11  ;;  %v63_v21 = vrot.slane %v46_v6, %v36_v11 }
   0x8   :  { %v42_v22 = vmul.f32 %v25_v14, %v16_v4  ;;  %v43_v23 = vmul.f32 %v29_v16, %v17_v7 }
   0x9   :  { %v44_v24 = vmul.f32 %v33_v18, %v18_v12  ;;  %v45_v25 = vmul.f32 %v37_v20, %v19_v13 }
   0xa   :  { %v68_v26 = vadd.f32 %v51_v15, %v42_v22  ;;  %v69_v27 = vadd.f32 %v55_v17, %v43_v23 }
   0xb   :  { %v70_v28 = vadd.f32 %v59_v19, %v44_v24  ;;  %v71_v29 = vadd.f32 %v63_v21, %v45_v25 }
   0xc   :  { %v72_v30 = vmax.f32 %v68_v26, 0.0  ;;  %v73_v31 = vmax.f32 %v69_v27, 0.0 }
   0xd   :  { %v74_v32 = vmax.f32 %v70_v28, 0.0  ;;  %v75_v33 = vmax.f32 %v71_v29, 0.0 }
   0xe   :  { %76 = vst [vmem:[%s131_s3] sm:$0xff] %v72_v30  ;;  %77 = vst [vmem:[%s131_s3 + $0x8] sm:$0xff] %v73_v31 }
   0xf   :  { %78 = vst [vmem:[%s131_s3 + $0x10] sm:$0xff] %v74_v32  ;;  %79 = vst [vmem:[%s131_s3 + $0x18] sm:$0xff] %v75_v33 }

// kernel: usps_feature_extractor.18
= control target key start
LH: loop header
LB: loop body
LE: loop exit
PB: predicated region body
PF: predicated region fallthrough
CT: control target
= control target key end

     0   :  { %vm4349_vm0 = vcmask 1040384   ;;  %s7770_s1 = inlined_call_operand.vmem [shape: bf16[2304,512], index: 1, kind: input, shape index: {}]   ;;  %s7771_s0 = inlined_call_operand.vmem [shape: bf16[8,2304], index: 0, kind: input, shape index: {}]   ;;  %s7772_s2 = inlined_call_operand.vmem [shape: bf16[8,512], index: 2, kind: output, shape index: {0}]   ;;  %s7773_s3 = inlined_call_operand.vmem [shape: f32[1,2,512], index: 3, kind: output, shape index: {1}]  }
   0x1   :  { %v5048_v0 = vld [vmem:[%s7770_s1 + $0x4] ss:$16 sps:$4 sm:$0xff]   ;;  %v5050_v1 = vld [vmem:[%s7770_s1 + $0xc] ss:$16 sps:$4 sm:$0xff]   ;;  %v5052_v2 = vld [vmem:[%s7770_s1] ss:$16 sps:$4 sm:$0xff]  }
   0x2   :  { %3541 = vmatprep.subr.bf16.mxu0 %v5048_v0  ;;  %v5053_v3 = vld [vmem:[%s7770_s1 + $0x8] ss:$16 sps:$4 sm:$0xff]   ;;  %3910 = vmatprep.subr.bf16.mxu1 %v5050_v1  ;;  %v5054_v4 = vld [vmem:[%s7770_s1 + $0x24] ss:$16 sps:$4 sm:$0xff]   ;;  %v5056_v5 = vld [vmem:[%s7770_s1 + $0x2c] ss:$16 sps:$4 sm:$0xff]  }
   0x3   :  { %3542 = vmatpush1.bf16.msra.mxu0 %v5052_v2  ;;  %3911 = vmatpush1.bf16.msra.mxu1 %v5053_v3  ;;  %v5058_v6 = vld [vmem:[%s7770_s1 + $0x20] ss:$16 sps:$4 sm:$0xff]   ;;  %v5059_v7 = vld [vmem:[%s7770_s1 + $0x28] ss:$16 sps:$4 sm:$0xff]   ;;  %v5060_v8 = vld [vmem:[%s7770_s1 + $0x44] ss:$16 sps:$4 sm:$0xff]  }
   0x4   :  { %3543 = vmatprep.subr.bf16.mxu0 %v5054_v4  ;;  %3912 = vmatprep.subr.bf16.mxu1 %v5056_v5  ;;  %v5062_v9 = vld [vmem:[%s7770_s1 + $0x4c] ss:$16 sps:$4 sm:$0xff]   ;;  %v5064_v10 = vld [vmem:[%s7770_s1 + $0x40] ss:$16 sps:$4 sm:$0xff]   ;;  %v5065_v11 = vld [vmem:[%s7770_s1 + $0x48] ss:$16 sps:$4 sm:$0xff]  }
   0x5   :  { %v5066_v12 = vld [vmem:[%s7770_s1 + $0x64] ss:$16 sps:$4 sm:$0xff]   ;;  %v5068_v13 = vld [vmem:[%s7770_s1 + $0x6c] ss:$16 sps:$4 sm:$0xff]   ;;  %v5070_v14 = vld [vmem:[%s7770_s1 + $0x60] ss:$16 sps:$4 sm:$0xff]  }
   0x6   :  { %v5071_v15 = vld [vmem:[%s7770_s1 + $0x68] ss:$16 sps:$4 sm:$0xff]   ;;  %v5072_v16 = vld [vmem:[%s7770_s1 + $0x84] ss:$16 sps:$4 sm:$0xff]   ;;  %v5074_v17 = vld [vmem:[%s7770_s1 + $0x8c] ss:$16 sps:$4 sm:$0xff]  }
   0x7   :  { %3544 = vmatpush1.bf16.msra.mxu0 %v5058_v6  ;;  %3913 = vmatpush1.bf16.msra.mxu1 %v5059_v7  ;;  %v5076_v18 = vld [vmem:[%s7770_s1 + $0x80] ss:$16 sps:$4 sm:$0xff]   ;;  %v5077_v19 = vld [vmem:[%s7770_s1 + $0x88] ss:$16 sps:$4 sm:$0xff]   ;;  %v5078_v20 = vld [vmem:[%s7770_s1 + $0xa4] ss:$16 sps:$4 sm:$0xff]  }
   0x8   :  { %3545 = vmatprep.subr.bf16.mxu0 %v5060_v8  ;;  %3914 = vmatprep.subr.bf16.mxu1 %v5062_v9  ;;  %v5080_v21 = vld [vmem:[%s7770_s1 + $0xac] ss:$16 sps:$4 sm:$0xff]   ;;  %v5082_v22 = vld [vmem:[%s7770_s1 + $0xa0] ss:$16 sps:$4 sm:$0xff]   ;;  %v5083_v23 = vld [vmem:[%s7770_s1 + $0xa8] ss:$16 sps:$4 sm:$0xff]  }
   0x9   :  { %v5084_v24 = vld [vmem:[%s7770_s1 + $0xc4] ss:$16 sps:$4 sm:$0xff]   ;;  %v5086_v25 = vld [vmem:[%s7770_s1 + $0xcc] ss:$16 sps:$4 sm:$0xff]   ;;  %v5088_v26 = vld [vmem:[%s7770_s1 + $0xc0] ss:$16 sps:$4 sm:$0xff]  }
   0xa   :  { %v5089_v27 = vld [vmem:[%s7770_s1 + $0xc8] ss:$16 sps:$4 sm:$0xff]   ;;  %v5090_v28 = vld [vmem:[%s7770_s1 + $0xe4] ss:$16 sps:$4 sm:$0xff]   ;;  %v5092_v29 = vld [vmem:[%s7770_s1 + $0xec] ss:$16 sps:$4 sm:$0xff]  }
   0xb   :  { %3546 = vmatpush1.bf16.msra.mxu0 %v5064_v10  ;;  %3915 = vmatpush1.bf16.msra.mxu1 %v5065_v11  ;;  %v5094_v30 = vld [vmem:[%s7770_s1 + $0xe0] ss:$16 sps:$4 sm:$0xff]   ;;  %v5095_v31 = vld [vmem:[%s7770_s1 + $0xe8] ss:$16 sps:$4 sm:$0xff]   ;;  %v5096_v32 = vld [vmem:[%s7770_s1 + $0x104] ss:$16 sps:$4 sm:$0xff]  }
   0xc   :  { %3547 = vmatprep.subr.bf16.mxu0 %v5066_v12  ;;  %3916 = vmatprep.subr.bf16.mxu1 %v5068_v13  ;;  %v5098_v33 = vld [vmem:[%s7770_s1 + $0x10c] ss:$16 sps:$4 sm:$0xff]   ;;  %v5100_v34 = vld [vmem:[%s7770_s1 + $0x100] ss:$16 sps:$4 sm:$0xff]   ;;  %v5101_v35 = vld [vmem:[%s7770_s1 + $0x108] ss:$16 sps:$4 sm:$0xff]  }
   0xd   :  { %v5102_v36 = vld [vmem:[%s7770_s1 + $0x124] ss:$16 sps:$4 sm:$0xff]   ;;  %v5104_v37 = vld [vmem:[%s7770_s1 + $0x12c] ss:$16 sps:$4 sm:$0xff]   ;;  %v5106_v38 = vld [vmem:[%s7770_s1 + $0x120] ss:$16 sps:$4 sm:$0xff]  }
   0xe   :  { %v5107_v39 = vld [vmem:[%s7770_s1 + $0x128] ss:$16 sps:$4 sm:$0xff]   ;;  %v5108_v40 = vld [vmem:[%s7770_s1 + $0x144] ss:$16 sps:$4 sm:$0xff]   ;;  %v5110_v41 = vld [vmem:[%s7770_s1 + $0x14c] ss:$16 sps:$4 sm:$0xff]  }
   0xf   :  { %3548 = vmatpush1.bf16.msra.mxu0 %v5070_v14  ;;  %3917 = vmatpush1.bf16.msra.mxu1 %v5071_v15  ;;  %v5112_v42 = vld [vmem:[%s7770_s1 + $0x140] ss:$16 sps:$4 sm:$0xff]   ;;  %v5113_v43 = vld [vmem:[%s7770_s1 + $0x148] ss:$16 sps:$4 sm:$0xff]   ;;  %v5114_v44 = vld [vmem:[%s7770_s1 + $0x164] ss:$16 sps:$4 sm:$0xff]  }
  0x10   :  { %3549 = vmatprep.subr.bf16.mxu0 %v5072_v16  ;;  %3918 = vmatprep.subr.bf16.mxu1 %v5074_v17  ;;  %v5116_v45 = vld [vmem:[%s7770_s1 + $0x16c] ss:$16 sps:$4 sm:$0xff]   ;;  %v13_v46 = vld [vmem:[%s7771_s0] sm:$0xff]  ;;  %v5119_v49 = vld [vmem:[%s7770_s1 + $0x168] ss:$16 sps:$4 sm:$0xff]  }
  0x11   :  { %v5118_v47 = vld [vmem:[%s7770_s1 + $0x160] ss:$16 sps:$4 sm:$0xff]   ;;  %v4386_v48 = vcombine.high %v13_v46, %v13_v46  ;;  %v5120_v50 = vld [vmem:[%s7770_s1 + $0x184] ss:$16 sps:$4 sm:$0xff]   ;;  %v5122_v51 = vld [vmem:[%s7770_s1 + $0x18c] ss:$16 sps:$4 sm:$0xff]   ;;  %v4385_v4 = vcombine.low %v13_v46, %v13_v46 }
  0x12   :  { %v5124_v52 = vld [vmem:[%s7770_s1 + $0x180] ss:$16 sps:$4 sm:$0xff]   ;;  %v5125_v53 = vld [vmem:[%s7770_s1 + $0x188] ss:$16 sps:$4 sm:$0xff]   ;;  %v5126_v54 = vld [vmem:[%s7770_s1 + $0x1a4] ss:$16 sps:$4 sm:$0xff]  }
  0x13   :  { %3550 = vmatpush1.bf16.msra.mxu0 %v5076_v18  ;;  %3919 = vmatpush1.bf16.msra.mxu1 %v5077_v19  ;;  %v5128_v55 = vld [vmem:[%s7770_s1 + $0x1ac] ss:$16 sps:$4 sm:$0xff]   ;;  %v5130_v56 = vld [vmem:[%s7770_s1 + $0x1a0] ss:$16 sps:$4 sm:$0xff]   ;;  %v5131_v57 = vld [vmem:[%s7770_s1 + $0x1a8] ss:$16 sps:$4 sm:$0xff]  }
  0x14   :  { %3551 = vmatprep.subr.bf16.mxu0 %v5078_v20  ;;  %3920 = vmatprep.subr.bf16.mxu1 %v5080_v21  ;;  %v5132_v58 = vld [vmem:[%s7770_s1 + $0x1c4] ss:$16 sps:$4 sm:$0xff]   ;;  %v5134_v59 = vld [vmem:[%s7770_s1 + $0x1cc] ss:$16 sps:$4 sm:$0xff]   ;;  %v5136_v60 = vld [vmem:[%s7770_s1 + $0x1c0] ss:$16 sps:$4 sm:$0xff]  }
  0x15   :  { %3573 = vmatprep.mubr.bf16.mxu0 %v4386_v48  ;;  %3942 = vmatprep.mubr.bf16.mxu1 %v4386_v48  ;;  %v5137_v61 = vld [vmem:[%s7770_s1 + $0x1c8] ss:$16 sps:$4 sm:$0xff]   ;;  %v5138_v62 = vld [vmem:[%s7770_s1 + $0x1e4] ss:$16 sps:$4 sm:$0xff]   ;;  %v5140_v63 = vld [vmem:[%s7770_s1 + $0x1ec] ss:$16 sps:$4 sm:$0xff]  }
  0x16   :  { %v5142_v0 = vld [vmem:[%s7770_s1 + $0x1e0] ss:$16 sps:$4 sm:$0xff]   ;;  %v5143_v1 = vld [vmem:[%s7770_s1 + $0x1e8] ss:$16 sps:$4 sm:$0xff]   ;;  %v5148_v2 = vld [vmem:[%s7770_s1 + $0x204] ss:$16 sps:$4 sm:$0xff]  }
  0x17   :  { %3552 = vmatpush1.bf16.msra.mxu0 %v5082_v22  ;;  %3921 = vmatpush1.bf16.msra.mxu1 %v5083_v23  ;;  %v5151_v3 = vld [vmem:[%s7770_s1 + $0x20c] ss:$16 sps:$4 sm:$0xff]   ;;  %v5146_v5 = vld [vmem:[%s7770_s1 + $0x200] ss:$16 sps:$4 sm:$0xff]   ;;  %v5149_v6 = vld [vmem:[%s7770_s1 + $0x208] ss:$16 sps:$4 sm:$0xff]  }
  0x18   :  { %3553 = vmatprep.subr.bf16.mxu0 %v5084_v24  ;;  %3922 = vmatprep.subr.bf16.mxu1 %v5086_v25  ;;  %v5154_v7 = vld [vmem:[%s7770_s1 + $0x224] ss:$16 sps:$4 sm:$0xff]   ;;  %v5157_v8 = vld [vmem:[%s7770_s1 + $0x22c] ss:$16 sps:$4 sm:$0xff]   ;;  %v5152_v9 = vld [vmem:[%s7770_s1 + $0x220] ss:$16 sps:$4 sm:$0xff]  }
  0x19   :  { %v5155_v10 = vld [vmem:[%s7770_s1 + $0x228] ss:$16 sps:$4 sm:$0xff]   ;;  %v5160_v11 = vld [vmem:[%s7770_s1 + $0x244] ss:$16 sps:$4 sm:$0xff]   ;;  %v5163_v12 = vld [vmem:[%s7770_s1 + $0x24c] ss:$16 sps:$4 sm:$0xff]  }
  0x1a   :  { %v5158_v13 = vld [vmem:[%s7770_s1 + $0x240] ss:$16 sps:$4 sm:$0xff]   ;;  %v5161_v14 = vld [vmem:[%s7770_s1 + $0x248] ss:$16 sps:$4 sm:$0xff]   ;;  %v5166_v15 = vld [vmem:[%s7770_s1 + $0x264] ss:$16 sps:$4 sm:$0xff]  }
  0x1b   :  { %3554 = vmatpush1.bf16.msra.mxu0 %v5088_v26  ;;  %3923 = vmatpush1.bf16.msra.mxu1 %v5089_v27  ;;  %v5169_v16 = vld [vmem:[%s7770_s1 + $0x26c] ss:$16 sps:$4 sm:$0xff]   ;;  %v5164_v17 = vld [vmem:[%s7770_s1 + $0x260] ss:$16 sps:$4 sm:$0xff]   ;;  %v5167_v18 = vld [vmem:[%s7770_s1 + $0x268] ss:$16 sps:$4 sm:$0xff]  }
  0x1c   :  { %3555 = vmatprep.subr.bf16.mxu0 %v5090_v28  ;;  %3924 = vmatprep.subr.bf16.mxu1 %v5092_v29  ;;  %v5172_v19 = vld [vmem:[%s7770_s1 + $0x284] ss:$16 sps:$4 sm:$0xff]   ;;  %v5175_v20 = vld [vmem:[%s7770_s1 + $0x28c] ss:$16 sps:$4 sm:$0xff]   ;;  %v5170_v21 = vld [vmem:[%s7770_s1 + $0x280] ss:$16 sps:$4 sm:$0xff]  }
  0x1d   :  { %v5173_v22 = vld [vmem:[%s7770_s1 + $0x288] ss:$16 sps:$4 sm:$0xff]   ;;  %v5178_v23 = vld [vmem:[%s7770_s1 + $0x2a4] ss:$16 sps:$4 sm:$0xff]   ;;  %v5181_v24 = vld [vmem:[%s7770_s1 + $0x2ac] ss:$16 sps:$4 sm:$0xff]  }
  0x1e   :  { %v5176_v25 = vld [vmem:[%s7770_s1 + $0x2a0] ss:$16 sps:$4 sm:$0xff]   ;;  %v5179_v26 = vld [vmem:[%s7770_s1 + $0x2a8] ss:$16 sps:$4 sm:$0xff]   ;;  %v5184_v27 = vld [vmem:[%s7770_s1 + $0x2c4] ss:$16 sps:$4 sm:$0xff]  }
  0x1f   :  { %3556 = vmatpush1.bf16.msra.mxu0 %v5094_v30  ;;  %3925 = vmatpush1.bf16.msra.mxu1 %v5095_v31  ;;  %v5187_v28 = vld [vmem:[%s7770_s1 + $0x2cc] ss:$16 sps:$4 sm:$0xff]   ;;  %v5182_v31 = vld [vmem:[%s7770_s1 + $0x2c0] ss:$16 sps:$4 sm:$0xff]   ;;  %v5209_v48 = vld [vmem:[%s7770_s1 + $0x348] ss:$16 sps:$4 sm:$0xff]  }
  0x20   :  { %3557 = vmatprep.subr.bf16.mxu0 %v5096_v32  ;;  %3926 = vmatprep.subr.bf16.mxu1 %v5098_v33  ;;  %v6227_v29 = vld [vmem:[%s7771_s0 + $0x8] sm:$0xff]  ;;  %v5190_v33 = vld [vmem:[%s7770_s1 + $0x2e4] ss:$16 sps:$4 sm:$0xff]  }
  0x21   :  { %v4388_v30 = vcombine.high %v6227_v29, %v6227_v29  ;;  %v5185_v32 = vld [vmem:[%s7770_s1 + $0x2c8] ss:$16 sps:$4 sm:$0xff]   ;;  %v5211_v46 = vld [vmem:[%s7770_s1 + $0x34c] ss:$16 sps:$4 sm:$0xff]  }
  0x23   :  { %3558 = vmatpush1.bf16.msra.mxu0 %v5100_v34  ;;  %3927 = vmatpush1.bf16.msra.mxu1 %v5101_v35  ;;  %v5193_v34 = vld [vmem:[%s7770_s1 + $0x2ec] ss:$16 sps:$4 sm:$0xff]   ;;  %v5188_v35 = vld [vmem:[%s7770_s1 + $0x2e0] ss:$16 sps:$4 sm:$0xff]  }
  0x24   :  { %3559 = vmatprep.subr.bf16.mxu0 %v5102_v36  ;;  %3928 = vmatprep.subr.bf16.mxu1 %v5104_v37  ;;  %v5191_v36 = vld [vmem:[%s7770_s1 + $0x2e8] ss:$16 sps:$4 sm:$0xff]   ;;  %v5196_v37 = vld [vmem:[%s7770_s1 + $0x304] ss:$16 sps:$4 sm:$0xff]  }
  0x27   :  { %3560 = vmatpush1.bf16.msra.mxu0 %v5106_v38  ;;  %3929 = vmatpush1.bf16.msra.mxu1 %v5107_v39  ;;  %v5199_v38 = vld [vmem:[%s7770_s1 + $0x30c] ss:$16 sps:$4 sm:$0xff]   ;;  %v5194_v39 = vld [vmem:[%s7770_s1 + $0x300] ss:$16 sps:$4 sm:$0xff]  }
  0x28   :  { %3561 = vmatprep.subr.bf16.mxu0 %v5108_v40  ;;  %3930 = vmatprep.subr.bf16.mxu1 %v5110_v41  ;;  %v5197_v40 = vld [vmem:[%s7770_s1 + $0x308] ss:$16 sps:$4 sm:$0xff]   ;;  %v5202_v41 = vld [vmem:[%s7770_s1 + $0x324] ss:$16 sps:$4 sm:$0xff]  }
  0x2b   :  { %3562 = vmatpush1.bf16.msra.mxu0 %v5112_v42  ;;  %3931 = vmatpush1.bf16.msra.mxu1 %v5113_v43  ;;  %v5205_v42 = vld [vmem:[%s7770_s1 + $0x32c] ss:$16 sps:$4 sm:$0xff]   ;;  %v5200_v43 = vld [vmem:[%s7770_s1 + $0x320] ss:$16 sps:$4 sm:$0xff]  }
  0x2c   :  { %3563 = vmatprep.subr.bf16.mxu0 %v5114_v44  ;;  %3932 = vmatprep.subr.bf16.mxu1 %v5116_v45  ;;  %v5203_v44 = vld [vmem:[%s7770_s1 + $0x328] ss:$16 sps:$4 sm:$0xff]   ;;  %v5208_v45 = vld [vmem:[%s7770_s1 + $0x344] ss:$16 sps:$4 sm:$0xff]  }
  0x2f   :  { %3564 = vmatpush1.bf16.msra.mxu0 %v5118_v47  ;;  %3933 = vmatpush1.bf16.msra.mxu1 %v5119_v49  ;;  %v5206_v47 = vld [vmem:[%s7770_s1 + $0x340] ss:$16 sps:$4 sm:$0xff]   ;;  %v5214_v49 = vld [vmem:[%s7770_s1 + $0x364] ss:$16 sps:$4 sm:$0xff]  }
  0x30   :  { %3565 = vmatprep.subr.bf16.mxu0 %v5120_v50  ;;  %3934 = vmatprep.subr.bf16.mxu1 %v5122_v51  ;;  %v5217_v50 = vld [vmem:[%s7770_s1 + $0x36c] ss:$16 sps:$4 sm:$0xff]   ;;  %v5212_v51 = vld [vmem:[%s7770_s1 + $0x360] ss:$16 sps:$4 sm:$0xff]  }
  0x33   :  { %3566 = vmatpush1.bf16.msra.mxu0 %v5124_v52  ;;  %3935 = vmatpush1.bf16.msra.mxu1 %v5125_v53  ;;  %v5215_v52 = vld [vmem:[%s7770_s1 + $0x368] ss:$16 sps:$4 sm:$0xff]   ;;  %v5220_v53 = vld [vmem:[%s7770_s1 + $0x384] ss:$16 sps:$4 sm:$0xff]  }
  0x34   :  { %3567 = vmatprep.subr.bf16.mxu0 %v5126_v54  ;;  %3936 = vmatprep.subr.bf16.mxu1 %v5128_v55  ;;  %v5223_v54 = vld [vmem:[%s7770_s1 + $0x38c] ss:$16 sps:$4 sm:$0xff]   ;;  %v5218_v55 = vld [vmem:[%s7770_s1 + $0x380] ss:$16 sps:$4 sm:$0xff]  }
  0x37   :  { %3568 = vmatpush1.bf16.msra.mxu0 %v5130_v56  ;;  %3937 = vmatpush1.bf16.msra.mxu1 %v5131_v57  ;;  %v5221_v56 = vld [vmem:[%s7770_s1 + $0x388] ss:$16 sps:$4 sm:$0xff]   ;;  %v5226_v57 = vld [vmem:[%s7770_s1 + $0x3a4] ss:$16 sps:$4 sm:$0xff]  }
  0x38   :  { %3569 = vmatprep.subr.bf16.mxu0 %v5132_v58  ;;  %3938 = vmatprep.subr.bf16.mxu1 %v5134_v59  ;;  %v5229_v58 = vld [vmem:[%s7770_s1 + $0x3ac] ss:$16 sps:$4 sm:$0xff]   ;;  %v5224_v59 = vld [vmem:[%s7770_s1 + $0x3a0] ss:$16 sps:$4 sm:$0xff]  }
  0x3b   :  { %3570 = vmatpush1.bf16.msra.mxu0 %v5136_v60  ;;  %3939 = vmatpush1.bf16.msra.mxu1 %v5137_v61  ;;  %v5227_v60 = vld [vmem:[%s7770_s1 + $0x3a8] ss:$16 sps:$4 sm:$0xff]   ;;  %v5232_v61 = vld [vmem:[%s7770_s1 + $0x3c4] ss:$16 sps:$4 sm:$0xff]  }
  0x3c   :  { %3571 = vmatprep.subr.bf16.mxu0 %v5138_v62  ;;  %3940 = vmatprep.subr.bf16.mxu1 %v5140_v63  ;;  %v5235_v62 = vld [vmem:[%s7770_s1 + $0x3cc] ss:$16 sps:$4 sm:$0xff]   ;;  %v5230_v63 = vld [vmem:[%s7770_s1 + $0x3c0] ss:$16 sps:$4 sm:$0xff]  }
  0x3f   :  { %3572 = vmatpush1.bf16.msra.mxu0 %v5142_v0  ;;  %3941 = vmatpush1.bf16.msra.mxu1 %v5143_v1  ;;  %v5233_v0 = vld [vmem:[%s7770_s1 + $0x3c8] ss:$16 sps:$4 sm:$0xff]   ;;  %v5238_v1 = vld [vmem:[%s7770_s1 + $0x3e4] ss:$16 sps:$4 sm:$0xff]  }
  0x40   :  { %3582 = vmatprep.subr.bf16.mxu0 %v5148_v2  ;;  %3951 = vmatprep.subr.bf16.mxu1 %v5151_v3  ;;  %v5241_v2 = vld [vmem:[%s7770_s1 + $0x3ec] ss:$16 sps:$4 sm:$0xff]   ;;  %v5236_v3 = vld [vmem:[%s7770_s1 + $0x3e0] ss:$16 sps:$4 sm:$0xff]  }
  0x42   :  { %3574 = vmatmul.mubr.bf16.vlgmr.msra.gmra.mrb[0].mxu0 %v4385_v4  ;;  %3943 = vmatmul.mubr.bf16.vlgmr.msra.gmra.mrb[0].mxu1 %v4385_v4  ;;  %v5239_v4 = vld [vmem:[%s7770_s1 + $0x3e8] ss:$16 sps:$4 sm:$0xff]  }
  0x43   :  { %3583 = vmatpush1.bf16.msra.mxu0 %v5146_v5  ;;  %3952 = vmatpush1.bf16.msra.mxu1 %v5149_v6  ;;  %v5246_v5 = vld [vmem:[%s7770_s1 + $0x404] ss:$16 sps:$4 sm:$0xff]   ;;  %v5249_v6 = vld [vmem:[%s7770_s1 + $0x40c] ss:$16 sps:$4 sm:$0xff]  }
  0x44   :  { %3584 = vmatprep.subr.bf16.mxu0 %v5154_v7  ;;  %3953 = vmatprep.subr.bf16.mxu1 %v5157_v8  ;;  %v4387_v7 = vcombine.low %v6227_v29, %v6227_v29  ;;  %v5244_v8 = vld [vmem:[%s7770_s1 + $0x400] ss:$16 sps:$4 sm:$0xff]   ;;  %v5279_v29 = vld [vmem:[%s7770_s1 + $0x4ac] ss:$16 sps:$4 sm:$0xff]  }
  0x45   :  { %3614 = vmatprep.mubr.bf16.mxu0 %v4388_v30  ;;  %3983 = vmatprep.mubr.bf16.mxu1 %v4388_v30  ;;  %v5274_v30 = vld [vmem:[%s7770_s1 + $0x4a0] ss:$16 sps:$4 sm:$0xff]  }
  0x47   :  { %3585 = vmatpush1.bf16.msra.mxu0 %v5152_v9  ;;  %3954 = vmatpush1.bf16.msra.mxu1 %v5155_v10  ;;  %v5247_v9 = vld [vmem:[%s7770_s1 + $0x408] ss:$16 sps:$4 sm:$0xff]   ;;  %v5252_v10 = vld [vmem:[%s7770_s1 + $0x424] ss:$16 sps:$4 sm:$0xff]  }
  0x48   :  { %3586 = vmatprep.subr.bf16.mxu0 %v5160_v11  ;;  %3955 = vmatprep.subr.bf16.mxu1 %v5163_v12  ;;  %v6365_v11 = vld [vmem:[%s7771_s0 + $0x10] sm:$0xff]  ;;  %v5255_v12 = vld [vmem:[%s7770_s1 + $0x42c] ss:$16 sps:$4 sm:$0xff]  }
  0x4b   :  { %3587 = vmatpush1.bf16.msra.mxu0 %v5158_v13  ;;  %3956 = vmatpush1.bf16.msra.mxu1 %v5161_v14  ;;  %v4390_v13 = vcombine.high %v6365_v11, %v6365_v11  ;;  %v5250_v14 = vld [vmem:[%s7770_s1 + $0x420] ss:$16 sps:$4 sm:$0xff]  }
  0x4c   :  { %3588 = vmatprep.subr.bf16.mxu0 %v5166_v15  ;;  %3957 = vmatprep.subr.bf16.mxu1 %v5169_v16  ;;  %v5253_v15 = vld [vmem:[%s7770_s1 + $0x428] ss:$16 sps:$4 sm:$0xff]   ;;  %v5258_v16 = vld [vmem:[%s7770_s1 + $0x444] ss:$16 sps:$4 sm:$0xff]  }
  0x4f   :  { %3589 = vmatpush1.bf16.msra.mxu0 %v5164_v17  ;;  %3958 = vmatpush1.bf16.msra.mxu1 %v5167_v18  ;;  %v5261_v17 = vld [vmem:[%s7770_s1 + $0x44c] ss:$16 sps:$4 sm:$0xff]   ;;  %v5256_v18 = vld [vmem:[%s7770_s1 + $0x440] ss:$16 sps:$4 sm:$0xff]  }
  0x50   :  { %3590 = vmatprep.subr.bf16.mxu0 %v5172_v19  ;;  %3959 = vmatprep.subr.bf16.mxu1 %v5175_v20  ;;  %v5259_v19 = vld [vmem:[%s7770_s1 + $0x448] ss:$16 sps:$4 sm:$0xff]   ;;  %v5264_v20 = vld [vmem:[%s7770_s1 + $0x464] ss:$16 sps:$4 sm:$0xff]  }
  0x53   :  { %3591 = vmatpush1.bf16.msra.mxu0 %v5170_v21  ;;  %3960 = vmatpush1.bf16.msra.mxu1 %v5173_v22  ;;  %v5267_v21 = vld [vmem:[%s7770_s1 + $0x46c] ss:$16 sps:$4 sm:$0xff]   ;;  %v5262_v22 = vld [vmem:[%s7770_s1 + $0x460] ss:$16 sps:$4 sm:$0xff]  }
  0x54   :  { %3592 = vmatprep.subr.bf16.mxu0 %v5178_v23  ;;  %3961 = vmatprep.subr.bf16.mxu1 %v5181_v24  ;;  %v5265_v23 = vld [vmem:[%s7770_s1 + $0x468] ss:$16 sps:$4 sm:$0xff]   ;;  %v5270_v24 = vld [vmem:[%s7770_s1 + $0x484] ss:$16 sps:$4 sm:$0xff]  }
  0x57   :  { %3593 = vmatpush1.bf16.msra.mxu0 %v5176_v25  ;;  %3962 = vmatpush1.bf16.msra.mxu1 %v5179_v26  ;;  %v5273_v25 = vld [vmem:[%s7770_s1 + $0x48c] ss:$16 sps:$4 sm:$0xff]   ;;  %v5268_v26 = vld [vmem:[%s7770_s1 + $0x480] ss:$16 sps:$4 sm:$0xff]  }
  0x58   :  { %3594 = vmatprep.subr.bf16.mxu0 %v5184_v27  ;;  %3963 = vmatprep.subr.bf16.mxu1 %v5187_v28  ;;  %v5271_v27 = vld [vmem:[%s7770_s1 + $0x488] ss:$16 sps:$4 sm:$0xff]   ;;  %v5276_v28 = vld [vmem:[%s7770_s1 + $0x4a4] ss:$16 sps:$4 sm:$0xff]  }
  0x5b   :  { %3595 = vmatpush1.bf16.msra.mxu0 %v5182_v31  ;;  %3964 = vmatpush1.bf16.msra.mxu1 %v5185_v32  ;;  %v5277_v31 = vld [vmem:[%s7770_s1 + $0x4a8] ss:$16 sps:$4 sm:$0xff]   ;;  %v5282_v32 = vld [vmem:[%s7770_s1 + $0x4c4] ss:$16 sps:$4 sm:$0xff]  }
  0x5c   :  { %3596 = vmatprep.subr.bf16.mxu0 %v5190_v33  ;;  %3965 = vmatprep.subr.bf16.mxu1 %v5193_v34  ;;  %v5285_v33 = vld [vmem:[%s7770_s1 + $0x4cc] ss:$16 sps:$4 sm:$0xff]   ;;  %v5280_v34 = vld [vmem:[%s7770_s1 + $0x4c0] ss:$16 sps:$4 sm:$0xff]  }
  0x5f   :  { %3597 = vmatpush1.bf16.msra.mxu0 %v5188_v35  ;;  %3966 = vmatpush1.bf16.msra.mxu1 %v5191_v36  ;;  %v5283_v35 = vld [vmem:[%s7770_s1 + $0x4c8] ss:$16 sps:$4 sm:$0xff]   ;;  %v5288_v36 = vld [vmem:[%s7770_s1 + $0x4e4] ss:$16 sps:$4 sm:$0xff]  }
  0x60   :  { %3598 = vmatprep.subr.bf16.mxu0 %v5196_v37  ;;  %3967 = vmatprep.subr.bf16.mxu1 %v5199_v38  ;;  %v5291_v37 = vld [vmem:[%s7770_s1 + $0x4ec] ss:$16 sps:$4 sm:$0xff]   ;;  %v5286_v38 = vld [vmem:[%s7770_s1 + $0x4e0] ss:$16 sps:$4 sm:$0xff]  }
  0x63   :  { %3599 = vmatpush1.bf16.msra.mxu0 %v5194_v39  ;;  %3968 = vmatpush1.bf16.msra.mxu1 %v5197_v40  ;;  %v5289_v39 = vld [vmem:[%s7770_s1 + $0x4e8] ss:$16 sps:$4 sm:$0xff]   ;;  %v5294_v40 = vld [vmem:[%s7770_s1 + $0x504] ss:$16 sps:$4 sm:$0xff]  }
  0x64   :  { %3600 = vmatprep.subr.bf16.mxu0 %v5202_v41  ;;  %3969 = vmatprep.subr.bf16.mxu1 %v5205_v42  ;;  %v5297_v41 = vld [vmem:[%s7770_s1 + $0x50c] ss:$16 sps:$4 sm:$0xff]   ;;  %v5292_v42 = vld [vmem:[%s7770_s1 + $0x500] ss:$16 sps:$4 sm:$0xff]  }
  0x67   :  { %3601 = vmatpush1.bf16.msra.mxu0 %v5200_v43  ;;  %3970 = vmatpush1.bf16.msra.mxu1 %v5203_v44  ;;  %v5295_v43 = vld [vmem:[%s7770_s1 + $0x508] ss:$16 sps:$4 sm:$0xff]   ;;  %v5300_v44 = vld [vmem:[%s7770_s1 + $0x524] ss:$16 sps:$4 sm:$0xff]  }
  0x68   :  { %3602 = vmatprep.subr.bf16.mxu0 %v5208_v45  ;;  %3971 = vmatprep.subr.bf16.mxu1 %v5211_v46  ;;  %v5303_v45 = vld [vmem:[%s7770_s1 + $0x52c] ss:$16 sps:$4 sm:$0xff]   ;;  %v5298_v46 = vld [vmem:[%s7770_s1 + $0x520] ss:$16 sps:$4 sm:$0xff]  }
  0x6b   :  { %3603 = vmatpush1.bf16.msra.mxu0 %v5206_v47  ;;  %3972 = vmatpush1.bf16.msra.mxu1 %v5209_v48  ;;  %v5301_v47 = vld [vmem:[%s7770_s1 + $0x528] ss:$16 sps:$4 sm:$0xff]   ;;  %v5306_v48 = vld [vmem:[%s7770_s1 + $0x544] ss:$16 sps:$4 sm:$0xff]  }
  0x6c   :  { %3604 = vmatprep.subr.bf16.mxu0 %v5214_v49  ;;  %3973 = vmatprep.subr.bf16.mxu1 %v5217_v50  ;;  %v5309_v49 = vld [vmem:[%s7770_s1 + $0x54c] ss:$16 sps:$4 sm:$0xff]   ;;  %v5304_v50 = vld [vmem:[%s7770_s1 + $0x540] ss:$16 sps:$4 sm:$0xff]  }
  0x6f   :  { %3605 = vmatpush1.bf16.msra.mxu0 %v5212_v51  ;;  %3974 = vmatpush1.bf16.msra.mxu1 %v5215_v52  ;;  %v5307_v51 = vld [vmem:[%s7770_s1 + $0x548] ss:$16 sps:$4 sm:$0xff]   ;;  %v5312_v52 = vld [vmem:[%s7770_s1 + $0x564] ss:$16 sps:$4 sm:$0xff]  }
  0x70   :  { %3606 = vmatprep.subr.bf16.mxu0 %v5220_v53  ;;  %3975 = vmatprep.subr.bf16.mxu1 %v5223_v54  ;;  %v5315_v53 = vld [vmem:[%s7770_s1 + $0x56c] ss:$16 sps:$4 sm:$0xff]   ;;  %v5310_v54 = vld [vmem:[%s7770_s1 + $0x560] ss:$16 sps:$4 sm:$0xff]  }
  0x73   :  { %3607 = vmatpush1.bf16.msra.mxu0 %v5218_v55  ;;  %3976 = vmatpush1.bf16.msra.mxu1 %v5221_v56  ;;  %v5313_v55 = vld [vmem:[%s7770_s1 + $0x568] ss:$16 sps:$4 sm:$0xff]   ;;  %v5318_v56 = vld [vmem:[%s7770_s1 + $0x584] ss:$16 sps:$4 sm:$0xff]  }
  0x74   :  { %3608 = vmatprep.subr.bf16.mxu0 %v5226_v57  ;;  %3977 = vmatprep.subr.bf16.mxu1 %v5229_v58  ;;  %v5321_v57 = vld [vmem:[%s7770_s1 + $0x58c] ss:$16 sps:$4 sm:$0xff]   ;;  %v5316_v58 = vld [vmem:[%s7770_s1 + $0x580] ss:$16 sps:$4 sm:$0xff]  }
  0x77   :  { %3609 = vmatpush1.bf16.msra.mxu0 %v5224_v59  ;;  %3978 = vmatpush1.bf16.msra.mxu1 %v5227_v60  ;;  %v5319_v59 = vld [vmem:[%s7770_s1 + $0x588] ss:$16 sps:$4 sm:$0xff]   ;;  %v5324_v60 = vld [vmem:[%s7770_s1 + $0x5a4] ss:$16 sps:$4 sm:$0xff]  }
  0x78   :  { %3610 = vmatprep.subr.bf16.mxu0 %v5232_v61  ;;  %3979 = vmatprep.subr.bf16.mxu1 %v5235_v62  ;;  %v5327_v61 = vld [vmem:[%s7770_s1 + $0x5ac] ss:$16 sps:$4 sm:$0xff]   ;;  %v5322_v62 = vld [vmem:[%s7770_s1 + $0x5a0] ss:$16 sps:$4 sm:$0xff]  }
  0x7b   :  { %3611 = vmatpush1.bf16.msra.mxu0 %v5230_v63  ;;  %3980 = vmatpush1.bf16.msra.mxu1 %v5233_v0  ;;  %v5325_v63 = vld [vmem:[%s7770_s1 + $0x5a8] ss:$16 sps:$4 sm:$0xff]   ;;  %v5330_v0 = vld [vmem:[%s7770_s1 + $0x5c4] ss:$16 sps:$4 sm:$0xff]  }
  0x7c   :  { %3612 = vmatprep.subr.bf16.mxu0 %v5238_v1  ;;  %3981 = vmatprep.subr.bf16.mxu1 %v5241_v2  ;;  %v5333_v1 = vld [vmem:[%s7770_s1 + $0x5cc] ss:$16 sps:$4 sm:$0xff]   ;;  %v5328_v2 = vld [vmem:[%s7770_s1 + $0x5c0] ss:$16 sps:$4 sm:$0xff]  }
  0x7f   :  { %3613 = vmatpush1.bf16.msra.mxu0 %v5236_v3  ;;  %3982 = vmatpush1.bf16.msra.mxu1 %v5239_v4  ;;  %v5331_v3 = vld [vmem:[%s7770_s1 + $0x5c8] ss:$16 sps:$4 sm:$0xff]   ;;  %v5336_v4 = vld [vmem:[%s7770_s1 + $0x5e4] ss:$16 sps:$4 sm:$0xff]  }
  0x80   :  { %3623 = vmatprep.subr.bf16.mxu0 %v5246_v5  ;;  %3992 = vmatprep.subr.bf16.mxu1 %v5249_v6  ;;  %v5339_v5 = vld [vmem:[%s7770_s1 + $0x5ec] ss:$16 sps:$4 sm:$0xff]   ;;  %v5334_v6 = vld [vmem:[%s7770_s1 + $0x5e0] ss:$16 sps:$4 sm:$0xff]  }
  0x82   :  { %3615 = vmatmul.mubr.bf16.vlgmr.msra.gmra.mrb[0].mxu0 %v4387_v7  ;;  %3984 = vmatmul.mubr.bf16.vlgmr.msra.gmra.mrb[0].mxu1 %v4387_v7  ;;  %v5337_v7 = vld [vmem:[%s7770_s1 + $0x5e8] ss:$16 sps:$4 sm:$0xff]  }
  0x83   :  { %3624 = vmatpush1.bf16.msra.mxu0 %v5244_v8  ;;  %3993 = vmatpush1.bf16.msra.mxu1 %v5247_v9  ;;  %v5344_v8 = vld [vmem:[%s7770_s1 + $0x604] ss:$16 sps:$4 sm:$0xff]   ;;  %v5347_v9 = vld [vmem:[%s7770_s1 + $0x60c] ss:$16 sps:$4 sm:$0xff]  }
  0x84   :  { %3625 = vmatprep.subr.bf16.mxu0 %v5252_v10  ;;  %3994 = vmatprep.subr.bf16.mxu1 %v5255_v12  ;;  %v5342_v10 = vld [vmem:[%s7770_s1 + $0x600] ss:$16 sps:$4 sm:$0xff]   ;;  %v4389_v12 = vcombine.low %v6365_v11, %v6365_v11  ;;  %v5353_v11 = vld [vmem:[%s7770_s1 + $0x62c] ss:$16 sps:$4 sm:$0xff]  }
  0x85   :  { %3655 = vmatprep.mubr.bf16.mxu0 %v4390_v13  ;;  %4024 = vmatprep.mubr.bf16.mxu1 %v4390_v13  ;;  %v5345_v13 = vld [vmem:[%s7770_s1 + $0x608] ss:$16 sps:$4 sm:$0xff]  }
  0x87   :  { %3626 = vmatpush1.bf16.msra.mxu0 %v5250_v14  ;;  %3995 = vmatpush1.bf16.msra.mxu1 %v5253_v15  ;;  %v6563_v14 = vld [vmem:[%s7771_s0 + $0x18] sm:$0xff]  ;;  %v5350_v15 = vld [vmem:[%s7770_s1 + $0x624] ss:$16 sps:$4 sm:$0xff]  }
  0x88   :  { %3627 = vmatprep.subr.bf16.mxu0 %v5258_v16  ;;  %3996 = vmatprep.subr.bf16.mxu1 %v5261_v17  ;;  %v4392_v16 = vcombine.high %v6563_v14, %v6563_v14  ;;  %v5348_v17 = vld [vmem:[%s7770_s1 + $0x620] ss:$16 sps:$4 sm:$0xff]  }
  0x8b   :  { %3628 = vmatpush1.bf16.msra.mxu0 %v5256_v18  ;;  %3997 = vmatpush1.bf16.msra.mxu1 %v5259_v19  ;;  %v5351_v18 = vld [vmem:[%s7770_s1 + $0x628] ss:$16 sps:$4 sm:$0xff]   ;;  %v5356_v19 = vld [vmem:[%s7770_s1 + $0x644] ss:$16 sps:$4 sm:$0xff]  }
  0x8c   :  { %3629 = vmatprep.subr.bf16.mxu0 %v5264_v20  ;;  %3998 = vmatprep.subr.bf16.mxu1 %v5267_v21  ;;  %v5359_v20 = vld [vmem:[%s7770_s1 + $0x64c] ss:$16 sps:$4 sm:$0xff]   ;;  %v5354_v21 = vld [vmem:[%s7770_s1 + $0x640] ss:$16 sps:$4 sm:$0xff]  }
  0x8f   :  { %3630 = vmatpush1.bf16.msra.mxu0 %v5262_v22  ;;  %3999 = vmatpush1.bf16.msra.mxu1 %v5265_v23  ;;  %v5357_v22 = vld [vmem:[%s7770_s1 + $0x648] ss:$16 sps:$4 sm:$0xff]   ;;  %v5362_v23 = vld [vmem:[%s7770_s1 + $0x664] ss:$16 sps:$4 sm:$0xff]  }
  0x90   :  { %3631 = vmatprep.subr.bf16.mxu0 %v5270_v24  ;;  %4000 = vmatprep.subr.bf16.mxu1 %v5273_v25  ;;  %v5365_v24 = vld [vmem:[%s7770_s1 + $0x66c] ss:$16 sps:$4 sm:$0xff]   ;;  %v5360_v25 = vld [vmem:[%s7770_s1 + $0x660] ss:$16 sps:$4 sm:$0xff]  }
  0x93   :  { %3632 = vmatpush1.bf16.msra.mxu0 %v5268_v26  ;;  %4001 = vmatpush1.bf16.msra.mxu1 %v5271_v27  ;;  %v5363_v26 = vld [vmem:[%s7770_s1 + $0x668] ss:$16 sps:$4 sm:$0xff]   ;;  %v5368_v27 = vld [vmem:[%s7770_s1 + $0x684] ss:$16 sps:$4 sm:$0xff]  }
  0x94   :  { %3633 = vmatprep.subr.bf16.mxu0 %v5276_v28  ;;  %4002 = vmatprep.subr.bf16.mxu1 %v5279_v29  ;;  %v5371_v28 = vld [vmem:[%s7770_s1 + $0x68c] ss:$16 sps:$4 sm:$0xff]   ;;  %v5366_v29 = vld [vmem:[%s7770_s1 + $0x680] ss:$16 sps:$4 sm:$0xff]  }
  0x97   :  { %3634 = vmatpush1.bf16.msra.mxu0 %v5274_v30  ;;  %4003 = vmatpush1.bf16.msra.mxu1 %v5277_v31  ;;  %v5369_v30 = vld [vmem:[%s7770_s1 + $0x688] ss:$16 sps:$4 sm:$0xff]   ;;  %v5374_v31 = vld [vmem:[%s7770_s1 + $0x6a4] ss:$16 sps:$4 sm:$0xff]  }
  0x98   :  { %3635 = vmatprep.subr.bf16.mxu0 %v5282_v32  ;;  %4004 = vmatprep.subr.bf16.mxu1 %v5285_v33  ;;  %v5377_v32 = vld [vmem:[%s7770_s1 + $0x6ac] ss:$16 sps:$4 sm:$0xff]   ;;  %v5372_v33 = vld [vmem:[%s7770_s1 + $0x6a0] ss:$16 sps:$4 sm:$0xff]  }
  0x9b   :  { %3636 = vmatpush1.bf16.msra.mxu0 %v5280_v34  ;;  %4005 = vmatpush1.bf16.msra.mxu1 %v5283_v35  ;;  %v5375_v34 = vld [vmem:[%s7770_s1 + $0x6a8] ss:$16 sps:$4 sm:$0xff]   ;;  %v5380_v35 = vld [vmem:[%s7770_s1 + $0x6c4] ss:$16 sps:$4 sm:$0xff]  }
  0x9c   :  { %3637 = vmatprep.subr.bf16.mxu0 %v5288_v36  ;;  %4006 = vmatprep.subr.bf16.mxu1 %v5291_v37  ;;  %v5383_v36 = vld [vmem:[%s7770_s1 + $0x6cc] ss:$16 sps:$4 sm:$0xff]   ;;  %v5378_v37 = vld [vmem:[%s7770_s1 + $0x6c0] ss:$16 sps:$4 sm:$0xff]  }
  0x9f   :  { %3638 = vmatpush1.bf16.msra.mxu0 %v5286_v38  ;;  %4007 = vmatpush1.bf16.msra.mxu1 %v5289_v39  ;;  %v5381_v38 = vld [vmem:[%s7770_s1 + $0x6c8] ss:$16 sps:$4 sm:$0xff]   ;;  %v5386_v39 = vld [vmem:[%s7770_s1 + $0x6e4] ss:$16 sps:$4 sm:$0xff]  }
  0xa0   :  { %3639 = vmatprep.subr.bf16.mxu0 %v5294_v40  ;;  %4008 = vmatprep.subr.bf16.mxu1 %v5297_v41  ;;  %v5389_v40 = vld [vmem:[%s7770_s1 + $0x6ec] ss:$16 sps:$4 sm:$0xff]   ;;  %v5384_v41 = vld [vmem:[%s7770_s1 + $0x6e0] ss:$16 sps:$4 sm:$0xff]  }
  0xa3   :  { %3640 = vmatpush1.bf16.msra.mxu0 %v5292_v42  ;;  %4009 = vmatpush1.bf16.msra.mxu1 %v5295_v43  ;;  %v5387_v42 = vld [vmem:[%s7770_s1 + $0x6e8] ss:$16 sps:$4 sm:$0xff]   ;;  %v5392_v43 = vld [vmem:[%s7770_s1 + $0x704] ss:$16 sps:$4 sm:$0xff]  }
  0xa4   :  { %3641 = vmatprep.subr.bf16.mxu0 %v5300_v44  ;;  %4010 = vmatprep.subr.bf16.mxu1 %v5303_v45  ;;  %v5395_v44 = vld [vmem:[%s7770_s1 + $0x70c] ss:$16 sps:$4 sm:$0xff]   ;;  %v5390_v45 = vld [vmem:[%s7770_s1 + $0x700] ss:$16 sps:$4 sm:$0xff]  }
  0xa7   :  { %3642 = vmatpush1.bf16.msra.mxu0 %v5298_v46  ;;  %4011 = vmatpush1.bf16.msra.mxu1 %v5301_v47  ;;  %v5393_v46 = vld [vmem:[%s7770_s1 + $0x708] ss:$16 sps:$4 sm:$0xff]   ;;  %v5398_v47 = vld [vmem:[%s7770_s1 + $0x724] ss:$16 sps:$4 sm:$0xff]  }
  0xa8   :  { %3643 = vmatprep.subr.bf16.mxu0 %v5306_v48  ;;  %4012 = vmatprep.subr.bf16.mxu1 %v5309_v49  ;;  %v5401_v48 = vld [vmem:[%s7770_s1 + $0x72c] ss:$16 sps:$4 sm:$0xff]   ;;  %v5396_v49 = vld [vmem:[%s7770_s1 + $0x720] ss:$16 sps:$4 sm:$0xff]  }
  0xab   :  { %3644 = vmatpush1.bf16.msra.mxu0 %v5304_v50  ;;  %4013 = vmatpush1.bf16.msra.mxu1 %v5307_v51  ;;  %v5399_v50 = vld [vmem:[%s7770_s1 + $0x728] ss:$16 sps:$4 sm:$0xff]   ;;  %v5404_v51 = vld [vmem:[%s7770_s1 + $0x744] ss:$16 sps:$4 sm:$0xff]  }
  0xac   :  { %3645 = vmatprep.subr.bf16.mxu0 %v5312_v52  ;;  %4014 = vmatprep.subr.bf16.mxu1 %v5315_v53  ;;  %v5407_v52 = vld [vmem:[%s7770_s1 + $0x74c] ss:$16 sps:$4 sm:$0xff]   ;;  %v5402_v53 = vld [vmem:[%s7770_s1 + $0x740] ss:$16 sps:$4 sm:$0xff]  }
  0xaf   :  { %3646 = vmatpush1.bf16.msra.mxu0 %v5310_v54  ;;  %4015 = vmatpush1.bf16.msra.mxu1 %v5313_v55  ;;  %v5405_v54 = vld [vmem:[%s7770_s1 + $0x748] ss:$16 sps:$4 sm:$0xff]   ;;  %v5410_v55 = vld [vmem:[%s7770_s1 + $0x764] ss:$16 sps:$4 sm:$0xff]  }
  0xb0   :  { %3647 = vmatprep.subr.bf16.mxu0 %v5318_v56  ;;  %4016 = vmatprep.subr.bf16.mxu1 %v5321_v57  ;;  %v5413_v56 = vld [vmem:[%s7770_s1 + $0x76c] ss:$16 sps:$4 sm:$0xff]   ;;  %v5408_v57 = vld [vmem:[%s7770_s1 + $0x760] ss:$16 sps:$4 sm:$0xff]  }
  0xb3   :  { %3648 = vmatpush1.bf16.msra.mxu0 %v5316_v58  ;;  %4017 = vmatpush1.bf16.msra.mxu1 %v5319_v59  ;;  %v5411_v58 = vld [vmem:[%s7770_s1 + $0x768] ss:$16 sps:$4 sm:$0xff]   ;;  %v5416_v59 = vld [vmem:[%s7770_s1 + $0x784] ss:$16 sps:$4 sm:$0xff]  }
  0xb4   :  { %3649 = vmatprep.subr.bf16.mxu0 %v5324_v60  ;;  %4018 = vmatprep.subr.bf16.mxu1 %v5327_v61  ;;  %v5419_v60 = vld [vmem:[%s7770_s1 + $0x78c] ss:$16 sps:$4 sm:$0xff]   ;;  %v5414_v61 = vld [vmem:[%s7770_s1 + $0x780] ss:$16 sps:$4 sm:$0xff]  }
  0xb7   :  { %3650 = vmatpush1.bf16.msra.mxu0 %v5322_v62  ;;  %4019 = vmatpush1.bf16.msra.mxu1 %v5325_v63  ;;  %v5417_v62 = vld [vmem:[%s7770_s1 + $0x788] ss:$16 sps:$4 sm:$0xff]   ;;  %v5422_v63 = vld [vmem:[%s7770_s1 + $0x7a4] ss:$16 sps:$4 sm:$0xff]  }
  0xb8   :  { %3651 = vmatprep.subr.bf16.mxu0 %v5330_v0  ;;  %4020 = vmatprep.subr.bf16.mxu1 %v5333_v1  ;;  %v5425_v0 = vld [vmem:[%s7770_s1 + $0x7ac] ss:$16 sps:$4 sm:$0xff]   ;;  %v5420_v1 = vld [vmem:[%s7770_s1 + $0x7a0] ss:$16 sps:$4 sm:$0xff]  }
  0xbb   :  { %3652 = vmatpush1.bf16.msra.mxu0 %v5328_v2  ;;  %4021 = vmatpush1.bf16.msra.mxu1 %v5331_v3  ;;  %v5423_v2 = vld [vmem:[%s7770_s1 + $0x7a8] ss:$16 sps:$4 sm:$0xff]   ;;  %v5428_v3 = vld [vmem:[%s7770_s1 + $0x7c4] ss:$16 sps:$4 sm:$0xff]  }
  0xbc   :  { %3653 = vmatprep.subr.bf16.mxu0 %v5336_v4  ;;  %4022 = vmatprep.subr.bf16.mxu1 %v5339_v5  ;;  %v5431_v4 = vld [vmem:[%s7770_s1 + $0x7cc] ss:$16 sps:$4 sm:$0xff]   ;;  %v5426_v5 = vld [vmem:[%s7770_s1 + $0x7c0] ss:$16 sps:$4 sm:$0xff]  }
  0xbf   :  { %3654 = vmatpush1.bf16.msra.mxu0 %v5334_v6  ;;  %4023 = vmatpush1.bf16.msra.mxu1 %v5337_v7  ;;  %v5429_v6 = vld [vmem:[%s7770_s1 + $0x7c8] ss:$16 sps:$4 sm:$0xff]   ;;  %v5434_v7 = vld [vmem:[%s7770_s1 + $0x7e4] ss:$16 sps:$4 sm:$0xff]  }
  0xc0   :  { %3664 = vmatprep.subr.bf16.mxu0 %v5344_v8  ;;  %4033 = vmatprep.subr.bf16.mxu1 %v5347_v9  ;;  %v5437_v8 = vld [vmem:[%s7770_s1 + $0x7ec] ss:$16 sps:$4 sm:$0xff]   ;;  %v5432_v9 = vld [vmem:[%s7770_s1 + $0x7e0] ss:$16 sps:$4 sm:$0xff]  }
  0xc2   :  { %3656 = vmatmul.mubr.bf16.vlgmr.msra.gmra.mrb[0].mxu0 %v4389_v12  ;;  %4025 = vmatmul.mubr.bf16.vlgmr.msra.gmra.mrb[0].mxu1 %v4389_v12  ;;  %v5442_v12 = vld [vmem:[%s7770_s1 + $0x804] ss:$16 sps:$4 sm:$0xff]  }
  0xc3   :  { %3665 = vmatpush1.bf16.msra.mxu0 %v5342_v10  ;;  %4034 = vmatpush1.bf16.msra.mxu1 %v5345_v13  ;;  %v5435_v10 = vld [vmem:[%s7770_s1 + $0x7e8] ss:$16 sps:$4 sm:$0xff]   ;;  %v5445_v13 = vld [vmem:[%s7770_s1 + $0x80c] ss:$16 sps:$4 sm:$0xff]  }
  0xc4   :  { %3666 = vmatprep.subr.bf16.mxu0 %v5350_v15  ;;  %4035 = vmatprep.subr.bf16.mxu1 %v5353_v11  ;;  %v5440_v15 = vld [vmem:[%s7770_s1 + $0x800] ss:$16 sps:$4 sm:$0xff]   ;;  %v4391_v11 = vcombine.low %v6563_v14, %v6563_v14  ;;  %v5451_v14 = vld [vmem:[%s7770_s1 + $0x82c] ss:$16 sps:$4 sm:$0xff]  }
  0xc5   :  { %3696 = vmatprep.mubr.bf16.mxu0 %v4392_v16  ;;  %4065 = vmatprep.mubr.bf16.mxu1 %v4392_v16  ;;  %v6761_v16 = vld [vmem:[%s7771_s0 + $0x20] sm:$0xff] }
  0xc7   :  { %3667 = vmatpush1.bf16.msra.mxu0 %v5348_v17  ;;  %4036 = vmatpush1.bf16.msra.mxu1 %v5351_v18  ;;  %v5443_v17 = vld [vmem:[%s7770_s1 + $0x808] ss:$16 sps:$4 sm:$0xff]   ;;  %v5448_v18 = vld [vmem:[%s7770_s1 + $0x824] ss:$16 sps:$4 sm:$0xff]  }
  0xc8   :  { %3668 = vmatprep.subr.bf16.mxu0 %v5356_v19  ;;  %4037 = vmatprep.subr.bf16.mxu1 %v5359_v20  ;;  %v4394_v19 = vcombine.high %v6761_v16, %v6761_v16  ;;  %v5446_v20 = vld [vmem:[%s7770_s1 + $0x820] ss:$16 sps:$4 sm:$0xff]  }
  0xcb   :  { %3669 = vmatpush1.bf16.msra.mxu0 %v5354_v21  ;;  %4038 = vmatpush1.bf16.msra.mxu1 %v5357_v22  ;;  %v5449_v21 = vld [vmem:[%s7770_s1 + $0x828] ss:$16 sps:$4 sm:$0xff]   ;;  %v5454_v22 = vld [vmem:[%s7770_s1 + $0x844] ss:$16 sps:$4 sm:$0xff]  }
  0xcc   :  { %3670 = vmatprep.subr.bf16.mxu0 %v5362_v23  ;;  %4039 = vmatprep.subr.bf16.mxu1 %v5365_v24  ;;  %v5457_v23 = vld [vmem:[%s7770_s1 + $0x84c] ss:$16 sps:$4 sm:$0xff]   ;;  %v5452_v24 = vld [vmem:[%s7770_s1 + $0x840] ss:$16 sps:$4 sm:$0xff]  }
  0xcf   :  { %3671 = vmatpush1.bf16.msra.mxu0 %v5360_v25  ;;  %4040 = vmatpush1.bf16.msra.mxu1 %v5363_v26  ;;  %v5455_v25 = vld [vmem:[%s7770_s1 + $0x848] ss:$16 sps:$4 sm:$0xff]   ;;  %v5460_v26 = vld [vmem:[%s7770_s1 + $0x864] ss:$16 sps:$4 sm:$0xff]  }
  0xd0   :  { %3672 = vmatprep.subr.bf16.mxu0 %v5368_v27  ;;  %4041 = vmatprep.subr.bf16.mxu1 %v5371_v28  ;;  %v5463_v27 = vld [vmem:[%s7770_s1 + $0x86c] ss:$16 sps:$4 sm:$0xff]   ;;  %v5458_v28 = vld [vmem:[%s7770_s1 + $0x860] ss:$16 sps:$4 sm:$0xff]  }
  0xd3   :  { %3673 = vmatpush1.bf16.msra.mxu0 %v5366_v29  ;;  %4042 = vmatpush1.bf16.msra.mxu1 %v5369_v30  ;;  %v5461_v29 = vld [vmem:[%s7770_s1 + $0x868] ss:$16 sps:$4 sm:$0xff]   ;;  %v5466_v30 = vld [vmem:[%s7770_s1 + $0x884] ss:$16 sps:$4 sm:$0xff]  }
  0xd4   :  { %3674 = vmatprep.subr.bf16.mxu0 %v5374_v31  ;;  %4043 = vmatprep.subr.bf16.mxu1 %v5377_v32  ;;  %v5469_v31 = vld [vmem:[%s7770_s1 + $0x88c] ss:$16 sps:$4 sm:$0xff]   ;;  %v5464_v32 = vld [vmem:[%s7770_s1 + $0x880] ss:$16 sps:$4 sm:$0xff]  }
  0xd7   :  { %3675 = vmatpush1.bf16.msra.mxu0 %v5372_v33  ;;  %4044 = vmatpush1.bf16.msra.mxu1 %v5375_v34  ;;  %v5467_v33 = vld [vmem:[%s7770_s1 + $0x888] ss:$16 sps:$4 sm:$0xff]   ;;  %v5472_v34 = vld [vmem:[%s7770_s1 + $0x8a4] ss:$16 sps:$4 sm:$0xff]  }
  0xd8   :  { %3676 = vmatprep.subr.bf16.mxu0 %v5380_v35  ;;  %4045 = vmatprep.subr.bf16.mxu1 %v5383_v36  ;;  %v5475_v35 = vld [vmem:[%s7770_s1 + $0x8ac] ss:$16 sps:$4 sm:$0xff]   ;;  %v5470_v36 = vld [vmem:[%s7770_s1 + $0x8a0] ss:$16 sps:$4 sm:$0xff]  }
  0xdb   :  { %3677 = vmatpush1.bf16.msra.mxu0 %v5378_v37  ;;  %4046 = vmatpush1.bf16.msra.mxu1 %v5381_v38  ;;  %v5473_v37 = vld [vmem:[%s7770_s1 + $0x8a8] ss:$16 sps:$4 sm:$0xff]   ;;  %v5478_v38 = vld [vmem:[%s7770_s1 + $0x8c4] ss:$16 sps:$4 sm:$0xff]  }
  0xdc   :  { %3678 = vmatprep.subr.bf16.mxu0 %v5386_v39  ;;  %4047 = vmatprep.subr.bf16.mxu1 %v5389_v40  ;;  %v5481_v39 = vld [vmem:[%s7770_s1 + $0x8cc] ss:$16 sps:$4 sm:$0xff]   ;;  %v5476_v40 = vld [vmem:[%s7770_s1 + $0x8c0] ss:$16 sps:$4 sm:$0xff]  }
  0xdf   :  { %3679 = vmatpush1.bf16.msra.mxu0 %v5384_v41  ;;  %4048 = vmatpush1.bf16.msra.mxu1 %v5387_v42  ;;  %v5479_v41 = vld [vmem:[%s7770_s1 + $0x8c8] ss:$16 sps:$4 sm:$0xff]   ;;  %v5484_v42 = vld [vmem:[%s7770_s1 + $0x8e4] ss:$16 sps:$4 sm:$0xff]  }
  0xe0   :  { %3680 = vmatprep.subr.bf16.mxu0 %v5392_v43  ;;  %4049 = vmatprep.subr.bf16.mxu1 %v5395_v44  ;;  %v5487_v43 = vld [vmem:[%s7770_s1 + $0x8ec] ss:$16 sps:$4 sm:$0xff]   ;;  %v5482_v44 = vld [vmem:[%s7770_s1 + $0x8e0] ss:$16 sps:$4 sm:$0xff]  }
  0xe3   :  { %3681 = vmatpush1.bf16.msra.mxu0 %v5390_v45  ;;  %4050 = vmatpush1.bf16.msra.mxu1 %v5393_v46  ;;  %v5485_v45 = vld [vmem:[%s7770_s1 + $0x8e8] ss:$16 sps:$4 sm:$0xff]   ;;  %v5490_v46 = vld [vmem:[%s7770_s1 + $0x904] ss:$16 sps:$4 sm:$0xff]  }
  0xe4   :  { %3682 = vmatprep.subr.bf16.mxu0 %v5398_v47  ;;  %4051 = vmatprep.subr.bf16.mxu1 %v5401_v48  ;;  %v5493_v47 = vld [vmem:[%s7770_s1 + $0x90c] ss:$16 sps:$4 sm:$0xff]   ;;  %v5488_v48 = vld [vmem:[%s7770_s1 + $0x900] ss:$16 sps:$4 sm:$0xff]  }
  0xe7   :  { %3683 = vmatpush1.bf16.msra.mxu0 %v5396_v49  ;;  %4052 = vmatpush1.bf16.msra.mxu1 %v5399_v50  ;;  %v5491_v49 = vld [vmem:[%s7770_s1 + $0x908] ss:$16 sps:$4 sm:$0xff]   ;;  %v5496_v50 = vld [vmem:[%s7770_s1 + $0x924] ss:$16 sps:$4 sm:$0xff]  }
  0xe8   :  { %3684 = vmatprep.subr.bf16.mxu0 %v5404_v51  ;;  %4053 = vmatprep.subr.bf16.mxu1 %v5407_v52  ;;  %v5499_v51 = vld [vmem:[%s7770_s1 + $0x92c] ss:$16 sps:$4 sm:$0xff]   ;;  %v5494_v52 = vld [vmem:[%s7770_s1 + $0x920] ss:$16 sps:$4 sm:$0xff]  }
  0xeb   :  { %3685 = vmatpush1.bf16.msra.mxu0 %v5402_v53  ;;  %4054 = vmatpush1.bf16.msra.mxu1 %v5405_v54  ;;  %v5497_v53 = vld [vmem:[%s7770_s1 + $0x928] ss:$16 sps:$4 sm:$0xff]   ;;  %v5502_v54 = vld [vmem:[%s7770_s1 + $0x944] ss:$16 sps:$4 sm:$0xff]  }
  0xec   :  { %3686 = vmatprep.subr.bf16.mxu0 %v5410_v55  ;;  %4055 = vmatprep.subr.bf16.mxu1 %v5413_v56  ;;  %v5505_v55 = vld [vmem:[%s7770_s1 + $0x94c] ss:$16 sps:$4 sm:$0xff]   ;;  %v5500_v56 = vld [vmem:[%s7770_s1 + $0x940] ss:$16 sps:$4 sm:$0xff]  }
  0xef   :  { %3687 = vmatpush1.bf16.msra.mxu0 %v5408_v57  ;;  %4056 = vmatpush1.bf16.msra.mxu1 %v5411_v58  ;;  %v5503_v57 = vld [vmem:[%s7770_s1 + $0x948] ss:$16 sps:$4 sm:$0xff]   ;;  %v5508_v58 = vld [vmem:[%s7770_s1 + $0x964] ss:$16 sps:$4 sm:$0xff]  }
  0xf0   :  { %3688 = vmatprep.subr.bf16.mxu0 %v5416_v59  ;;  %4057 = vmatprep.subr.bf16.mxu1 %v5419_v60  ;;  %v5511_v59 = vld [vmem:[%s7770_s1 + $0x96c] ss:$16 sps:$4 sm:$0xff]   ;;  %v5506_v60 = vld [vmem:[%s7770_s1 + $0x960] ss:$16 sps:$4 sm:$0xff]  }
  0xf3   :  { %3689 = vmatpush1.bf16.msra.mxu0 %v5414_v61  ;;  %4058 = vmatpush1.bf16.msra.mxu1 %v5417_v62  ;;  %v5509_v61 = vld [vmem:[%s7770_s1 + $0x968] ss:$16 sps:$4 sm:$0xff]   ;;  %v5514_v62 = vld [vmem:[%s7770_s1 + $0x984] ss:$16 sps:$4 sm:$0xff]  }
  0xf4   :  { %3690 = vmatprep.subr.bf16.mxu0 %v5422_v63  ;;  %4059 = vmatprep.subr.bf16.mxu1 %v5425_v0  ;;  %v5517_v63 = vld [vmem:[%s7770_s1 + $0x98c] ss:$16 sps:$4 sm:$0xff]   ;;  %v5512_v0 = vld [vmem:[%s7770_s1 + $0x980] ss:$16 sps:$4 sm:$0xff]  }
  0xf7   :  { %3691 = vmatpush1.bf16.msra.mxu0 %v5420_v1  ;;  %4060 = vmatpush1.bf16.msra.mxu1 %v5423_v2  ;;  %v5515_v1 = vld [vmem:[%s7770_s1 + $0x988] ss:$16 sps:$4 sm:$0xff]   ;;  %v5520_v2 = vld [vmem:[%s7770_s1 + $0x9a4] ss:$16 sps:$4 sm:$0xff]  }
  0xf8   :  { %3692 = vmatprep.subr.bf16.mxu0 %v5428_v3  ;;  %4061 = vmatprep.subr.bf16.mxu1 %v5431_v4  ;;  %v5523_v3 = vld [vmem:[%s7770_s1 + $0x9ac] ss:$16 sps:$4 sm:$0xff]   ;;  %v5518_v4 = vld [vmem:[%s7770_s1 + $0x9a0] ss:$16 sps:$4 sm:$0xff]  }
  0xfb   :  { %3693 = vmatpush1.bf16.msra.mxu0 %v5426_v5  ;;  %4062 = vmatpush1.bf16.msra.mxu1 %v5429_v6  ;;  %v5521_v5 = vld [vmem:[%s7770_s1 + $0x9a8] ss:$16 sps:$4 sm:$0xff]   ;;  %v5526_v6 = vld [vmem:[%s7770_s1 + $0x9c4] ss:$16 sps:$4 sm:$0xff]  }
  0xfc   :  { %3694 = vmatprep.subr.bf16.mxu0 %v5434_v7  ;;  %4063 = vmatprep.subr.bf16.mxu1 %v5437_v8  ;;  %v5529_v7 = vld [vmem:[%s7770_s1 + $0x9cc] ss:$16 sps:$4 sm:$0xff]   ;;  %v5524_v8 = vld [vmem:[%s7770_s1 + $0x9c0] ss:$16 sps:$4 sm:$0xff]  }
  0xff   :  { %3695 = vmatpush1.bf16.msra.mxu0 %v5432_v9  ;;  %4064 = vmatpush1.bf16.msra.mxu1 %v5435_v10  ;;  %v5527_v9 = vld [vmem:[%s7770_s1 + $0x9c8] ss:$16 sps:$4 sm:$0xff]   ;;  %v5532_v10 = vld [vmem:[%s7770_s1 + $0x9e4] ss:$16 sps:$4 sm:$0xff]  }
 0x100   :  { %3705 = vmatprep.subr.bf16.mxu0 %v5442_v12  ;;  %4074 = vmatprep.subr.bf16.mxu1 %v5445_v13  ;;  %v5535_v12 = vld [vmem:[%s7770_s1 + $0x9ec] ss:$16 sps:$4 sm:$0xff]   ;;  %v5530_v13 = vld [vmem:[%s7770_s1 + $0x9e0] ss:$16 sps:$4 sm:$0xff]  }
 0x102   :  { %3697 = vmatmul.mubr.bf16.vlgmr.msra.gmra.mrb[0].mxu0 %v4391_v11  ;;  %4066 = vmatmul.mubr.bf16.vlgmr.msra.gmra.mrb[0].mxu1 %v4391_v11  ;;  %v5540_v11 = vld [vmem:[%s7770_s1 + $0xa04] ss:$16 sps:$4 sm:$0xff]  }
 0x103   :  { %3706 = vmatpush1.bf16.msra.mxu0 %v5440_v15  ;;  %4075 = vmatpush1.bf16.msra.mxu1 %v5443_v17  ;;  %v5533_v15 = vld [vmem:[%s7770_s1 + $0x9e8] ss:$16 sps:$4 sm:$0xff]   ;;  %v5543_v17 = vld [vmem:[%s7770_s1 + $0xa0c] ss:$16 sps:$4 sm:$0xff]  }
 0x104   :  { %3707 = vmatprep.subr.bf16.mxu0 %v5448_v18  ;;  %4076 = vmatprep.subr.bf16.mxu1 %v5451_v14  ;;  %v6957_v18 = vld [vmem:[%s7771_s0 + $0x28] sm:$0xff]  ;;  %v4393_v14 = vcombine.low %v6761_v16, %v6761_v16 }
 0x105   :  { %3737 = vmatprep.mubr.bf16.mxu0 %v4394_v19  ;;  %4106 = vmatprep.mubr.bf16.mxu1 %v4394_v19  ;;  %v5538_v19 = vld [vmem:[%s7770_s1 + $0xa00] ss:$16 sps:$4 sm:$0xff]   ;;  %v5549_v16 = vld [vmem:[%s7770_s1 + $0xa2c] ss:$16 sps:$4 sm:$0xff]  }
 0x107   :  { %3708 = vmatpush1.bf16.msra.mxu0 %v5446_v20  ;;  %4077 = vmatpush1.bf16.msra.mxu1 %v5449_v21  ;;  %v5541_v20 = vld [vmem:[%s7770_s1 + $0xa08] ss:$16 sps:$4 sm:$0xff]   ;;  %v5546_v21 = vld [vmem:[%s7770_s1 + $0xa24] ss:$16 sps:$4 sm:$0xff]  }
 0x108   :  { %3709 = vmatprep.subr.bf16.mxu0 %v5454_v22  ;;  %4078 = vmatprep.subr.bf16.mxu1 %v5457_v23  ;;  %v4396_v22 = vcombine.high %v6957_v18, %v6957_v18  ;;  %v5544_v23 = vld [vmem:[%s7770_s1 + $0xa20] ss:$16 sps:$4 sm:$0xff]  }
 0x10b   :  { %3710 = vmatpush1.bf16.msra.mxu0 %v5452_v24  ;;  %4079 = vmatpush1.bf16.msra.mxu1 %v5455_v25  ;;  %v5547_v24 = vld [vmem:[%s7770_s1 + $0xa28] ss:$16 sps:$4 sm:$0xff]   ;;  %v5552_v25 = vld [vmem:[%s7770_s1 + $0xa44] ss:$16 sps:$4 sm:$0xff]  }
 0x10c   :  { %3711 = vmatprep.subr.bf16.mxu0 %v5460_v26  ;;  %4080 = vmatprep.subr.bf16.mxu1 %v5463_v27  ;;  %v5555_v26 = vld [vmem:[%s7770_s1 + $0xa4c] ss:$16 sps:$4 sm:$0xff]   ;;  %v5550_v27 = vld [vmem:[%s7770_s1 + $0xa40] ss:$16 sps:$4 sm:$0xff]  }
 0x10f   :  { %3712 = vmatpush1.bf16.msra.mxu0 %v5458_v28  ;;  %4081 = vmatpush1.bf16.msra.mxu1 %v5461_v29  ;;  %v5553_v28 = vld [vmem:[%s7770_s1 + $0xa48] ss:$16 sps:$4 sm:$0xff]   ;;  %v5558_v29 = vld [vmem:[%s7770_s1 + $0xa64] ss:$16 sps:$4 sm:$0xff]  }
 0x110   :  { %3713 = vmatprep.subr.bf16.mxu0 %v5466_v30  ;;  %4082 = vmatprep.subr.bf16.mxu1 %v5469_v31  ;;  %v5561_v30 = vld [vmem:[%s7770_s1 + $0xa6c] ss:$16 sps:$4 sm:$0xff]   ;;  %v5556_v31 = vld [vmem:[%s7770_s1 + $0xa60] ss:$16 sps:$4 sm:$0xff]  }
 0x113   :  { %3714 = vmatpush1.bf16.msra.mxu0 %v5464_v32  ;;  %4083 = vmatpush1.bf16.msra.mxu1 %v5467_v33  ;;  %v5559_v32 = vld [vmem:[%s7770_s1 + $0xa68] ss:$16 sps:$4 sm:$0xff]   ;;  %v5564_v33 = vld [vmem:[%s7770_s1 + $0xa84] ss:$16 sps:$4 sm:$0xff]  }
 0x114   :  { %3715 = vmatprep.subr.bf16.mxu0 %v5472_v34  ;;  %4084 = vmatprep.subr.bf16.mxu1 %v5475_v35  ;;  %v5567_v34 = vld [vmem:[%s7770_s1 + $0xa8c] ss:$16 sps:$4 sm:$0xff]   ;;  %v5562_v35 = vld [vmem:[%s7770_s1 + $0xa80] ss:$16 sps:$4 sm:$0xff]  }
 0x117   :  { %3716 = vmatpush1.bf16.msra.mxu0 %v5470_v36  ;;  %4085 = vmatpush1.bf16.msra.mxu1 %v5473_v37  ;;  %v5565_v36 = vld [vmem:[%s7770_s1 + $0xa88] ss:$16 sps:$4 sm:$0xff]   ;;  %v5570_v37 = vld [vmem:[%s7770_s1 + $0xaa4] ss:$16 sps:$4 sm:$0xff]  }
 0x118   :  { %3717 = vmatprep.subr.bf16.mxu0 %v5478_v38  ;;  %4086 = vmatprep.subr.bf16.mxu1 %v5481_v39  ;;  %v5573_v38 = vld [vmem:[%s7770_s1 + $0xaac] ss:$16 sps:$4 sm:$0xff]   ;;  %v5568_v39 = vld [vmem:[%s7770_s1 + $0xaa0] ss:$16 sps:$4 sm:$0xff]  }
 0x11b   :  { %3718 = vmatpush1.bf16.msra.mxu0 %v5476_v40  ;;  %4087 = vmatpush1.bf16.msra.mxu1 %v5479_v41  ;;  %v5571_v40 = vld [vmem:[%s7770_s1 + $0xaa8] ss:$16 sps:$4 sm:$0xff]   ;;  %v5576_v41 = vld [vmem:[%s7770_s1 + $0xac4] ss:$16 sps:$4 sm:$0xff]  }
 0x11c   :  { %3719 = vmatprep.subr.bf16.mxu0 %v5484_v42  ;;  %4088 = vmatprep.subr.bf16.mxu1 %v5487_v43  ;;  %v5579_v42 = vld [vmem:[%s7770_s1 + $0xacc] ss:$16 sps:$4 sm:$0xff]   ;;  %v5574_v43 = vld [vmem:[%s7770_s1 + $0xac0] ss:$16 sps:$4 sm:$0xff]  }
 0x11f   :  { %3720 = vmatpush1.bf16.msra.mxu0 %v5482_v44  ;;  %4089 = vmatpush1.bf16.msra.mxu1 %v5485_v45  ;;  %v5577_v44 = vld [vmem:[%s7770_s1 + $0xac8] ss:$16 sps:$4 sm:$0xff]   ;;  %v5582_v45 = vld [vmem:[%s7770_s1 + $0xae4] ss:$16 sps:$4 sm:$0xff]  }
 0x120   :  { %3721 = vmatprep.subr.bf16.mxu0 %v5490_v46  ;;  %4090 = vmatprep.subr.bf16.mxu1 %v5493_v47  ;;  %v5585_v46 = vld [vmem:[%s7770_s1 + $0xaec] ss:$16 sps:$4 sm:$0xff]   ;;  %v5580_v47 = vld [vmem:[%s7770_s1 + $0xae0] ss:$16 sps:$4 sm:$0xff]  }
 0x123   :  { %3722 = vmatpush1.bf16.msra.mxu0 %v5488_v48  ;;  %4091 = vmatpush1.bf16.msra.mxu1 %v5491_v49  ;;  %v5583_v48 = vld [vmem:[%s7770_s1 + $0xae8] ss:$16 sps:$4 sm:$0xff]   ;;  %v5588_v49 = vld [vmem:[%s7770_s1 + $0xb04] ss:$16 sps:$4 sm:$0xff]  }
 0x124   :  { %3723 = vmatprep.subr.bf16.mxu0 %v5496_v50  ;;  %4092 = vmatprep.subr.bf16.mxu1 %v5499_v51  ;;  %v5591_v50 = vld [vmem:[%s7770_s1 + $0xb0c] ss:$16 sps:$4 sm:$0xff]   ;;  %v5586_v51 = vld [vmem:[%s7770_s1 + $0xb00] ss:$16 sps:$4 sm:$0xff]  }
 0x127   :  { %3724 = vmatpush1.bf16.msra.mxu0 %v5494_v52  ;;  %4093 = vmatpush1.bf16.msra.mxu1 %v5497_v53  ;;  %v5589_v52 = vld [vmem:[%s7770_s1 + $0xb08] ss:$16 sps:$4 sm:$0xff]   ;;  %v5594_v53 = vld [vmem:[%s7770_s1 + $0xb24] ss:$16 sps:$4 sm:$0xff]  }
 0x128   :  { %3725 = vmatprep.subr.bf16.mxu0 %v5502_v54  ;;  %4094 = vmatprep.subr.bf16.mxu1 %v5505_v55  ;;  %v5597_v54 = vld [vmem:[%s7770_s1 + $0xb2c] ss:$16 sps:$4 sm:$0xff]   ;;  %v5592_v55 = vld [vmem:[%s7770_s1 + $0xb20] ss:$16 sps:$4 sm:$0xff]  }
 0x12b   :  { %3726 = vmatpush1.bf16.msra.mxu0 %v5500_v56  ;;  %4095 = vmatpush1.bf16.msra.mxu1 %v5503_v57  ;;  %v5595_v56 = vld [vmem:[%s7770_s1 + $0xb28] ss:$16 sps:$4 sm:$0xff]   ;;  %v5600_v57 = vld [vmem:[%s7770_s1 + $0xb44] ss:$16 sps:$4 sm:$0xff]  }
 0x12c   :  { %3727 = vmatprep.subr.bf16.mxu0 %v5508_v58  ;;  %4096 = vmatprep.subr.bf16.mxu1 %v5511_v59  ;;  %v5603_v58 = vld [vmem:[%s7770_s1 + $0xb4c] ss:$16 sps:$4 sm:$0xff]   ;;  %v5598_v59 = vld [vmem:[%s7770_s1 + $0xb40] ss:$16 sps:$4 sm:$0xff]  }
 0x12f   :  { %3728 = vmatpush1.bf16.msra.mxu0 %v5506_v60  ;;  %4097 = vmatpush1.bf16.msra.mxu1 %v5509_v61  ;;  %v5601_v60 = vld [vmem:[%s7770_s1 + $0xb48] ss:$16 sps:$4 sm:$0xff]   ;;  %v5606_v61 = vld [vmem:[%s7770_s1 + $0xb64] ss:$16 sps:$4 sm:$0xff]  }
 0x130   :  { %3729 = vmatprep.subr.bf16.mxu0 %v5514_v62  ;;  %4098 = vmatprep.subr.bf16.mxu1 %v5517_v63  ;;  %v5609_v62 = vld [vmem:[%s7770_s1 + $0xb6c] ss:$16 sps:$4 sm:$0xff]   ;;  %v5604_v63 = vld [vmem:[%s7770_s1 + $0xb60] ss:$16 sps:$4 sm:$0xff]  }
 0x133   :  { %3730 = vmatpush1.bf16.msra.mxu0 %v5512_v0  ;;  %4099 = vmatpush1.bf16.msra.mxu1 %v5515_v1  ;;  %v5607_v0 = vld [vmem:[%s7770_s1 + $0xb68] ss:$16 sps:$4 sm:$0xff]   ;;  %v5612_v1 = vld [vmem:[%s7770_s1 + $0xb84] ss:$16 sps:$4 sm:$0xff]  }
 0x134   :  { %3731 = vmatprep.subr.bf16.mxu0 %v5520_v2  ;;  %4100 = vmatprep.subr.bf16.mxu1 %v5523_v3  ;;  %v5615_v2 = vld [vmem:[%s7770_s1 + $0xb8c] ss:$16 sps:$4 sm:$0xff]   ;;  %v5610_v3 = vld [vmem:[%s7770_s1 + $0xb80] ss:$16 sps:$4 sm:$0xff]  }
 0x137   :  { %3732 = vmatpush1.bf16.msra.mxu0 %v5518_v4  ;;  %4101 = vmatpush1.bf16.msra.mxu1 %v5521_v5  ;;  %v5613_v4 = vld [vmem:[%s7770_s1 + $0xb88] ss:$16 sps:$4 sm:$0xff]   ;;  %v5618_v5 = vld [vmem:[%s7770_s1 + $0xba4] ss:$16 sps:$4 sm:$0xff]  }
 0x138   :  { %3733 = vmatprep.subr.bf16.mxu0 %v5526_v6  ;;  %4102 = vmatprep.subr.bf16.mxu1 %v5529_v7  ;;  %v5621_v6 = vld [vmem:[%s7770_s1 + $0xbac] ss:$16 sps:$4 sm:$0xff]   ;;  %v5616_v7 = vld [vmem:[%s7770_s1 + $0xba0] ss:$16 sps:$4 sm:$0xff]  }
 0x13b   :  { %3734 = vmatpush1.bf16.msra.mxu0 %v5524_v8  ;;  %4103 = vmatpush1.bf16.msra.mxu1 %v5527_v9  ;;  %v5619_v8 = vld [vmem:[%s7770_s1 + $0xba8] ss:$16 sps:$4 sm:$0xff]   ;;  %v5624_v9 = vld [vmem:[%s7770_s1 + $0xbc4] ss:$16 sps:$4 sm:$0xff]  }
 0x13c   :  { %3735 = vmatprep.subr.bf16.mxu0 %v5532_v10  ;;  %4104 = vmatprep.subr.bf16.mxu1 %v5535_v12  ;;  %v5627_v10 = vld [vmem:[%s7770_s1 + $0xbcc] ss:$16 sps:$4 sm:$0xff]   ;;  %v5622_v12 = vld [vmem:[%s7770_s1 + $0xbc0] ss:$16 sps:$4 sm:$0xff]  }
 0x13f   :  { %3736 = vmatpush1.bf16.msra.mxu0 %v5530_v13  ;;  %4105 = vmatpush1.bf16.msra.mxu1 %v5533_v15  ;;  %v5625_v13 = vld [vmem:[%s7770_s1 + $0xbc8] ss:$16 sps:$4 sm:$0xff]   ;;  %v5630_v15 = vld [vmem:[%s7770_s1 + $0xbe4] ss:$16 sps:$4 sm:$0xff]  }
 0x140   :  { %3746 = vmatprep.subr.bf16.mxu0 %v5540_v11  ;;  %4115 = vmatprep.subr.bf16.mxu1 %v5543_v17  ;;  %v5633_v11 = vld [vmem:[%s7770_s1 + $0xbec] ss:$16 sps:$4 sm:$0xff]   ;;  %v5628_v17 = vld [vmem:[%s7770_s1 + $0xbe0] ss:$16 sps:$4 sm:$0xff]  }
 0x142   :  { %3738 = vmatmul.mubr.bf16.vlgmr.msra.gmra.mrb[0].mxu0 %v4393_v14  ;;  %4107 = vmatmul.mubr.bf16.vlgmr.msra.gmra.mrb[0].mxu1 %v4393_v14  ;;  %v5631_v14 = vld [vmem:[%s7770_s1 + $0xbe8] ss:$16 sps:$4 sm:$0xff]  }
 0x143   :  { %3747 = vmatpush1.bf16.msra.mxu0 %v5538_v19  ;;  %4116 = vmatpush1.bf16.msra.mxu1 %v5541_v20  ;;  %v5638_v19 = vld [vmem:[%s7770_s1 + $0xc04] ss:$16 sps:$4 sm:$0xff]   ;;  %v5641_v20 = vld [vmem:[%s7770_s1 + $0xc0c] ss:$16 sps:$4 sm:$0xff]  }
 0x144   :  { %3748 = vmatprep.subr.bf16.mxu0 %v5546_v21  ;;  %4117 = vmatprep.subr.bf16.mxu1 %v5549_v16  ;;  %v4395_v21 = vcombine.low %v6957_v18, %v6957_v18  ;;  %v7160_v16 = vld [vmem:[%s7771_s0 + $0x30] sm:$0xff] }
 0x145   :  { %3778 = vmatprep.mubr.bf16.mxu0 %v4396_v22  ;;  %4147 = vmatprep.mubr.bf16.mxu1 %v4396_v22  ;;  %v5636_v22 = vld [vmem:[%s7770_s1 + $0xc00] ss:$16 sps:$4 sm:$0xff]   ;;  %v5644_v18 = vld [vmem:[%s7770_s1 + $0xc24] ss:$16 sps:$4 sm:$0xff]  }
 0x147   :  { %3749 = vmatpush1.bf16.msra.mxu0 %v5544_v23  ;;  %4118 = vmatpush1.bf16.msra.mxu1 %v5547_v24  ;;  %v5639_v23 = vld [vmem:[%s7770_s1 + $0xc08] ss:$16 sps:$4 sm:$0xff]   ;;  %v5647_v24 = vld [vmem:[%s7770_s1 + $0xc2c] ss:$16 sps:$4 sm:$0xff]  }
 0x148   :  { %3750 = vmatprep.subr.bf16.mxu0 %v5552_v25  ;;  %4119 = vmatprep.subr.bf16.mxu1 %v5555_v26  ;;  %v4398_v25 = vcombine.high %v7160_v16, %v7160_v16  ;;  %v5642_v26 = vld [vmem:[%s7770_s1 + $0xc20] ss:$16 sps:$4 sm:$0xff]  }
 0x14b   :  { %3751 = vmatpush1.bf16.msra.mxu0 %v5550_v27  ;;  %4120 = vmatpush1.bf16.msra.mxu1 %v5553_v28  ;;  %v5645_v27 = vld [vmem:[%s7770_s1 + $0xc28] ss:$16 sps:$4 sm:$0xff]   ;;  %v5650_v28 = vld [vmem:[%s7770_s1 + $0xc44] ss:$16 sps:$4 sm:$0xff]  }
 0x14c   :  { %3752 = vmatprep.subr.bf16.mxu0 %v5558_v29  ;;  %4121 = vmatprep.subr.bf16.mxu1 %v5561_v30  ;;  %v5653_v29 = vld [vmem:[%s7770_s1 + $0xc4c] ss:$16 sps:$4 sm:$0xff]   ;;  %v5648_v30 = vld [vmem:[%s7770_s1 + $0xc40] ss:$16 sps:$4 sm:$0xff]  }
 0x14f   :  { %3753 = vmatpush1.bf16.msra.mxu0 %v5556_v31  ;;  %4122 = vmatpush1.bf16.msra.mxu1 %v5559_v32  ;;  %v5651_v31 = vld [vmem:[%s7770_s1 + $0xc48] ss:$16 sps:$4 sm:$0xff]   ;;  %v5656_v32 = vld [vmem:[%s7770_s1 + $0xc64] ss:$16 sps:$4 sm:$0xff]  }
 0x150   :  { %3754 = vmatprep.subr.bf16.mxu0 %v5564_v33  ;;  %4123 = vmatprep.subr.bf16.mxu1 %v5567_v34  ;;  %v5659_v33 = vld [vmem:[%s7770_s1 + $0xc6c] ss:$16 sps:$4 sm:$0xff]   ;;  %v5654_v34 = vld [vmem:[%s7770_s1 + $0xc60] ss:$16 sps:$4 sm:$0xff]  }
 0x153   :  { %3755 = vmatpush1.bf16.msra.mxu0 %v5562_v35  ;;  %4124 = vmatpush1.bf16.msra.mxu1 %v5565_v36  ;;  %v5657_v35 = vld [vmem:[%s7770_s1 + $0xc68] ss:$16 sps:$4 sm:$0xff]   ;;  %v5662_v36 = vld [vmem:[%s7770_s1 + $0xc84] ss:$16 sps:$4 sm:$0xff]  }
 0x154   :  { %3756 = vmatprep.subr.bf16.mxu0 %v5570_v37  ;;  %4125 = vmatprep.subr.bf16.mxu1 %v5573_v38  ;;  %v5665_v37 = vld [vmem:[%s7770_s1 + $0xc8c] ss:$16 sps:$4 sm:$0xff]   ;;  %v5660_v38 = vld [vmem:[%s7770_s1 + $0xc80] ss:$16 sps:$4 sm:$0xff]  }
 0x157   :  { %3757 = vmatpush1.bf16.msra.mxu0 %v5568_v39  ;;  %4126 = vmatpush1.bf16.msra.mxu1 %v5571_v40  ;;  %v5663_v39 = vld [vmem:[%s7770_s1 + $0xc88] ss:$16 sps:$4 sm:$0xff]   ;;  %v5668_v40 = vld [vmem:[%s7770_s1 + $0xca4] ss:$16 sps:$4 sm:$0xff]  }
 0x158   :  { %3758 = vmatprep.subr.bf16.mxu0 %v5576_v41  ;;  %4127 = vmatprep.subr.bf16.mxu1 %v5579_v42  ;;  %v5671_v41 = vld [vmem:[%s7770_s1 + $0xcac] ss:$16 sps:$4 sm:$0xff]   ;;  %v5666_v42 = vld [vmem:[%s7770_s1 + $0xca0] ss:$16 sps:$4 sm:$0xff]  }
 0x15b   :  { %3759 = vmatpush1.bf16.msra.mxu0 %v5574_v43  ;;  %4128 = vmatpush1.bf16.msra.mxu1 %v5577_v44  ;;  %v5669_v43 = vld [vmem:[%s7770_s1 + $0xca8] ss:$16 sps:$4 sm:$0xff]   ;;  %v5674_v44 = vld [vmem:[%s7770_s1 + $0xcc4] ss:$16 sps:$4 sm:$0xff]  }
 0x15c   :  { %3760 = vmatprep.subr.bf16.mxu0 %v5582_v45  ;;  %4129 = vmatprep.subr.bf16.mxu1 %v5585_v46  ;;  %v5677_v45 = vld [vmem:[%s7770_s1 + $0xccc] ss:$16 sps:$4 sm:$0xff]   ;;  %v5672_v46 = vld [vmem:[%s7770_s1 + $0xcc0] ss:$16 sps:$4 sm:$0xff]  }
 0x15f   :  { %3761 = vmatpush1.bf16.msra.mxu0 %v5580_v47  ;;  %4130 = vmatpush1.bf16.msra.mxu1 %v5583_v48  ;;  %v5675_v47 = vld [vmem:[%s7770_s1 + $0xcc8] ss:$16 sps:$4 sm:$0xff]   ;;  %v5680_v48 = vld [vmem:[%s7770_s1 + $0xce4] ss:$16 sps:$4 sm:$0xff]  }
 0x160   :  { %3762 = vmatprep.subr.bf16.mxu0 %v5588_v49  ;;  %4131 = vmatprep.subr.bf16.mxu1 %v5591_v50  ;;  %v5683_v49 = vld [vmem:[%s7770_s1 + $0xcec] ss:$16 sps:$4 sm:$0xff]   ;;  %v5678_v50 = vld [vmem:[%s7770_s1 + $0xce0] ss:$16 sps:$4 sm:$0xff]  }
 0x163   :  { %3763 = vmatpush1.bf16.msra.mxu0 %v5586_v51  ;;  %4132 = vmatpush1.bf16.msra.mxu1 %v5589_v52  ;;  %v5681_v51 = vld [vmem:[%s7770_s1 + $0xce8] ss:$16 sps:$4 sm:$0xff]   ;;  %v5686_v52 = vld [vmem:[%s7770_s1 + $0xd04] ss:$16 sps:$4 sm:$0xff]  }
 0x164   :  { %3764 = vmatprep.subr.bf16.mxu0 %v5594_v53  ;;  %4133 = vmatprep.subr.bf16.mxu1 %v5597_v54  ;;  %v5689_v53 = vld [vmem:[%s7770_s1 + $0xd0c] ss:$16 sps:$4 sm:$0xff]   ;;  %v5684_v54 = vld [vmem:[%s7770_s1 + $0xd00] ss:$16 sps:$4 sm:$0xff]  }
 0x167   :  { %3765 = vmatpush1.bf16.msra.mxu0 %v5592_v55  ;;  %4134 = vmatpush1.bf16.msra.mxu1 %v5595_v56  ;;  %v5687_v55 = vld [vmem:[%s7770_s1 + $0xd08] ss:$16 sps:$4 sm:$0xff]   ;;  %v5692_v56 = vld [vmem:[%s7770_s1 + $0xd24] ss:$16 sps:$4 sm:$0xff]  }
 0x168   :  { %3766 = vmatprep.subr.bf16.mxu0 %v5600_v57  ;;  %4135 = vmatprep.subr.bf16.mxu1 %v5603_v58  ;;  %v5695_v57 = vld [vmem:[%s7770_s1 + $0xd2c] ss:$16 sps:$4 sm:$0xff]   ;;  %v5690_v58 = vld [vmem:[%s7770_s1 + $0xd20] ss:$16 sps:$4 sm:$0xff]  }
 0x16b   :  { %3767 = vmatpush1.bf16.msra.mxu0 %v5598_v59  ;;  %4136 = vmatpush1.bf16.msra.mxu1 %v5601_v60  ;;  %v5693_v59 = vld [vmem:[%s7770_s1 + $0xd28] ss:$16 sps:$4 sm:$0xff]   ;;  %v5698_v60 = vld [vmem:[%s7770_s1 + $0xd44] ss:$16 sps:$4 sm:$0xff]  }
 0x16c   :  { %3768 = vmatprep.subr.bf16.mxu0 %v5606_v61  ;;  %4137 = vmatprep.subr.bf16.mxu1 %v5609_v62  ;;  %v5701_v61 = vld [vmem:[%s7770_s1 + $0xd4c] ss:$16 sps:$4 sm:$0xff]   ;;  %v5696_v62 = vld [vmem:[%s7770_s1 + $0xd40] ss:$16 sps:$4 sm:$0xff]  }
 0x16f   :  { %3769 = vmatpush1.bf16.msra.mxu0 %v5604_v63  ;;  %4138 = vmatpush1.bf16.msra.mxu1 %v5607_v0  ;;  %v5699_v63 = vld [vmem:[%s7770_s1 + $0xd48] ss:$16 sps:$4 sm:$0xff]   ;;  %v5704_v0 = vld [vmem:[%s7770_s1 + $0xd64] ss:$16 sps:$4 sm:$0xff]  }
 0x170   :  { %3770 = vmatprep.subr.bf16.mxu0 %v5612_v1  ;;  %4139 = vmatprep.subr.bf16.mxu1 %v5615_v2  ;;  %v5707_v1 = vld [vmem:[%s7770_s1 + $0xd6c] ss:$16 sps:$4 sm:$0xff]   ;;  %v5702_v2 = vld [vmem:[%s7770_s1 + $0xd60] ss:$16 sps:$4 sm:$0xff]  }
 0x173   :  { %3771 = vmatpush1.bf16.msra.mxu0 %v5610_v3  ;;  %4140 = vmatpush1.bf16.msra.mxu1 %v5613_v4  ;;  %v5705_v3 = vld [vmem:[%s7770_s1 + $0xd68] ss:$16 sps:$4 sm:$0xff]   ;;  %v5710_v4 = vld [vmem:[%s7770_s1 + $0xd84] ss:$16 sps:$4 sm:$0xff]  }
 0x174   :  { %3772 = vmatprep.subr.bf16.mxu0 %v5618_v5  ;;  %4141 = vmatprep.subr.bf16.mxu1 %v5621_v6  ;;  %v5713_v5 = vld [vmem:[%s7770_s1 + $0xd8c] ss:$16 sps:$4 sm:$0xff]   ;;  %v5708_v6 = vld [vmem:[%s7770_s1 + $0xd80] ss:$16 sps:$4 sm:$0xff]  }
 0x177   :  { %3773 = vmatpush1.bf16.msra.mxu0 %v5616_v7  ;;  %4142 = vmatpush1.bf16.msra.mxu1 %v5619_v8  ;;  %v5711_v7 = vld [vmem:[%s7770_s1 + $0xd88] ss:$16 sps:$4 sm:$0xff]   ;;  %v5716_v8 = vld [vmem:[%s7770_s1 + $0xda4] ss:$16 sps:$4 sm:$0xff]  }
 0x178   :  { %3774 = vmatprep.subr.bf16.mxu0 %v5624_v9  ;;  %4143 = vmatprep.subr.bf16.mxu1 %v5627_v10  ;;  %v5719_v9 = vld [vmem:[%s7770_s1 + $0xdac] ss:$16 sps:$4 sm:$0xff]   ;;  %v5714_v10 = vld [vmem:[%s7770_s1 + $0xda0] ss:$16 sps:$4 sm:$0xff]  }
 0x17b   :  { %3775 = vmatpush1.bf16.msra.mxu0 %v5622_v12  ;;  %4144 = vmatpush1.bf16.msra.mxu1 %v5625_v13  ;;  %v5717_v12 = vld [vmem:[%s7770_s1 + $0xda8] ss:$16 sps:$4 sm:$0xff]   ;;  %v5722_v13 = vld [vmem:[%s7770_s1 + $0xdc4] ss:$16 sps:$4 sm:$0xff]  }
 0x17c   :  { %3776 = vmatprep.subr.bf16.mxu0 %v5630_v15  ;;  %4145 = vmatprep.subr.bf16.mxu1 %v5633_v11  ;;  %v5725_v15 = vld [vmem:[%s7770_s1 + $0xdcc] ss:$16 sps:$4 sm:$0xff]   ;;  %v5720_v11 = vld [vmem:[%s7770_s1 + $0xdc0] ss:$16 sps:$4 sm:$0xff]  }
 0x17f   :  { %3777 = vmatpush1.bf16.msra.mxu0 %v5628_v17  ;;  %4146 = vmatpush1.bf16.msra.mxu1 %v5631_v14  ;;  %v5723_v17 = vld [vmem:[%s7770_s1 + $0xdc8] ss:$16 sps:$4 sm:$0xff]   ;;  %v5728_v14 = vld [vmem:[%s7770_s1 + $0xde4] ss:$16 sps:$4 sm:$0xff]  }
 0x180   :  { %3787 = vmatprep.subr.bf16.mxu0 %v5638_v19  ;;  %4156 = vmatprep.subr.bf16.mxu1 %v5641_v20  ;;  %v5731_v19 = vld [vmem:[%s7770_s1 + $0xdec] ss:$16 sps:$4 sm:$0xff]   ;;  %v5726_v20 = vld [vmem:[%s7770_s1 + $0xde0] ss:$16 sps:$4 sm:$0xff]  }
 0x182   :  { %3779 = vmatmul.mubr.bf16.vlgmr.msra.gmra.mrb[0].mxu0 %v4395_v21  ;;  %4148 = vmatmul.mubr.bf16.vlgmr.msra.gmra.mrb[0].mxu1 %v4395_v21  ;;  %v5729_v21 = vld [vmem:[%s7770_s1 + $0xde8] ss:$16 sps:$4 sm:$0xff]  }
 0x183   :  { %3788 = vmatpush1.bf16.msra.mxu0 %v5636_v22  ;;  %4157 = vmatpush1.bf16.msra.mxu1 %v5639_v23  ;;  %v5736_v22 = vld [vmem:[%s7770_s1 + $0xe04] ss:$16 sps:$4 sm:$0xff]   ;;  %v5739_v23 = vld [vmem:[%s7770_s1 + $0xe0c] ss:$16 sps:$4 sm:$0xff]  }
 0x184   :  { %3789 = vmatprep.subr.bf16.mxu0 %v5644_v18  ;;  %4158 = vmatprep.subr.bf16.mxu1 %v5647_v24  ;;  %v4397_v18 = vcombine.low %v7160_v16, %v7160_v16  ;;  %v7361_v24 = vld [vmem:[%s7771_s0 + $0x38] sm:$0xff]  ;;  %v5742_v16 = vld [vmem:[%s7770_s1 + $0xe24] ss:$16 sps:$4 sm:$0xff]  }
 0x185   :  { %3819 = vmatprep.mubr.bf16.mxu0 %v4398_v25  ;;  %4188 = vmatprep.mubr.bf16.mxu1 %v4398_v25  ;;  %v5734_v25 = vld [vmem:[%s7770_s1 + $0xe00] ss:$16 sps:$4 sm:$0xff]  }
 0x187   :  { %3790 = vmatpush1.bf16.msra.mxu0 %v5642_v26  ;;  %4159 = vmatpush1.bf16.msra.mxu1 %v5645_v27  ;;  %v5737_v26 = vld [vmem:[%s7770_s1 + $0xe08] ss:$16 sps:$4 sm:$0xff]   ;;  %v5745_v27 = vld [vmem:[%s7770_s1 + $0xe2c] ss:$16 sps:$4 sm:$0xff]  }
 0x188   :  { %3791 = vmatprep.subr.bf16.mxu0 %v5650_v28  ;;  %4160 = vmatprep.subr.bf16.mxu1 %v5653_v29  ;;  %v4400_v28 = vcombine.high %v7361_v24, %v7361_v24  ;;  %v5740_v29 = vld [vmem:[%s7770_s1 + $0xe20] ss:$16 sps:$4 sm:$0xff]  }
 0x18b   :  { %3792 = vmatpush1.bf16.msra.mxu0 %v5648_v30  ;;  %4161 = vmatpush1.bf16.msra.mxu1 %v5651_v31  ;;  %v5743_v30 = vld [vmem:[%s7770_s1 + $0xe28] ss:$16 sps:$4 sm:$0xff]   ;;  %v5748_v31 = vld [vmem:[%s7770_s1 + $0xe44] ss:$16 sps:$4 sm:$0xff]  }
 0x18c   :  { %3793 = vmatprep.subr.bf16.mxu0 %v5656_v32  ;;  %4162 = vmatprep.subr.bf16.mxu1 %v5659_v33  ;;  %v5751_v32 = vld [vmem:[%s7770_s1 + $0xe4c] ss:$16 sps:$4 sm:$0xff]   ;;  %v5746_v33 = vld [vmem:[%s7770_s1 + $0xe40] ss:$16 sps:$4 sm:$0xff]  }
 0x18f   :  { %3794 = vmatpush1.bf16.msra.mxu0 %v5654_v34  ;;  %4163 = vmatpush1.bf16.msra.mxu1 %v5657_v35  ;;  %v5749_v34 = vld [vmem:[%s7770_s1 + $0xe48] ss:$16 sps:$4 sm:$0xff]   ;;  %v5754_v35 = vld [vmem:[%s7770_s1 + $0xe64] ss:$16 sps:$4 sm:$0xff]  }
 0x190   :  { %3795 = vmatprep.subr.bf16.mxu0 %v5662_v36  ;;  %4164 = vmatprep.subr.bf16.mxu1 %v5665_v37  ;;  %v5757_v36 = vld [vmem:[%s7770_s1 + $0xe6c] ss:$16 sps:$4 sm:$0xff]   ;;  %v5752_v37 = vld [vmem:[%s7770_s1 + $0xe60] ss:$16 sps:$4 sm:$0xff]  }
 0x193   :  { %3796 = vmatpush1.bf16.msra.mxu0 %v5660_v38  ;;  %4165 = vmatpush1.bf16.msra.mxu1 %v5663_v39  ;;  %v5755_v38 = vld [vmem:[%s7770_s1 + $0xe68] ss:$16 sps:$4 sm:$0xff]   ;;  %v5760_v39 = vld [vmem:[%s7770_s1 + $0xe84] ss:$16 sps:$4 sm:$0xff]  }
 0x194   :  { %3797 = vmatprep.subr.bf16.mxu0 %v5668_v40  ;;  %4166 = vmatprep.subr.bf16.mxu1 %v5671_v41  ;;  %v5763_v40 = vld [vmem:[%s7770_s1 + $0xe8c] ss:$16 sps:$4 sm:$0xff]   ;;  %v5758_v41 = vld [vmem:[%s7770_s1 + $0xe80] ss:$16 sps:$4 sm:$0xff]  }
 0x197   :  { %3798 = vmatpush1.bf16.msra.mxu0 %v5666_v42  ;;  %4167 = vmatpush1.bf16.msra.mxu1 %v5669_v43  ;;  %v5761_v42 = vld [vmem:[%s7770_s1 + $0xe88] ss:$16 sps:$4 sm:$0xff]   ;;  %v5766_v43 = vld [vmem:[%s7770_s1 + $0xea4] ss:$16 sps:$4 sm:$0xff]  }
 0x198   :  { %3799 = vmatprep.subr.bf16.mxu0 %v5674_v44  ;;  %4168 = vmatprep.subr.bf16.mxu1 %v5677_v45  ;;  %v5769_v44 = vld [vmem:[%s7770_s1 + $0xeac] ss:$16 sps:$4 sm:$0xff]   ;;  %v5764_v45 = vld [vmem:[%s7770_s1 + $0xea0] ss:$16 sps:$4 sm:$0xff]  }
 0x19b   :  { %3800 = vmatpush1.bf16.msra.mxu0 %v5672_v46  ;;  %4169 = vmatpush1.bf16.msra.mxu1 %v5675_v47  ;;  %v5767_v46 = vld [vmem:[%s7770_s1 + $0xea8] ss:$16 sps:$4 sm:$0xff]   ;;  %v5772_v47 = vld [vmem:[%s7770_s1 + $0xec4] ss:$16 sps:$4 sm:$0xff]  }
 0x19c   :  { %3801 = vmatprep.subr.bf16.mxu0 %v5680_v48  ;;  %4170 = vmatprep.subr.bf16.mxu1 %v5683_v49  ;;  %v5775_v48 = vld [vmem:[%s7770_s1 + $0xecc] ss:$16 sps:$4 sm:$0xff]   ;;  %v5770_v49 = vld [vmem:[%s7770_s1 + $0xec0] ss:$16 sps:$4 sm:$0xff]  }
 0x19f   :  { %3802 = vmatpush1.bf16.msra.mxu0 %v5678_v50  ;;  %4171 = vmatpush1.bf16.msra.mxu1 %v5681_v51  ;;  %v5773_v50 = vld [vmem:[%s7770_s1 + $0xec8] ss:$16 sps:$4 sm:$0xff]   ;;  %v5778_v51 = vld [vmem:[%s7770_s1 + $0xee4] ss:$16 sps:$4 sm:$0xff]  }
 0x1a0   :  { %3803 = vmatprep.subr.bf16.mxu0 %v5686_v52  ;;  %4172 = vmatprep.subr.bf16.mxu1 %v5689_v53  ;;  %v5781_v52 = vld [vmem:[%s7770_s1 + $0xeec] ss:$16 sps:$4 sm:$0xff]   ;;  %v5776_v53 = vld [vmem:[%s7770_s1 + $0xee0] ss:$16 sps:$4 sm:$0xff]  }
 0x1a3   :  { %3804 = vmatpush1.bf16.msra.mxu0 %v5684_v54  ;;  %4173 = vmatpush1.bf16.msra.mxu1 %v5687_v55  ;;  %v5779_v54 = vld [vmem:[%s7770_s1 + $0xee8] ss:$16 sps:$4 sm:$0xff]   ;;  %v5784_v55 = vld [vmem:[%s7770_s1 + $0xf04] ss:$16 sps:$4 sm:$0xff]  }
 0x1a4   :  { %3805 = vmatprep.subr.bf16.mxu0 %v5692_v56  ;;  %4174 = vmatprep.subr.bf16.mxu1 %v5695_v57  ;;  %v5787_v56 = vld [vmem:[%s7770_s1 + $0xf0c] ss:$16 sps:$4 sm:$0xff]   ;;  %v5782_v57 = vld [vmem:[%s7770_s1 + $0xf00] ss:$16 sps:$4 sm:$0xff]  }
 0x1a7   :  { %3806 = vmatpush1.bf16.msra.mxu0 %v5690_v58  ;;  %4175 = vmatpush1.bf16.msra.mxu1 %v5693_v59  ;;  %v5785_v58 = vld [vmem:[%s7770_s1 + $0xf08] ss:$16 sps:$4 sm:$0xff]   ;;  %v5790_v59 = vld [vmem:[%s7770_s1 + $0xf24] ss:$16 sps:$4 sm:$0xff]  }
 0x1a8   :  { %3807 = vmatprep.subr.bf16.mxu0 %v5698_v60  ;;  %4176 = vmatprep.subr.bf16.mxu1 %v5701_v61  ;;  %v5793_v60 = vld [vmem:[%s7770_s1 + $0xf2c] ss:$16 sps:$4 sm:$0xff]   ;;  %v5788_v61 = vld [vmem:[%s7770_s1 + $0xf20] ss:$16 sps:$4 sm:$0xff]  }
 0x1ab   :  { %3808 = vmatpush1.bf16.msra.mxu0 %v5696_v62  ;;  %4177 = vmatpush1.bf16.msra.mxu1 %v5699_v63  ;;  %v5791_v62 = vld [vmem:[%s7770_s1 + $0xf28] ss:$16 sps:$4 sm:$0xff]   ;;  %v5796_v63 = vld [vmem:[%s7770_s1 + $0xf44] ss:$16 sps:$4 sm:$0xff]  }
 0x1ac   :  { %3809 = vmatprep.subr.bf16.mxu0 %v5704_v0  ;;  %4178 = vmatprep.subr.bf16.mxu1 %v5707_v1  ;;  %v5799_v0 = vld [vmem:[%s7770_s1 + $0xf4c] ss:$16 sps:$4 sm:$0xff]   ;;  %v5794_v1 = vld [vmem:[%s7770_s1 + $0xf40] ss:$16 sps:$4 sm:$0xff]  }
 0x1af   :  { %3810 = vmatpush1.bf16.msra.mxu0 %v5702_v2  ;;  %4179 = vmatpush1.bf16.msra.mxu1 %v5705_v3  ;;  %v5797_v2 = vld [vmem:[%s7770_s1 + $0xf48] ss:$16 sps:$4 sm:$0xff]   ;;  %v5802_v3 = vld [vmem:[%s7770_s1 + $0xf64] ss:$16 sps:$4 sm:$0xff]  }
 0x1b0   :  { %3811 = vmatprep.subr.bf16.mxu0 %v5710_v4  ;;  %4180 = vmatprep.subr.bf16.mxu1 %v5713_v5  ;;  %v5805_v4 = vld [vmem:[%s7770_s1 + $0xf6c] ss:$16 sps:$4 sm:$0xff]   ;;  %v5800_v5 = vld [vmem:[%s7770_s1 + $0xf60] ss:$16 sps:$4 sm:$0xff]  }
 0x1b3   :  { %3812 = vmatpush1.bf16.msra.mxu0 %v5708_v6  ;;  %4181 = vmatpush1.bf16.msra.mxu1 %v5711_v7  ;;  %v5803_v6 = vld [vmem:[%s7770_s1 + $0xf68] ss:$16 sps:$4 sm:$0xff]   ;;  %v5808_v7 = vld [vmem:[%s7770_s1 + $0xf84] ss:$16 sps:$4 sm:$0xff]  }
 0x1b4   :  { %3813 = vmatprep.subr.bf16.mxu0 %v5716_v8  ;;  %4182 = vmatprep.subr.bf16.mxu1 %v5719_v9  ;;  %v5811_v8 = vld [vmem:[%s7770_s1 + $0xf8c] ss:$16 sps:$4 sm:$0xff]   ;;  %v5806_v9 = vld [vmem:[%s7770_s1 + $0xf80] ss:$16 sps:$4 sm:$0xff]  }
 0x1b7   :  { %3814 = vmatpush1.bf16.msra.mxu0 %v5714_v10  ;;  %4183 = vmatpush1.bf16.msra.mxu1 %v5717_v12  ;;  %v5809_v10 = vld [vmem:[%s7770_s1 + $0xf88] ss:$16 sps:$4 sm:$0xff]   ;;  %v5814_v12 = vld [vmem:[%s7770_s1 + $0xfa4] ss:$16 sps:$4 sm:$0xff]  }
 0x1b8   :  { %3815 = vmatprep.subr.bf16.mxu0 %v5722_v13  ;;  %4184 = vmatprep.subr.bf16.mxu1 %v5725_v15  ;;  %v5817_v13 = vld [vmem:[%s7770_s1 + $0xfac] ss:$16 sps:$4 sm:$0xff]   ;;  %v5812_v15 = vld [vmem:[%s7770_s1 + $0xfa0] ss:$16 sps:$4 sm:$0xff]  }
 0x1bb   :  { %3816 = vmatpush1.bf16.msra.mxu0 %v5720_v11  ;;  %4185 = vmatpush1.bf16.msra.mxu1 %v5723_v17  ;;  %v5815_v11 = vld [vmem:[%s7770_s1 + $0xfa8] ss:$16 sps:$4 sm:$0xff]   ;;  %v5820_v17 = vld [vmem:[%s7770_s1 + $0xfc4] ss:$16 sps:$4 sm:$0xff]  }
 0x1bc   :  { %3817 = vmatprep.subr.bf16.mxu0 %v5728_v14  ;;  %4186 = vmatprep.subr.bf16.mxu1 %v5731_v19  ;;  %v5823_v14 = vld [vmem:[%s7770_s1 + $0xfcc] ss:$16 sps:$4 sm:$0xff]   ;;  %v5818_v19 = vld [vmem:[%s7770_s1 + $0xfc0] ss:$16 sps:$4 sm:$0xff]  }
 0x1bf   :  { %3818 = vmatpush1.bf16.msra.mxu0 %v5726_v20  ;;  %4187 = vmatpush1.bf16.msra.mxu1 %v5729_v21  ;;  %v5821_v20 = vld [vmem:[%s7770_s1 + $0xfc8] ss:$16 sps:$4 sm:$0xff]   ;;  %v5826_v21 = vld [vmem:[%s7770_s1 + $0xfe4] ss:$16 sps:$4 sm:$0xff]  }
 0x1c0   :  { %3828 = vmatprep.subr.bf16.mxu0 %v5736_v22  ;;  %4197 = vmatprep.subr.bf16.mxu1 %v5739_v23  ;;  %v5829_v22 = vld [vmem:[%s7770_s1 + $0xfec] ss:$16 sps:$4 sm:$0xff]   ;;  %v5824_v23 = vld [vmem:[%s7770_s1 + $0xfe0] ss:$16 sps:$4 sm:$0xff]  }
 0x1c2   :  { %3820 = vmatmul.mubr.bf16.vlgmr.msra.gmra.mrb[0].mxu0 %v4397_v18  ;;  %4189 = vmatmul.mubr.bf16.vlgmr.msra.gmra.mrb[0].mxu1 %v4397_v18  ;;  %v5827_v18 = vld [vmem:[%s7770_s1 + $0xfe8] ss:$16 sps:$4 sm:$0xff]  }
 0x1c3   :  { %3829 = vmatpush1.bf16.msra.mxu0 %v5734_v25  ;;  %4198 = vmatpush1.bf16.msra.mxu1 %v5737_v26  ;;  %v5834_v25 = vld [vmem:[%s7770_s1 + $0x1004] ss:$16 sps:$4 sm:$0xff]   ;;  %v5837_v26 = vld [vmem:[%s7770_s1 + $0x100c] ss:$16 sps:$4 sm:$0xff]  }
 0x1c4   :  { %3830 = vmatprep.subr.bf16.mxu0 %v5742_v16  ;;  %4199 = vmatprep.subr.bf16.mxu1 %v5745_v27  ;;  %v4399_v16 = vcombine.low %v7361_v24, %v7361_v24  ;;  %v7562_v27 = vld [vmem:[%s7771_s0 + $0x40] sm:$0xff] }
 0x1c5   :  { %3860 = vmatprep.mubr.bf16.mxu0 %v4400_v28  ;;  %4229 = vmatprep.mubr.bf16.mxu1 %v4400_v28  ;;  %v5832_v28 = vld [vmem:[%s7770_s1 + $0x1000] ss:$16 sps:$4 sm:$0xff]   ;;  %v5840_v24 = vld [vmem:[%s7770_s1 + $0x1024] ss:$16 sps:$4 sm:$0xff]  }
 0x1c7   :  { %3831 = vmatpush1.bf16.msra.mxu0 %v5740_v29  ;;  %4200 = vmatpush1.bf16.msra.mxu1 %v5743_v30  ;;  %v5835_v29 = vld [vmem:[%s7770_s1 + $0x1008] ss:$16 sps:$4 sm:$0xff]   ;;  %v5843_v30 = vld [vmem:[%s7770_s1 + $0x102c] ss:$16 sps:$4 sm:$0xff]  }
 0x1c8   :  { %3832 = vmatprep.subr.bf16.mxu0 %v5748_v31  ;;  %4201 = vmatprep.subr.bf16.mxu1 %v5751_v32  ;;  %v4402_v31 = vcombine.high %v7562_v27, %v7562_v27  ;;  %v5838_v32 = vld [vmem:[%s7770_s1 + $0x1020] ss:$16 sps:$4 sm:$0xff]  }
 0x1cb   :  { %3833 = vmatpush1.bf16.msra.mxu0 %v5746_v33  ;;  %4202 = vmatpush1.bf16.msra.mxu1 %v5749_v34  ;;  %v5841_v33 = vld [vmem:[%s7770_s1 + $0x1028] ss:$16 sps:$4 sm:$0xff]   ;;  %v5846_v34 = vld [vmem:[%s7770_s1 + $0x1044] ss:$16 sps:$4 sm:$0xff]  }
 0x1cc   :  { %3834 = vmatprep.subr.bf16.mxu0 %v5754_v35  ;;  %4203 = vmatprep.subr.bf16.mxu1 %v5757_v36  ;;  %v5849_v35 = vld [vmem:[%s7770_s1 + $0x104c] ss:$16 sps:$4 sm:$0xff]   ;;  %v5844_v36 = vld [vmem:[%s7770_s1 + $0x1040] ss:$16 sps:$4 sm:$0xff]  }
 0x1cf   :  { %3835 = vmatpush1.bf16.msra.mxu0 %v5752_v37  ;;  %4204 = vmatpush1.bf16.msra.mxu1 %v5755_v38  ;;  %v5847_v37 = vld [vmem:[%s7770_s1 + $0x1048] ss:$16 sps:$4 sm:$0xff]   ;;  %v5852_v38 = vld [vmem:[%s7770_s1 + $0x1064] ss:$16 sps:$4 sm:$0xff]  }
 0x1d0   :  { %3836 = vmatprep.subr.bf16.mxu0 %v5760_v39  ;;  %4205 = vmatprep.subr.bf16.mxu1 %v5763_v40  ;;  %v5855_v39 = vld [vmem:[%s7770_s1 + $0x106c] ss:$16 sps:$4 sm:$0xff]   ;;  %v5850_v40 = vld [vmem:[%s7770_s1 + $0x1060] ss:$16 sps:$4 sm:$0xff]  }
 0x1d3   :  { %3837 = vmatpush1.bf16.msra.mxu0 %v5758_v41  ;;  %4206 = vmatpush1.bf16.msra.mxu1 %v5761_v42  ;;  %v5853_v41 = vld [vmem:[%s7770_s1 + $0x1068] ss:$16 sps:$4 sm:$0xff]   ;;  %v5858_v42 = vld [vmem:[%s7770_s1 + $0x1084] ss:$16 sps:$4 sm:$0xff]  }
 0x1d4   :  { %3838 = vmatprep.subr.bf16.mxu0 %v5766_v43  ;;  %4207 = vmatprep.subr.bf16.mxu1 %v5769_v44  ;;  %v5861_v43 = vld [vmem:[%s7770_s1 + $0x108c] ss:$16 sps:$4 sm:$0xff]   ;;  %v5856_v44 = vld [vmem:[%s7770_s1 + $0x1080] ss:$16 sps:$4 sm:$0xff]  }
 0x1d7   :  { %3839 = vmatpush1.bf16.msra.mxu0 %v5764_v45  ;;  %4208 = vmatpush1.bf16.msra.mxu1 %v5767_v46  ;;  %v5859_v45 = vld [vmem:[%s7770_s1 + $0x1088] ss:$16 sps:$4 sm:$0xff]   ;;  %v5864_v46 = vld [vmem:[%s7770_s1 + $0x10a4] ss:$16 sps:$4 sm:$0xff]  }
 0x1d8   :  { %3840 = vmatprep.subr.bf16.mxu0 %v5772_v47  ;;  %4209 = vmatprep.subr.bf16.mxu1 %v5775_v48  ;;  %v5867_v47 = vld [vmem:[%s7770_s1 + $0x10ac] ss:$16 sps:$4 sm:$0xff]   ;;  %v5862_v48 = vld [vmem:[%s7770_s1 + $0x10a0] ss:$16 sps:$4 sm:$0xff]  }
 0x1db   :  { %3841 = vmatpush1.bf16.msra.mxu0 %v5770_v49  ;;  %4210 = vmatpush1.bf16.msra.mxu1 %v5773_v50  ;;  %v5865_v49 = vld [vmem:[%s7770_s1 + $0x10a8] ss:$16 sps:$4 sm:$0xff]   ;;  %v5870_v50 = vld [vmem:[%s7770_s1 + $0x10c4] ss:$16 sps:$4 sm:$0xff]  }
 0x1dc   :  { %3842 = vmatprep.subr.bf16.mxu0 %v5778_v51  ;;  %4211 = vmatprep.subr.bf16.mxu1 %v5781_v52  ;;  %v5873_v51 = vld [vmem:[%s7770_s1 + $0x10cc] ss:$16 sps:$4 sm:$0xff]   ;;  %v5868_v52 = vld [vmem:[%s7770_s1 + $0x10c0] ss:$16 sps:$4 sm:$0xff]  }
 0x1df   :  { %3843 = vmatpush1.bf16.msra.mxu0 %v5776_v53  ;;  %4212 = vmatpush1.bf16.msra.mxu1 %v5779_v54  ;;  %v5871_v53 = vld [vmem:[%s7770_s1 + $0x10c8] ss:$16 sps:$4 sm:$0xff]   ;;  %v5876_v54 = vld [vmem:[%s7770_s1 + $0x10e4] ss:$16 sps:$4 sm:$0xff]  }
 0x1e0   :  { %3844 = vmatprep.subr.bf16.mxu0 %v5784_v55  ;;  %4213 = vmatprep.subr.bf16.mxu1 %v5787_v56  ;;  %v5879_v55 = vld [vmem:[%s7770_s1 + $0x10ec] ss:$16 sps:$4 sm:$0xff]   ;;  %v5874_v56 = vld [vmem:[%s7770_s1 + $0x10e0] ss:$16 sps:$4 sm:$0xff]  }
 0x1e3   :  { %3845 = vmatpush1.bf16.msra.mxu0 %v5782_v57  ;;  %4214 = vmatpush1.bf16.msra.mxu1 %v5785_v58  ;;  %v5877_v57 = vld [vmem:[%s7770_s1 + $0x10e8] ss:$16 sps:$4 sm:$0xff]   ;;  %v5882_v58 = vld [vmem:[%s7770_s1 + $0x1104] ss:$16 sps:$4 sm:$0xff]  }
 0x1e4   :  { %3846 = vmatprep.subr.bf16.mxu0 %v5790_v59  ;;  %4215 = vmatprep.subr.bf16.mxu1 %v5793_v60  ;;  %v5885_v59 = vld [vmem:[%s7770_s1 + $0x110c] ss:$16 sps:$4 sm:$0xff]   ;;  %v5880_v60 = vld [vmem:[%s7770_s1 + $0x1100] ss:$16 sps:$4 sm:$0xff]  }
 0x1e7   :  { %3847 = vmatpush1.bf16.msra.mxu0 %v5788_v61  ;;  %4216 = vmatpush1.bf16.msra.mxu1 %v5791_v62  ;;  %v5883_v61 = vld [vmem:[%s7770_s1 + $0x1108] ss:$16 sps:$4 sm:$0xff]   ;;  %v5888_v62 = vld [vmem:[%s7770_s1 + $0x1124] ss:$16 sps:$4 sm:$0xff]  }
 0x1e8   :  { %3848 = vmatprep.subr.bf16.mxu0 %v5796_v63  ;;  %4217 = vmatprep.subr.bf16.mxu1 %v5799_v0  ;;  %v5891_v63 = vld [vmem:[%s7770_s1 + $0x112c] ss:$16 sps:$4 sm:$0xff]   ;;  %v5886_v0 = vld [vmem:[%s7770_s1 + $0x1120] ss:$16 sps:$4 sm:$0xff]  }
 0x1eb   :  { %3849 = vmatpush1.bf16.msra.mxu0 %v5794_v1  ;;  %4218 = vmatpush1.bf16.msra.mxu1 %v5797_v2  ;;  %v5889_v1 = vld [vmem:[%s7770_s1 + $0x1128] ss:$16 sps:$4 sm:$0xff]   ;;  %v5894_v2 = vld [vmem:[%s7770_s1 + $0x1144] ss:$16 sps:$4 sm:$0xff]  }
 0x1ec   :  { %3850 = vmatprep.subr.bf16.mxu0 %v5802_v3  ;;  %4219 = vmatprep.subr.bf16.mxu1 %v5805_v4  ;;  %v5897_v3 = vld [vmem:[%s7770_s1 + $0x114c] ss:$16 sps:$4 sm:$0xff]   ;;  %v5892_v4 = vld [vmem:[%s7770_s1 + $0x1140] ss:$16 sps:$4 sm:$0xff]  }
 0x1ef   :  { %3851 = vmatpush1.bf16.msra.mxu0 %v5800_v5  ;;  %4220 = vmatpush1.bf16.msra.mxu1 %v5803_v6  ;;  %v5895_v5 = vld [vmem:[%s7770_s1 + $0x1148] ss:$16 sps:$4 sm:$0xff]   ;;  %v5900_v6 = vld [vmem:[%s7770_s1 + $0x1164] ss:$16 sps:$4 sm:$0xff]  }
 0x1f0   :  { %3852 = vmatprep.subr.bf16.mxu0 %v5808_v7  ;;  %4221 = vmatprep.subr.bf16.mxu1 %v5811_v8  ;;  %v5903_v7 = vld [vmem:[%s7770_s1 + $0x116c] ss:$16 sps:$4 sm:$0xff]   ;;  %v5898_v8 = vld [vmem:[%s7770_s1 + $0x1160] ss:$16 sps:$4 sm:$0xff]  }
 0x1f3   :  { %3853 = vmatpush1.bf16.msra.mxu0 %v5806_v9  ;;  %4222 = vmatpush1.bf16.msra.mxu1 %v5809_v10  ;;  %v5901_v9 = vld [vmem:[%s7770_s1 + $0x1168] ss:$16 sps:$4 sm:$0xff]   ;;  %v5906_v10 = vld [vmem:[%s7770_s1 + $0x1184] ss:$16 sps:$4 sm:$0xff]  }
 0x1f4   :  { %3854 = vmatprep.subr.bf16.mxu0 %v5814_v12  ;;  %4223 = vmatprep.subr.bf16.mxu1 %v5817_v13  ;;  %v5909_v12 = vld [vmem:[%s7770_s1 + $0x118c] ss:$16 sps:$4 sm:$0xff]   ;;  %v5904_v13 = vld [vmem:[%s7770_s1 + $0x1180] ss:$16 sps:$4 sm:$0xff]  }
 0x1f7   :  { %3855 = vmatpush1.bf16.msra.mxu0 %v5812_v15  ;;  %4224 = vmatpush1.bf16.msra.mxu1 %v5815_v11  ;;  %v5907_v15 = vld [vmem:[%s7770_s1 + $0x1188] ss:$16 sps:$4 sm:$0xff]   ;;  %v5912_v11 = vld [vmem:[%s7770_s1 + $0x11a4] ss:$16 sps:$4 sm:$0xff]  }
 0x1f8   :  { %3856 = vmatprep.subr.bf16.mxu0 %v5820_v17  ;;  %4225 = vmatprep.subr.bf16.mxu1 %v5823_v14  ;;  %v5915_v17 = vld [vmem:[%s7770_s1 + $0x11ac] ss:$16 sps:$4 sm:$0xff]   ;;  %v5910_v14 = vld [vmem:[%s7770_s1 + $0x11a0] ss:$16 sps:$4 sm:$0xff]  }
 0x1fb   :  { %3857 = vmatpush1.bf16.msra.mxu0 %v5818_v19  ;;  %4226 = vmatpush1.bf16.msra.mxu1 %v5821_v20  ;;  %v5913_v19 = vld [vmem:[%s7770_s1 + $0x11a8] ss:$16 sps:$4 sm:$0xff]   ;;  %v5918_v20 = vld [vmem:[%s7770_s1 + $0x11c4] ss:$16 sps:$4 sm:$0xff]  }
 0x1fc   :  { %3858 = vmatprep.subr.bf16.mxu0 %v5826_v21  ;;  %4227 = vmatprep.subr.bf16.mxu1 %v5829_v22  ;;  %v5921_v21 = vld [vmem:[%s7770_s1 + $0x11cc] ss:$16 sps:$4 sm:$0xff]   ;;  %v5916_v22 = vld [vmem:[%s7770_s1 + $0x11c0] ss:$16 sps:$4 sm:$0xff]  }
 0x1ff   :  { %3859 = vmatpush1.bf16.msra.mxu0 %v5824_v23  ;;  %4228 = vmatpush1.bf16.msra.mxu1 %v5827_v18  ;;  %v5919_v23 = vld [vmem:[%s7770_s1 + $0x11c8] ss:$16 sps:$4 sm:$0xff]   ;;  %v5924_v18 = vld [vmem:[%s7770_s1 + $0x11e4] ss:$16 sps:$4 sm:$0xff]  }
 0x200   :  { %3869 = vmatprep.subr.bf16.mxu0 %v5834_v25  ;;  %4238 = vmatprep.subr.bf16.mxu1 %v5837_v26  ;;  %v5927_v25 = vld [vmem:[%s7770_s1 + $0x11ec] ss:$16 sps:$4 sm:$0xff]   ;;  %v5922_v26 = vld [vmem:[%s7770_s1 + $0x11e0] ss:$16 sps:$4 sm:$0xff]  }
 0x202   :  { %3861 = vmatmul.mubr.bf16.vlgmr.msra.gmra.mrb[0].mxu0 %v4399_v16  ;;  %4230 = vmatmul.mubr.bf16.vlgmr.msra.gmra.mrb[0].mxu1 %v4399_v16  ;;  %v5925_v16 = vld [vmem:[%s7770_s1 + $0x11e8] ss:$16 sps:$4 sm:$0xff]  }
 0x203   :  { %3870 = vmatpush1.bf16.msra.mxu0 %v5832_v28  ;;  %4239 = vmatpush1.bf16.msra.mxu1 %v5835_v29  ;;  %v4401_v28 = vcombine.low %v7562_v27, %v7562_v27 }
 0x204   :  { %3871 = vmatprep.subr.bf16.mxu0 %v5840_v24  ;;  %4240 = vmatprep.subr.bf16.mxu1 %v5843_v30  ;;  %v5930_v30 = vmov 1983009808  }
 0x205   :  { %3901 = vmatprep.mubr.bf16.mxu0 %v4402_v31  ;;  %4270 = vmatprep.mubr.bf16.mxu1 %v4402_v31  ;;  %v7754_v31 = vunpack.c.l.s4 %v5930_v30 }
 0x207   :  { %3872 = vmatpush1.bf16.msra.mxu0 %v5838_v32  ;;  %4241 = vmatpush1.bf16.msra.mxu1 %v5841_v33  ;;  %v4363_v32 = vlaneseq }
 0x208   :  { %3873 = vmatprep.subr.bf16.mxu0 %v5846_v34  ;;  %4242 = vmatprep.subr.bf16.mxu1 %v5849_v35 }
 0x20b   :  { %3874 = vmatpush1.bf16.msra.mxu0 %v5844_v36  ;;  %4243 = vmatpush1.bf16.msra.mxu1 %v5847_v37 }
 0x20c   :  { %3875 = vmatprep.subr.bf16.mxu0 %v5852_v38  ;;  %4244 = vmatprep.subr.bf16.mxu1 %v5855_v39 }
 0x20f   :  { %3876 = vmatpush1.bf16.msra.mxu0 %v5850_v40  ;;  %4245 = vmatpush1.bf16.msra.mxu1 %v5853_v41 }
 0x210   :  { %3877 = vmatprep.subr.bf16.mxu0 %v5858_v42  ;;  %4246 = vmatprep.subr.bf16.mxu1 %v5861_v43 }
 0x213   :  { %3878 = vmatpush1.bf16.msra.mxu0 %v5856_v44  ;;  %4247 = vmatpush1.bf16.msra.mxu1 %v5859_v45 }
 0x214   :  { %3879 = vmatprep.subr.bf16.mxu0 %v5864_v46  ;;  %4248 = vmatprep.subr.bf16.mxu1 %v5867_v47 }
 0x217   :  { %3880 = vmatpush1.bf16.msra.mxu0 %v5862_v48  ;;  %4249 = vmatpush1.bf16.msra.mxu1 %v5865_v49 }
 0x218   :  { %3881 = vmatprep.subr.bf16.mxu0 %v5870_v50  ;;  %4250 = vmatprep.subr.bf16.mxu1 %v5873_v51 }
 0x21b   :  { %3882 = vmatpush1.bf16.msra.mxu0 %v5868_v52  ;;  %4251 = vmatpush1.bf16.msra.mxu1 %v5871_v53 }
 0x21c   :  { %3883 = vmatprep.subr.bf16.mxu0 %v5876_v54  ;;  %4252 = vmatprep.subr.bf16.mxu1 %v5879_v55 }
 0x21f   :  { %3884 = vmatpush1.bf16.msra.mxu0 %v5874_v56  ;;  %4253 = vmatpush1.bf16.msra.mxu1 %v5877_v57 }
 0x220   :  { %3885 = vmatprep.subr.bf16.mxu0 %v5882_v58  ;;  %4254 = vmatprep.subr.bf16.mxu1 %v5885_v59 }
 0x223   :  { %3886 = vmatpush1.bf16.msra.mxu0 %v5880_v60  ;;  %4255 = vmatpush1.bf16.msra.mxu1 %v5883_v61 }
 0x224   :  { %3887 = vmatprep.subr.bf16.mxu0 %v5888_v62  ;;  %4256 = vmatprep.subr.bf16.mxu1 %v5891_v63 }
 0x227   :  { %3888 = vmatpush1.bf16.msra.mxu0 %v5886_v0  ;;  %4257 = vmatpush1.bf16.msra.mxu1 %v5889_v1 }
 0x228   :  { %3889 = vmatprep.subr.bf16.mxu0 %v5894_v2  ;;  %4258 = vmatprep.subr.bf16.mxu1 %v5897_v3 }
 0x22b   :  { %3890 = vmatpush1.bf16.msra.mxu0 %v5892_v4  ;;  %4259 = vmatpush1.bf16.msra.mxu1 %v5895_v5 }
 0x22c   :  { %3891 = vmatprep.subr.bf16.mxu0 %v5900_v6  ;;  %4260 = vmatprep.subr.bf16.mxu1 %v5903_v7 }
 0x22f   :  { %3892 = vmatpush1.bf16.msra.mxu0 %v5898_v8  ;;  %4261 = vmatpush1.bf16.msra.mxu1 %v5901_v9 }
 0x230   :  { %3893 = vmatprep.subr.bf16.mxu0 %v5906_v10  ;;  %4262 = vmatprep.subr.bf16.mxu1 %v5909_v12 }
 0x233   :  { %3894 = vmatpush1.bf16.msra.mxu0 %v5904_v13  ;;  %4263 = vmatpush1.bf16.msra.mxu1 %v5907_v15 }
 0x234   :  { %3895 = vmatprep.subr.bf16.mxu0 %v5912_v11  ;;  %4264 = vmatprep.subr.bf16.mxu1 %v5915_v17 }
 0x237   :  { %3896 = vmatpush1.bf16.msra.mxu0 %v5910_v14  ;;  %4265 = vmatpush1.bf16.msra.mxu1 %v5913_v19  ;;  %v4362_v14 = vunpack.c.0.s8 %v7754_v31  ;;  %v4364_v19 = vshrl.u32 %v4363_v32, 7 }
 0x238   :  { %3897 = vmatprep.subr.bf16.mxu0 %v5918_v20  ;;  %4266 = vmatprep.subr.bf16.mxu1 %v5921_v21 }
 0x239   :  { %v4365_v30 = vsub.s32 %v4362_v14, %v4364_v19 }
 0x23b   :  { %3898 = vmatpush1.bf16.msra.mxu0 %v5916_v22  ;;  %4267 = vmatpush1.bf16.msra.mxu1 %v5919_v23 }
 0x23c   :  { %3899 = vmatprep.subr.bf16.mxu0 %v5924_v18  ;;  %4268 = vmatprep.subr.bf16.mxu1 %v5927_v25 }
 0x23f   :  { %3900 = vmatpush1.bf16.msra.mxu0 %v5922_v26  ;;  %4269 = vmatpush1.bf16.msra.mxu1 %v5925_v16 }
 0x242   :  { %3902 = vmatmul.mubr.bf16.vlgmr.msra.gmra.mrb[0].mxu0 %v4401_v28  ;;  %4271 = vmatmul.mubr.bf16.vlgmr.msra.gmra.mrb[0].mxu1 %v4401_v28 }
 0x315   :  { %v3903_v29 = vpop.f32.mrb[0].mxu0  ;;  %v4272_v24 = vpop.f32.mrb[0].mxu1 }
 0x316   :  { %v4297_v33 = vrot.slane %v3903_v29, 4  ;;  %v4321_v34 = vmul.f32 %v3903_v29, %v3903_v29  ;;  %v4309_v35 = vrot.slane %v4272_v24, 4  ;;  %v4323_v36 = vmul.f32 %v4272_v24, %v4272_v24  ;;  %v3905_v37 = vpop.f32.mrb[1].mxu0  ;;  %v4274_v38 = vpop.f32.mrb[1].mxu1 }
 0x317   :  { %v4981_v39 = vpack.c.bf16 %v3905_v37, %v3903_v29  ;;  %v4303_v40 = vrot.slane %v3905_v37, 4  ;;  %v4322_v41 = vmul.f32 %v3905_v37, %v3905_v37  ;;  %v4982_v27 = vpack.c.bf16 %v4274_v38, %v4272_v24  ;;  %v3907_v42 = vpop.f32.mrb[2].mxu0  ;;  %v4276_v43 = vpop.f32.mrb[2].mxu1 }
 0x318   :  { %v4298_v44 = vadd.f32 %v4297_v33, %v3903_v29  ;;  %v4325_v45 = vrot.slane %v4321_v34, 4  ;;  %v4310_v46 = vadd.f32 %v4309_v35, %v4272_v24  ;;  %v4337_v47 = vrot.slane %v4323_v36, 4  ;;  %v3908_v48 = vpop.f32.mrb[3].mxu0  ;;  %v4277_v49 = vpop.f32.mrb[3].mxu1 }
 0x319   :  { %4295 = vst [vmem:[%s7772_s2] sm:$0xff] %v4981_v39  ;;  %v4304_v50 = vadd.f32 %v4303_v40, %v3905_v37  ;;  %v4331_v51 = vrot.slane %v4322_v41, 4  ;;  %4296 = vst [vmem:[%s7772_s2 + $0x8] sm:$0xff] %v4982_v27  ;;  %v4315_v52 = vrot.slane %v4274_v38, 4  ;;  %v4324_v53 = vmul.f32 %v4274_v38, %v4274_v38 }
 0x31a   :  { %v4299_v54 = vrot.slane %v4298_v44, 2  ;;  %v4326_v55 = vadd.f32 %v4325_v45, %v4321_v34  ;;  %v4311_v56 = vrot.slane %v4310_v46, 2  ;;  %v4338_v57 = vadd.f32 %v4337_v47, %v4323_v36 }
 0x31b   :  { %v4305_v58 = vrot.slane %v4304_v50, 2  ;;  %v4332_v59 = vadd.f32 %v4331_v51, %v4322_v41  ;;  %v4316_v60 = vadd.f32 %v4315_v52, %v4274_v38  ;;  %v4343_v61 = vrot.slane %v4324_v53, 4 }
 0x31c   :  { %v4300_v62 = vadd.f32 %v4299_v54, %v4298_v44  ;;  %v4327_v63 = vrot.slane %v4326_v55, 2  ;;  %v4312_v0 = vadd.f32 %v4311_v56, %v4310_v46  ;;  %v4339_v1 = vrot.slane %v4338_v57, 2 }
 0x31d   :  { %v4306_v2 = vadd.f32 %v4305_v58, %v4304_v50  ;;  %v4333_v3 = vrot.slane %v4332_v59, 2  ;;  %v4317_v4 = vrot.slane %v4316_v60, 2  ;;  %v4344_v5 = vadd.f32 %v4343_v61, %v4324_v53 }
 0x31e   :  { %v4301_v6 = vrot.slane %v4300_v62, 1  ;;  %v4328_v7 = vadd.f32 %v4327_v63, %v4326_v55  ;;  %v4313_v8 = vrot.slane %v4312_v0, 1  ;;  %v4340_v9 = vadd.f32 %v4339_v1, %v4338_v57 }
 0x31f   :  { %v4307_v10 = vrot.slane %v4306_v2, 1  ;;  %v4334_v12 = vadd.f32 %v4333_v3, %v4332_v59  ;;  %v4318_v13 = vadd.f32 %v4317_v4, %v4316_v60  ;;  %v4345_v15 = vrot.slane %v4344_v5, 2 }
 0x320   :  { %v4329_v11 = vrot.slane %v4328_v7, 1  ;;  %v4341_v17 = vrot.slane %v4340_v9, 1  ;;  %v4302_v23 = vadd.f32 %v4301_v6, %v4300_v62  ;;  %v4314_v26 = vadd.f32 %v4313_v8, %v4312_v0 }
 0x321   :  { %v4335_v20 = vrot.slane %v4334_v12, 1  ;;  %v4319_v21 = vrot.slane %v4318_v13, 1  ;;  %v4346_v22 = vadd.f32 %v4345_v15, %v4344_v5  ;;  %v4308_v16 = vadd.f32 %v4307_v10, %v4306_v2 }
 0x322   :  { %v4330_v18 = vadd.f32 %v4329_v11, %v4328_v7  ;;  %v4342_v25 = vadd.f32 %v4341_v17, %v4340_v9 }
 0x323   :  { %v4336_v28 = vadd.f32 %v4335_v20, %v4334_v12  ;;  %v4347_v29 = vrot.slane %v4346_v22, 1  ;;  %v4320_v31 = vadd.f32 %v4319_v21, %v4318_v13 }
 0x324   :  { %v4350_v24 = vsel %vm4349_vm0, %v4302_v23, %v4330_v18  ;;  %v4352_v33 = vsel %vm4349_vm0, %v4314_v26, %v4342_v25 }
 0x325   :  { %v4351_v34 = vsel %vm4349_vm0, %v4308_v16, %v4336_v28  ;;  %v4348_v32 = vadd.f32 %v4347_v29, %v4346_v22 }
 0x326   :  { %v4358_v35 = vcombine.low %v4350_v24, %v4351_v34 }
 0x327   :  { %v4353_v36 = vsel %vm4349_vm0, %v4320_v31, %v4348_v32 }
 0x328   :  { %v4366_v37 = vrot.slane %v4358_v35, %v4365_v30  ;;  %v4359_v38 = vcombine.low %v4352_v33, %v4353_v36 }
 0x32a   :  { %v4373_v39 = vrot.slane %v4359_v38, %v4365_v30 }
 0x32c   :  { %v4374_v40 = vcombine.low %v4366_v37, %v4373_v39 }
 0x32e   :  { %4376 = vst [vmem:[%s7773_s3] sm:$0xff] %v4374_v40 }

</bundles_post_ra>
